<compile_context>
chip_gen: v5e
topology: v5e:2x2
jax: 0.10.0
libtpu: 0.0.40
codegen_flags: <defaults>
</compile_context>

<pallas_src>
import jax
import jax.numpy as jnp
from jax.experimental import pallas as pl
from jax.experimental.pallas import tpu as pltpu

T = 200
_TAPS = [(kh, kw) for kh in range(3) for kw in range(3)]


def _unet_kernel(t_ref, b4_ref, x_ref,
                 w1_ref, b1_ref, w2_ref, b2_ref, w3_ref, b3_ref, w4_ref,
                 o_ref, pad1, pad2, pad3, pad4):
    """Whole network for one batch element.

    t_ref : (B,)   f32 SMEM, already divided by T
    b4_ref: (1,1)  f32 SMEM (conv4 bias, scalar)
    x_ref : (1,H,W,1) VMEM input tile
    w1_ref: (9,16)      per-tap output-channel rows (conv1, Cin=1)
    w2_ref: (144,32)    im2col weights (conv2)
    w3_ref: (288,16)    im2col weights (conv3)
    w4_ref: (9,16)      per-tap input-channel rows (conv4, Cout=1)
    b*_ref: (1,C)       biases
    o_ref : (1,H,W)     output tile
    pad*  : zero-padded activation scratch, (H+2, W+2, C)
    """
    H = o_ref.shape[1]
    W = o_ref.shape[2]
    b = pl.program_id(0)

    def pad_into(ref, val):
        # in-kernel zero padding: zero the halo buffer, write the interior
        ref[...] = jnp.zeros_like(ref)
        ref[1:H + 1, 1:W + 1, :] = val

    def im2col(ref):
        # (H*W, 9*Cin) patch matrix from the nine shifted windows
        cin = ref.shape[2]
        cols = [ref[kh:kh + H, kw:kw + W, :] for kh, kw in _TAPS]
        return jnp.concatenate(cols, axis=-1).reshape(H * W, 9 * cin)

    # ---- fused timestep add: x + t/T (single input channel) ----
    x0 = x_ref[0] + t_ref[b]                                   # (H, W, 1)

    # ---- conv1: 1 -> 16.  Cin=1 => VPU broadcast MAC over 9 taps (no MXU) ----
    pad_into(pad1, x0)
    a1 = jnp.zeros((H, W, 16), jnp.float32)
    for k, (kh, kw) in enumerate(_TAPS):
        a1 = a1 + pad1[kh:kh + H, kw:kw + W, :] * w1_ref[k]    # (H,W,1)*(16,)
    a1 = jnp.maximum(a1 + b1_ref[0], 0.0)                      # (H, W, 16)

    # ---- conv2: 16 -> 32.  One im2col matmul, K = 144 ----
    pad_into(pad2, a1)
    a2 = jnp.dot(im2col(pad2), w2_ref[...],
                 preferred_element_type=jnp.float32)           # (H*W, 32)
    a2 = jnp.maximum(a2 + b2_ref[...], 0.0)

    # ---- conv3: 32 -> 16.  One im2col matmul, K = 288 ----
    pad_into(pad3, a2.reshape(H, W, 32))
    a3 = jnp.dot(im2col(pad3), w3_ref[...],
                 preferred_element_type=jnp.float32)           # (H*W, 16)
    a3 = jnp.maximum(a3 + b3_ref[...], 0.0)

    # ---- conv4: 16 -> 1.  Cout=1 => VPU MAC + lane reduce (no MXU) ----
    pad_into(pad4, a3.reshape(H, W, 16))
    acc = jnp.zeros((H, W, 16), jnp.float32)
    for k, (kh, kw) in enumerate(_TAPS):
        acc = acc + pad4[kh:kh + H, kw:kw + W, :] * w4_ref[k]  # (H,W,16)*(16,)
    y = jnp.sum(acc, axis=-1) + b4_ref[0, 0]                   # (H, W)

    o_ref[0] = y


def simple_unet_forward(x_nchw, t, params):
    """x_nchw: (B,1,H,W) float32, t: (B,) int -> (B,1,H,W) float32."""
    B, C, H, W = x_nchw.shape
    assert C == 1
    (w1, b1), (w2, b2), (w3, b3), (w4, b4) = params

    # C == 1: NCHW -> NHWC is a pure reshape.
    x_nhwc = x_nchw.astype(jnp.float32).reshape(B, H, W, 1)
    t_scaled = t.astype(jnp.float32) / T                       # (B,) scalars

    # im2col / per-tap weight layouts (row index = kh*3 + kw).
    w1m = w1.reshape(9, 16)           # (3,3,1,16)  -> (9,16)
    w2m = w2.reshape(9 * 16, 32)      # (3,3,16,32) -> (144,32)
    w3m = w3.reshape(9 * 32, 16)      # (3,3,32,16) -> (288,16)
    w4m = w4.reshape(9, 16)           # (3,3,16,1)  -> (9,16)

    out = pl.pallas_call(
        _unet_kernel,
        out_shape=jax.ShapeDtypeStruct((B, H, W), jnp.float32),
        grid=(B,),
        in_specs=[
            pl.BlockSpec(memory_space=pltpu.MemorySpace.SMEM),     # t/T
            pl.BlockSpec(memory_space=pltpu.MemorySpace.SMEM),     # b4 scalar
            pl.BlockSpec((1, H, W, 1), lambda i: (i, 0, 0, 0)),    # x
            pl.BlockSpec((9, 16), lambda i: (0, 0)),               # w1
            pl.BlockSpec((1, 16), lambda i: (0, 0)),               # b1
            pl.BlockSpec((9 * 16, 32), lambda i: (0, 0)),          # w2
            pl.BlockSpec((1, 32), lambda i: (0, 0)),               # b2
            pl.BlockSpec((9 * 32, 16), lambda i: (0, 0)),          # w3
            pl.BlockSpec((1, 16), lambda i: (0, 0)),               # b3
            pl.BlockSpec((9, 16), lambda i: (0, 0)),               # w4
        ],
        out_specs=pl.BlockSpec((1, H, W), lambda i: (i, 0, 0)),
        scratch_shapes=[
            pltpu.VMEM((H + 2, W + 2, 1), jnp.float32),   # padded layer-1 input
            pltpu.VMEM((H + 2, W + 2, 16), jnp.float32),  # padded conv1 output
            pltpu.VMEM((H + 2, W + 2, 32), jnp.float32),  # padded conv2 output
            pltpu.VMEM((H + 2, W + 2, 16), jnp.float32),  # padded conv3 output
        ],
        compiler_params=pltpu.CompilerParams(
            dimension_semantics=("parallel",)),
    )(t_scaled, b4.reshape(1, 1).astype(jnp.float32), x_nhwc,
      w1m, b1.reshape(1, 16), w2m, b2.reshape(1, 32),
      w3m, b3.reshape(1, 16), w4m)

    return out.reshape(B, 1, H, W)


def init_params(key):
    """Deterministic synthetic parameters matching the module's shapes (HWIO)."""
    shapes = [
        ((3, 3, 1, 16), (16,)),    # conv1
        ((3, 3, 16, 32), (32,)),   # conv2
        ((3, 3, 32, 16), (16,)),   # conv3
        ((3, 3, 16, 1), (1,)),     # conv4
    ]
    params = []
    for ws, bs in shapes:
        key, kw_, kb_ = jax.random.split(key, 3)
        w = 0.1 * jax.random.normal(kw_, ws, jnp.float32)
        b = 0.05 * jax.random.normal(kb_, bs, jnp.float32)
        params.append((w, b))
    return params


def _reference_forward(x_nchw, t, params):
    """Pure-JAX reference (lax conv) for the correctness check."""
    tb = (t.astype(jnp.float32) / T)[:, None, None, None]
    x = x_nchw.astype(jnp.float32) + tb
    dn = jax.lax.conv_dimension_numbers(x.shape, (3, 3, 1, 16),
                                        ("NCHW", "HWIO", "NCHW"))
    for li, (w, b) in enumerate(params):
        x = jax.lax.conv_general_dilated(
            x, w, window_strides=(1, 1), padding=((1, 1), (1, 1)),
            dimension_numbers=dn)
        x = x + b[None, :, None, None]
        if li < 3:
            x = jnp.maximum(x, 0.0)
    return x


if __name__ == "__main__":
    key = jax.random.PRNGKey(0)
    kx, kt, kp = jax.random.split(key, 3)

    B, H, W = 2, 16, 16
    x = jax.random.normal(kx, (B, 1, H, W), jnp.float32)        # NCHW like PyTorch
    t = jax.random.randint(kt, (B,), 0, T).astype(jnp.int32)    # per-sample timestep
    params = init_params(kp)

    fwd = jax.jit(simple_unet_forward)
    out = jax.block_until_ready(fwd(x, t, params))

    assert out.shape == (B, 1, H, W), out.shape
    assert out.dtype == jnp.float32

    ref = jax.block_until_ready(_reference_forward(x, t, params))
    max_err = float(jnp.max(jnp.abs(out - ref)))
    assert jnp.allclose(out, ref, atol=1e-5, rtol=1e-5), max_err

    print("KERNEL_OK")
</pallas_src>

<mosaic_0001>
module attributes {stable_mosaic.version = 11 : i64} {
  func.func @_unet_kernel(%arg0: i32, %arg1: memref<2xf32, #tpu.memory_space<smem>>, %arg2: memref<1x1xf32, #tpu.memory_space<smem>>, %arg3: memref<1x16x16x1xf32, #tpu.memory_space<vmem>>, %arg4: memref<9x16xf32, #tpu.memory_space<vmem>>, %arg5: memref<1x16xf32, #tpu.memory_space<vmem>>, %arg6: memref<144x32xf32, #tpu.memory_space<vmem>>, %arg7: memref<1x32xf32, #tpu.memory_space<vmem>>, %arg8: memref<288x16xf32, #tpu.memory_space<vmem>>, %arg9: memref<1x16xf32, #tpu.memory_space<vmem>>, %arg10: memref<9x16xf32, #tpu.memory_space<vmem>>, %arg11: memref<1x16x16xf32, #tpu.memory_space<vmem>>, %arg12: memref<18x18x1xf32, #tpu.memory_space<vmem>>, %arg13: memref<18x18x16xf32, #tpu.memory_space<vmem>>, %arg14: memref<18x18x32xf32, #tpu.memory_space<vmem>>, %arg15: memref<18x18x16xf32, #tpu.memory_space<vmem>>) attributes {dimension_semantics = [#tpu.dimension_semantics<parallel>], iteration_bounds = array<i64: 2>, scalar_prefetch = 0 : i64, scratch_operands = 4 : i64, tpu.core_type = #tpu.core_type<tc>, window_params = [{transform_indices = @transform_0, window_bounds = array<i64: 2>}, {transform_indices = @transform_1, window_bounds = array<i64: 1, 1>}, {transform_indices = @transform_2, window_bounds = array<i64: 1, 16, 16, 1>}, {pipeline_mode = #tpu.pipeline_mode<synchronous>, transform_indices = @transform_3, window_bounds = array<i64: 9, 16>}, {pipeline_mode = #tpu.pipeline_mode<synchronous>, transform_indices = @transform_4, window_bounds = array<i64: 1, 16>}, {pipeline_mode = #tpu.pipeline_mode<synchronous>, transform_indices = @transform_5, window_bounds = array<i64: 144, 32>}, {pipeline_mode = #tpu.pipeline_mode<synchronous>, transform_indices = @transform_6, window_bounds = array<i64: 1, 32>}, {pipeline_mode = #tpu.pipeline_mode<synchronous>, transform_indices = @transform_7, window_bounds = array<i64: 288, 16>}, {pipeline_mode = #tpu.pipeline_mode<synchronous>, transform_indices = @transform_8, window_bounds = array<i64: 1, 16>}, {pipeline_mode = #tpu.pipeline_mode<synchronous>, transform_indices = @transform_9, window_bounds = array<i64: 9, 16>}, {transform_indices = @transform_10, window_bounds = array<i64: 1, 16, 16>}]} {
    %c0 = arith.constant 0 : index
    %c0_0 = arith.constant 0 : index
    %c0_1 = arith.constant 0 : index
    %c0_2 = arith.constant 0 : index
    %0 = vector.load %arg3[%c0, %c0_0, %c0_1, %c0_2] : memref<1x16x16x1xf32, #tpu.memory_space<vmem>>, vector<1x16x16x1xf32>
    %1 = vector.shape_cast %0 : vector<1x16x16x1xf32> to vector<16x16x1xf32>
    %2 = arith.index_cast %arg0 : i32 to index
    %3 = memref.load %arg1[%2] : memref<2xf32, #tpu.memory_space<smem>>
    %4 = vector.broadcast %3 : f32 to vector<16x16x1xf32>
    %5 = arith.addf %1, %4 : vector<16x16x1xf32>
    %cst = arith.constant 0.000000e+00 : f32
    %6 = vector.broadcast %cst : f32 to vector<18x18x1xf32>
    %c0_3 = arith.constant 0 : index
    %c0_4 = arith.constant 0 : index
    %c0_5 = arith.constant 0 : index
    %7 = vector.load %arg12[%c0_3, %c0_4, %c0_5] : memref<18x18x1xf32, #tpu.memory_space<vmem>>, vector<18x18x1xf32>
    tpu.vector_store %arg12[%c0_3, %c0_4, %c0_5], %6 {strides = array<i32>} : memref<18x18x1xf32, #tpu.memory_space<vmem>>, vector<18x18x1xf32>,
    %c1 = arith.constant 1 : index
    %c1_6 = arith.constant 1 : index
    %c0_7 = arith.constant 0 : index
    %8 = vector.load %arg12[%c1, %c1_6, %c0_7] : memref<18x18x1xf32, #tpu.memory_space<vmem>>, vector<16x16x1xf32>
    tpu.vector_store %arg12[%c1, %c1_6, %c0_7], %5 {strides = array<i32>} : memref<18x18x1xf32, #tpu.memory_space<vmem>>, vector<16x16x1xf32>,
    %cst_8 = arith.constant 0.000000e+00 : f32
    %9 = vector.broadcast %cst_8 : f32 to vector<16x16x16xf32>
    %c0_9 = arith.constant 0 : index
    %c0_10 = arith.constant 0 : index
    %c0_11 = arith.constant 0 : index
    %10 = vector.load %arg12[%c0_9, %c0_10, %c0_11] : memref<18x18x1xf32, #tpu.memory_space<vmem>>, vector<16x16x1xf32>
    %c0_12 = arith.constant 0 : index
    %c0_13 = arith.constant 0 : index
    %11 = vector.load %arg4[%c0_12, %c0_13] : memref<9x16xf32, #tpu.memory_space<vmem>>, vector<1x16xf32>
    %12 = vector.shape_cast %11 : vector<1x16xf32> to vector<16xf32>
    %13 = vector.shape_cast %12 : vector<16xf32> to vector<1x1x16xf32>
    %14 = vector.broadcast %10 : vector<16x16x1xf32> to vector<16x16x16xf32>
    %15 = vector.broadcast %13 : vector<1x1x16xf32> to vector<16x16x16xf32>
    %16 = arith.mulf %14, %15 : vector<16x16x16xf32>
    %17 = arith.addf %9, %16 : vector<16x16x16xf32>
    %c0_14 = arith.constant 0 : index
    %c1_15 = arith.constant 1 : index
    %c0_16 = arith.constant 0 : index
    %18 = vector.load %arg12[%c0_14, %c1_15, %c0_16] : memref<18x18x1xf32, #tpu.memory_space<vmem>>, vector<16x16x1xf32>
    %c1_17 = arith.constant 1 : index
    %c0_18 = arith.constant 0 : index
    %19 = vector.load %arg4[%c1_17, %c0_18] : memref<9x16xf32, #tpu.memory_space<vmem>>, vector<1x16xf32>
    %20 = vector.shape_cast %19 : vector<1x16xf32> to vector<16xf32>
    %21 = vector.shape_cast %20 : vector<16xf32> to vector<1x1x16xf32>
    %22 = vector.broadcast %18 : vector<16x16x1xf32> to vector<16x16x16xf32>
    %23 = vector.broadcast %21 : vector<1x1x16xf32> to vector<16x16x16xf32>
    %24 = arith.mulf %22, %23 : vector<16x16x16xf32>
    %25 = arith.addf %17, %24 : vector<16x16x16xf32>
    %c0_19 = arith.constant 0 : index
    %c2 = arith.constant 2 : index
    %c0_20 = arith.constant 0 : index
    %26 = vector.load %arg12[%c0_19, %c2, %c0_20] : memref<18x18x1xf32, #tpu.memory_space<vmem>>, vector<16x16x1xf32>
    %c2_21 = arith.constant 2 : index
    %c0_22 = arith.constant 0 : index
    %27 = vector.load %arg4[%c2_21, %c0_22] : memref<9x16xf32, #tpu.memory_space<vmem>>, vector<1x16xf32>
    %28 = vector.shape_cast %27 : vector<1x16xf32> to vector<16xf32>
    %29 = vector.shape_cast %28 : vector<16xf32> to vector<1x1x16xf32>
    %30 = vector.broadcast %26 : vector<16x16x1xf32> to vector<16x16x16xf32>
    %31 = vector.broadcast %29 : vector<1x1x16xf32> to vector<16x16x16xf32>
    %32 = arith.mulf %30, %31 : vector<16x16x16xf32>
    %33 = arith.addf %25, %32 : vector<16x16x16xf32>
    %c1_23 = arith.constant 1 : index
    %c0_24 = arith.constant 0 : index
    %c0_25 = arith.constant 0 : index
    %34 = vector.load %arg12[%c1_23, %c0_24, %c0_25] : memref<18x18x1xf32, #tpu.memory_space<vmem>>, vector<16x16x1xf32>
    %c3 = arith.constant 3 : index
    %c0_26 = arith.constant 0 : index
    %35 = vector.load %arg4[%c3, %c0_26] : memref<9x16xf32, #tpu.memory_space<vmem>>, vector<1x16xf32>
    %36 = vector.shape_cast %35 : vector<1x16xf32> to vector<16xf32>
    %37 = vector.shape_cast %36 : vector<16xf32> to vector<1x1x16xf32>
    %38 = vector.broadcast %34 : vector<16x16x1xf32> to vector<16x16x16xf32>
    %39 = vector.broadcast %37 : vector<1x1x16xf32> to vector<16x16x16xf32>
    %40 = arith.mulf %38, %39 : vector<16x16x16xf32>
    %41 = arith.addf %33, %40 : vector<16x16x16xf32>
    %c1_27 = arith.constant 1 : index
    %c1_28 = arith.constant 1 : index
    %c0_29 = arith.constant 0 : index
    %42 = vector.load %arg12[%c1_27, %c1_28, %c0_29] : memref<18x18x1xf32, #tpu.memory_space<vmem>>, vector<16x16x1xf32>
    %c4 = arith.constant 4 : index
    %c0_30 = arith.constant 0 : index
    %43 = vector.load %arg4[%c4, %c0_30] : memref<9x16xf32, #tpu.memory_space<vmem>>, vector<1x16xf32>
    %44 = vector.shape_cast %43 : vector<1x16xf32> to vector<16xf32>
    %45 = vector.shape_cast %44 : vector<16xf32> to vector<1x1x16xf32>
    %46 = vector.broadcast %42 : vector<16x16x1xf32> to vector<16x16x16xf32>
    %47 = vector.broadcast %45 : vector<1x1x16xf32> to vector<16x16x16xf32>
    %48 = arith.mulf %46, %47 : vector<16x16x16xf32>
    %49 = arith.addf %41, %48 : vector<16x16x16xf32>
    %c1_31 = arith.constant 1 : index
    %c2_32 = arith.constant 2 : index
    %c0_33 = arith.constant 0 : index
    %50 = vector.load %arg12[%c1_31, %c2_32, %c0_33] : memref<18x18x1xf32, #tpu.memory_space<vmem>>, vector<16x16x1xf32>
    %c5 = arith.constant 5 : index
    %c0_34 = arith.constant 0 : index
    %51 = vector.load %arg4[%c5, %c0_34] : memref<9x16xf32, #tpu.memory_space<vmem>>, vector<1x16xf32>
    %52 = vector.shape_cast %51 : vector<1x16xf32> to vector<16xf32>
    %53 = vector.shape_cast %52 : vector<16xf32> to vector<1x1x16xf32>
    %54 = vector.broadcast %50 : vector<16x16x1xf32> to vector<16x16x16xf32>
    %55 = vector.broadcast %53 : vector<1x1x16xf32> to vector<16x16x16xf32>
    %56 = arith.mulf %54, %55 : vector<16x16x16xf32>
    %57 = arith.addf %49, %56 : vector<16x16x16xf32>
    %c2_35 = arith.constant 2 : index
    %c0_36 = arith.constant 0 : index
    %c0_37 = arith.constant 0 : index
    %58 = vector.load %arg12[%c2_35, %c0_36, %c0_37] : memref<18x18x1xf32, #tpu.memory_space<vmem>>, vector<16x16x1xf32>
    %c6 = arith.constant 6 : index
    %c0_38 = arith.constant 0 : index
    %59 = vector.load %arg4[%c6, %c0_38] : memref<9x16xf32, #tpu.memory_space<vmem>>, vector<1x16xf32>
    %60 = vector.shape_cast %59 : vector<1x16xf32> to vector<16xf32>
    %61 = vector.shape_cast %60 : vector<16xf32> to vector<1x1x16xf32>
    %62 = vector.broadcast %58 : vector<16x16x1xf32> to vector<16x16x16xf32>
    %63 = vector.broadcast %61 : vector<1x1x16xf32> to vector<16x16x16xf32>
    %64 = arith.mulf %62, %63 : vector<16x16x16xf32>
    %65 = arith.addf %57, %64 : vector<16x16x16xf32>
    %c2_39 = arith.constant 2 : index
    %c1_40 = arith.constant 1 : index
    %c0_41 = arith.constant 0 : index
    %66 = vector.load %arg12[%c2_39, %c1_40, %c0_41] : memref<18x18x1xf32, #tpu.memory_space<vmem>>, vector<16x16x1xf32>
    %c7 = arith.constant 7 : index
    %c0_42 = arith.constant 0 : index
    %67 = vector.load %arg4[%c7, %c0_42] : memref<9x16xf32, #tpu.memory_space<vmem>>, vector<1x16xf32>
    %68 = vector.shape_cast %67 : vector<1x16xf32> to vector<16xf32>
    %69 = vector.shape_cast %68 : vector<16xf32> to vector<1x1x16xf32>
    %70 = vector.broadcast %66 : vector<16x16x1xf32> to vector<16x16x16xf32>
    %71 = vector.broadcast %69 : vector<1x1x16xf32> to vector<16x16x16xf32>
    %72 = arith.mulf %70, %71 : vector<16x16x16xf32>
    %73 = arith.addf %65, %72 : vector<16x16x16xf32>
    %c2_43 = arith.constant 2 : index
    %c2_44 = arith.constant 2 : index
    %c0_45 = arith.constant 0 : index
    %74 = vector.load %arg12[%c2_43, %c2_44, %c0_45] : memref<18x18x1xf32, #tpu.memory_space<vmem>>, vector<16x16x1xf32>
    %c8 = arith.constant 8 : index
    %c0_46 = arith.constant 0 : index
    %75 = vector.load %arg4[%c8, %c0_46] : memref<9x16xf32, #tpu.memory_space<vmem>>, vector<1x16xf32>
    %76 = vector.shape_cast %75 : vector<1x16xf32> to vector<16xf32>
    %77 = vector.shape_cast %76 : vector<16xf32> to vector<1x1x16xf32>
    %78 = vector.broadcast %74 : vector<16x16x1xf32> to vector<16x16x16xf32>
    %79 = vector.broadcast %77 : vector<1x1x16xf32> to vector<16x16x16xf32>
    %80 = arith.mulf %78, %79 : vector<16x16x16xf32>
    %81 = arith.addf %73, %80 : vector<16x16x16xf32>
    %c0_47 = arith.constant 0 : index
    %c0_48 = arith.constant 0 : index
    %82 = vector.load %arg5[%c0_47, %c0_48] : memref<1x16xf32, #tpu.memory_space<vmem>>, vector<1x16xf32>
    %83 = vector.shape_cast %82 : vector<1x16xf32> to vector<16xf32>
    %84 = vector.shape_cast %83 : vector<16xf32> to vector<1x1x16xf32>
    %85 = vector.broadcast %84 : vector<1x1x16xf32> to vector<16x16x16xf32>
    %86 = arith.addf %81, %85 : vector<16x16x16xf32>
    %cst_49 = arith.constant 0.000000e+00 : f32
    %87 = vector.broadcast %cst_49 : f32 to vector<16x16x16xf32>
    %88 = arith.maximumf %86, %87 : vector<16x16x16xf32>
    %cst_50 = arith.constant 0.000000e+00 : f32
    %89 = vector.broadcast %cst_50 : f32 to vector<18x18x16xf32>
    %c0_51 = arith.constant 0 : index
    %c0_52 = arith.constant 0 : index
    %c0_53 = arith.constant 0 : index
    %90 = vector.load %arg13[%c0_51, %c0_52, %c0_53] : memref<18x18x16xf32, #tpu.memory_space<vmem>>, vector<18x18x16xf32>
    tpu.vector_store %arg13[%c0_51, %c0_52, %c0_53], %89 {strides = array<i32>} : memref<18x18x16xf32, #tpu.memory_space<vmem>>, vector<18x18x16xf32>,
    %c1_54 = arith.constant 1 : index
    %c1_55 = arith.constant 1 : index
    %c0_56 = arith.constant 0 : index
    %91 = vector.load %arg13[%c1_54, %c1_55, %c0_56] : memref<18x18x16xf32, #tpu.memory_space<vmem>>, vector<16x16x16xf32>
    tpu.vector_store %arg13[%c1_54, %c1_55, %c0_56], %88 {strides = array<i32>} : memref<18x18x16xf32, #tpu.memory_space<vmem>>, vector<16x16x16xf32>,
    %c0_57 = arith.constant 0 : index
    %c0_58 = arith.constant 0 : index
    %c0_59 = arith.constant 0 : index
    %92 = vector.load %arg13[%c0_57, %c0_58, %c0_59] : memref<18x18x16xf32, #tpu.memory_space<vmem>>, vector<16x16x16xf32>
    %c0_60 = arith.constant 0 : index
    %c1_61 = arith.constant 1 : index
    %c0_62 = arith.constant 0 : index
    %93 = vector.load %arg13[%c0_60, %c1_61, %c0_62] : memref<18x18x16xf32, #tpu.memory_space<vmem>>, vector<16x16x16xf32>
    %c0_63 = arith.constant 0 : index
    %c2_64 = arith.constant 2 : index
    %c0_65 = arith.constant 0 : index
    %94 = vector.load %arg13[%c0_63, %c2_64, %c0_65] : memref<18x18x16xf32, #tpu.memory_space<vmem>>, vector<16x16x16xf32>
    %c1_66 = arith.constant 1 : index
    %c0_67 = arith.constant 0 : index
    %c0_68 = arith.constant 0 : index
    %95 = vector.load %arg13[%c1_66, %c0_67, %c0_68] : memref<18x18x16xf32, #tpu.memory_space<vmem>>, vector<16x16x16xf32>
    %c1_69 = arith.constant 1 : index
    %c1_70 = arith.constant 1 : index
    %c0_71 = arith.constant 0 : index
    %96 = vector.load %arg13[%c1_69, %c1_70, %c0_71] : memref<18x18x16xf32, #tpu.memory_space<vmem>>, vector<16x16x16xf32>
    %c1_72 = arith.constant 1 : index
    %c2_73 = arith.constant 2 : index
    %c0_74 = arith.constant 0 : index
    %97 = vector.load %arg13[%c1_72, %c2_73, %c0_74] : memref<18x18x16xf32, #tpu.memory_space<vmem>>, vector<16x16x16xf32>
    %c2_75 = arith.constant 2 : index
    %c0_76 = arith.constant 0 : index
    %c0_77 = arith.constant 0 : index
    %98 = vector.load %arg13[%c2_75, %c0_76, %c0_77] : memref<18x18x16xf32, #tpu.memory_space<vmem>>, vector<16x16x16xf32>
    %c2_78 = arith.constant 2 : index
    %c1_79 = arith.constant 1 : index
    %c0_80 = arith.constant 0 : index
    %99 = vector.load %arg13[%c2_78, %c1_79, %c0_80] : memref<18x18x16xf32, #tpu.memory_space<vmem>>, vector<16x16x16xf32>
    %c2_81 = arith.constant 2 : index
    %c2_82 = arith.constant 2 : index
    %c0_83 = arith.constant 0 : index
    %100 = vector.load %arg13[%c2_81, %c2_82, %c0_83] : memref<18x18x16xf32, #tpu.memory_space<vmem>>, vector<16x16x16xf32>
    %101 = tpu.concatenate %92, %93, %94, %95, %96, %97, %98, %99, %100 in 2 : vector<16x16x16xf32>, vector<16x16x16xf32>, vector<16x16x16xf32>, vector<16x16x16xf32>, vector<16x16x16xf32>, vector<16x16x16xf32>, vector<16x16x16xf32>, vector<16x16x16xf32>, vector<16x16x16xf32> -> vector<16x16x144xf32>
    %102 = vector.shape_cast %101 : vector<16x16x144xf32> to vector<256x144xf32>
    %c0_84 = arith.constant 0 : index
    %c0_85 = arith.constant 0 : index
    %103 = vector.load %arg6[%c0_84, %c0_85] : memref<144x32xf32, #tpu.memory_space<vmem>>, vector<144x32xf32>
    %cst_86 = arith.constant dense<0.000000e+00> : vector<256x32xf32>
    %104 = tpu.matmul %102, %103, %cst_86 {dimension_numbers = #tpu.dot_dimension_numbers<[1], [0], [0], [1], [0, 0, 1, 1], [], []>} : vector<256x144xf32>, vector<144x32xf32>, vector<256x32xf32> -> vector<256x32xf32>
    %c0_87 = arith.constant 0 : index
    %c0_88 = arith.constant 0 : index
    %105 = vector.load %arg7[%c0_87, %c0_88] : memref<1x32xf32, #tpu.memory_space<vmem>>, vector<1x32xf32>
    %106 = vector.broadcast %105 : vector<1x32xf32> to vector<256x32xf32>
    %107 = arith.addf %104, %106 : vector<256x32xf32>
    %cst_89 = arith.constant 0.000000e+00 : f32
    %108 = vector.broadcast %cst_89 : f32 to vector<256x32xf32>
    %109 = arith.maximumf %107, %108 : vector<256x32xf32>
    %110 = vector.shape_cast %109 : vector<256x32xf32> to vector<16x16x32xf32>
    %cst_90 = arith.constant 0.000000e+00 : f32
    %111 = vector.broadcast %cst_90 : f32 to vector<18x18x32xf32>
    %c0_91 = arith.constant 0 : index
    %c0_92 = arith.constant 0 : index
    %c0_93 = arith.constant 0 : index
    %112 = vector.load %arg14[%c0_91, %c0_92, %c0_93] : memref<18x18x32xf32, #tpu.memory_space<vmem>>, vector<18x18x32xf32>
    tpu.vector_store %arg14[%c0_91, %c0_92, %c0_93], %111 {strides = array<i32>} : memref<18x18x32xf32, #tpu.memory_space<vmem>>, vector<18x18x32xf32>,
    %c1_94 = arith.constant 1 : index
    %c1_95 = arith.constant 1 : index
    %c0_96 = arith.constant 0 : index
    %113 = vector.load %arg14[%c1_94, %c1_95, %c0_96] : memref<18x18x32xf32, #tpu.memory_space<vmem>>, vector<16x16x32xf32>
    tpu.vector_store %arg14[%c1_94, %c1_95, %c0_96], %110 {strides = array<i32>} : memref<18x18x32xf32, #tpu.memory_space<vmem>>, vector<16x16x32xf32>,
    %c0_97 = arith.constant 0 : index
    %c0_98 = arith.constant 0 : index
    %c0_99 = arith.constant 0 : index
    %114 = vector.load %arg14[%c0_97, %c0_98, %c0_99] : memref<18x18x32xf32, #tpu.memory_space<vmem>>, vector<16x16x32xf32>
    %c0_100 = arith.constant 0 : index
    %c1_101 = arith.constant 1 : index
    %c0_102 = arith.constant 0 : index
    %115 = vector.load %arg14[%c0_100, %c1_101, %c0_102] : memref<18x18x32xf32, #tpu.memory_space<vmem>>, vector<16x16x32xf32>
    %c0_103 = arith.constant 0 : index
    %c2_104 = arith.constant 2 : index
    %c0_105 = arith.constant 0 : index
    %116 = vector.load %arg14[%c0_103, %c2_104, %c0_105] : memref<18x18x32xf32, #tpu.memory_space<vmem>>, vector<16x16x32xf32>
    %c1_106 = arith.constant 1 : index
    %c0_107 = arith.constant 0 : index
    %c0_108 = arith.constant 0 : index
    %117 = vector.load %arg14[%c1_106, %c0_107, %c0_108] : memref<18x18x32xf32, #tpu.memory_space<vmem>>, vector<16x16x32xf32>
    %c1_109 = arith.constant 1 : index
    %c1_110 = arith.constant 1 : index
    %c0_111 = arith.constant 0 : index
    %118 = vector.load %arg14[%c1_109, %c1_110, %c0_111] : memref<18x18x32xf32, #tpu.memory_space<vmem>>, vector<16x16x32xf32>
    %c1_112 = arith.constant 1 : index
    %c2_113 = arith.constant 2 : index
    %c0_114 = arith.constant 0 : index
    %119 = vector.load %arg14[%c1_112, %c2_113, %c0_114] : memref<18x18x32xf32, #tpu.memory_space<vmem>>, vector<16x16x32xf32>
    %c2_115 = arith.constant 2 : index
    %c0_116 = arith.constant 0 : index
    %c0_117 = arith.constant 0 : index
    %120 = vector.load %arg14[%c2_115, %c0_116, %c0_117] : memref<18x18x32xf32, #tpu.memory_space<vmem>>, vector<16x16x32xf32>
    %c2_118 = arith.constant 2 : index
    %c1_119 = arith.constant 1 : index
    %c0_120 = arith.constant 0 : index
    %121 = vector.load %arg14[%c2_118, %c1_119, %c0_120] : memref<18x18x32xf32, #tpu.memory_space<vmem>>, vector<16x16x32xf32>
    %c2_121 = arith.constant 2 : index
    %c2_122 = arith.constant 2 : index
    %c0_123 = arith.constant 0 : index
    %122 = vector.load %arg14[%c2_121, %c2_122, %c0_123] : memref<18x18x32xf32, #tpu.memory_space<vmem>>, vector<16x16x32xf32>
    %123 = tpu.concatenate %114, %115, %116, %117, %118, %119, %120, %121, %122 in 2 : vector<16x16x32xf32>, vector<16x16x32xf32>, vector<16x16x32xf32>, vector<16x16x32xf32>, vector<16x16x32xf32>, vector<16x16x32xf32>, vector<16x16x32xf32>, vector<16x16x32xf32>, vector<16x16x32xf32> -> vector<16x16x288xf32>
    %124 = vector.shape_cast %123 : vector<16x16x288xf32> to vector<256x288xf32>
    %c0_124 = arith.constant 0 : index
    %c0_125 = arith.constant 0 : index
    %125 = vector.load %arg8[%c0_124, %c0_125] : memref<288x16xf32, #tpu.memory_space<vmem>>, vector<288x16xf32>
    %cst_126 = arith.constant dense<0.000000e+00> : vector<256x16xf32>
    %126 = tpu.matmul %124, %125, %cst_126 {dimension_numbers = #tpu.dot_dimension_numbers<[1], [0], [0], [1], [0, 0, 1, 1], [], []>} : vector<256x288xf32>, vector<288x16xf32>, vector<256x16xf32> -> vector<256x16xf32>
    %c0_127 = arith.constant 0 : index
    %c0_128 = arith.constant 0 : index
    %127 = vector.load %arg9[%c0_127, %c0_128] : memref<1x16xf32, #tpu.memory_space<vmem>>, vector<1x16xf32>
    %128 = vector.broadcast %127 : vector<1x16xf32> to vector<256x16xf32>
    %129 = arith.addf %126, %128 : vector<256x16xf32>
    %cst_129 = arith.constant 0.000000e+00 : f32
    %130 = vector.broadcast %cst_129 : f32 to vector<256x16xf32>
    %131 = arith.maximumf %129, %130 : vector<256x16xf32>
    %132 = vector.shape_cast %131 : vector<256x16xf32> to vector<16x16x16xf32>
    %cst_130 = arith.constant 0.000000e+00 : f32
    %133 = vector.broadcast %cst_130 : f32 to vector<18x18x16xf32>
    %c0_131 = arith.constant 0 : index
    %c0_132 = arith.constant 0 : index
    %c0_133 = arith.constant 0 : index
    %134 = vector.load %arg15[%c0_131, %c0_132, %c0_133] : memref<18x18x16xf32, #tpu.memory_space<vmem>>, vector<18x18x16xf32>
    tpu.vector_store %arg15[%c0_131, %c0_132, %c0_133], %133 {strides = array<i32>} : memref<18x18x16xf32, #tpu.memory_space<vmem>>, vector<18x18x16xf32>,
    %c1_134 = arith.constant 1 : index
    %c1_135 = arith.constant 1 : index
    %c0_136 = arith.constant 0 : index
    %135 = vector.load %arg15[%c1_134, %c1_135, %c0_136] : memref<18x18x16xf32, #tpu.memory_space<vmem>>, vector<16x16x16xf32>
    tpu.vector_store %arg15[%c1_134, %c1_135, %c0_136], %132 {strides = array<i32>} : memref<18x18x16xf32, #tpu.memory_space<vmem>>, vector<16x16x16xf32>,
    %cst_137 = arith.constant 0.000000e+00 : f32
    %136 = vector.broadcast %cst_137 : f32 to vector<16x16x16xf32>
    %c0_138 = arith.constant 0 : index
    %c0_139 = arith.constant 0 : index
    %c0_140 = arith.constant 0 : index
    %137 = vector.load %arg15[%c0_138, %c0_139, %c0_140] : memref<18x18x16xf32, #tpu.memory_space<vmem>>, vector<16x16x16xf32>
    %c0_141 = arith.constant 0 : index
    %c0_142 = arith.constant 0 : index
    %138 = vector.load %arg10[%c0_141, %c0_142] : memref<9x16xf32, #tpu.memory_space<vmem>>, vector<1x16xf32>
    %139 = vector.shape_cast %138 : vector<1x16xf32> to vector<16xf32>
    %140 = vector.shape_cast %139 : vector<16xf32> to vector<1x1x16xf32>
    %141 = vector.broadcast %140 : vector<1x1x16xf32> to vector<16x16x16xf32>
    %142 = arith.mulf %137, %141 : vector<16x16x16xf32>
    %143 = arith.addf %136, %142 : vector<16x16x16xf32>
    %c0_143 = arith.constant 0 : index
    %c1_144 = arith.constant 1 : index
    %c0_145 = arith.constant 0 : index
    %144 = vector.load %arg15[%c0_143, %c1_144, %c0_145] : memref<18x18x16xf32, #tpu.memory_space<vmem>>, vector<16x16x16xf32>
    %c1_146 = arith.constant 1 : index
    %c0_147 = arith.constant 0 : index
    %145 = vector.load %arg10[%c1_146, %c0_147] : memref<9x16xf32, #tpu.memory_space<vmem>>, vector<1x16xf32>
    %146 = vector.shape_cast %145 : vector<1x16xf32> to vector<16xf32>
    %147 = vector.shape_cast %146 : vector<16xf32> to vector<1x1x16xf32>
    %148 = vector.broadcast %147 : vector<1x1x16xf32> to vector<16x16x16xf32>
    %149 = arith.mulf %144, %148 : vector<16x16x16xf32>
    %150 = arith.addf %143, %149 : vector<16x16x16xf32>
    %c0_148 = arith.constant 0 : index
    %c2_149 = arith.constant 2 : index
    %c0_150 = arith.constant 0 : index
    %151 = vector.load %arg15[%c0_148, %c2_149, %c0_150] : memref<18x18x16xf32, #tpu.memory_space<vmem>>, vector<16x16x16xf32>
    %c2_151 = arith.constant 2 : index
    %c0_152 = arith.constant 0 : index
    %152 = vector.load %arg10[%c2_151, %c0_152] : memref<9x16xf32, #tpu.memory_space<vmem>>, vector<1x16xf32>
    %153 = vector.shape_cast %152 : vector<1x16xf32> to vector<16xf32>
    %154 = vector.shape_cast %153 : vector<16xf32> to vector<1x1x16xf32>
    %155 = vector.broadcast %154 : vector<1x1x16xf32> to vector<16x16x16xf32>
    %156 = arith.mulf %151, %155 : vector<16x16x16xf32>
    %157 = arith.addf %150, %156 : vector<16x16x16xf32>
    %c1_153 = arith.constant 1 : index
    %c0_154 = arith.constant 0 : index
    %c0_155 = arith.constant 0 : index
    %158 = vector.load %arg15[%c1_153, %c0_154, %c0_155] : memref<18x18x16xf32, #tpu.memory_space<vmem>>, vector<16x16x16xf32>
    %c3_156 = arith.constant 3 : index
    %c0_157 = arith.constant 0 : index
    %159 = vector.load %arg10[%c3_156, %c0_157] : memref<9x16xf32, #tpu.memory_space<vmem>>, vector<1x16xf32>
    %160 = vector.shape_cast %159 : vector<1x16xf32> to vector<16xf32>
    %161 = vector.shape_cast %160 : vector<16xf32> to vector<1x1x16xf32>
    %162 = vector.broadcast %161 : vector<1x1x16xf32> to vector<16x16x16xf32>
    %163 = arith.mulf %158, %162 : vector<16x16x16xf32>
    %164 = arith.addf %157, %163 : vector<16x16x16xf32>
    %c1_158 = arith.constant 1 : index
    %c1_159 = arith.constant 1 : index
    %c0_160 = arith.constant 0 : index
    %165 = vector.load %arg15[%c1_158, %c1_159, %c0_160] : memref<18x18x16xf32, #tpu.memory_space<vmem>>, vector<16x16x16xf32>
    %c4_161 = arith.constant 4 : index
    %c0_162 = arith.constant 0 : index
    %166 = vector.load %arg10[%c4_161, %c0_162] : memref<9x16xf32, #tpu.memory_space<vmem>>, vector<1x16xf32>
    %167 = vector.shape_cast %166 : vector<1x16xf32> to vector<16xf32>
    %168 = vector.shape_cast %167 : vector<16xf32> to vector<1x1x16xf32>
    %169 = vector.broadcast %168 : vector<1x1x16xf32> to vector<16x16x16xf32>
    %170 = arith.mulf %165, %169 : vector<16x16x16xf32>
    %171 = arith.addf %164, %170 : vector<16x16x16xf32>
    %c1_163 = arith.constant 1 : index
    %c2_164 = arith.constant 2 : index
    %c0_165 = arith.constant 0 : index
    %172 = vector.load %arg15[%c1_163, %c2_164, %c0_165] : memref<18x18x16xf32, #tpu.memory_space<vmem>>, vector<16x16x16xf32>
    %c5_166 = arith.constant 5 : index
    %c0_167 = arith.constant 0 : index
    %173 = vector.load %arg10[%c5_166, %c0_167] : memref<9x16xf32, #tpu.memory_space<vmem>>, vector<1x16xf32>
    %174 = vector.shape_cast %173 : vector<1x16xf32> to vector<16xf32>
    %175 = vector.shape_cast %174 : vector<16xf32> to vector<1x1x16xf32>
    %176 = vector.broadcast %175 : vector<1x1x16xf32> to vector<16x16x16xf32>
    %177 = arith.mulf %172, %176 : vector<16x16x16xf32>
    %178 = arith.addf %171, %177 : vector<16x16x16xf32>
    %c2_168 = arith.constant 2 : index
    %c0_169 = arith.constant 0 : index
    %c0_170 = arith.constant 0 : index
    %179 = vector.load %arg15[%c2_168, %c0_169, %c0_170] : memref<18x18x16xf32, #tpu.memory_space<vmem>>, vector<16x16x16xf32>
    %c6_171 = arith.constant 6 : index
    %c0_172 = arith.constant 0 : index
    %180 = vector.load %arg10[%c6_171, %c0_172] : memref<9x16xf32, #tpu.memory_space<vmem>>, vector<1x16xf32>
    %181 = vector.shape_cast %180 : vector<1x16xf32> to vector<16xf32>
    %182 = vector.shape_cast %181 : vector<16xf32> to vector<1x1x16xf32>
    %183 = vector.broadcast %182 : vector<1x1x16xf32> to vector<16x16x16xf32>
    %184 = arith.mulf %179, %183 : vector<16x16x16xf32>
    %185 = arith.addf %178, %184 : vector<16x16x16xf32>
    %c2_173 = arith.constant 2 : index
    %c1_174 = arith.constant 1 : index
    %c0_175 = arith.constant 0 : index
    %186 = vector.load %arg15[%c2_173, %c1_174, %c0_175] : memref<18x18x16xf32, #tpu.memory_space<vmem>>, vector<16x16x16xf32>
    %c7_176 = arith.constant 7 : index
    %c0_177 = arith.constant 0 : index
    %187 = vector.load %arg10[%c7_176, %c0_177] : memref<9x16xf32, #tpu.memory_space<vmem>>, vector<1x16xf32>
    %188 = vector.shape_cast %187 : vector<1x16xf32> to vector<16xf32>
    %189 = vector.shape_cast %188 : vector<16xf32> to vector<1x1x16xf32>
    %190 = vector.broadcast %189 : vector<1x1x16xf32> to vector<16x16x16xf32>
    %191 = arith.mulf %186, %190 : vector<16x16x16xf32>
    %192 = arith.addf %185, %191 : vector<16x16x16xf32>
    %c2_178 = arith.constant 2 : index
    %c2_179 = arith.constant 2 : index
    %c0_180 = arith.constant 0 : index
    %193 = vector.load %arg15[%c2_178, %c2_179, %c0_180] : memref<18x18x16xf32, #tpu.memory_space<vmem>>, vector<16x16x16xf32>
    %c8_181 = arith.constant 8 : index
    %c0_182 = arith.constant 0 : index
    %194 = vector.load %arg10[%c8_181, %c0_182] : memref<9x16xf32, #tpu.memory_space<vmem>>, vector<1x16xf32>
    %195 = vector.shape_cast %194 : vector<1x16xf32> to vector<16xf32>
    %196 = vector.shape_cast %195 : vector<16xf32> to vector<1x1x16xf32>
    %197 = vector.broadcast %196 : vector<1x1x16xf32> to vector<16x16x16xf32>
    %198 = arith.mulf %193, %197 : vector<16x16x16xf32>
    %199 = arith.addf %192, %198 : vector<16x16x16xf32>
    %cst_183 = arith.constant dense<0.000000e+00> : vector<16x16xf32>
    %200 = vector.multi_reduction <add>, %199, %cst_183 [2] : vector<16x16x16xf32> to vector<16x16xf32>
    %c0_184 = arith.constant 0 : index
    %c0_185 = arith.constant 0 : index
    %201 = memref.load %arg2[%c0_184, %c0_185] : memref<1x1xf32, #tpu.memory_space<smem>>
    %202 = vector.broadcast %201 : f32 to vector<16x16xf32>
    %203 = arith.addf %200, %202 : vector<16x16xf32>
    %c0_186 = arith.constant 0 : index
    %c0_187 = arith.constant 0 : index
    %c0_188 = arith.constant 0 : index
    %204 = vector.load %arg11[%c0_186, %c0_187, %c0_188] : memref<1x16x16xf32, #tpu.memory_space<vmem>>, vector<1x16x16xf32>
    %205 = vector.shape_cast %204 : vector<1x16x16xf32> to vector<16x16xf32>
    %206 = vector.shape_cast %203 : vector<16x16xf32> to vector<1x16x16xf32>
    tpu.vector_store %arg11[%c0_186, %c0_187, %c0_188], %206 {strides = array<i32>} : memref<1x16x16xf32, #tpu.memory_space<vmem>>, vector<1x16x16xf32>,
    return
  }
  func.func @transform_0(%arg0: i32) -> i32 {
    %c0_i32 = arith.constant 0 : i32
    %c0_i32_0 = arith.constant 0 : i32
    return %c0_i32 : i32
  }
  func.func @transform_1(%arg0: i32) -> (i32, i32) {
    %c0_i32 = arith.constant 0 : i32
    %c0_i32_0 = arith.constant 0 : i32
    %c0_i32_1 = arith.constant 0 : i32
    return %c0_i32, %c0_i32_0 : i32, i32
  }
  func.func @transform_2(%arg0: i32) -> (i32, i32, i32, i32) {
    %c0_i32 = arith.constant 0 : i32
    %c0_i32_0 = arith.constant 0 : i32
    %c0_i32_1 = arith.constant 0 : i32
    %c0_i32_2 = arith.constant 0 : i32
    return %arg0, %c0_i32, %c0_i32_0, %c0_i32_1 : i32, i32, i32, i32
  }
  func.func @transform_3(%arg0: i32) -> (i32, i32) {
    %c0_i32 = arith.constant 0 : i32
    %c0_i32_0 = arith.constant 0 : i32
    %c0_i32_1 = arith.constant 0 : i32
    return %c0_i32, %c0_i32_0 : i32, i32
  }
  func.func @transform_4(%arg0: i32) -> (i32, i32) {
    %c0_i32 = arith.constant 0 : i32
    %c0_i32_0 = arith.constant 0 : i32
    %c0_i32_1 = arith.constant 0 : i32
    return %c0_i32, %c0_i32_0 : i32, i32
  }
  func.func @transform_5(%arg0: i32) -> (i32, i32) {
    %c0_i32 = arith.constant 0 : i32
    %c0_i32_0 = arith.constant 0 : i32
    %c0_i32_1 = arith.constant 0 : i32
    return %c0_i32, %c0_i32_0 : i32, i32
  }
  func.func @transform_6(%arg0: i32) -> (i32, i32) {
    %c0_i32 = arith.constant 0 : i32
    %c0_i32_0 = arith.constant 0 : i32
    %c0_i32_1 = arith.constant 0 : i32
    return %c0_i32, %c0_i32_0 : i32, i32
  }
  func.func @transform_7(%arg0: i32) -> (i32, i32) {
    %c0_i32 = arith.constant 0 : i32
    %c0_i32_0 = arith.constant 0 : i32
    %c0_i32_1 = arith.constant 0 : i32
    return %c0_i32, %c0_i32_0 : i32, i32
  }
  func.func @transform_8(%arg0: i32) -> (i32, i32) {
    %c0_i32 = arith.constant 0 : i32
    %c0_i32_0 = arith.constant 0 : i32
    %c0_i32_1 = arith.constant 0 : i32
    return %c0_i32, %c0_i32_0 : i32, i32
  }
  func.func @transform_9(%arg0: i32) -> (i32, i32) {
    %c0_i32 = arith.constant 0 : i32
    %c0_i32_0 = arith.constant 0 : i32
    %c0_i32_1 = arith.constant 0 : i32
    return %c0_i32, %c0_i32_0 : i32, i32
  }
  func.func @transform_10(%arg0: i32) -> (i32, i32, i32) {
    %c0_i32 = arith.constant 0 : i32
    %c0_i32_0 = arith.constant 0 : i32
    %c0_i32_1 = arith.constant 0 : i32
    return %arg0, %c0_i32, %c0_i32_0 : i32, i32, i32
  }
}

</mosaic_0001>

<bundles_post_ra>
// kernel: simple_unet_forward.1
= control target key start
LH: loop header
LB: loop body
LE: loop exit
PB: predicated region body
PF: predicated region fallthrough
CT: control target
= control target key end

     0   :  { %s15073_s0 = inlined_call_operand.vmem [shape: f32[2], index: 0, kind: input, shape index: {}]   ;;  %s15074_s1 = inlined_call_operand.<no memory space> [shape: f32[1,1], index: 1, kind: input, shape index: {}]   ;;  %s15075_s2 = inlined_call_operand.vmem [shape: f32[2,16,16,1], index: 2, kind: input, shape index: {}]   ;;  %s15076_s3 = inlined_call_operand.vmem [shape: f32[9,16], index: 3, kind: input, shape index: {}]   ;;  %s15077_s4 = inlined_call_operand.vmem [shape: f32[1,16], index: 4, kind: input, shape index: {}]   ;;  %s15078_s5 = inlined_call_operand.vmem [shape: f32[144,32], index: 5, kind: input, shape index: {}]   ;;  %s15079_s6 = inlined_call_operand.vmem [shape: f32[1,32], index: 6, kind: input, shape index: {}]   ;;  %s15080_s7 = inlined_call_operand.vmem [shape: f32[288,16], index: 7, kind: input, shape index: {}]   ;;  %s15081_s8 = inlined_call_operand.vmem [shape: f32[1,16], index: 8, kind: input, shape index: {}]   ;;  %s15082_s9 = inlined_call_operand.vmem [shape: f32[9,16], index: 9, kind: input, shape index: {}]   ;;  %s15083_s10 = inlined_call_operand.hbm [shape: f32[2,16,16], index: 10, kind: output, shape index: {}]  }
   0x1   :  { %15 = sst [smem:[#allocation6]] %s15074_s1 }
   0x2   :  { %16 = vsyncpa [#allocation9], 0 }
   0x3   :  { %17 = vsyncpa [#allocation8], 0 }
   0x4   :  { %19 = vsyncpa [#allocation8 + $0x1], 0  ;;  %s9355_s15 = smov 0   ;;  %s9357_s16 = smov 0  }
   0x5   :  { %s9359_s17 = smov 0   ;;  %s9361_s18 = smov 0  }
   0x6 LB: > { %s9376_s1 = sadd.s32 4294967295, %s9283_s18   ;;  %s7942_s19 = sadd.s32 4294967294, %s9283_s18   ;;  %s9283_s18 = sphi %s9361_s18, %s15809_s18   ;;  %s9279_s17 = sphi %s9359_s17, %s15808_s17   ;;  %s9275_s16 = sphi %s9357_s16, %s15807_s16   ;;  %s9271_s15 = sphi %s9355_s15, %s15806_s15  }
   0x7   : > { %s9380_s20 = sadd.s32 1, %s9283_s18   ;;  %s247_s21 = sadd.s32 1, %s9279_s17 }
   0x8   : > { %s244_s22 = ssub.s32 %s9283_s18, %s9380_s20  ;;  %p257_p0 = scmp.ne.s32.totalorder %s9279_s17, %s9275_s16 }
   0x9   : > { %p245_p1 = scmp.eq.s32.totalorder %s244_s22, 0  ;;  %p258_p2 = scmp.eq.s32.totalorder %s9376_s1, 1 }
   0xa   : > { %p263_p3 = scmp.ne.s32.totalorder %s9275_s16, %s9271_s15  ;;  %p264_p4 = scmp.eq.s32.totalorder %s7942_s19, 1 }
   0xb   : > { %s9391_s23 = scalar_select %p245_p1, %s9279_s17, %s247_s21  }
   0xc   : > { %p9393_p5 = por %p258_p2, %p257_p0  ;;  %p9397_p6 = por %p264_p4, %p263_p3 }
   0xd   : > { %p7943_p7 = scmp.ge.s32.totalorder %s9283_s18, 1  ;;  %p271_p8 = scmp.lt.s32.totalorder %s9283_s18, 3 }
   0xe   : > { %p8046_p9 = scmp.eq.s32.totalorder %s9376_s1, 0  ;;  %s283_s28 = sshll.u32 %s15073_s0, 4  ;;  %s284_s28 = int_to_ptr.vmem [resolvable:$true] %s283_s28 }
   0xf   : > { %p272_p10 = pnand %p7943_p7, %p271_p8  ;;  %s9285_s29 = smov [#allocation7]  }
  0x11   : > { %p8038_p11 = pneg %p272_p10  ;;  %328 = sbr.rel (%p272_p10) target bundleno = 2441 (0x989), region = 60 }
  0x13   : > { %p8039_p12 = pnand %p8046_p9, %p8038_p11 }
  0x15   : > { %8041 = dma.vmem_to_smem (!%p8039_p12), %s284_s28, 16, %s9285_s29, [#allocation9]  }
  0x16   : > { %9262 = dma.done.wait (%p8046_p9), [#allocation9], 16  }
  0x17   : > { %9264 = vsyncadd (%p8046_p9), [#allocation9], 4294967280 }
  0x18   : > { %335 = sfence }
  0x19   : > { %vm439_vm0 = vcmask 7168   ;;  %v9286_v0 = vmov 0   ;;  %v15084_v1 = vmov 0.0   ;;  %p368_p13 = scmp.lt.s32.totalorder %s9376_s1, 1  ;;  %s405_s11 = sld [smem:[#allocation7 + %s9376_s1]]  ;;  %vm442_vm1 = vcmask 1024  }
  0x1a   : > { %8093 = vset.pattern.permute.xlu0 %v9286_v0  ;;  %440 = vst.msk [vmem:[#allocation2] sm:$0xff] %vm439_vm0, %v15084_v1  ;;  %8095 = vset.pattern.permute.xlu2 %v9286_v0  ;;  %vm2919_vm2 = vcmask 130048   ;;  %vm2922_vm3 = vcmask 123904   ;;  %vm4225_vm4 = vcmask 261120   ;;  %s9292_s13 = smov 80   ;;  %s9293_s14 = smov 96  }
  0x1b   : > { %441 = vst.msk [vmem:[#allocation2 + $0x8] sm:$0xff] %vm439_vm0, %v15084_v1  ;;  %8094 = vset.pattern.permute.xlu1 %v9286_v0  ;;  %s369_s30 = scalar_select %p368_p13, %s9376_s1, 1  ;;  %vm4258_vm5 = vcmask 392192   ;;  %vm4291_vm6 = vcmask 523264   ;;  %vm4324_vm7 = vcmask 654336   ;;  %vm4357_vm8 = vcmask 785408  }
  0x1c   : > { %444 = vst.msk [vmem:[#allocation2 + $0x18] sm:$0xff] %vm439_vm0, %v15084_v1  ;;  %vm4390_vm9 = vcmask 916480   ;;  %vm4801_vm10 = vcmask 254976   ;;  %vm7780_vm11 = vcmask 130112   ;;  %vm7827_vm12 = vcmask 1041409   ;;  %s8021_s26 = sshll.u32 %s9376_s1, 4 }
  0x1d   : > { %445 = vst.msk [vmem:[#allocation2 + $0x20] sm:$0xff] %vm439_vm0, %v15084_v1  ;;  %s8020_s12 = sshll.u32 %s369_s30, 8  ;;  %s9289_s30 = smov 32   ;;  %vm7829_vm13 = vcmask 1042434   ;;  %vm7831_vm14 = vcmask 1043459   ;;  %vm7833_vm15 = vcmask 1044484  }
  0x1e   : > { %447 = vst.msk [vmem:[#allocation2 + $0x30] sm:$0xff] %vm439_vm0, %v15084_v1  ;;  %s9467_s19 = scalar_lea.vmem %s15075_s2, %s8020_s12  ;;  %s9288_s12 = smov 16  }
  0x1f   : > { %448 = vst.msk [vmem:[#allocation2 + $0x38] sm:$0xff] %vm439_vm0, %v15084_v1  ;;  %v375_v4 = vld [vmem:[%s9467_s19 + $0x10] sm:$0xff]  ;;  %v9476_v5 = vstv %s405_s11  ;;  %v373_v6 = vld [vmem:[%s9467_s19] sm:$0xff]  ;;  %v376_v10 = vld [vmem:[%s9467_s19 + $0x18] sm:$0xff]  ;;  %s9291_s11 = smov 64   ;;  %s7864_s28 = scalar_lea.hbm %s15083_s10, %s8021_s26 }
  0x20   : > { %450 = vst.msk [vmem:[#allocation2 + $0x48] sm:$0xff] %vm439_vm0, %v15084_v1  ;;  %v377_v7 = vld [vmem:[%s9467_s19 + $0x20] sm:$0xff]  ;;  %v409_v8 = vadd.f32 %v9476_v5, %v375_v4  ;;  %v407_v9 = vadd.f32 %v9476_v5, %v373_v6  ;;  %v410_v12 = vadd.f32 %v9476_v5, %v376_v10  ;;  %v374_v17 = vld [vmem:[%s9467_s19 + $0x8] sm:$0xff]  ;;  %v379_v18 = vld [vmem:[%s9467_s19 + $0x30] sm:$0xff]  ;;  %s9237_s26 = scalar_lea.hbm %s15083_s10, 32 }
  0x21   : > { %v528_v2 = vld [vmem:[#allocation2] sm:$0xff]  ;;  %451 = vst.msk [vmem:[#allocation2 + $0x50] sm:$0xff] %vm439_vm0, %v15084_v1  ;;  %v411_v11 = vadd.f32 %v9476_v5, %v377_v7  ;;  %v380_v19 = vld [vmem:[%s9467_s19 + $0x38] sm:$0xff]  ;;  %v408_v20 = vadd.f32 %v9476_v5, %v374_v17  ;;  %v378_v21 = vld [vmem:[%s9467_s19 + $0x28] sm:$0xff]  ;;  %v413_v22 = vadd.f32 %v9476_v5, %v379_v18 }
  0x22   : > { %563 = vperm.xlu0 %8093, %v528_v2   ;;  %453 = vst.msk [vmem:[#allocation2 + $0x60] sm:$0xff] %vm439_vm0, %v15084_v1  ;;  %v529_v3 = vld [vmem:[#allocation2 + $0x8] sm:$0xff]  ;;  %v383_v23 = vld [vmem:[%s9467_s19 + $0x50] sm:$0xff]  ;;  %v414_v24 = vadd.f32 %v9476_v5, %v380_v19  ;;  %v381_v25 = vld [vmem:[%s9467_s19 + $0x40] sm:$0xff]  ;;  %v412_v26 = vadd.f32 %v9476_v5, %v378_v21 }
  0x23   : > { %454 = vst.msk [vmem:[#allocation2 + $0x68] sm:$0xff] %vm439_vm0, %v15084_v1  ;;  %v382_v27 = vld [vmem:[%s9467_s19 + $0x48] sm:$0xff]  ;;  %v417_v28 = vadd.f32 %v9476_v5, %v383_v23  ;;  %v385_v29 = vld [vmem:[%s9467_s19 + $0x60] sm:$0xff]  ;;  %v415_v30 = vadd.f32 %v9476_v5, %v381_v25  ;;  %v384_v33 = vld [vmem:[%s9467_s19 + $0x58] sm:$0xff] }
  0x24   : > { %456 = vst.msk [vmem:[#allocation2 + $0x78] sm:$0xff] %vm439_vm0, %v15084_v1  ;;  %v386_v31 = vld [vmem:[%s9467_s19 + $0x68] sm:$0xff]  ;;  %v416_v32 = vadd.f32 %v9476_v5, %v382_v27  ;;  %v419_v34 = vadd.f32 %v9476_v5, %v385_v29  ;;  %v389_v35 = vld [vmem:[%s9467_s19 + $0x80] sm:$0xff]  ;;  %v387_v37 = vld [vmem:[%s9467_s19 + $0x70] sm:$0xff]  ;;  %v418_v38 = vadd.f32 %v9476_v5, %v384_v33 }
  0x25   : > { %457 = vst.msk [vmem:[#allocation2 + $0x80] sm:$0xff] %vm439_vm0, %v15084_v1  ;;  %v420_v36 = vadd.f32 %v9476_v5, %v386_v31  ;;  %v388_v39 = vld [vmem:[%s9467_s19 + $0x78] sm:$0xff]  ;;  %v423_v40 = vadd.f32 %v9476_v5, %v389_v35  ;;  %v391_v41 = vld [vmem:[%s9467_s19 + $0x90] sm:$0xff]  ;;  %v421_v43 = vadd.f32 %v9476_v5, %v387_v37  ;;  %v390_v47 = vld [vmem:[%s9467_s19 + $0x88] sm:$0xff] }
  0x26   : > { %459 = vst.msk [vmem:[#allocation2 + $0x90] sm:$0xff] %vm439_vm0, %v15084_v1  ;;  %v392_v44 = vld [vmem:[%s9467_s19 + $0x98] sm:$0xff]  ;;  %v422_v46 = vadd.f32 %v9476_v5, %v388_v39  ;;  %v425_v49 = vadd.f32 %v9476_v5, %v391_v41  ;;  %v424_v51 = vadd.f32 %v9476_v5, %v390_v47  ;;  %v395_v53 = vld [vmem:[%s9467_s19 + $0xb0] sm:$0xff]  ;;  %v393_v54 = vld [vmem:[%s9467_s19 + $0xa0] sm:$0xff] }
  0x27   : > { %460 = vst.msk [vmem:[#allocation2 + $0x98] sm:$0xff] %vm439_vm0, %v15084_v1  ;;  %v426_v50 = vadd.f32 %v9476_v5, %v392_v44  ;;  %v429_v56 = vadd.f32 %v9476_v5, %v395_v53  ;;  %v394_v57 = vld [vmem:[%s9467_s19 + $0xa8] sm:$0xff]  ;;  %v427_v58 = vadd.f32 %v9476_v5, %v393_v54  ;;  %v397_v62 = vld [vmem:[%s9467_s19 + $0xc0] sm:$0xff]  ;;  %v396_v4 = vld [vmem:[%s9467_s19 + $0xb8] sm:$0xff] }
  0x28   : > { %462 = vst.msk [vmem:[#allocation2 + $0xa8] sm:$0xff] %vm439_vm0, %v15084_v1  ;;  %v428_v60 = vadd.f32 %v9476_v5, %v394_v57  ;;  %v398_v63 = vld [vmem:[%s9467_s19 + $0xc8] sm:$0xff]  ;;  %v431_v2 = vadd.f32 %v9476_v5, %v397_v62  ;;  %v430_v7 = vadd.f32 %v9476_v5, %v396_v4  ;;  %v399_v10 = vld [vmem:[%s9467_s19 + $0xd0] sm:$0xff] }
  0x29   : > { %463 = vst.msk [vmem:[#allocation2 + $0xb0] sm:$0xff] %vm439_vm0, %v15084_v1  ;;  %v433_v18 = vadd.f32 %v9476_v5, %v399_v10 }
  0x2a   : > { %465 = vst.msk [vmem:[#allocation2 + $0xc0] sm:$0xff] %vm439_vm0, %v15084_v1  ;;  %568 = vperm.xlu0 %8093, %v529_v3   ;;  %v432_v3 = vadd.f32 %v9476_v5, %v398_v63 }
  0x2b   : > { %466 = vst.msk [vmem:[#allocation2 + $0xc8] sm:$0xff] %vm439_vm0, %v15084_v1 }
  0x2c   : > { %468 = vst.msk [vmem:[#allocation2 + $0xd8] sm:$0xff] %vm439_vm0, %v15084_v1 }
  0x2d   : > { %469 = vst.msk [vmem:[#allocation2 + $0xe0] sm:$0xff] %vm439_vm0, %v15084_v1 }
  0x2e   : > { %471 = vst.msk [vmem:[#allocation2 + $0xf0] sm:$0xff] %vm439_vm0, %v15084_v1 }
  0x2f   : > { %472 = vst.msk [vmem:[#allocation2 + $0xf8] sm:$0xff] %vm439_vm0, %v15084_v1 }
  0x30   : > { %474 = vst.msk [vmem:[#allocation2 + $0x108] sm:$0xff] %vm439_vm0, %v15084_v1 }
  0x31   : > { %475 = vst.msk [vmem:[#allocation2 + $0x110] sm:$0xff] %vm439_vm0, %v15084_v1 }
  0x32   : > { %477 = vst.msk [vmem:[#allocation2 + $0x120] sm:$0xff] %vm439_vm0, %v15084_v1 }
  0x33   : > { %478 = vst.msk [vmem:[#allocation2 + $0x128] sm:$0xff] %vm439_vm0, %v15084_v1 }
  0x34   : > { %480 = vst.msk [vmem:[#allocation2 + $0x138] sm:$0xff] %vm439_vm0, %v15084_v1 }
  0x35   : > { %481 = vst.msk [vmem:[#allocation2 + $0x140] sm:$0xff] %vm439_vm0, %v15084_v1 }
  0x36   : > { %483 = vst.msk [vmem:[#allocation2 + $0x150] sm:$0xff] %vm439_vm0, %v15084_v1 }
  0x37   : > { %484 = vst.msk [vmem:[#allocation2 + $0x158] sm:$0xff] %vm439_vm0, %v15084_v1 }
  0x38   : > { %486 = vst.msk [vmem:[#allocation2 + $0x168] sm:$0xff] %vm439_vm0, %v15084_v1 }
  0x39   : > { %487 = vst.msk [vmem:[#allocation2 + $0x170] sm:$0xff] %vm439_vm0, %v15084_v1 }
  0x3a   : > { %489 = vst.msk [vmem:[#allocation2 + $0x180] sm:$0xff] %vm439_vm0, %v15084_v1 }
  0x3b   : > { %490 = vst.msk [vmem:[#allocation2 + $0x188] sm:$0xff] %vm439_vm0, %v15084_v1 }
  0x3c   : > { %492 = vst.msk [vmem:[#allocation2 + $0x198] sm:$0xff] %vm439_vm0, %v15084_v1 }
  0x3d   : > { %493 = vst.msk [vmem:[#allocation2 + $0x1a0] sm:$0xff] %vm439_vm0, %v15084_v1 }
  0x3e   : > { %498 = vst.msk [vmem:[#allocation2 + $0x31] sm:$0xff] %vm439_vm0, %v409_v8 }
  0x3f   : > { %496 = vst.msk [vmem:[#allocation2 + $0x19] sm:$0xff] %vm439_vm0, %v407_v9  ;;  %v401_v9 = vld [vmem:[%s9467_s19 + $0xe0] sm:$0xff] }
  0x40   : > { %500 = vst.msk [vmem:[#allocation2 + $0x49] sm:$0xff] %vm439_vm0, %v411_v11  ;;  %v400_v11 = vld [vmem:[%s9467_s19 + $0xd8] sm:$0xff]  ;;  %v435_v17 = vadd.f32 %v9476_v5, %v401_v9 }
  0x41   : > { %449 = vst.msk [vmem:[#allocation2 + $0x40] sm:$0x3] %vm442_vm1, %v15084_v1  ;;  %v434_v19 = vadd.f32 %v9476_v5, %v400_v11 }
  0x42   : > { %499 = vst.msk [vmem:[#allocation2 + $0x39] sm:$0xff] %vm439_vm0, %v410_v12 }
  0x43   : > { %443 = vst.msk [vmem:[#allocation2 + $0x10] sm:$0x3] %vm442_vm1, %v15084_v1 }
  0x44   : > { %446 = vst.msk [vmem:[#allocation2 + $0x28] sm:$0x3] %vm442_vm1, %v15084_v1 }
  0x45   : > { %v9507_v13 = vld [vmem:[#allocation2 + $0x30] sm:$0xff]  ;;  %452 = vst.msk [vmem:[#allocation2 + $0x58] sm:$0x3] %vm442_vm1, %v15084_v1 }
  0x46   : > { %583 = vperm.xlu2 %8095, %v9507_v13   ;;  %v9512_v14 = vld [vmem:[#allocation2 + $0x18] sm:$0xff]  ;;  %455 = vst.msk [vmem:[#allocation2 + $0x70] sm:$0x3] %vm442_vm1, %v15084_v1 }
  0x47   : > { %573 = vperm.xlu1 %8094, %v9512_v14   ;;  %v9517_v15 = vld [vmem:[#allocation2 + $0x48] sm:$0xff]  ;;  %458 = vst.msk [vmem:[#allocation2 + $0x88] sm:$0x3] %vm442_vm1, %v15084_v1 }
  0x48   : > { %593 = vperm.xlu0 %8093, %v9517_v15   ;;  %461 = vst.msk [vmem:[#allocation2 + $0xa0] sm:$0x3] %vm442_vm1, %v15084_v1  ;;  %v9715_v44 = vld [vmem:[#allocation2 + $0x49] sm:$0xff] }
  0x49   : > { %464 = vst.msk [vmem:[#allocation2 + $0xb8] sm:$0x3] %vm442_vm1, %v15084_v1  ;;  %v9528_v16 = vld [vmem:[#allocation2 + $0x38] sm:$0xff] }
  0x4a   : > { %467 = vst.msk [vmem:[#allocation2 + $0xd0] sm:$0x3] %vm442_vm1, %v15084_v1  ;;  %v787_v37 = vld [vmem:[#allocation2 + $0x9] sm:$0xff] }
  0x4b   : > { %470 = vst.msk [vmem:[#allocation2 + $0xe8] sm:$0x3] %vm442_vm1, %v15084_v1 }
  0x4c   : > { %473 = vst.msk [vmem:[#allocation2 + $0x100] sm:$0x3] %vm442_vm1, %v15084_v1 }
  0x4d   : > { %476 = vst.msk [vmem:[#allocation2 + $0x118] sm:$0x3] %vm442_vm1, %v15084_v1 }
  0x4e   : > { %588 = vperm.xlu2 %8095, %v9528_v16   ;;  %479 = vst.msk [vmem:[#allocation2 + $0x130] sm:$0x3] %vm442_vm1, %v15084_v1 }
  0x4f   : > { %482 = vst.msk [vmem:[#allocation2 + $0x148] sm:$0x3] %vm442_vm1, %v15084_v1 }
  0x50   : > { %485 = vst.msk [vmem:[#allocation2 + $0x160] sm:$0x3] %vm442_vm1, %v15084_v1 }
  0x51   : > { %488 = vst.msk [vmem:[#allocation2 + $0x178] sm:$0x3] %vm442_vm1, %v15084_v1 }
  0x52   : > { %491 = vst.msk [vmem:[#allocation2 + $0x190] sm:$0x3] %vm442_vm1, %v15084_v1 }
  0x53   : > { %494 = vst.msk [vmem:[#allocation2 + $0x1a8] sm:$0x3] %vm442_vm1, %v15084_v1  ;;  %vm7837_vm1 = vcmask 1046534  }
  0x54   : > { %497 = vst.msk [vmem:[#allocation2 + $0x21] sm:$0xff] %vm439_vm0, %v408_v20 }
  0x55   : > { %502 = vst.msk [vmem:[#allocation2 + $0x61] sm:$0xff] %vm439_vm0, %v413_v22  ;;  %v402_v22 = vld [vmem:[%s9467_s19 + $0xe8] sm:$0xff] }
  0x56   : > { %503 = vst.msk [vmem:[#allocation2 + $0x69] sm:$0xff] %vm439_vm0, %v414_v24  ;;  %v436_v24 = vadd.f32 %v9476_v5, %v402_v22 }
  0x57   : > { %501 = vst.msk [vmem:[#allocation2 + $0x51] sm:$0xff] %vm439_vm0, %v412_v26 }
  0x58   : > { %506 = vst.msk [vmem:[#allocation2 + $0x91] sm:$0xff] %vm439_vm0, %v417_v28 }
  0x59   : > { %504 = vst.msk [vmem:[#allocation2 + $0x79] sm:$0xff] %vm439_vm0, %v415_v30 }
  0x5a   : > { %505 = vst.msk [vmem:[#allocation2 + $0x81] sm:$0xff] %vm439_vm0, %v416_v32 }
  0x5b   : > { %v9581_v42 = vld [vmem:[#allocation2 + $0x20] sm:$0xff]  ;;  %508 = vst.msk [vmem:[#allocation2 + $0xa9] sm:$0xff] %vm439_vm0, %v419_v34 }
  0x5c   : > { %578 = vperm.xlu1 %8094, %v9581_v42   ;;  %v9587_v45 = vld [vmem:[#allocation2 + $0x60] sm:$0xff]  ;;  %509 = vst.msk [vmem:[#allocation2 + $0xb1] sm:$0xff] %vm439_vm0, %v420_v36 }
  0x5d   : > { %v9592_v48 = vld [vmem:[#allocation2 + $0x68] sm:$0xff]  ;;  %603 = vperm.xlu2 %8095, %v9587_v45   ;;  %507 = vst.msk [vmem:[#allocation2 + $0x99] sm:$0xff] %vm439_vm0, %v418_v38 }
  0x5e   : > { %608 = vperm.xlu0 %8093, %v9592_v48   ;;  %512 = vst.msk [vmem:[#allocation2 + $0xd9] sm:$0xff] %vm439_vm0, %v423_v40  ;;  %v9603_v52 = vld [vmem:[#allocation2 + $0x50] sm:$0xff]  ;;  %v786_v36 = vld [vmem:[#allocation2 + $0x1] sm:$0xff] }
  0x5f   : > { %510 = vst.msk [vmem:[#allocation2 + $0xc1] sm:$0xff] %vm439_vm0, %v421_v43  ;;  %v9614_v59 = vld [vmem:[#allocation2 + $0x90] sm:$0xff]  ;;  %v9704_v39 = vld [vmem:[#allocation2 + $0x21] sm:$0xff]  ;;  %v9713_v43 = vld [vmem:[#allocation2 + $0x19] sm:$0xff] }
  0x60   : > { %511 = vst.msk [vmem:[#allocation2 + $0xc9] sm:$0xff] %vm439_vm0, %v422_v46  ;;  %v9624_v61 = vld [vmem:[#allocation2 + $0x78] sm:$0xff] }
  0x61   : > { %514 = vst.msk [vmem:[#allocation2 + $0xf1] sm:$0xff] %vm439_vm0, %v425_v49  ;;  %v9608_v55 = vld [vmem:[#allocation2 + $0x80] sm:$0xff]  ;;  %v9706_v40 = vld [vmem:[#allocation2 + $0x31] sm:$0xff] }
  0x62   : > { %515 = vst.msk [vmem:[#allocation2 + $0xf9] sm:$0xff] %vm439_vm0, %v426_v50  ;;  %v9628_v0 = vld [vmem:[#allocation2 + $0xa8] sm:$0xff]  ;;  %v9717_v46 = vld [vmem:[#allocation2 + $0x51] sm:$0xff]  ;;  %v9724_v49 = vld [vmem:[#allocation2 + $0x39] sm:$0xff] }
  0x63   : > { %513 = vst.msk [vmem:[#allocation2 + $0xe1] sm:$0xff] %vm439_vm0, %v424_v51  ;;  %v9633_v6 = vld [vmem:[#allocation2 + $0xb0] sm:$0xff]  ;;  %v9730_v53 = vld [vmem:[#allocation2 + $0x79] sm:$0xff]  ;;  %v9750_v63 = vld [vmem:[#allocation2 + $0x81] sm:$0xff] }
  0x64   : > { %598 = vperm.xlu1 %8094, %v9603_v52   ;;  %518 = vst.msk [vmem:[#allocation2 + $0x121] sm:$0xff] %vm439_vm0, %v429_v56  ;;  %v9642_v8 = vld [vmem:[#allocation2 + $0x98] sm:$0xff]  ;;  %v9726_v50 = vld [vmem:[#allocation2 + $0x69] sm:$0xff]  ;;  %v9737_v56 = vld [vmem:[#allocation2 + $0x61] sm:$0xff] }
  0x65   : > { %618 = vperm.xlu2 %8095, %v9608_v55   ;;  %516 = vst.msk [vmem:[#allocation2 + $0x109] sm:$0xff] %vm439_vm0, %v427_v58  ;;  %v9652_v20 = vld [vmem:[#allocation2 + $0xd8] sm:$0xff]  ;;  %v9765_v10 = vld [vmem:[#allocation2 + $0xa9] sm:$0xff] }
  0x66   : > { %623 = vperm.xlu0 %8093, %v9614_v59   ;;  %517 = vst.msk [vmem:[#allocation2 + $0x111] sm:$0xff] %vm439_vm0, %v428_v60  ;;  %v9660_v21 = vld [vmem:[#allocation2 + $0xc0] sm:$0xff]  ;;  %v9739_v57 = vld [vmem:[#allocation2 + $0x91] sm:$0xff] }
  0x67   : > { %520 = vst.msk [vmem:[#allocation2 + $0x139] sm:$0xff] %vm439_vm0, %v431_v2  ;;  %v9647_v12 = vld [vmem:[#allocation2 + $0xc8] sm:$0xff]  ;;  %v9741_v58 = vld [vmem:[#allocation2 + $0x99] sm:$0xff]  ;;  %v9752_v2 = vld [vmem:[#allocation2 + $0xb1] sm:$0xff] }
  0x68   : > { %521 = vst.msk [vmem:[#allocation2 + $0x141] sm:$0xff] %vm439_vm0, %v432_v3  ;;  %v9663_v23 = vld [vmem:[#allocation2 + $0xf0] sm:$0xff]  ;;  %v9754_v3 = vld [vmem:[#allocation2 + $0xc1] sm:$0xff]  ;;  %v9767_v11 = vld [vmem:[#allocation2 + $0xd9] sm:$0xff] }
  0x69   : > { %519 = vst.msk [vmem:[#allocation2 + $0x129] sm:$0xff] %vm439_vm0, %v430_v7  ;;  %v9666_v25 = vld [vmem:[#allocation2 + $0xf8] sm:$0xff] }
  0x6a   : > { %524 = vst.msk [vmem:[#allocation2 + $0x169] sm:$0xff] %vm439_vm0, %v435_v17  ;;  %v9672_v26 = vld [vmem:[#allocation2 + $0xe0] sm:$0xff] }
  0x6b   : > { %522 = vst.msk [vmem:[#allocation2 + $0x151] sm:$0xff] %vm439_vm0, %v433_v18  ;;  %v9676_v28 = vld [vmem:[#allocation2 + $0x120] sm:$0xff] }
  0x6c   : > { %613 = vperm.xlu1 %8094, %v9624_v61   ;;  %523 = vst.msk [vmem:[#allocation2 + $0x159] sm:$0xff] %vm439_vm0, %v434_v19  ;;  %v9681_v29 = vld [vmem:[#allocation2 + $0x108] sm:$0xff] }
  0x6d   : > { %633 = vperm.xlu2 %8095, %v9628_v0   ;;  %525 = vst.msk [vmem:[#allocation2 + $0x171] sm:$0xff] %vm439_vm0, %v436_v24  ;;  %v9674_v27 = vld [vmem:[#allocation2 + $0x110] sm:$0xff]  ;;  %v9769_v17 = vld [vmem:[#allocation2 + $0xe1] sm:$0xff] }
  0x6e   : > { %638 = vperm.xlu0 %8093, %v9633_v6   ;;  %v9683_v30 = vld [vmem:[#allocation2 + $0x138] sm:$0xff]  ;;  %v9780_v24 = vld [vmem:[#allocation2 + $0xc9] sm:$0xff] }
  0x6f   : > { %v9685_v31 = vld [vmem:[#allocation2 + $0x140] sm:$0xff] }
  0x70   : > { %v9690_v32 = vld [vmem:[#allocation2 + $0x128] sm:$0xff] }
  0x71   : > { %v9694_v34 = vld [vmem:[#allocation2 + $0x168] sm:$0xff] }
  0x72   : > { %v9699_v35 = vld [vmem:[#allocation2 + $0x150] sm:$0xff] }
  0x73   : > { %v9692_v33 = vld [vmem:[#allocation2 + $0x158] sm:$0xff] }
  0x74   : > { %628 = vperm.xlu1 %8094, %v9642_v8   ;;  %v9702_v38 = vld [vmem:[#allocation2 + $0x170] sm:$0xff] }
  0x75   : > { %648 = vperm.xlu2 %8095, %v9647_v12  }
  0x76   : > { %653 = vperm.xlu0 %8093, %v9652_v20  }
  0x7c   : > { %643 = vperm.xlu1 %8094, %v9660_v21  }
  0x7d   : > { %663 = vperm.xlu2 %8095, %v9663_v23  }
  0x7e   : > { %668 = vperm.xlu0 %8093, %v9666_v25  }
  0x84   : > { %658 = vperm.xlu1 %8094, %v9672_v26  }
  0x85   : > { %678 = vperm.xlu2 %8095, %v9674_v27  }
  0x86   : > { %683 = vperm.xlu0 %8093, %v9676_v28  }
  0x8c   : > { %673 = vperm.xlu1 %8094, %v9681_v29  }
  0x8d   : > { %693 = vperm.xlu2 %8095, %v9683_v30  }
  0x8e   : > { %698 = vperm.xlu0 %8093, %v9685_v31  }
  0x94   : > { %688 = vperm.xlu1 %8094, %v9690_v32   ;;  %v9728_v51 = vpop.permute.xlu0 %563 }
  0x95   : > { %708 = vperm.xlu2 %8095, %v9692_v33   ;;  %15159 = vst [vmem:[#allocation15_spill] sm:$0xff] %v9728_v51 }
  0x96   : > { %713 = vperm.xlu0 %8093, %v9694_v34  }
  0x9c   : > { %703 = vperm.xlu1 %8094, %v9699_v35   ;;  %v9744_v60 = vpop.permute.xlu0 %568 }
  0x9d   : > { %821 = vperm.xlu2 %8095, %v786_v36   ;;  %15161 = vst [vmem:[#allocation17_spill] sm:$0xff] %v9744_v60  ;;  %v9782_v36 = vld [vmem:[#allocation2 + $0xf9] sm:$0xff] }
  0x9e   : > { %826 = vperm.xlu0 %8093, %v787_v37   ;;  %v9784_v37 = vld [vmem:[#allocation2 + $0x109] sm:$0xff] }
  0xa0   : > { %v9708_v41 = vpop.permute.xlu2 %583 }
  0xa1   : > { %15157 = vst [vmem:[#allocation13_spill] sm:$0xff] %v9708_v41  ;;  %v9829_v41 = vld [vmem:[#allocation2 + $0x171] sm:$0xff] }
  0xa2   : > { %15183 = vst [vmem:[#allocation39_spill] sm:$0xff] %v9829_v41 }
  0xa4   : > { %718 = vperm.xlu1 %8094, %v9702_v38  }
  0xa5   : > { %836 = vperm.xlu2 %8095, %v9704_v39  }
  0xa6   : > { %841 = vperm.xlu0 %8093, %v9706_v40  }
  0xa8   : > { %v9721_v47 = vpop.permute.xlu2 %588 }
  0xa9   : > { %15158 = vst [vmem:[#allocation14_spill] sm:$0xff] %v9721_v47 }
  0xac   : > { %831 = vperm.xlu1 %8094, %v9713_v43  }
  0xad   : > { %851 = vperm.xlu2 %8095, %v9715_v44  }
  0xae   : > { %856 = vperm.xlu0 %8093, %v9717_v46  }
  0xb4   : > { %846 = vperm.xlu1 %8094, %v9724_v49  }
  0xb5   : > { %866 = vperm.xlu2 %8095, %v9726_v50  }
  0xb6   : > { %871 = vperm.xlu0 %8093, %v9730_v53  }
  0xb7   : > { %v9735_v54 = vpop.permute.xlu2 %603 }
  0xb8   : > { %15160 = vst [vmem:[#allocation16_spill] sm:$0xff] %v9735_v54  ;;  %v9814_v54 = vld [vmem:[#allocation2 + $0x151] sm:$0xff] }
  0xb9   : > { %v9757_v4 = vpop.permute.xlu1 %573  ;;  %15177 = vst [vmem:[#allocation33_spill] sm:$0xff] %v9814_v54 }
  0xba   : > { %15163 = vst [vmem:[#allocation19_spill] sm:$0xff] %v9757_v4  ;;  %v9761_v7 = vpop.permute.xlu0 %593 }
  0xbb   : > { %15164 = vst [vmem:[#allocation20_spill] sm:$0xff] %v9761_v7 }
  0xbc   : > { %861 = vperm.xlu1 %8094, %v9737_v56  }
  0xbd   : > { %881 = vperm.xlu2 %8095, %v9739_v57  }
  0xbe   : > { %886 = vperm.xlu0 %8093, %v9741_v58  }
  0xbf   : > { %v9748_v62 = vpop.permute.xlu2 %618 }
  0xc0   : > { %15162 = vst [vmem:[#allocation18_spill] sm:$0xff] %v9748_v62  ;;  %v9799_v62 = vld [vmem:[#allocation2 + $0x129] sm:$0xff] }
  0xc1   : > { %15172 = vst [vmem:[#allocation28_spill] sm:$0xff] %v9799_v62 }
  0xc4   : > { %876 = vperm.xlu1 %8094, %v9750_v63  }
  0xc5   : > { %896 = vperm.xlu2 %8095, %v9752_v2  }
  0xc6   : > { %901 = vperm.xlu0 %8093, %v9754_v3  }
  0xc7   : > { %v9763_v9 = vpop.permute.xlu2 %633 }
  0xc8   : > { %15165 = vst [vmem:[#allocation21_spill] sm:$0xff] %v9763_v9 }
  0xcc   : > { %891 = vperm.xlu1 %8094, %v9765_v10  }
  0xcd   : > { %911 = vperm.xlu2 %8095, %v9767_v11  }
  0xce   : > { %v9773_v18 = vpop.permute.xlu1 %578  ;;  %916 = vperm.xlu0 %8093, %v9769_v17  }
  0xcf   : > { %15166 = vst [vmem:[#allocation22_spill] sm:$0xff] %v9773_v18  ;;  %v9776_v19 = vpop.permute.xlu2 %648 }
  0xd0   : > { %15167 = vst [vmem:[#allocation23_spill] sm:$0xff] %v9776_v19  ;;  %v9778_v22 = vpop.permute.xlu0 %608  ;;  %v9795_v19 = vld [vmem:[#allocation2 + $0xf1] sm:$0xff] }
  0xd1   : > { %15168 = vst [vmem:[#allocation24_spill] sm:$0xff] %v9778_v22  ;;  %v9797_v22 = vld [vmem:[#allocation2 + $0x121] sm:$0xff] }
  0xd4   : > { %906 = vperm.xlu1 %8094, %v9780_v24  }
  0xd5   : > { %926 = vperm.xlu2 %8095, %v9782_v36  }
  0xd6   : > { %v9788_v1 = vpop.permute.xlu1 %598  ;;  %931 = vperm.xlu0 %8093, %v9784_v37  }
  0xd7   : > { %15169 = vst [vmem:[#allocation25_spill] sm:$0xff] %v9788_v1  ;;  %v9791_v18 = vpop.permute.xlu2 %663 }
  0xd8   : > { %15170 = vst [vmem:[#allocation26_spill] sm:$0xff] %v9791_v18  ;;  %v9793_v9 = vpop.permute.xlu0 %623  ;;  %v9810_v18 = vld [vmem:[#allocation2 + $0x111] sm:$0xff] }
  0xd9   : > { %15171 = vst [vmem:[#allocation27_spill] sm:$0xff] %v9793_v9  ;;  %v9812_v9 = vld [vmem:[#allocation2 + $0x141] sm:$0xff] }
  0xda   : > { %15176 = vst [vmem:[#allocation32_spill] sm:$0xff] %v9812_v9 }
  0xdc   : > { %921 = vperm.xlu1 %8094, %v9795_v19  }
  0xdd   : > { %941 = vperm.xlu2 %8095, %v9797_v22  }
  0xde   : > { %v9803_v7 = vpop.permute.xlu1 %613  ;;  %946 = vperm.xlu0 %8093, %v9799_v62   ;;  %v9842_v62 = vld [vmem:[#allocation2 + $0x1a] sm:$0xff] }
  0xdf   : > { %15173 = vst [vmem:[#allocation29_spill] sm:$0xff] %v9803_v7  ;;  %v9806_v1 = vpop.permute.xlu2 %678 }
  0xe0   : > { %15174 = vst [vmem:[#allocation30_spill] sm:$0xff] %v9806_v1  ;;  %v9808_v4 = vpop.permute.xlu0 %638  ;;  %v9825_v1 = vld [vmem:[#allocation2 + $0x139] sm:$0xff] }
  0xe1   : > { %15175 = vst [vmem:[#allocation31_spill] sm:$0xff] %v9808_v4  ;;  %v9827_v4 = vld [vmem:[#allocation2 + $0x169] sm:$0xff] }
  0xe2   : > { %15181 = vst [vmem:[#allocation37_spill] sm:$0xff] %v9825_v1 }
  0xe3   : > { %15182 = vst [vmem:[#allocation38_spill] sm:$0xff] %v9827_v4 }
  0xe4   : > { %936 = vperm.xlu1 %8094, %v9810_v18   ;;  %15187 = vst [vmem:[#allocation43_spill] sm:$0xff] %v9842_v62 }
  0xe5   : > { %956 = vperm.xlu2 %8095, %v9812_v9  }
  0xe6   : > { %v9818_v60 = vpop.permute.xlu1 %628  ;;  %961 = vperm.xlu0 %8093, %v9814_v54  }
  0xe7   : > { %15178 = vst [vmem:[#allocation34_spill] sm:$0xff] %v9818_v60  ;;  %v9821_v7 = vpop.permute.xlu2 %693 }
  0xe8   : > { %15179 = vst [vmem:[#allocation35_spill] sm:$0xff] %v9821_v7  ;;  %v9823_v47 = vpop.permute.xlu0 %653  ;;  %v9840_v7 = vld [vmem:[#allocation2 + $0x159] sm:$0xff] }
  0xe9   : > { %15180 = vst [vmem:[#allocation36_spill] sm:$0xff] %v9823_v47  ;;  %v1045_v47 = vld [vmem:[#allocation2 + $0xa] sm:$0xff] }
  0xec   : > { %951 = vperm.xlu1 %8094, %v9825_v1  }
  0xed   : > { %971 = vperm.xlu2 %8095, %v9827_v4  }
  0xee   : > { %v9833_v51 = vpop.permute.xlu1 %643  ;;  %976 = vperm.xlu0 %8093, %v9829_v41   ;;  %v1044_v41 = vld [vmem:[#allocation2 + $0x2] sm:$0xff] }
  0xef   : > { %15184 = vst [vmem:[#allocation40_spill] sm:$0xff] %v9833_v51  ;;  %v9836_v60 = vpop.permute.xlu2 %708 }
  0xf0   : > { %15185 = vst [vmem:[#allocation41_spill] sm:$0xff] %v9836_v60  ;;  %v9838_v54 = vpop.permute.xlu0 %668  ;;  %v9852_v60 = vld [vmem:[#allocation2 + $0x32] sm:$0xff] }
  0xf1   : > { %15186 = vst [vmem:[#allocation42_spill] sm:$0xff] %v9838_v54  ;;  %v9854_v54 = vld [vmem:[#allocation2 + $0x3a] sm:$0xff] }
  0xf2   : > { %15191 = vst [vmem:[#allocation47_spill] sm:$0xff] %v9852_v60 }
  0xf3   : > { %15192 = vst [vmem:[#allocation48_spill] sm:$0xff] %v9854_v54 }
  0xf4   : > { %966 = vperm.xlu1 %8094, %v9840_v7  }
  0xf5   : > { %1084 = vperm.xlu2 %8095, %v1045_v47  }
  0xf6   : > { %v9845_v9 = vpop.permute.xlu1 %658  ;;  %1089 = vperm.xlu0 %8093, %v9842_v62   ;;  %v9864_v62 = vld [vmem:[#allocation2 + $0x22] sm:$0xff] }
  0xf7   : > { %15188 = vst [vmem:[#allocation44_spill] sm:$0xff] %v9845_v9  ;;  %v9848_v4 = vpop.permute.xlu2 %821 }
  0xf8   : > { %15189 = vst [vmem:[#allocation45_spill] sm:$0xff] %v9848_v4  ;;  %v9850_v51 = vpop.permute.xlu0 %683  ;;  %v9866_v4 = vld [vmem:[#allocation2 + $0x52] sm:$0xff] }
  0xf9   : > { %15190 = vst [vmem:[#allocation46_spill] sm:$0xff] %v9850_v51  ;;  %v9868_v51 = vld [vmem:[#allocation2 + $0x62] sm:$0xff] }
  0xfa   : > { %15196 = vst [vmem:[#allocation52_spill] sm:$0xff] %v9864_v62 }
  0xfb   : > { %15197 = vst [vmem:[#allocation53_spill] sm:$0xff] %v9866_v4 }
  0xfc   : > { %1079 = vperm.xlu1 %8094, %v1044_v41   ;;  %15198 = vst [vmem:[#allocation54_spill] sm:$0xff] %v9868_v51 }
  0xfd   : > { %1099 = vperm.xlu2 %8095, %v9852_v60   ;;  %v9883_v60 = vld [vmem:[#allocation2 + $0x82] sm:$0xff] }
  0xfe   : > { %v9857_v1 = vpop.permute.xlu1 %673  ;;  %1104 = vperm.xlu0 %8093, %v9854_v54   ;;  %15204 = vst [vmem:[#allocation60_spill] sm:$0xff] %v9883_v60 }
  0xff   : > { %15193 = vst [vmem:[#allocation49_spill] sm:$0xff] %v9857_v1  ;;  %v9860_v47 = vpop.permute.xlu2 %836 }
 0x100   : > { %15194 = vst [vmem:[#allocation50_spill] sm:$0xff] %v9860_v47  ;;  %v9862_v9 = vpop.permute.xlu0 %698  ;;  %v9879_v47 = vld [vmem:[#allocation2 + $0x4a] sm:$0xff] }
 0x101   : > { %15195 = vst [vmem:[#allocation51_spill] sm:$0xff] %v9862_v9  ;;  %v9881_v9 = vld [vmem:[#allocation2 + $0x7a] sm:$0xff] }
 0x102   : > { %15202 = vst [vmem:[#allocation58_spill] sm:$0xff] %v9879_v47 }
 0x103   : > { %15203 = vst [vmem:[#allocation59_spill] sm:$0xff] %v9881_v9 }
 0x104   : > { %1094 = vperm.xlu1 %8094, %v9864_v62  }
 0x105   : > { %1114 = vperm.xlu2 %8095, %v9866_v4   ;;  %v9898_v4 = vld [vmem:[#allocation2 + $0xaa] sm:$0xff] }
 0x106   : > { %v9872_v41 = vpop.permute.xlu1 %688  ;;  %1119 = vperm.xlu0 %8093, %v9868_v51   ;;  %15210 = vst [vmem:[#allocation66_spill] sm:$0xff] %v9898_v4 }
 0x107   : > { %15199 = vst [vmem:[#allocation55_spill] sm:$0xff] %v9872_v41  ;;  %v9875_v1 = vpop.permute.xlu2 %851 }
 0x108   : > { %15200 = vst [vmem:[#allocation56_spill] sm:$0xff] %v9875_v1  ;;  %v9877_v54 = vpop.permute.xlu0 %713  ;;  %v9894_v1 = vld [vmem:[#allocation2 + $0x6a] sm:$0xff] }
 0x109   : > { %15201 = vst [vmem:[#allocation57_spill] sm:$0xff] %v9877_v54  ;;  %v9896_v54 = vld [vmem:[#allocation2 + $0x9a] sm:$0xff] }
 0x10a   : > { %15208 = vst [vmem:[#allocation64_spill] sm:$0xff] %v9894_v1 }
 0x10b   : > { %15209 = vst [vmem:[#allocation65_spill] sm:$0xff] %v9896_v54 }
 0x10c   : > { %1109 = vperm.xlu1 %8094, %v9879_v47  }
 0x10d   : > { %1129 = vperm.xlu2 %8095, %v9881_v9   ;;  %v9913_v9 = vld [vmem:[#allocation2 + $0xca] sm:$0xff] }
 0x10e   : > { %v9887_v62 = vpop.permute.xlu1 %703  ;;  %1134 = vperm.xlu0 %8093, %v9883_v60   ;;  %15216 = vst [vmem:[#allocation72_spill] sm:$0xff] %v9913_v9 }
 0x10f   : > { %15205 = vst [vmem:[#allocation61_spill] sm:$0xff] %v9887_v62  ;;  %v9890_v41 = vpop.permute.xlu2 %866 }
 0x110   : > { %15206 = vst [vmem:[#allocation62_spill] sm:$0xff] %v9890_v41  ;;  %v9892_v51 = vpop.permute.xlu0 %826  ;;  %v9909_v41 = vld [vmem:[#allocation2 + $0x92] sm:$0xff] }
 0x111   : > { %15207 = vst [vmem:[#allocation63_spill] sm:$0xff] %v9892_v51  ;;  %v9911_v51 = vld [vmem:[#allocation2 + $0xc2] sm:$0xff] }
 0x112   : > { %15214 = vst [vmem:[#allocation70_spill] sm:$0xff] %v9909_v41 }
 0x113   : > { %15215 = vst [vmem:[#allocation71_spill] sm:$0xff] %v9911_v51 }
 0x114   : > { %1124 = vperm.xlu1 %8094, %v9894_v1  }
 0x115   : > { %1144 = vperm.xlu2 %8095, %v9896_v54   ;;  %v9928_v54 = vld [vmem:[#allocation2 + $0xf2] sm:$0xff] }
 0x116   : > { %v9902_v47 = vpop.permute.xlu1 %718  ;;  %1149 = vperm.xlu0 %8093, %v9898_v4   ;;  %15222 = vst [vmem:[#allocation78_spill] sm:$0xff] %v9928_v54 }
 0x117   : > { %15211 = vst [vmem:[#allocation67_spill] sm:$0xff] %v9902_v47  ;;  %v9905_v62 = vpop.permute.xlu2 %881 }
 0x118   : > { %15212 = vst [vmem:[#allocation68_spill] sm:$0xff] %v9905_v62  ;;  %v9907_v60 = vpop.permute.xlu0 %841  ;;  %v9924_v62 = vld [vmem:[#allocation2 + $0xb2] sm:$0xff] }
 0x119   : > { %15213 = vst [vmem:[#allocation69_spill] sm:$0xff] %v9907_v60  ;;  %v9926_v60 = vld [vmem:[#allocation2 + $0xe2] sm:$0xff] }
 0x11a   : > { %15220 = vst [vmem:[#allocation76_spill] sm:$0xff] %v9924_v62 }
 0x11b   : > { %15221 = vst [vmem:[#allocation77_spill] sm:$0xff] %v9926_v60 }
 0x11c   : > { %1139 = vperm.xlu1 %8094, %v9909_v41  }
 0x11d   : > { %1159 = vperm.xlu2 %8095, %v9911_v51   ;;  %v9943_v51 = vld [vmem:[#allocation2 + $0x112] sm:$0xff] }
 0x11e   : > { %v9917_v1 = vpop.permute.xlu1 %831  ;;  %1164 = vperm.xlu0 %8093, %v9913_v9   ;;  %15228 = vst [vmem:[#allocation84_spill] sm:$0xff] %v9943_v51 }
 0x11f   : > { %15217 = vst [vmem:[#allocation73_spill] sm:$0xff] %v9917_v1  ;;  %v9920_v47 = vpop.permute.xlu2 %896 }
 0x120   : > { %15218 = vst [vmem:[#allocation74_spill] sm:$0xff] %v9920_v47  ;;  %v9922_v4 = vpop.permute.xlu0 %856  ;;  %v9939_v47 = vld [vmem:[#allocation2 + $0xda] sm:$0xff] }
 0x121   : > { %15219 = vst [vmem:[#allocation75_spill] sm:$0xff] %v9922_v4  ;;  %v9941_v4 = vld [vmem:[#allocation2 + $0x10a] sm:$0xff] }
 0x122   : > { %15226 = vst [vmem:[#allocation82_spill] sm:$0xff] %v9939_v47 }
 0x123   : > { %15227 = vst [vmem:[#allocation83_spill] sm:$0xff] %v9941_v4 }
 0x124   : > { %1154 = vperm.xlu1 %8094, %v9924_v62  }
 0x125   : > { %1174 = vperm.xlu2 %8095, %v9926_v60   ;;  %v9958_v60 = vld [vmem:[#allocation2 + $0x13a] sm:$0xff] }
 0x126   : > { %v9932_v41 = vpop.permute.xlu1 %846  ;;  %1179 = vperm.xlu0 %8093, %v9928_v54   ;;  %15234 = vst [vmem:[#allocation90_spill] sm:$0xff] %v9958_v60 }
 0x127   : > { %15223 = vst [vmem:[#allocation79_spill] sm:$0xff] %v9932_v41  ;;  %v9935_v1 = vpop.permute.xlu2 %911 }
 0x128   : > { %15224 = vst [vmem:[#allocation80_spill] sm:$0xff] %v9935_v1  ;;  %v9937_v9 = vpop.permute.xlu0 %871  ;;  %v9954_v1 = vld [vmem:[#allocation2 + $0xfa] sm:$0xff] }
 0x129   : > { %15225 = vst [vmem:[#allocation81_spill] sm:$0xff] %v9937_v9  ;;  %v9956_v9 = vld [vmem:[#allocation2 + $0x12a] sm:$0xff] }
 0x12a   : > { %15232 = vst [vmem:[#allocation88_spill] sm:$0xff] %v9954_v1 }
 0x12b   : > { %15233 = vst [vmem:[#allocation89_spill] sm:$0xff] %v9956_v9 }
 0x12c   : > { %1169 = vperm.xlu1 %8094, %v9939_v47  }
 0x12d   : > { %1189 = vperm.xlu2 %8095, %v9941_v4   ;;  %v9973_v4 = vld [vmem:[#allocation2 + $0x15a] sm:$0xff] }
 0x12e   : > { %v9947_v62 = vpop.permute.xlu1 %861  ;;  %1194 = vperm.xlu0 %8093, %v9943_v51   ;;  %15239 = vst [vmem:[#allocation95_spill] sm:$0xff] %v9973_v4 }
 0x12f   : > { %15229 = vst [vmem:[#allocation85_spill] sm:$0xff] %v9947_v62  ;;  %v9950_v41 = vpop.permute.xlu2 %926 }
 0x130   : > { %15230 = vst [vmem:[#allocation86_spill] sm:$0xff] %v9950_v41  ;;  %v9952_v54 = vpop.permute.xlu0 %886  ;;  %v9969_v41 = vld [vmem:[#allocation2 + $0x122] sm:$0xff] }
 0x131   : > { %15231 = vst [vmem:[#allocation87_spill] sm:$0xff] %v9952_v54  ;;  %v9971_v54 = vld [vmem:[#allocation2 + $0x152] sm:$0xff] }
 0x132   : > { %15238 = vst [vmem:[#allocation94_spill] sm:$0xff] %v9971_v54 }
 0x134   : > { %1184 = vperm.xlu1 %8094, %v9954_v1  }
 0x135   : > { %1204 = vperm.xlu2 %8095, %v9956_v9  }
 0x136   : > { %v9962_v47 = vpop.permute.xlu1 %876  ;;  %1209 = vperm.xlu0 %8093, %v9958_v60  }
 0x137   : > { %15235 = vst [vmem:[#allocation91_spill] sm:$0xff] %v9962_v47  ;;  %v9965_v62 = vpop.permute.xlu2 %941 }
 0x138   : > { %15236 = vst [vmem:[#allocation92_spill] sm:$0xff] %v9965_v62  ;;  %v9967_v51 = vpop.permute.xlu0 %901  ;;  %v9984_v62 = vld [vmem:[#allocation2 + $0x142] sm:$0xff] }
 0x139   : > { %15237 = vst [vmem:[#allocation93_spill] sm:$0xff] %v9967_v51  ;;  %v9986_v51 = vld [vmem:[#allocation2 + $0x172] sm:$0xff] }
 0x13a   : > { %15243 = vst [vmem:[#allocation99_spill] sm:$0xff] %v9986_v51 }
 0x13c   : > { %1199 = vperm.xlu1 %8094, %v9969_v41  }
 0x13d   : > { %1219 = vperm.xlu2 %8095, %v9971_v54  }
 0x13e   : > { %v9977_v1 = vpop.permute.xlu1 %891  ;;  %1224 = vperm.xlu0 %8093, %v9973_v4   ;;  %v9997_v4 = vld [vmem:[#allocation2 + $0x16a] sm:$0xff] }
 0x13f   : > { %15240 = vst [vmem:[#allocation96_spill] sm:$0xff] %v9977_v1  ;;  %v9980_v47 = vpop.permute.xlu2 %956 }
 0x140   : > { %15241 = vst [vmem:[#allocation97_spill] sm:$0xff] %v9980_v47  ;;  %v9982_v60 = vpop.permute.xlu0 %916 }
 0x141   : > { %15242 = vst [vmem:[#allocation98_spill] sm:$0xff] %v9982_v60 }
 0x144   : > { %1214 = vperm.xlu1 %8094, %v9984_v62  }
 0x145   : > { %1234 = vperm.xlu2 %8095, %v9986_v51  }
 0x146   : > { %v9990_v9 = vpop.permute.xlu1 %906  ;;  %1337 = vperm.xlu0 %8093, %v9512_v14  }
 0x147   : > { %v9993_v54 = vpop.permute.xlu2 %971 }
 0x148   : > { %15244 = vst [vmem:[#allocation100_spill] sm:$0xff] %v9993_v54  ;;  %v9995_v1 = vpop.permute.xlu0 %931 }
 0x149   : > { %15245 = vst [vmem:[#allocation101_spill] sm:$0xff] %v9995_v1 }
 0x14c   : > { %1229 = vperm.xlu1 %8094, %v9997_v4  }
 0x14d   : > { %1347 = vperm.xlu2 %8095, %v9507_v13  }
 0x14e   : > { %v10001_v60 = vpop.permute.xlu1 %921  ;;  %1352 = vperm.xlu0 %8093, %v9528_v16  }
 0x14f   : > { %v10004_v47 = vpop.permute.xlu2 %1084 }
 0x150   : > { %v10006_v51 = vpop.permute.xlu0 %946 }
 0x154   : > { %1342 = vperm.xlu1 %8094, %v9581_v42  }
 0x155   : > { %1362 = vperm.xlu2 %8095, %v9603_v52  }
 0x156   : > { %v10010_v14 = vpop.permute.xlu1 %936  ;;  %1367 = vperm.xlu0 %8093, %v9587_v45  }
 0x157   : > { %v10013_v54 = vpop.permute.xlu2 %1099 }
 0x158   : > { %v10015_v1 = vpop.permute.xlu0 %961 }
 0x15c   : > { %1357 = vperm.xlu1 %8094, %v9517_v15  }
 0x15d   : > { %1377 = vperm.xlu2 %8095, %v9624_v61  }
 0x15e   : > { %v10019_v13 = vpop.permute.xlu1 %951  ;;  %1382 = vperm.xlu0 %8093, %v9608_v55  }
 0x15f   : > { %v10022_v16 = vpop.permute.xlu2 %1114 }
 0x160   : > { %v10024_v42 = vpop.permute.xlu0 %976 }
 0x164   : > { %1372 = vperm.xlu1 %8094, %v9592_v48  }
 0x165   : > { %1392 = vperm.xlu2 %8095, %v9642_v8   ;;  %v403_v8 = vld [vmem:[%s9467_s19 + $0xf0] sm:$0xff] }
 0x166   : > { %v10028_v45 = vpop.permute.xlu1 %966  ;;  %1397 = vperm.xlu0 %8093, %v9628_v0   ;;  %v437_v0 = vadd.f32 %v9476_v5, %v403_v8 }
 0x167   : > { %v10031_v15 = vpop.permute.xlu2 %1129 }
 0x168   : > { %v10033_v52 = vpop.permute.xlu0 %1089  ;;  %526 = vst.msk [vmem:[#allocation2 + $0x181] sm:$0xff] %vm439_vm0, %v437_v0 }
 0x169   : > { %15246 = vst [vmem:[#allocation102_spill] sm:$0xff] %v10033_v52  ;;  %v15495_v52 = vld [vmem:[#allocation79_spill] sm:$0xff] }
 0x16c   : > { %1387 = vperm.xlu1 %8094, %v9614_v59  }
 0x16d   : > { %1407 = vperm.xlu2 %8095, %v9660_v21  }
 0x16e   : > { %v10037_v55 = vpop.permute.xlu1 %1079  ;;  %1412 = vperm.xlu0 %8093, %v9647_v12  }
 0x16f   : > { %15247 = vst [vmem:[#allocation103_spill] sm:$0xff] %v10037_v55  ;;  %v10040_v48 = vpop.permute.xlu2 %1144  ;;  %v15494_v55 = vld [vmem:[#allocation67_spill] sm:$0xff] }
 0x170   : > { %15248 = vst [vmem:[#allocation104_spill] sm:$0xff] %v10040_v48  ;;  %v10042_v61 = vpop.permute.xlu0 %1104  ;;  %v404_v48 = vld [vmem:[%s9467_s19 + $0xf8] sm:$0xff]  ;;  %s9294_s19 = smov 112  }
 0x171   : > { %15249 = vst [vmem:[#allocation105_spill] sm:$0xff] %v10042_v61  ;;  %v438_v61 = vadd.f32 %v9476_v5, %v404_v48 }
 0x173   : > { %527 = vst.msk [vmem:[#allocation2 + $0x189] sm:$0xff] %vm439_vm0, %v438_v61  ;;  %vm7835_vm0 = vcmask 1045509  }
 0x174   : > { %1402 = vperm.xlu1 %8094, %v9633_v6  }
 0x175   : > { %1422 = vperm.xlu2 %8095, %v9672_v26  }
 0x176   : > { %v10049_v59 = vpop.permute.xlu1 %1094  ;;  %1427 = vperm.xlu0 %8093, %v9663_v23  }
 0x177   : > { %15250 = vst [vmem:[#allocation106_spill] sm:$0xff] %v10049_v59  ;;  %v10052_v21 = vpop.permute.xlu2 %1159  ;;  %v15488_v59 = vld [vmem:[#allocation74_spill] sm:$0xff] }
 0x178   : > { %15251 = vst [vmem:[#allocation107_spill] sm:$0xff] %v10052_v21  ;;  %v10054_v12 = vpop.permute.xlu0 %1119  ;;  %v15487_v21 = vld [vmem:[#allocation75_spill] sm:$0xff] }
 0x179   : > { %15252 = vst [vmem:[#allocation108_spill] sm:$0xff] %v10054_v12  ;;  %v15481_v12 = vld [vmem:[#allocation62_spill] sm:$0xff] }
 0x17c   : > { %1417 = vperm.xlu1 %8094, %v9652_v20  }
 0x17d   : > { %1437 = vperm.xlu2 %8095, %v9681_v29  }
 0x17e   : > { %v10061_v6 = vpop.permute.xlu1 %1109  ;;  %1442 = vperm.xlu0 %8093, %v9674_v27  }
 0x17f   : > { %15253 = vst [vmem:[#allocation109_spill] sm:$0xff] %v10061_v6  ;;  %v10064_v26 = vpop.permute.xlu2 %1174 }
 0x180   : > { %15254 = vst [vmem:[#allocation110_spill] sm:$0xff] %v10064_v26  ;;  %v10066_v23 = vpop.permute.xlu0 %1134 }
 0x181   : > { %15255 = vst [vmem:[#allocation111_spill] sm:$0xff] %v10066_v23  ;;  %v15478_v23 = vld [vmem:[#allocation56_spill] sm:$0xff] }
 0x184   : > { %1432 = vperm.xlu1 %8094, %v9666_v25  }
 0x185   : > { %1452 = vperm.xlu2 %8095, %v9690_v32   ;;  %v10086_v32 = vld [vmem:[#allocation2 + $0x180] sm:$0xff] }
 0x186   : > { %v10070_v8 = vpop.permute.xlu1 %1124  ;;  %1457 = vperm.xlu0 %8093, %v9683_v30  }
 0x187   : > { %15256 = vst [vmem:[#allocation112_spill] sm:$0xff] %v10070_v8  ;;  %v10073_v5 = vpop.permute.xlu2 %1189 }
 0x188   : > { %15257 = vst [vmem:[#allocation113_spill] sm:$0xff] %v10073_v5  ;;  %v10075_v20 = vpop.permute.xlu0 %1149 }
 0x189   : > { %15258 = vst [vmem:[#allocation114_spill] sm:$0xff] %v10075_v20 }
 0x18c   : > { %1447 = vperm.xlu1 %8094, %v9676_v28  }
 0x18d   : > { %1467 = vperm.xlu2 %8095, %v9699_v35  }
 0x18e   : > { %v10079_v27 = vpop.permute.xlu1 %1139  ;;  %1472 = vperm.xlu0 %8093, %v9692_v33  }
 0x18f   : > { %15259 = vst [vmem:[#allocation115_spill] sm:$0xff] %v10079_v27  ;;  %v10082_v29 = vpop.permute.xlu2 %1204 }
 0x190   : > { %15260 = vst [vmem:[#allocation116_spill] sm:$0xff] %v10082_v29  ;;  %v10084_v25 = vpop.permute.xlu0 %1164 }
 0x191   : > { %15261 = vst [vmem:[#allocation117_spill] sm:$0xff] %v10084_v25 }
 0x194   : > { %1462 = vperm.xlu1 %8094, %v9685_v31  }
 0x195   : > { %1482 = vperm.xlu2 %8095, %v9702_v38   ;;  %v10106_v38 = vld [vmem:[#allocation2 + $0x188] sm:$0xff] }
 0x196   : > { %v10090_v30 = vpop.permute.xlu1 %1154  ;;  %1487 = vperm.xlu0 %8093, %v10086_v32  }
 0x197   : > { %15262 = vst [vmem:[#allocation118_spill] sm:$0xff] %v10090_v30  ;;  %v10093_v28 = vpop.permute.xlu2 %1219 }
 0x198   : > { %15263 = vst [vmem:[#allocation119_spill] sm:$0xff] %v10093_v28  ;;  %v10095_v35 = vpop.permute.xlu0 %1179 }
 0x199   : > { %15264 = vst [vmem:[#allocation120_spill] sm:$0xff] %v10095_v35 }
 0x19c   : > { %1477 = vperm.xlu1 %8094, %v9694_v34  }
 0x19d   : > { %1595 = vperm.xlu2 %8095, %v9713_v43  }
 0x19e   : > { %v10099_v33 = vpop.permute.xlu1 %1169  ;;  %1600 = vperm.xlu0 %8093, %v9704_v39  }
 0x19f   : > { %15265 = vst [vmem:[#allocation121_spill] sm:$0xff] %v10099_v33  ;;  %v10102_v48 = vpop.permute.xlu2 %1234  ;;  %v2617_v33 = vld [vmem:[#allocation2 + $0x152] sm:$0xff] }
 0x1a0   : > { %15266 = vst [vmem:[#allocation122_spill] sm:$0xff] %v10102_v48  ;;  %v10104_v31 = vpop.permute.xlu0 %1194  ;;  %v15463_v48 = vld [vmem:[#allocation30_spill] sm:$0xff] }
 0x1a1   : > { %15267 = vst [vmem:[#allocation123_spill] sm:$0xff] %v10104_v31 }
 0x1a4   : > { %1492 = vperm.xlu1 %8094, %v10106_v38  }
 0x1a5   : > { %1610 = vperm.xlu2 %8095, %v9724_v49  }
 0x1a6   : > { %v10110_v61 = vpop.permute.xlu1 %1184  ;;  %1615 = vperm.xlu0 %8093, %v9715_v44  }
 0x1a7   : > { %15268 = vst [vmem:[#allocation124_spill] sm:$0xff] %v10110_v61  ;;  %v10113_v34 = vpop.permute.xlu2 %1347  ;;  %v15462_v61 = vld [vmem:[#allocation31_spill] sm:$0xff] }
 0x1a8   : > { %15269 = vst [vmem:[#allocation125_spill] sm:$0xff] %v10113_v34  ;;  %v10115_v43 = vpop.permute.xlu0 %1209  ;;  %v15461_v34 = vld [vmem:[#allocation29_spill] sm:$0xff] }
 0x1a9   : > { %15270 = vst [vmem:[#allocation126_spill] sm:$0xff] %v10115_v43 }
 0x1ac   : > { %1605 = vperm.xlu1 %8094, %v9706_v40  }
 0x1ad   : > { %1625 = vperm.xlu2 %8095, %v9737_v56  }
 0x1ae   : > { %v10119_v39 = vpop.permute.xlu1 %1199  ;;  %1630 = vperm.xlu0 %8093, %v9726_v50  }
 0x1af   : > { %15271 = vst [vmem:[#allocation127_spill] sm:$0xff] %v10119_v39  ;;  %v10122_v0 = vpop.permute.xlu2 %1362 }
 0x1b0   : > { %15272 = vst [vmem:[#allocation128_spill] sm:$0xff] %v10122_v0  ;;  %v10124_v31 = vpop.permute.xlu0 %1224 }
 0x1b1   : > { %15273 = vst [vmem:[#allocation129_spill] sm:$0xff] %v10124_v31  ;;  %v15457_v31 = vld [vmem:[#allocation25_spill] sm:$0xff] }
 0x1b4   : > { %1620 = vperm.xlu1 %8094, %v9717_v46  }
 0x1b5   : > { %1640 = vperm.xlu2 %8095, %v9750_v63  }
 0x1b6   : > { %v10128_v44 = vpop.permute.xlu1 %1214  ;;  %1645 = vperm.xlu0 %8093, %v9739_v57  }
 0x1b7   : > { %15274 = vst [vmem:[#allocation130_spill] sm:$0xff] %v10128_v44  ;;  %v10131_v49 = vpop.permute.xlu2 %1377 }
 0x1b8   : > { %15275 = vst [vmem:[#allocation131_spill] sm:$0xff] %v10131_v49  ;;  %v10133_v40 = vpop.permute.xlu0 %1337 }
 0x1b9   : > { %15276 = vst [vmem:[#allocation132_spill] sm:$0xff] %v10133_v40 }
 0x1bc   : > { %1635 = vperm.xlu1 %8094, %v9730_v53  }
 0x1bd   : > { %1655 = vperm.xlu2 %8095, %v9765_v10  }
 0x1be   : > { %v10137_v50 = vpop.permute.xlu1 %1229  ;;  %1660 = vperm.xlu0 %8093, %v9752_v2  }
 0x1bf   : > { %15277 = vst [vmem:[#allocation133_spill] sm:$0xff] %v10137_v50  ;;  %v10140_v56 = vpop.permute.xlu2 %1392  ;;  %v15290_v50 = vld [vmem:[#allocation32_spill] sm:$0xff] }
 0x1c0   : > { %15278 = vst [vmem:[#allocation134_spill] sm:$0xff] %v10140_v56  ;;  %v10142_v46 = vpop.permute.xlu0 %1352  ;;  %v15452_v56 = vld [vmem:[#allocation21_spill] sm:$0xff] }
 0x1c1   : > { %15279 = vst [vmem:[#allocation135_spill] sm:$0xff] %v10142_v46  ;;  %v15450_v46 = vld [vmem:[#allocation20_spill] sm:$0xff] }
 0x1c4   : > { %1650 = vperm.xlu1 %8094, %v9741_v58  }
 0x1c5   : > { %1670 = vperm.xlu2 %8095, %v9780_v24  }
 0x1c6   : > { %v10146_v57 = vpop.permute.xlu1 %1342  ;;  %1675 = vperm.xlu0 %8093, %v9767_v11  }
 0x1c7   : > { %v10149_v63 = vpop.permute.xlu2 %1407 }
 0x1c8   : > { %15280 = vst [vmem:[#allocation136_spill] sm:$0xff] %v10149_v63  ;;  %v10151_v53 = vpop.permute.xlu0 %1367  ;;  %v15449_v63 = vld [vmem:[#allocation19_spill] sm:$0xff] }
 0x1c9   : > { %15281 = vst [vmem:[#allocation137_spill] sm:$0xff] %v10151_v53 }
 0x1cc   : > { %1665 = vperm.xlu1 %8094, %v9754_v3  }
 0x1cd   : > { %1685 = vperm.xlu2 %8095, %v9795_v19   ;;  %v15288_v19 = vld [vmem:[#allocation37_spill] sm:$0xff] }
 0x1ce   : > { %v10155_v2 = vpop.permute.xlu1 %1357  ;;  %1690 = vperm.xlu0 %8093, %v9782_v36  }
 0x1cf   : > { %15282 = vst [vmem:[#allocation138_spill] sm:$0xff] %v10155_v2  ;;  %v10158_v10 = vpop.permute.xlu2 %1422 }
 0x1d0   : > { %15283 = vst [vmem:[#allocation139_spill] sm:$0xff] %v10158_v10  ;;  %v10160_v58 = vpop.permute.xlu0 %1382 }
 0x1d1   : > { %15284 = vst [vmem:[#allocation140_spill] sm:$0xff] %v10160_v58 }
 0x1d4   : > { %1680 = vperm.xlu1 %8094, %v9769_v17  }
 0x1d5   : > { %1700 = vperm.xlu2 %8095, %v9810_v18   ;;  %v15293_v18 = vld [vmem:[#allocation28_spill] sm:$0xff] }
 0x1d6   : > { %v10164_v11 = vpop.permute.xlu1 %1372  ;;  %1705 = vperm.xlu0 %8093, %v9797_v22  }
 0x1d7   : > { %15285 = vst [vmem:[#allocation141_spill] sm:$0xff] %v10164_v11  ;;  %v10167_v24 = vpop.permute.xlu2 %1437  ;;  %v15308_v11 = vld [vmem:[#allocation43_spill] sm:$0xff] }
 0x1d8   : > { %15286 = vst [vmem:[#allocation142_spill] sm:$0xff] %v10167_v24  ;;  %v10169_v3 = vpop.permute.xlu0 %1397  ;;  %v15295_v24 = vld [vmem:[#allocation38_spill] sm:$0xff] }
 0x1d9   : > { %15287 = vst [vmem:[#allocation143_spill] sm:$0xff] %v10169_v3 }
 0x1dc   : > { %1695 = vperm.xlu1 %8094, %v9784_v37  }
 0x1dd   : > { %1715 = vperm.xlu2 %8095, %v15288_v19   ;;  %v10189_v19 = vld [vmem:[#allocation2 + $0x181] sm:$0xff] }
 0x1de   : > { %v10173_v36 = vpop.permute.xlu1 %1387  ;;  %1720 = vperm.xlu0 %8093, %v15290_v50   ;;  %v15298_v50 = vld [vmem:[#allocation33_spill] sm:$0xff] }
 0x1df   : > { %15289 = vst [vmem:[#allocation37_spill] sm:$0xff] %v10173_v36  ;;  %v10176_v58 = vpop.permute.xlu2 %1452  ;;  %v10191_v36 = vld [vmem:[#allocation2 + $0x189] sm:$0xff] }
 0x1e0   : > { %15291 = vst [vmem:[#allocation32_spill] sm:$0xff] %v10176_v58  ;;  %v10178_v17 = vpop.permute.xlu0 %1412 }
 0x1e1   : > { %15292 = vst [vmem:[#allocation144_spill] sm:$0xff] %v10178_v17 }
 0x1e4   : > { %1710 = vperm.xlu1 %8094, %v15293_v18  }
 0x1e5   : > { %1730 = vperm.xlu2 %8095, %v9840_v7  }
 0x1e6   : > { %v10182_v22 = vpop.permute.xlu1 %1402  ;;  %1735 = vperm.xlu0 %8093, %v15295_v24   ;;  %v15302_v24 = vld [vmem:[#allocation39_spill] sm:$0xff] }
 0x1e7   : > { %15294 = vst [vmem:[#allocation28_spill] sm:$0xff] %v10182_v22  ;;  %v10185_v3 = vpop.permute.xlu2 %1467  ;;  %v15305_v22 = vld [vmem:[#allocation47_spill] sm:$0xff] }
 0x1e8   : > { %15296 = vst [vmem:[#allocation38_spill] sm:$0xff] %v10185_v3  ;;  %v10187_v37 = vpop.permute.xlu0 %1427  ;;  %v15303_v3 = vld [vmem:[#allocation52_spill] sm:$0xff] }
 0x1e9   : > { %15297 = vst [vmem:[#allocation145_spill] sm:$0xff] %v10187_v37 }
 0x1ec   : > { %1725 = vperm.xlu1 %8094, %v15298_v50  }
 0x1ed   : > { %1745 = vperm.xlu2 %8095, %v10189_v19  }
 0x1ee   : > { %v10195_v17 = vpop.permute.xlu1 %1417  ;;  %1750 = vperm.xlu0 %8093, %v10191_v36  }
 0x1ef   : > { %15299 = vst [vmem:[#allocation33_spill] sm:$0xff] %v10195_v17  ;;  %v10198_v7 = vpop.permute.xlu2 %1482  ;;  %v15309_v17 = vld [vmem:[#allocation58_spill] sm:$0xff] }
 0x1f0   : > { %15300 = vst [vmem:[#allocation146_spill] sm:$0xff] %v10198_v7  ;;  %v10200_v18 = vpop.permute.xlu0 %1442  ;;  %v15311_v7 = vld [vmem:[#allocation53_spill] sm:$0xff] }
 0x1f1   : > { %15301 = vst [vmem:[#allocation147_spill] sm:$0xff] %v10200_v18 }
 0x1f4   : > { %1740 = vperm.xlu1 %8094, %v15302_v24  }
 0x1f5   : > { %1858 = vperm.xlu2 %8095, %v15303_v3   ;;  %v15314_v3 = vld [vmem:[#allocation48_spill] sm:$0xff] }
 0x1f6   : > { %v10204_v37 = vpop.permute.xlu1 %1432  ;;  %1863 = vperm.xlu0 %8093, %v15305_v22  }
 0x1f7   : > { %15304 = vst [vmem:[#allocation39_spill] sm:$0xff] %v10204_v37  ;;  %v10207_v58 = vpop.permute.xlu2 %1595  ;;  %v15315_v37 = vld [vmem:[#allocation64_spill] sm:$0xff] }
 0x1f8   : > { %15306 = vst [vmem:[#allocation52_spill] sm:$0xff] %v10207_v58  ;;  %v10209_v50 = vpop.permute.xlu0 %1457  ;;  %v15317_v58 = vld [vmem:[#allocation59_spill] sm:$0xff] }
 0x1f9   : > { %15307 = vst [vmem:[#allocation47_spill] sm:$0xff] %v10209_v50 }
 0x1fc   : > { %1853 = vperm.xlu1 %8094, %v15308_v11  }
 0x1fd   : > { %1873 = vperm.xlu2 %8095, %v15309_v17   ;;  %v15320_v17 = vld [vmem:[#allocation54_spill] sm:$0xff] }
 0x1fe   : > { %v10213_v10 = vpop.permute.xlu1 %1447  ;;  %1878 = vperm.xlu0 %8093, %v15311_v7  }
 0x1ff   : > { %15310 = vst [vmem:[#allocation43_spill] sm:$0xff] %v10213_v10  ;;  %v10216_v18 = vpop.permute.xlu2 %1610  ;;  %v15321_v10 = vld [vmem:[#allocation70_spill] sm:$0xff] }
 0x200   : > { %15312 = vst [vmem:[#allocation58_spill] sm:$0xff] %v10216_v18  ;;  %v10218_v24 = vpop.permute.xlu0 %1472  ;;  %v15323_v18 = vld [vmem:[#allocation65_spill] sm:$0xff] }
 0x201   : > { %15313 = vst [vmem:[#allocation53_spill] sm:$0xff] %v10218_v24 }
 0x204   : > { %1868 = vperm.xlu1 %8094, %v15314_v3  }
 0x205   : > { %1888 = vperm.xlu2 %8095, %v15315_v37   ;;  %v15325_v37 = vld [vmem:[#allocation60_spill] sm:$0xff] }
 0x206   : > { %v10222_v22 = vpop.permute.xlu1 %1462  ;;  %1893 = vperm.xlu0 %8093, %v15317_v58  }
 0x207   : > { %15316 = vst [vmem:[#allocation48_spill] sm:$0xff] %v10222_v22  ;;  %v10225_v50 = vpop.permute.xlu2 %1625  ;;  %v15326_v22 = vld [vmem:[#allocation76_spill] sm:$0xff] }
 0x208   : > { %15318 = vst [vmem:[#allocation64_spill] sm:$0xff] %v10225_v50  ;;  %v10227_v11 = vpop.permute.xlu0 %1487  ;;  %v15328_v50 = vld [vmem:[#allocation71_spill] sm:$0xff] }
 0x209   : > { %15319 = vst [vmem:[#allocation59_spill] sm:$0xff] %v10227_v11 }
 0x20c   : > { %1883 = vperm.xlu1 %8094, %v15320_v17  }
 0x20d   : > { %1903 = vperm.xlu2 %8095, %v15321_v10   ;;  %v15331_v10 = vld [vmem:[#allocation66_spill] sm:$0xff] }
 0x20e   : > { %v10231_v7 = vpop.permute.xlu1 %1477  ;;  %1908 = vperm.xlu0 %8093, %v15323_v18  }
 0x20f   : > { %15322 = vst [vmem:[#allocation54_spill] sm:$0xff] %v10231_v7  ;;  %v10234_v24 = vpop.permute.xlu2 %1640  ;;  %v15332_v7 = vld [vmem:[#allocation82_spill] sm:$0xff] }
 0x210   : > { %15324 = vst [vmem:[#allocation70_spill] sm:$0xff] %v10234_v24  ;;  %v10236_v3 = vpop.permute.xlu0 %1600  ;;  %v15334_v24 = vld [vmem:[#allocation77_spill] sm:$0xff] }
 0x214   : > { %1898 = vperm.xlu1 %8094, %v15325_v37  }
 0x215   : > { %1918 = vperm.xlu2 %8095, %v15326_v22   ;;  %v15337_v22 = vld [vmem:[#allocation72_spill] sm:$0xff] }
 0x216   : > { %v10240_v58 = vpop.permute.xlu1 %1492  ;;  %1923 = vperm.xlu0 %8093, %v15328_v50  }
 0x217   : > { %15327 = vst [vmem:[#allocation65_spill] sm:$0xff] %v10240_v58  ;;  %v10243_v11 = vpop.permute.xlu2 %1655  ;;  %v15338_v58 = vld [vmem:[#allocation88_spill] sm:$0xff] }
 0x218   : > { %15329 = vst [vmem:[#allocation60_spill] sm:$0xff] %v10243_v11  ;;  %v10245_v17 = vpop.permute.xlu0 %1615  ;;  %v15340_v11 = vld [vmem:[#allocation83_spill] sm:$0xff] }
 0x219   : > { %15330 = vst [vmem:[#allocation76_spill] sm:$0xff] %v10245_v17 }
 0x21c   : > { %1913 = vperm.xlu1 %8094, %v15331_v10  }
 0x21d   : > { %1933 = vperm.xlu2 %8095, %v15332_v7   ;;  %v15343_v7 = vld [vmem:[#allocation78_spill] sm:$0xff] }
 0x21e   : > { %v10249_v18 = vpop.permute.xlu1 %1605  ;;  %1938 = vperm.xlu0 %8093, %v15334_v24  }
 0x21f   : > { %15333 = vst [vmem:[#allocation71_spill] sm:$0xff] %v10249_v18  ;;  %v10252_v2 = vpop.permute.xlu2 %1670  ;;  %v2085_v18 = vld [vmem:[#allocation2 + $0x90] sm:$0xff] }
 0x220   : > { %15335 = vst [vmem:[#allocation66_spill] sm:$0xff] %v10252_v2  ;;  %v10254_v37 = vpop.permute.xlu0 %1630  ;;  %v15345_v2 = vld [vmem:[#allocation89_spill] sm:$0xff] }
 0x221   : > { %15336 = vst [vmem:[#allocation82_spill] sm:$0xff] %v10254_v37 }
 0x224   : > { %1928 = vperm.xlu1 %8094, %v15337_v22  }
 0x225   : > { %1948 = vperm.xlu2 %8095, %v15338_v58   ;;  %v15348_v58 = vld [vmem:[#allocation84_spill] sm:$0xff] }
 0x226   : > { %v10258_v50 = vpop.permute.xlu1 %1620  ;;  %1953 = vperm.xlu0 %8093, %v15340_v11  }
 0x227   : > { %15339 = vst [vmem:[#allocation77_spill] sm:$0xff] %v10258_v50  ;;  %v10261_v17 = vpop.permute.xlu2 %1685 }
 0x228   : > { %15341 = vst [vmem:[#allocation72_spill] sm:$0xff] %v10261_v17  ;;  %v10263_v10 = vpop.permute.xlu0 %1645  ;;  %v15350_v17 = vld [vmem:[#allocation94_spill] sm:$0xff] }
 0x229   : > { %15342 = vst [vmem:[#allocation88_spill] sm:$0xff] %v10263_v10 }
 0x22c   : > { %1943 = vperm.xlu1 %8094, %v15343_v7  }
 0x22d   : > { %1963 = vperm.xlu2 %8095, %v9969_v41   ;;  %v15353_v41 = vld [vmem:[#allocation90_spill] sm:$0xff] }
 0x22e   : > { %v10267_v24 = vpop.permute.xlu1 %1635  ;;  %1968 = vperm.xlu0 %8093, %v15345_v2  }
 0x22f   : > { %15344 = vst [vmem:[#allocation83_spill] sm:$0xff] %v10267_v24  ;;  %v10270_v37 = vpop.permute.xlu2 %1700  ;;  %v2083_v24 = vld [vmem:[#allocation2 + $0x78] sm:$0xff] }
 0x230   : > { %15346 = vst [vmem:[#allocation78_spill] sm:$0xff] %v10270_v37  ;;  %v10272_v22 = vpop.permute.xlu0 %1660  ;;  %v15355_v37 = vld [vmem:[#allocation99_spill] sm:$0xff] }
 0x231   : > { %15347 = vst [vmem:[#allocation89_spill] sm:$0xff] %v10272_v22 }
 0x234   : > { %1958 = vperm.xlu1 %8094, %v15348_v58  }
 0x235   : > { %1978 = vperm.xlu2 %8095, %v9984_v62   ;;  %v10292_v62 = vld [vmem:[#allocation2 + $0x18a] sm:$0xff] }
 0x236   : > { %v10276_v11 = vpop.permute.xlu1 %1650  ;;  %1983 = vperm.xlu0 %8093, %v15350_v17   ;;  %v15358_v17 = vld [vmem:[#allocation95_spill] sm:$0xff] }
 0x237   : > { %15349 = vst [vmem:[#allocation84_spill] sm:$0xff] %v10276_v11  ;;  %v10279_v10 = vpop.permute.xlu2 %1715  ;;  %v2077_v11 = vld [vmem:[#allocation2 + $0x30] sm:$0xff] }
 0x238   : > { %15351 = vst [vmem:[#allocation94_spill] sm:$0xff] %v10279_v10  ;;  %v10281_v7 = vpop.permute.xlu0 %1675 }
 0x239   : > { %15352 = vst [vmem:[#allocation148_spill] sm:$0xff] %v10281_v7 }
 0x23c   : > { %1973 = vperm.xlu1 %8094, %v15353_v41  }
 0x23d   : > { %1993 = vperm.xlu2 %8095, %v9997_v4  }
 0x23e   : > { %v10285_v2 = vpop.permute.xlu1 %1665  ;;  %1998 = vperm.xlu0 %8093, %v15355_v37   ;;  %v2079_v37 = vld [vmem:[#allocation2 + $0x48] sm:$0xff] }
 0x23f   : > { %15354 = vst [vmem:[#allocation90_spill] sm:$0xff] %v10285_v2  ;;  %v10288_v22 = vpop.permute.xlu2 %1730  ;;  %v10302_v2 = vld [vmem:[#allocation2 + $0x182] sm:$0xff] }
 0x240   : > { %15356 = vst [vmem:[#allocation99_spill] sm:$0xff] %v10288_v22  ;;  %v10290_v58 = vpop.permute.xlu0 %1690  ;;  %v2080_v22 = vld [vmem:[#allocation2 + $0x50] sm:$0xff] }
 0x241   : > { %15357 = vst [vmem:[#allocation149_spill] sm:$0xff] %v10290_v58 }
 0x244   : > { %1988 = vperm.xlu1 %8094, %v15358_v17  }
 0x245   : > { %2008 = vperm.xlu2 %8095, %v10292_v62  }
 0x246   : > { %v10296_v10 = vpop.permute.xlu1 %1680  ;;  %2112 = vperm.xlu0 %8093, %v2077_v11   ;;  %v2082_v11 = vld [vmem:[#allocation2 + $0x68] sm:$0xff] }
 0x247   : > { %15359 = vst [vmem:[#allocation95_spill] sm:$0xff] %v10296_v10  ;;  %v10298_v41 = vpop.permute.xlu2 %1745  ;;  %v2078_v10 = vld [vmem:[#allocation2 + $0x38] sm:$0xff] }
 0x248   : > { %15360 = vst [vmem:[#allocation150_spill] sm:$0xff] %v10298_v41  ;;  %v10300_v4 = vpop.permute.xlu0 %1705 }
 0x249   : > { %15361 = vst [vmem:[#allocation151_spill] sm:$0xff] %v10300_v4 }
 0x24c   : > { %2003 = vperm.xlu1 %8094, %v10302_v2  }
 0x24d   : > { %2122 = vperm.xlu2 %8095, %v2079_v37   ;;  %v2081_v37 = vld [vmem:[#allocation2 + $0x60] sm:$0xff] }
 0x24e   : > { %v10305_v58 = vpop.permute.xlu1 %1695  ;;  %2127 = vperm.xlu0 %8093, %v2080_v22  }
 0x24f   : > { %15362 = vst [vmem:[#allocation152_spill] sm:$0xff] %v10305_v58  ;;  %v10307_v17 = vpop.permute.xlu2 %1858  ;;  %v2086_v58 = vld [vmem:[#allocation2 + $0x98] sm:$0xff] }
 0x250   : > { %v10309_v7 = vpop.permute.xlu0 %1720 }
 0x251   : > { %15363 = vst [vmem:[#allocation153_spill] sm:$0xff] %v10309_v7 }
 0x254   : > { %2117 = vperm.xlu1 %8094, %v2078_v10   ;;  %v2084_v10 = vld [vmem:[#allocation2 + $0x80] sm:$0xff] }
 0x255   : > { %2137 = vperm.xlu2 %8095, %v2082_v11   ;;  %v2088_v11 = vld [vmem:[#allocation2 + $0xb0] sm:$0xff] }
 0x256   : > { %v10311_v41 = vpop.permute.xlu1 %1710  ;;  %2142 = vperm.xlu0 %8093, %v2083_v24  }
 0x257   : > { %15364 = vst [vmem:[#allocation154_spill] sm:$0xff] %v10311_v41  ;;  %v10313_v4 = vpop.permute.xlu2 %1873  ;;  %v2089_v41 = vld [vmem:[#allocation2 + $0xc0] sm:$0xff] }
 0x258   : > { %15365 = vst [vmem:[#allocation155_spill] sm:$0xff] %v10313_v4  ;;  %v10315_v50 = vpop.permute.xlu0 %1735 }
 0x259   : > { %15366 = vst [vmem:[#allocation156_spill] sm:$0xff] %v10315_v50 }
 0x25c   : > { %2132 = vperm.xlu1 %8094, %v2081_v37   ;;  %v2091_v37 = vld [vmem:[#allocation2 + $0xd8] sm:$0xff] }
 0x25d   : > { %2152 = vperm.xlu2 %8095, %v2085_v18   ;;  %v2087_v18 = vld [vmem:[#allocation2 + $0xa8] sm:$0xff] }
 0x25e   : > { %v10317_v22 = vpop.permute.xlu1 %1725  ;;  %2157 = vperm.xlu0 %8093, %v2086_v58  }
 0x25f   : > { %15367 = vst [vmem:[#allocation157_spill] sm:$0xff] %v10317_v22  ;;  %v10319_v7 = vpop.permute.xlu2 %1888  ;;  %v2092_v22 = vld [vmem:[#allocation2 + $0xe0] sm:$0xff] }
 0x260   : > { %15368 = vst [vmem:[#allocation158_spill] sm:$0xff] %v10319_v7  ;;  %v10321_v53 = vpop.permute.xlu0 %1750 }
 0x261   : > { %15369 = vst [vmem:[#allocation159_spill] sm:$0xff] %v10321_v53 }
 0x264   : > { %2147 = vperm.xlu1 %8094, %v2084_v10   ;;  %v2090_v10 = vld [vmem:[#allocation2 + $0xc8] sm:$0xff] }
 0x265   : > { %2167 = vperm.xlu2 %8095, %v2088_v11   ;;  %v2094_v11 = vld [vmem:[#allocation2 + $0xf8] sm:$0xff] }
 0x266   : > { %v10323_v24 = vpop.permute.xlu1 %1740  ;;  %2172 = vperm.xlu0 %8093, %v2089_v41  }
 0x267   : > { %15370 = vst [vmem:[#allocation160_spill] sm:$0xff] %v10323_v24  ;;  %v10325_v50 = vpop.permute.xlu2 %1903  ;;  %v2095_v24 = vld [vmem:[#allocation2 + $0x108] sm:$0xff] }
 0x268   : > { %15371 = vst [vmem:[#allocation161_spill] sm:$0xff] %v10325_v50  ;;  %v10327_v4 = vpop.permute.xlu0 %1863 }
 0x269   : > { %15372 = vst [vmem:[#allocation162_spill] sm:$0xff] %v10327_v4 }
 0x26c   : > { %2162 = vperm.xlu1 %8094, %v2087_v18   ;;  %v2093_v18 = vld [vmem:[#allocation2 + $0xf0] sm:$0xff] }
 0x26d   : > { %2182 = vperm.xlu2 %8095, %v2091_v37   ;;  %v2097_v37 = vld [vmem:[#allocation2 + $0x120] sm:$0xff] }
 0x26e   : > { %v10329_v58 = vpop.permute.xlu1 %1853  ;;  %2187 = vperm.xlu0 %8093, %v2092_v22  }
 0x26f   : > { %15373 = vst [vmem:[#allocation163_spill] sm:$0xff] %v10329_v58  ;;  %v10331_v53 = vpop.permute.xlu2 %1918  ;;  %v2098_v58 = vld [vmem:[#allocation2 + $0x128] sm:$0xff] }
 0x270   : > { %15374 = vst [vmem:[#allocation164_spill] sm:$0xff] %v10331_v53  ;;  %v10333_v7 = vpop.permute.xlu0 %1878 }
 0x271   : > { %15375 = vst [vmem:[#allocation165_spill] sm:$0xff] %v10333_v7 }
 0x274   : > { %2177 = vperm.xlu1 %8094, %v2090_v10   ;;  %v2096_v10 = vld [vmem:[#allocation2 + $0x110] sm:$0xff] }
 0x275   : > { %2197 = vperm.xlu2 %8095, %v2094_v11   ;;  %v2100_v11 = vld [vmem:[#allocation2 + $0x140] sm:$0xff] }
 0x276   : > { %v10335_v41 = vpop.permute.xlu1 %1868  ;;  %2202 = vperm.xlu0 %8093, %v2095_v24  }
 0x277   : > { %15376 = vst [vmem:[#allocation166_spill] sm:$0xff] %v10335_v41  ;;  %v10337_v4 = vpop.permute.xlu2 %1933  ;;  %v2101_v41 = vld [vmem:[#allocation2 + $0x150] sm:$0xff] }
 0x278   : > { %15377 = vst [vmem:[#allocation167_spill] sm:$0xff] %v10337_v4  ;;  %v10339_v50 = vpop.permute.xlu0 %1893 }
 0x279   : > { %15378 = vst [vmem:[#allocation168_spill] sm:$0xff] %v10339_v50 }
 0x27c   : > { %2192 = vperm.xlu1 %8094, %v2093_v18   ;;  %v2099_v18 = vld [vmem:[#allocation2 + $0x138] sm:$0xff] }
 0x27d   : > { %2212 = vperm.xlu2 %8095, %v2097_v37   ;;  %v2103_v37 = vld [vmem:[#allocation2 + $0x168] sm:$0xff] }
 0x27e   : > { %v10341_v22 = vpop.permute.xlu1 %1883  ;;  %2217 = vperm.xlu0 %8093, %v2098_v58  }
 0x27f   : > { %15379 = vst [vmem:[#allocation169_spill] sm:$0xff] %v10341_v22  ;;  %v10343_v7 = vpop.permute.xlu2 %1948  ;;  %v2104_v22 = vld [vmem:[#allocation2 + $0x170] sm:$0xff] }
 0x280   : > { %15380 = vst [vmem:[#allocation170_spill] sm:$0xff] %v10343_v7  ;;  %v10345_v53 = vpop.permute.xlu0 %1908 }
 0x281   : > { %15381 = vst [vmem:[#allocation171_spill] sm:$0xff] %v10345_v53 }
 0x284   : > { %2207 = vperm.xlu1 %8094, %v2096_v10   ;;  %v2102_v10 = vld [vmem:[#allocation2 + $0x158] sm:$0xff] }
 0x285   : > { %2227 = vperm.xlu2 %8095, %v2100_v11   ;;  %v2107_v11 = vld [vmem:[#allocation2 + $0x198] sm:$0xff] }
 0x286   : > { %v10347_v24 = vpop.permute.xlu1 %1898  ;;  %2232 = vperm.xlu0 %8093, %v2101_v41  }
 0x287   : > { %15382 = vst [vmem:[#allocation172_spill] sm:$0xff] %v10347_v24  ;;  %v10349_v50 = vpop.permute.xlu2 %1963 }
 0x288   : > { %15383 = vst [vmem:[#allocation173_spill] sm:$0xff] %v10349_v50  ;;  %v10351_v4 = vpop.permute.xlu0 %1923 }
 0x289   : > { %15384 = vst [vmem:[#allocation174_spill] sm:$0xff] %v10351_v4 }
 0x28c   : > { %2222 = vperm.xlu1 %8094, %v2099_v18   ;;  %v2335_v18 = vld [vmem:[#allocation2 + $0x31] sm:$0xff] }
 0x28d   : > { %2242 = vperm.xlu2 %8095, %v2103_v37   ;;  %v2336_v37 = vld [vmem:[#allocation2 + $0x39] sm:$0xff] }
 0x28e   : > { %v10353_v58 = vpop.permute.xlu1 %1913  ;;  %2247 = vperm.xlu0 %8093, %v2104_v22  }
 0x28f   : > { %15385 = vst [vmem:[#allocation175_spill] sm:$0xff] %v10353_v58  ;;  %v10355_v53 = vpop.permute.xlu2 %1978  ;;  %v2357_v58 = vld [vmem:[#allocation2 + $0x139] sm:$0xff] }
 0x290   : > { %15386 = vst [vmem:[#allocation176_spill] sm:$0xff] %v10355_v53  ;;  %v10357_v7 = vpop.permute.xlu0 %1938  ;;  %v2338_v53 = vld [vmem:[#allocation2 + $0x51] sm:$0xff] }
 0x291   : > { %15387 = vst [vmem:[#allocation177_spill] sm:$0xff] %v10357_v7 }
 0x294   : > { %2237 = vperm.xlu1 %8094, %v2102_v10  }
 0x295   : > { %2257 = vperm.xlu2 %8095, %v10106_v38   ;;  %v2108_v38 = vld [vmem:[#allocation2 + $0x1a0] sm:$0xff] }
 0x296   : > { %v10360_v41 = vpop.permute.xlu1 %1928  ;;  %2262 = vperm.xlu0 %8093, %v2107_v11  }
 0x297   : > { %15388 = vst [vmem:[#allocation178_spill] sm:$0xff] %v10360_v41  ;;  %v10362_v4 = vpop.permute.xlu2 %1993  ;;  %v2339_v41 = vld [vmem:[#allocation2 + $0x61] sm:$0xff] }
 0x298   : > { %15389 = vst [vmem:[#allocation179_spill] sm:$0xff] %v10362_v4  ;;  %v10364_v50 = vpop.permute.xlu0 %1953 }
 0x299   : > { %15390 = vst [vmem:[#allocation180_spill] sm:$0xff] %v10364_v50 }
 0x29c   : > { %2252 = vperm.xlu1 %8094, %v10086_v32   ;;  %v2337_v32 = vld [vmem:[#allocation2 + $0x49] sm:$0xff] }
 0x29d   : > { %2370 = vperm.xlu2 %8095, %v2335_v18   ;;  %v2341_v18 = vld [vmem:[#allocation2 + $0x79] sm:$0xff] }
 0x29e   : > { %v10367_v22 = vpop.permute.xlu1 %1943  ;;  %2375 = vperm.xlu0 %8093, %v2336_v37  }
 0x29f   : > { %15391 = vst [vmem:[#allocation181_spill] sm:$0xff] %v10367_v22  ;;  %v10369_v7 = vpop.permute.xlu2 %2008  ;;  %v2342_v22 = vld [vmem:[#allocation2 + $0x81] sm:$0xff] }
 0x2a0   : > { %15392 = vst [vmem:[#allocation182_spill] sm:$0xff] %v10369_v7  ;;  %v10371_v10 = vpop.permute.xlu0 %1968 }
 0x2a1   : > { %15393 = vst [vmem:[#allocation183_spill] sm:$0xff] %v10371_v10 }
 0x2a4   : > { %2267 = vperm.xlu1 %8094, %v2108_v38   ;;  %v2344_v38 = vld [vmem:[#allocation2 + $0x99] sm:$0xff] }
 0x2a5   : > { %2385 = vperm.xlu2 %8095, %v2338_v53   ;;  %v2340_v53 = vld [vmem:[#allocation2 + $0x69] sm:$0xff] }
 0x2a6   : > { %v10373_v11 = vpop.permute.xlu1 %1958  ;;  %2390 = vperm.xlu0 %8093, %v2339_v41  }
 0x2a7   : > { %15394 = vst [vmem:[#allocation184_spill] sm:$0xff] %v10373_v11  ;;  %v10375_v50 = vpop.permute.xlu2 %2122  ;;  %v2345_v11 = vld [vmem:[#allocation2 + $0xa9] sm:$0xff] }
 0x2a8   : > { %15395 = vst [vmem:[#allocation185_spill] sm:$0xff] %v10375_v50  ;;  %v10377_v4 = vpop.permute.xlu0 %1983 }
 0x2a9   : > { %15396 = vst [vmem:[#allocation186_spill] sm:$0xff] %v10377_v4 }
 0x2ac   : > { %2380 = vperm.xlu1 %8094, %v2337_v32   ;;  %v2343_v32 = vld [vmem:[#allocation2 + $0x91] sm:$0xff] }
 0x2ad   : > { %2400 = vperm.xlu2 %8095, %v2341_v18   ;;  %v2347_v18 = vld [vmem:[#allocation2 + $0xc1] sm:$0xff] }
 0x2ae   : > { %v10379_v37 = vpop.permute.xlu1 %1973  ;;  %2405 = vperm.xlu0 %8093, %v2342_v22  }
 0x2af   : > { %15397 = vst [vmem:[#allocation187_spill] sm:$0xff] %v10379_v37  ;;  %v10381_v10 = vpop.permute.xlu2 %2137  ;;  %v2348_v37 = vld [vmem:[#allocation2 + $0xc9] sm:$0xff] }
 0x2b0   : > { %15398 = vst [vmem:[#allocation188_spill] sm:$0xff] %v10381_v10  ;;  %v10383_v7 = vpop.permute.xlu0 %1998 }
 0x2b1   : > { %15399 = vst [vmem:[#allocation189_spill] sm:$0xff] %v10383_v7 }
 0x2b4   : > { %2395 = vperm.xlu1 %8094, %v2340_v53   ;;  %v2346_v53 = vld [vmem:[#allocation2 + $0xb1] sm:$0xff] }
 0x2b5   : > { %2415 = vperm.xlu2 %8095, %v2344_v38   ;;  %v2350_v38 = vld [vmem:[#allocation2 + $0xe1] sm:$0xff] }
 0x2b6   : > { %v10385_v41 = vpop.permute.xlu1 %1988  ;;  %2420 = vperm.xlu0 %8093, %v2345_v11  }
 0x2b7   : > { %15400 = vst [vmem:[#allocation190_spill] sm:$0xff] %v10385_v41  ;;  %v10387_v4 = vpop.permute.xlu2 %2152  ;;  %v2351_v41 = vld [vmem:[#allocation2 + $0xf1] sm:$0xff] }
 0x2b8   : > { %15401 = vst [vmem:[#allocation191_spill] sm:$0xff] %v10387_v4  ;;  %v10389_v50 = vpop.permute.xlu0 %2112 }
 0x2b9   : > { %15402 = vst [vmem:[#allocation192_spill] sm:$0xff] %v10389_v50 }
 0x2bc   : > { %2410 = vperm.xlu1 %8094, %v2343_v32   ;;  %v2349_v32 = vld [vmem:[#allocation2 + $0xd9] sm:$0xff] }
 0x2bd   : > { %2430 = vperm.xlu2 %8095, %v2347_v18   ;;  %v2353_v18 = vld [vmem:[#allocation2 + $0x109] sm:$0xff] }
 0x2be   : > { %v10391_v22 = vpop.permute.xlu1 %2003  ;;  %2435 = vperm.xlu0 %8093, %v2348_v37  }
 0x2bf   : > { %15403 = vst [vmem:[#allocation193_spill] sm:$0xff] %v10391_v22  ;;  %v10393_v7 = vpop.permute.xlu2 %2167  ;;  %v2354_v22 = vld [vmem:[#allocation2 + $0x111] sm:$0xff] }
 0x2c0   : > { %15404 = vst [vmem:[#allocation194_spill] sm:$0xff] %v10393_v7  ;;  %v10395_v10 = vpop.permute.xlu0 %2127 }
 0x2c1   : > { %15405 = vst [vmem:[#allocation195_spill] sm:$0xff] %v10395_v10 }
 0x2c4   : > { %2425 = vperm.xlu1 %8094, %v2346_v53   ;;  %v2352_v53 = vld [vmem:[#allocation2 + $0xf9] sm:$0xff] }
 0x2c5   : > { %2445 = vperm.xlu2 %8095, %v2350_v38   ;;  %v2356_v38 = vld [vmem:[#allocation2 + $0x129] sm:$0xff] }
 0x2c6   : > { %v10397_v11 = vpop.permute.xlu1 %2117  ;;  %2450 = vperm.xlu0 %8093, %v2351_v41  }
 0x2c7   : > { %v10399_v50 = vpop.permute.xlu2 %2182 }
 0x2c8   : > { %15406 = vst [vmem:[#allocation196_spill] sm:$0xff] %v10399_v50  ;;  %v10401_v4 = vpop.permute.xlu0 %2142 }
 0x2c9   : > { %15407 = vst [vmem:[#allocation197_spill] sm:$0xff] %v10401_v4 }
 0x2cc   : > { %2440 = vperm.xlu1 %8094, %v2349_v32   ;;  %v2355_v32 = vld [vmem:[#allocation2 + $0x121] sm:$0xff] }
 0x2cd   : > { %2460 = vperm.xlu2 %8095, %v2353_v18   ;;  %v2359_v18 = vld [vmem:[#allocation2 + $0x151] sm:$0xff] }
 0x2ce   : > { %v10403_v37 = vpop.permute.xlu1 %2132  ;;  %2465 = vperm.xlu0 %8093, %v2354_v22  }
 0x2cf   : > { %15408 = vst [vmem:[#allocation198_spill] sm:$0xff] %v10403_v37  ;;  %v10405_v10 = vpop.permute.xlu2 %2197  ;;  %v2360_v37 = vld [vmem:[#allocation2 + $0x159] sm:$0xff] }
 0x2d0   : > { %15409 = vst [vmem:[#allocation199_spill] sm:$0xff] %v10405_v10  ;;  %v10407_v7 = vpop.permute.xlu0 %2157 }
 0x2d1   : > { %15410 = vst [vmem:[#allocation200_spill] sm:$0xff] %v10407_v7 }
 0x2d4   : > { %2455 = vperm.xlu1 %8094, %v2352_v53   ;;  %v2358_v53 = vld [vmem:[#allocation2 + $0x141] sm:$0xff] }
 0x2d5   : > { %2475 = vperm.xlu2 %8095, %v2356_v38   ;;  %v2362_v38 = vld [vmem:[#allocation2 + $0x171] sm:$0xff] }
 0x2d6   : > { %v10409_v41 = vpop.permute.xlu1 %2147  ;;  %2480 = vperm.xlu0 %8093, %v2357_v58  }
 0x2d7   : > { %15411 = vst [vmem:[#allocation201_spill] sm:$0xff] %v10409_v41  ;;  %v10411_v50 = vpop.permute.xlu2 %2212  ;;  %v2615_v41 = vld [vmem:[#allocation2 + $0x13a] sm:$0xff] }
 0x2d8   : > { %15412 = vst [vmem:[#allocation202_spill] sm:$0xff] %v10411_v50  ;;  %v10413_v4 = vpop.permute.xlu0 %2172 }
 0x2d9   : > { %15413 = vst [vmem:[#allocation203_spill] sm:$0xff] %v10413_v4  ;;  %v2361_v4 = vld [vmem:[#allocation2 + $0x169] sm:$0xff] }
 0x2dc   : > { %2470 = vperm.xlu1 %8094, %v2355_v32  }
 0x2dd   : > { %2490 = vperm.xlu2 %8095, %v2359_v18   ;;  %v2365_v18 = vld [vmem:[#allocation2 + $0x199] sm:$0xff] }
 0x2de   : > { %v10415_v22 = vpop.permute.xlu1 %2162  ;;  %2495 = vperm.xlu0 %8093, %v2360_v37  }
 0x2df   : > { %15414 = vst [vmem:[#allocation204_spill] sm:$0xff] %v10415_v22  ;;  %v10417_v10 = vpop.permute.xlu2 %2227  ;;  %v2366_v22 = vld [vmem:[#allocation2 + $0x1a1] sm:$0xff] }
 0x2e0   : > { %15415 = vst [vmem:[#allocation205_spill] sm:$0xff] %v10417_v10  ;;  %v10419_v7 = vpop.permute.xlu0 %2187 }
 0x2e1   : > { %15416 = vst [vmem:[#allocation206_spill] sm:$0xff] %v10419_v7 }
 0x2e4   : > { %2485 = vperm.xlu1 %8094, %v2358_v53   ;;  %v2594_v53 = vld [vmem:[#allocation2 + $0x3a] sm:$0xff] }
 0x2e5   : > { %2505 = vperm.xlu2 %8095, %v2362_v38   ;;  %v2595_v38 = vld [vmem:[#allocation2 + $0x4a] sm:$0xff] }
 0x2e6   : > { %v10421_v58 = vpop.permute.xlu1 %2177  ;;  %2510 = vperm.xlu0 %8093, %v10189_v19  }
 0x2e7   : > { %15417 = vst [vmem:[#allocation207_spill] sm:$0xff] %v10421_v58  ;;  %v10424_v50 = vpop.permute.xlu2 %2242  ;;  %v2610_v58 = vld [vmem:[#allocation2 + $0xfa] sm:$0xff] }
 0x2e8   : > { %15418 = vst [vmem:[#allocation208_spill] sm:$0xff] %v10424_v50  ;;  %v10426_v32 = vpop.permute.xlu0 %2202 }
 0x2e9   : > { %15419 = vst [vmem:[#allocation209_spill] sm:$0xff] %v10426_v32  ;;  %v2593_v32 = vld [vmem:[#allocation2 + $0x32] sm:$0xff] }
 0x2ec   : > { %2500 = vperm.xlu1 %8094, %v2361_v4   ;;  %v2597_v4 = vld [vmem:[#allocation2 + $0x62] sm:$0xff] }
 0x2ed   : > { %2520 = vperm.xlu2 %8095, %v2365_v18   ;;  %v2598_v18 = vld [vmem:[#allocation2 + $0x6a] sm:$0xff] }
 0x2ee   : > { %v10428_v37 = vpop.permute.xlu1 %2192  ;;  %2525 = vperm.xlu0 %8093, %v2366_v22  }
 0x2ef   : > { %15420 = vst [vmem:[#allocation210_spill] sm:$0xff] %v10428_v37  ;;  %v10430_v10 = vpop.permute.xlu2 %2257 }
 0x2f0   : > { %15421 = vst [vmem:[#allocation211_spill] sm:$0xff] %v10430_v10  ;;  %v10433_v7 = vpop.permute.xlu0 %2217 }
 0x2f1   : > { %15422 = vst [vmem:[#allocation212_spill] sm:$0xff] %v10433_v7  ;;  %v2600_v7 = vld [vmem:[#allocation2 + $0x82] sm:$0xff] }
 0x2f4   : > { %2515 = vperm.xlu1 %8094, %v10191_v36   ;;  %v2596_v36 = vld [vmem:[#allocation2 + $0x52] sm:$0xff] }
 0x2f5   : > { %2633 = vperm.xlu2 %8095, %v2594_v53   ;;  %v2601_v53 = vld [vmem:[#allocation2 + $0x92] sm:$0xff] }
 0x2f6   : > { %v10435_v19 = vpop.permute.xlu1 %2207  ;;  %2638 = vperm.xlu0 %8093, %v2595_v38  }
 0x2f7   : > { %15423 = vst [vmem:[#allocation213_spill] sm:$0xff] %v10435_v19  ;;  %v10437_v50 = vpop.permute.xlu2 %2370 }
 0x2f8   : > { %15424 = vst [vmem:[#allocation214_spill] sm:$0xff] %v10437_v50  ;;  %v10439_v22 = vpop.permute.xlu0 %2232 }
 0x2f9   : > { %15425 = vst [vmem:[#allocation215_spill] sm:$0xff] %v10439_v22  ;;  %v2604_v22 = vld [vmem:[#allocation2 + $0xb2] sm:$0xff] }
 0x2fc   : > { %2628 = vperm.xlu1 %8094, %v2593_v32   ;;  %v2599_v32 = vld [vmem:[#allocation2 + $0x7a] sm:$0xff] }
 0x2fd   : > { %2648 = vperm.xlu2 %8095, %v2597_v4   ;;  %v2603_v4 = vld [vmem:[#allocation2 + $0xaa] sm:$0xff] }
 0x2fe   : > { %v10441_v10 = vpop.permute.xlu1 %2222  ;;  %2653 = vperm.xlu0 %8093, %v2598_v18  }
 0x2ff   : > { %15426 = vst [vmem:[#allocation216_spill] sm:$0xff] %v10441_v10  ;;  %v10443_v37 = vpop.permute.xlu2 %2385  ;;  %v2602_v10 = vld [vmem:[#allocation2 + $0x9a] sm:$0xff] }
 0x300   : > { %15427 = vst [vmem:[#allocation217_spill] sm:$0xff] %v10443_v37  ;;  %v10447_v50 = vpop.permute.xlu0 %2247 }
 0x301   : > { %15429 = vst [vmem:[#allocation219_spill] sm:$0xff] %v10447_v50 }
 0x304   : > { %2643 = vperm.xlu1 %8094, %v2596_v36  }
 0x305   : > { %2663 = vperm.xlu2 %8095, %v2600_v7   ;;  %v2606_v7 = vld [vmem:[#allocation2 + $0xca] sm:$0xff] }
 0x306   : > { %2668 = vperm.xlu0 %8093, %v2601_v53   ;;  %v10449_v19 = vpop.permute.xlu1 %2237  ;;  %v2607_v53 = vld [vmem:[#allocation2 + $0xda] sm:$0xff] }
 0x307   : > { %v10445_v38 = vpop.permute.xlu2 %2400  ;;  %15430 = vst [vmem:[#allocation220_spill] sm:$0xff] %v10449_v19  ;;  %v2605_v19 = vld [vmem:[#allocation2 + $0xc2] sm:$0xff] }
 0x308   : > { %15428 = vst [vmem:[#allocation218_spill] sm:$0xff] %v10445_v38  ;;  %v10453_v37 = vpop.permute.xlu0 %2262  ;;  %v2609_v38 = vld [vmem:[#allocation2 + $0xf2] sm:$0xff] }
 0x309   : > { %15432 = vst [vmem:[#allocation222_spill] sm:$0xff] %v10453_v37  ;;  %v2608_v37 = vld [vmem:[#allocation2 + $0xe2] sm:$0xff] }
 0x30c   : > { %2658 = vperm.xlu1 %8094, %v2599_v32  }
 0x30d   : > { %2678 = vperm.xlu2 %8095, %v2603_v4  }
 0x30e   : > { %2683 = vperm.xlu0 %8093, %v2604_v22   ;;  %v10455_v36 = vpop.permute.xlu1 %2252 }
 0x30f   : > { %v10451_v18 = vpop.permute.xlu2 %2415  ;;  %15433 = vst [vmem:[#allocation223_spill] sm:$0xff] %v10455_v36  ;;  %v2612_v36 = vld [vmem:[#allocation2 + $0x112] sm:$0xff] }
 0x310   : > { %15431 = vst [vmem:[#allocation221_spill] sm:$0xff] %v10451_v18  ;;  %v10459_v32 = vpop.permute.xlu0 %2375  ;;  %v2613_v18 = vld [vmem:[#allocation2 + $0x122] sm:$0xff] }
 0x314   : > { %2673 = vperm.xlu1 %8094, %v2602_v10  }
 0x315   : > { %2693 = vperm.xlu2 %8095, %v2606_v7  }
 0x316   : > { %2698 = vperm.xlu0 %8093, %v2607_v53   ;;  %v10461_v22 = vpop.permute.xlu1 %2267 }
 0x317   : > { %v10457_v50 = vpop.permute.xlu2 %2430  ;;  %15435 = vst [vmem:[#allocation225_spill] sm:$0xff] %v10461_v22  ;;  %v2616_v22 = vld [vmem:[#allocation2 + $0x142] sm:$0xff] }
 0x318   : > { %15434 = vst [vmem:[#allocation224_spill] sm:$0xff] %v10457_v50  ;;  %v10465_v10 = vpop.permute.xlu0 %2390  ;;  %v2611_v50 = vld [vmem:[#allocation2 + $0x10a] sm:$0xff] }
 0x319   : > { %15437 = vst [vmem:[#allocation227_spill] sm:$0xff] %v10465_v10  ;;  %v15447_v10 = vld [vmem:[#allocation17_spill] sm:$0xff] }
 0x31c   : > { %2688 = vperm.xlu1 %8094, %v2605_v19  }
 0x31d   : > { %2708 = vperm.xlu2 %8095, %v2609_v38  }
 0x31e   : > { %2713 = vperm.xlu0 %8093, %v2610_v58   ;;  %v10467_v7 = vpop.permute.xlu1 %2380 }
 0x31f   : > { %v10463_v4 = vpop.permute.xlu2 %2445  ;;  %15438 = vst [vmem:[#allocation228_spill] sm:$0xff] %v10467_v7  ;;  %v15446_v7 = vld [vmem:[#allocation14_spill] sm:$0xff] }
 0x320   : > { %15436 = vst [vmem:[#allocation226_spill] sm:$0xff] %v10463_v4  ;;  %v10478_v19 = vpop.permute.xlu0 %2405  ;;  %v15445_v4 = vld [vmem:[#allocation13_spill] sm:$0xff] }
 0x321   : > { %15441 = vst [vmem:[#allocation231_spill] sm:$0xff] %v10478_v19 }
 0x324   : > { %2703 = vperm.xlu1 %8094, %v2608_v37   ;;  %v10476_v37 = vld [vmem:[%s15076_s3] ss:$0 sm:$0xff] }
 0x325   : > { %2723 = vperm.xlu2 %8095, %v2612_v36   ;;  %v2618_v36 = vld [vmem:[#allocation2 + $0x15a] sm:$0xff]  ;;  %v10501_v19 = vmul.f32 %v10476_v37, %v15446_v7  ;;  %v728_v7 = vmul.f32 %v10476_v37, %v15450_v46  ;;  %v10527_v40 = vmul.f32 %v10476_v37, %v15452_v56  ;;  %v10543_v0 = vmul.f32 %v10476_v37, %v15457_v31  ;;  %v15458_v56 = vld [vmem:[#allocation26_spill] sm:$0xff] }
 0x326   : > { %2728 = vperm.xlu0 %8093, %v2613_v18   ;;  %v10480_v38 = vpop.permute.xlu1 %2395  ;;  %v2614_v18 = vld [vmem:[#allocation2 + $0x12a] sm:$0xff]  ;;  %v10547_v39 = vmul.f32 %v10476_v37, %v15458_v56  ;;  %v737_v31 = vmul.f32 %v10476_v37, %v15462_v61  ;;  %v10563_v56 = vmul.f32 %v10476_v37, %v15463_v48  ;;  %v15468_v61 = vld [vmem:[#allocation40_spill] sm:$0xff] }
 0x327   : > { %v10469_v53 = vpop.permute.xlu2 %2460  ;;  %15442 = vst [vmem:[#allocation232_spill] sm:$0xff] %v10480_v38  ;;  %v10497_v38 = vmul.f32 %v10476_v37, %v15445_v4  ;;  %v10515_v4 = vmul.f32 %v10476_v37, %v15449_v63  ;;  %v15454_v63 = vld [vmem:[#allocation23_spill] sm:$0xff]  ;;  %v10581_v48 = vmul.f32 %v10476_v37, %v15468_v61  ;;  %v15475_v61 = vld [vmem:[#allocation50_spill] sm:$0xff] }
 0x328   : > { %15439 = vst [vmem:[#allocation229_spill] sm:$0xff] %v10469_v53  ;;  %v15443_v53 = vmov 0.0   ;;  %v10533_v44 = vmul.f32 %v10476_v37, %v15454_v63  ;;  %v10583_v25 = vpop.permute.xlu0 %2420 }
 0x329   : > { %2925 = vst.msk [vmem:[#allocation3 + $0x20] sm:$0xff] %vm2919_vm2, %v15443_v53 }
 0x32a   : > { %2926 = vst.msk [vmem:[#allocation3 + $0x28] sm:$0x3] %vm2922_vm3, %v15443_v53 }
 0x32b   : > { %2920 = vst.msk [vmem:[#allocation3] sm:$0xff] %vm2919_vm2, %v15443_v53 }
 0x32c   : > { %2718 = vperm.xlu1 %8094, %v2611_v50   ;;  %v2619_v50 = vld [vmem:[#allocation2 + $0x16a] sm:$0xff]  ;;  %2921 = vst.msk [vmem:[#allocation3 + $0x8] sm:$0xff] %vm2919_vm2, %v15443_v53 }
 0x32d   : > { %2738 = vperm.xlu2 %8095, %v2615_v41   ;;  %v15444_v41 = vld [vmem:[#allocation15_spill] sm:$0xff]  ;;  %2923 = vst.msk [vmem:[#allocation3 + $0x10] sm:$0x3] %vm2922_vm3, %v15443_v53 }
 0x32e   : > { %2743 = vperm.xlu0 %8093, %v2616_v22   ;;  %v722_v22 = vmul.f32 %v10476_v37, %v15444_v41  ;;  %v10505_v41 = vmul.f32 %v10476_v37, %v15447_v10  ;;  %v15451_v10 = vld [vmem:[#allocation18_spill] sm:$0xff]  ;;  %2924 = vst.msk [vmem:[#allocation3 + $0x18] sm:$0xff] %vm2919_vm2, %v15443_v53  ;;  %v10585_v29 = vpop.permute.xlu1 %2410 }
 0x32f   : > { %v10471_v58 = vpop.permute.xlu2 %2475  ;;  %2927 = vst.msk [vmem:[#allocation3 + $0x30] sm:$0xff] %vm2919_vm2, %v15443_v53 }
 0x330   : > { %15440 = vst [vmem:[#allocation230_spill] sm:$0xff] %v10471_v58  ;;  %v10491_v58 = vld [vmem:[%s15076_s3 + $0x1] ss:$0 sm:$0xff] }
 0x331   : > { %2928 = vst.msk [vmem:[#allocation3 + $0x38] sm:$0xff] %vm2919_vm2, %v15443_v53 }
 0x332   : > { %15469 = vst [vmem:[#allocation14_spill] sm:$0xff] %v10583_v25  ;;  %v983_v25 = vmul.f32 %v10491_v58, %v15475_v61  ;;  %v15480_v61 = vld [vmem:[#allocation63_spill] sm:$0xff] }
 0x333   : > { %15470 = vst [vmem:[#allocation17_spill] sm:$0xff] %v10585_v29  ;;  %v15476_v29 = vld [vmem:[#allocation46_spill] sm:$0xff]  ;;  %v981_v6 = vmul.f32 %v10491_v58, %v15480_v61  ;;  %v10637_v61 = vld [vmem:[%s15076_s3 + $0x2] ss:$0 sm:$0xff] }
 0x334   : > { %2733 = vperm.xlu1 %8094, %v2614_v18   ;;  %v15448_v18 = vld [vmem:[#allocation16_spill] sm:$0xff]  ;;  %2929 = vst.msk [vmem:[#allocation3 + $0x40] sm:$0x3] %vm2922_vm3, %v15443_v53  ;;  %v10607_v8 = vmul.f32 %v10476_v37, %v15476_v29  ;;  %v989_v29 = vmul.f32 %v10491_v58, %v15481_v12 }
 0x335   : > { %2753 = vperm.xlu2 %8095, %v2618_v36   ;;  %v10511_v24 = vmul.f32 %v10476_v37, %v15448_v18  ;;  %v10523_v36 = vmul.f32 %v10476_v37, %v15451_v10  ;;  %v15453_v18 = vld [vmem:[#allocation22_spill] sm:$0xff]  ;;  %2930 = vst.msk [vmem:[#allocation3 + $0x48] sm:$0xff] %vm2919_vm2, %v15443_v53 }
 0x336   : > { %2758 = vperm.xlu0 %8093, %v2619_v50   ;;  %v725_v49 = vmul.f32 %v10476_v37, %v15453_v18  ;;  %v15456_v50 = vld [vmem:[#allocation24_spill] sm:$0xff]  ;;  %v15459_v18 = vld [vmem:[#allocation45_spill] sm:$0xff]  ;;  %2931 = vst.msk [vmem:[#allocation3 + $0x50] sm:$0xff] %vm2919_vm2, %v15443_v53 }
 0x337   : > { %v10535_v46 = vpop.permute.xlu2 %2490  ;;  %v731_v10 = vmul.f32 %v10476_v37, %v15456_v50  ;;  %v980_v63 = vmul.f32 %v10491_v58, %v15459_v18  ;;  %v10557_v50 = vmul.f32 %v10476_v37, %v15461_v34  ;;  %v15464_v18 = vld [vmem:[#allocation34_spill] sm:$0xff]  ;;  %v15466_v34 = vld [vmem:[#allocation35_spill] sm:$0xff]  ;;  %2932 = vst.msk [vmem:[#allocation3 + $0x58] sm:$0x3] %vm2922_vm3, %v15443_v53 }
 0x338   : > { %15455 = vst [vmem:[#allocation15_spill] sm:$0xff] %v10535_v46  ;;  %v15460_v46 = vld [vmem:[#allocation27_spill] sm:$0xff]  ;;  %v10569_v35 = vmul.f32 %v10476_v37, %v15464_v18  ;;  %v10577_v30 = vmul.f32 %v10476_v37, %v15466_v34  ;;  %v15471_v18 = vld [vmem:[#allocation42_spill] sm:$0xff]  ;;  %v15474_v34 = vld [vmem:[#allocation44_spill] sm:$0xff]  ;;  %v10642_v12 = vadd.f32 %v983_v25, %v725_v49 }
 0x339   : > { %v734_v43 = vmul.f32 %v10476_v37, %v15460_v46  ;;  %v15465_v46 = vld [vmem:[#allocation36_spill] sm:$0xff]  ;;  %v10591_v27 = vmul.f32 %v10476_v37, %v15471_v18  ;;  %v10599_v5 = vmul.f32 %v10476_v37, %v15474_v34  ;;  %v10609_v18 = vadd.f32 %v980_v63, %v722_v22  ;;  %v15479_v34 = vld [vmem:[#allocation49_spill] sm:$0xff]  ;;  %2933 = vst.msk [vmem:[#allocation3 + $0x60] sm:$0xff] %vm2919_vm2, %v15443_v53 }
 0x33a   : > { %v10573_v28 = vmul.f32 %v10476_v37, %v15465_v46  ;;  %15467 = vst [vmem:[#allocation13_spill] sm:$0xff] %v10577_v30  ;;  %v15472_v46 = vld [vmem:[#allocation41_spill] sm:$0xff]  ;;  %v10617_v26 = vmul.f32 %v10476_v37, %v15479_v34  ;;  %v15484_v34 = vld [vmem:[#allocation68_spill] sm:$0xff] }
 0x33b   : > { %v10595_v20 = vmul.f32 %v10476_v37, %v15472_v46  ;;  %15477 = vst [vmem:[#allocation19_spill] sm:$0xff] %v10609_v18  ;;  %v986_v46 = vmul.f32 %v10491_v58, %v15478_v23  ;;  %v15482_v23 = vld [vmem:[#allocation51_spill] sm:$0xff]  ;;  %v15483_v22 = vld [vmem:[#allocation69_spill] sm:$0xff]  ;;  %v992_v18 = vmul.f32 %v10491_v58, %v15484_v34  ;;  %v995_v34 = vmul.f32 %v10491_v58, %v15488_v59 }
 0x33c   : > { %2748 = vperm.xlu1 %8094, %v2617_v33   ;;  %v10628_v33 = vmul.f32 %v10476_v37, %v15482_v23  ;;  %v984_v63 = vmul.f32 %v10491_v58, %v15483_v22  ;;  %15485 = vst [vmem:[#allocation20_spill] sm:$0xff] %v10642_v12  ;;  %v987_v22 = vmul.f32 %v10491_v58, %v15487_v21  ;;  %v15491_v25 = vld [vmem:[#allocation57_spill] sm:$0xff] }
 0x33d   : > { %15473 = vst [vmem:[#allocation16_spill] sm:$0xff] %v10595_v20  ;;  %2768 = vperm.xlu2 %8095, %v10302_v2   ;;  %v15486_v2 = vld [vmem:[#allocation73_spill] sm:$0xff]  ;;  %v10660_v49 = vmul.f32 %v10476_v37, %v15491_v25  ;;  %v1013_v59 = vadd.f32 %v981_v6, %v10505_v41  ;;  %v985_v25 = vmul.f32 %v10491_v58, %v15495_v52 }
 0x33e   : > { %2773 = vperm.xlu0 %8093, %v10292_v62   ;;  %v982_v23 = vmul.f32 %v10491_v58, %v15486_v2  ;;  %2934 = vst.msk [vmem:[#allocation3 + $0x68] sm:$0xff] %vm2919_vm2, %v15443_v53  ;;  %v15490_v62 = vld [vmem:[#allocation55_spill] sm:$0xff]  ;;  %v10662_v2 = vadd.f32 %v986_v46, %v728_v7  ;;  %v15493_v12 = vld [vmem:[#allocation61_spill] sm:$0xff]  ;;  %v10682_v46 = vadd.f32 %v984_v63, %v10497_v38  ;;  %v15500_v63 = vld [vmem:[#allocation86_spill] sm:$0xff] }
 0x33f   : > { %v10650_v20 = vpop.permute.xlu2 %2505  ;;  %v10656_v30 = vmul.f32 %v10476_v37, %v15490_v62  ;;  %15492 = vst [vmem:[#allocation21_spill] sm:$0xff] %v10660_v49  ;;  %v10666_v21 = vmul.f32 %v10476_v37, %v15493_v12  ;;  %v10675_v62 = vmul.f32 %v10476_v37, %v15494_v55  ;;  %v2620_v7 = vld [vmem:[#allocation2 + $0x172] sm:$0xff]  ;;  %v10684_v12 = vadd.f32 %v992_v18, %v734_v43  ;;  %v10693_v55 = vld [vmem:[%s15076_s3 + $0x3] ss:$0 sm:$0xff] }
 0x340   : > { %15489 = vst [vmem:[#allocation18_spill] sm:$0xff] %v10650_v20  ;;  %v10671_v20 = vadd.f32 %v989_v29, %v731_v10  ;;  %v15496_v49 = vld [vmem:[#allocation80_spill] sm:$0xff]  ;;  %v1239_v41 = vmul.f32 %v10637_v61, %v10004_v47  ;;  %v2624_v52 = vld [vmem:[#allocation2 + $0x1a2] sm:$0xff]  ;;  %v10698_v37 = vadd.f32 %v982_v23, %v10515_v4  ;;  %v10701_v43 = vadd.f32 %v987_v22, %v10543_v0  ;;  %v10725_v23 = vpop.permute.xlu0 %2435  ;;  %v10727_v22 = vpop.permute.xlu1 %2425 }
 0x341   : > { %2935 = vst.msk [vmem:[#allocation3 + $0x70] sm:$0x3] %vm2922_vm3, %v15443_v53  ;;  %v998_v6 = vmul.f32 %v10491_v58, %v15496_v49  ;;  %v10703_v38 = vadd.f32 %v995_v34, %v737_v31  ;;  %v15498_v10 = vld [vmem:[#allocation81_spill] sm:$0xff]  ;;  %v1001_v49 = vmul.f32 %v10491_v58, %v15500_v63  ;;  %v1497_v4 = vmul.f32 %v10693_v55, %v10146_v57  ;;  %v15503_v34 = vld [vmem:[#allocation87_spill] sm:$0xff] }
 0x342   : > { %2936 = vst.msk [vmem:[#allocation3 + $0x78] sm:$0xff] %vm2919_vm2, %v15443_v53  ;;  %v990_v47 = vmul.f32 %v10491_v58, %v15498_v10  ;;  %v15499_v18 = vld [vmem:[#allocation85_spill] sm:$0xff]  ;;  %v10732_v57 = vadd.f32 %v985_v25, %v10501_v19  ;;  %v993_v10 = vmul.f32 %v10491_v58, %v15503_v34 }
 0x343   : > { %15497 = vst [vmem:[#allocation22_spill] sm:$0xff] %v10693_v55  ;;  %v988_v29 = vmul.f32 %v10491_v58, %v15499_v18  ;;  %v10718_v0 = vld [vmem:[%s15076_s3 + $0x4] ss:$0 sm:$0xff]  ;;  %v10723_v31 = vld [vmem:[%s15076_s3 + $0x5] ss:$0 sm:$0xff]  ;;  %v15504_v18 = vld [vmem:[#allocation91_spill] sm:$0xff]  ;;  %v1271_v55 = vadd.f32 %v1239_v41, %v1013_v59 }
 0x344   : > { %2937 = vst.msk [vmem:[#allocation3 + $0x80] sm:$0xff] %vm2919_vm2, %v15443_v53  ;;  %2763 = vperm.xlu1 %8094, %v2620_v7   ;;  %v991_v63 = vmul.f32 %v10491_v58, %v15504_v18  ;;  %v15506_v7 = vld [vmem:[#allocation92_spill] sm:$0xff]  ;;  %v1755_v19 = vmul.f32 %v10718_v0, %v10236_v3  ;;  %v10750_v25 = vadd.f32 %v990_v47, %v10557_v50  ;;  %v10773_v47 = vld [vmem:[%s15076_s3 + $0x6] ss:$0 sm:$0xff] }
 0x345   : > { %2938 = vst.msk [vmem:[#allocation3 + $0x88] sm:$0x3] %vm2922_vm3, %v15443_v53  ;;  %2783 = vperm.xlu2 %8095, %v2624_v52   ;;  %v15507_v52 = vld [vmem:[#allocation93_spill] sm:$0xff]  ;;  %v15508_v18 = vld [vmem:[#allocation96_spill] sm:$0xff]  ;;  %v10763_v3 = vadd.f32 %v988_v29, %v10511_v24  ;;  %v10766_v50 = vadd.f32 %v1001_v49, %v10591_v27  ;;  %v1529_v59 = vadd.f32 %v1497_v4, %v1271_v55  ;;  %v15511_v27 = vld [vmem:[#allocation98_spill] sm:$0xff] }
 0x346   : > { %15501 = vst [vmem:[#allocation23_spill] sm:$0xff] %v10725_v23  ;;  %v10741_v23 = vadd.f32 %v998_v6, %v10573_v28  ;;  %v996_v34 = vmul.f32 %v10491_v58, %v15507_v52  ;;  %v994_v28 = vmul.f32 %v10491_v58, %v15508_v18  ;;  %v15509_v6 = vld [vmem:[#allocation97_spill] sm:$0xff]  ;;  %v2013_v41 = vmul.f32 %v10723_v31, %v10307_v17 }
 0x347   : > { %15502 = vst [vmem:[#allocation24_spill] sm:$0xff] %v10727_v22  ;;  %v1004_v22 = vmul.f32 %v10491_v58, %v15506_v7  ;;  %v10758_v7 = vpop.permute.xlu2 %2520  ;;  %v10778_v52 = vadd.f32 %v993_v10, %v10569_v35  ;;  %v10781_v24 = vadd.f32 %v991_v63, %v10523_v36  ;;  %v999_v55 = vmul.f32 %v10491_v58, %v15511_v27  ;;  %v2623_v29 = vld [vmem:[#allocation2 + $0x19a] sm:$0xff]  ;;  %v10799_v63 = vld [vmem:[%s15076_s3 + $0x7] ss:$0 sm:$0xff] }
 0x348   : > { %2939 = vst.msk [vmem:[#allocation3 + $0x90] sm:$0xff] %vm2919_vm2, %v15443_v53  ;;  %v997_v17 = vmul.f32 %v10491_v58, %v9990_v9  ;;  %v15512_v4 = vld [vmem:[#allocation101_spill] sm:$0xff]  ;;  %v1787_v10 = vadd.f32 %v1755_v19, %v1529_v59  ;;  %v2272_v36 = vmul.f32 %v10773_v47, %v10397_v11  ;;  %v10804_v9 = vadd.f32 %v996_v34, %v10581_v48  ;;  %v10850_v59 = vpop.permute.xlu1 %2440 }
 0x349   : > { %2940 = vst.msk [vmem:[#allocation3 + $0x98] sm:$0xff] %vm2919_vm2, %v15443_v53  ;;  %v10790_v49 = vadd.f32 %v1004_v22, %v10607_v8  ;;  %v1002_v35 = vmul.f32 %v10491_v58, %v15512_v4  ;;  %v10807_v8 = vadd.f32 %v994_v28, %v10527_v40  ;;  %v1000_v11 = vmul.f32 %v10491_v58, %v10001_v60  ;;  %v10823_v40 = vld [vmem:[%s15076_s3 + $0x8] ss:$0 sm:$0xff] }
 0x34a   : > { %15505 = vst [vmem:[#allocation25_spill] sm:$0xff] %v10741_v23  ;;  %v1007_v23 = vmul.f32 %v10491_v58, %v15509_v6  ;;  %v1005_v19 = vmul.f32 %v10491_v58, %v10006_v51  ;;  %v2045_v18 = vadd.f32 %v2013_v41, %v1787_v10  ;;  %v2530_v48 = vmul.f32 %v10799_v63, %v10459_v32  ;;  %v15513_v51 = vld [vmem:[#allocation100_spill] sm:$0xff]  ;;  %v10848_v6 = vpop.permute.xlu0 %2450 }
 0x34b   : > { %2941 = vst.msk [vmem:[#allocation3 + $0xa0] sm:$0x3] %vm2922_vm3, %v15443_v53  ;;  %v10828_v60 = vadd.f32 %v999_v55, %v10599_v5  ;;  %v1003_v32 = vmul.f32 %v10491_v58, %v10010_v14  ;;  %v10842_v34 = vadd.f32 %v1002_v35, %v10617_v26  ;;  %v1008_v5 = vmul.f32 %v10491_v58, %v10015_v1  ;;  %v15517_v10 = vld [vmem:[#allocation104_spill] sm:$0xff] }
 0x34c   : > { %15510 = vst [vmem:[#allocation26_spill] sm:$0xff] %v10758_v7  ;;  %v10810_v22 = vadd.f32 %v1007_v23, %v10628_v33  ;;  %2778 = vperm.xlu1 %8094, %v2623_v29   ;;  %v10831_v33 = vadd.f32 %v997_v17, %v10533_v44  ;;  %v10835_v23 = vmul.f32 %v10491_v58, %v15513_v51  ;;  %v15515_v17 = vld [vmem:[#allocation102_spill] sm:$0xff] }
 0x34d   : > { %2942 = vst.msk [vmem:[#allocation3 + $0xa8] sm:$0xff] %vm2919_vm2, %v15443_v53  ;;  %v1242_v44 = vmul.f32 %v10637_v61, %v10013_v54  ;;  %v2304_v28 = vadd.f32 %v2272_v36, %v2045_v18  ;;  %v10855_v14 = vadd.f32 %v1000_v11, %v10547_v39  ;;  %v1006_v26 = vmul.f32 %v10491_v58, %v10019_v13  ;;  %v10873_v13 = vld [vmem:[%s15077_s4] ss:$0 sm:$0xff] }
 0x34e   : > { %2943 = vst.msk [vmem:[#allocation3 + $0xb0] sm:$0xff] %vm2919_vm2, %v15443_v53  ;;  %v1011_v1 = vmul.f32 %v10491_v58, %v10024_v42  ;;  %v1245_v54 = vmul.f32 %v10637_v61, %v10022_v16  ;;  %v10866_v27 = vadd.f32 %v1005_v19, %v10656_v30  ;;  %v1009_v39 = vmul.f32 %v10491_v58, %v10028_v45  ;;  %v15516_v58 = vld [vmem:[#allocation103_spill] sm:$0xff] }
 0x34f   : > { %2944 = vst.msk [vmem:[#allocation3 + $0xb8] sm:$0x3] %vm2922_vm3, %v15443_v53  ;;  %v2634_v41 = vpop.permute.xlu2 %2633  ;;  %v2562_v55 = vadd.f32 %v2530_v48, %v2304_v28  ;;  %v10879_v16 = vadd.f32 %v1003_v32, %v10563_v56  ;;  %v1248_v30 = vmul.f32 %v10637_v61, %v10031_v15  ;;  %v1240_v45 = vmul.f32 %v10637_v61, %v15515_v17  ;;  %v15518_v15 = vld [vmem:[#allocation13_spill] sm:$0xff]  ;;  %v15520_v48 = vld [vmem:[#allocation16_spill] sm:$0xff]  ;;  %v15521_v32 = vld [vmem:[#allocation106_spill] sm:$0xff] }
 0x350   : > { %2945 = vst.msk [vmem:[#allocation3 + $0xc0] sm:$0xff] %vm2919_vm2, %v15443_v53  ;;  %v2788_v42 = vmul.f32 %v10823_v40, %v2634_v41  ;;  %v1238_v29 = vmul.f32 %v10637_v61, %v15516_v58  ;;  %v1040_v4 = vadd.f32 %v1008_v5, %v10666_v21  ;;  %v10891_v35 = vadd.f32 %v1242_v44, %v10682_v46  ;;  %v15519_v21 = vld [vmem:[#allocation105_spill] sm:$0xff]  ;;  %v15522_v44 = vld [vmem:[#allocation107_spill] sm:$0xff]  ;;  %v15524_v41 = vld [vmem:[#allocation108_spill] sm:$0xff] }
 0x351   : > { %2946 = vst.msk [vmem:[#allocation3 + $0xc8] sm:$0xff] %vm2919_vm2, %v15443_v53  ;;  %v1251_v56 = vmul.f32 %v10637_v61, %v15517_v10  ;;  %v10898_v11 = vadd.f32 %v1006_v26, %v15518_v15  ;;  %v10901_v19 = vadd.f32 %v1011_v1, %v10675_v62  ;;  %v10904_v18 = vadd.f32 %v1245_v54, %v10701_v43  ;;  %v15523_v1 = vld [vmem:[#allocation19_spill] sm:$0xff]  ;;  %v15528_v10 = vld [vmem:[#allocation112_spill] sm:$0xff] }
 0x352   : > { %2947 = vst.msk [vmem:[#allocation3 + $0xd0] sm:$0x3] %vm2922_vm3, %v15443_v53  ;;  %v2820_v36 = vadd.f32 %v2788_v42, %v2562_v55  ;;  %v1243_v46 = vmul.f32 %v10637_v61, %v15519_v21  ;;  %v10911_v51 = vadd.f32 %v1009_v39, %v15520_v48  ;;  %v1241_v5 = vmul.f32 %v10637_v61, %v15521_v32  ;;  %v15525_v42 = vld [vmem:[#allocation109_spill] sm:$0xff]  ;;  %v15527_v58 = vld [vmem:[#allocation111_spill] sm:$0xff]  ;;  %v15530_v15 = vld [vmem:[#allocation20_spill] sm:$0xff] }
 0x353   : > { %15514 = vst [vmem:[#allocation45_spill] sm:$0xff] %v10835_v23  ;;  %v1254_v28 = vmul.f32 %v10637_v61, %v15522_v44  ;;  %v10921_v43 = vadd.f32 %v1248_v30, %v10750_v25  ;;  %v10924_v26 = vadd.f32 %v1240_v45, %v10698_v37  ;;  %v10927_v54 = vadd.f32 %v1238_v29, %v15523_v1  ;;  %v15526_v25 = vld [vmem:[#allocation110_spill] sm:$0xff]  ;;  %v15532_v32 = vld [vmem:[#allocation115_spill] sm:$0xff]  ;;  %v10965_v1 = vpop.permute.xlu1 %2455 }
 0x354   : > { %2948 = vst.msk [vmem:[#allocation3 + $0xd8] sm:$0xff] %vm2919_vm2, %v15443_v53  ;;  %v2856_v62 = vadd.f32 %v10873_v13, %v2820_v36  ;;  %v1246_v39 = vmul.f32 %v10637_v61, %v15524_v41  ;;  %v10934_v55 = vadd.f32 %v1251_v56, %v10778_v52  ;;  %v1244_v17 = vmul.f32 %v10637_v61, %v15525_v42  ;;  %v15529_v56 = vld [vmem:[#allocation113_spill] sm:$0xff]  ;;  %v15533_v42 = vld [vmem:[#allocation116_spill] sm:$0xff]  ;;  %v15574_v23 = vld [vmem:[#allocation47_spill] sm:$0xff] }
 0x355   : > { %2949 = vst.msk [vmem:[#allocation3 + $0xe0] sm:$0xff] %vm2919_vm2, %v15443_v53  ;;  %v1257_v30 = vmul.f32 %v10637_v61, %v15526_v25  ;;  %v10943_v45 = vadd.f32 %v1243_v46, %v10732_v57  ;;  %v1249_v29 = vmul.f32 %v10637_v61, %v15527_v58  ;;  %v1247_v52 = vmul.f32 %v10637_v61, %v15528_v10  ;;  %v15531_v57 = vld [vmem:[#allocation114_spill] sm:$0xff]  ;;  %v15534_v25 = vld [vmem:[#allocation117_spill] sm:$0xff] }
 0x356   : > { %2950 = vst.msk [vmem:[#allocation3 + $0xe8] sm:$0x3] %vm2922_vm3, %v15443_v53  ;;  %v2888_v37 = vmax.f32 %v2856_v62, 0.0  ;;  %v1260_v36 = vmul.f32 %v10637_v61, %v15529_v56  ;;  %v10954_v21 = vadd.f32 %v1241_v5, %v15530_v15  ;;  %v10957_v48 = vadd.f32 %v1254_v28, %v10804_v9  ;;  %v10963_v62 = vpop.permute.xlu0 %2465  ;;  %v15535_v28 = vld [vmem:[#allocation118_spill] sm:$0xff] }
 0x357   : > { %2951 = vst.msk [vmem:[#allocation3 + $0xf0] sm:$0xff] %vm2919_vm2, %v15443_v53  ;;  %v1252_v46 = vmul.f32 %v10637_v61, %v15531_v57  ;;  %v1250_v44 = vmul.f32 %v10637_v61, %v15532_v32  ;;  %v1278_v41 = vadd.f32 %v1246_v39, %v10763_v3  ;;  %v1263_v5 = vmul.f32 %v10637_v61, %v15533_v42  ;;  %v15537_v39 = vld [vmem:[#allocation120_spill] sm:$0xff] }
 0x358   : > { %2952 = vst.msk [vmem:[#allocation3 + $0xf8] sm:$0xff] %vm2919_vm2, %v15443_v53  ;;  %v1255_v9 = vmul.f32 %v10637_v61, %v15534_v25  ;;  %v1253_v58 = vmul.f32 %v10637_v61, %v15535_v28  ;;  %v10978_v10 = vadd.f32 %v1244_v17, %v10662_v2  ;;  %v10981_v56 = vadd.f32 %v1257_v30, %v10828_v60  ;;  %v15538_v17 = vld [vmem:[#allocation121_spill] sm:$0xff]  ;;  %v15539_v25 = vld [vmem:[#allocation122_spill] sm:$0xff] }
 0x359   : > { %2953 = vst.msk [vmem:[#allocation3 + $0x100] sm:$0x3] %vm2922_vm3, %v15443_v53  ;;  %v1258_v15 = vmul.f32 %v10637_v61, %v15537_v39  ;;  %v1281_v57 = vadd.f32 %v1249_v29, %v10781_v24  ;;  %v10991_v32 = vadd.f32 %v1247_v52, %v10671_v20  ;;  %v10994_v2 = vadd.f32 %v1260_v36, %v10842_v34  ;;  %v15540_v29 = vld [vmem:[#allocation123_spill] sm:$0xff]  ;;  %v15542_v28 = vld [vmem:[#allocation125_spill] sm:$0xff] }
 0x35a   : > { %2954 = vst.msk [vmem:[#allocation3 + $0x108] sm:$0xff] %vm2919_vm2, %v15443_v53  ;;  %v1256_v60 = vmul.f32 %v10637_v61, %v15538_v17  ;;  %v1284_v30 = vadd.f32 %v1252_v46, %v10807_v8  ;;  %v11002_v42 = vadd.f32 %v1250_v44, %v10684_v12  ;;  %v1269_v24 = vmul.f32 %v10637_v61, %v15539_v25  ;;  %v15541_v8 = vld [vmem:[#allocation124_spill] sm:$0xff] }
 0x35b   : > { %2955 = vst.msk [vmem:[#allocation3 + $0x110] sm:$0xff] %vm2919_vm2, %v15443_v53  ;;  %v1261_v20 = vmul.f32 %v10637_v61, %v15540_v29  ;;  %v11011_v34 = vadd.f32 %v1263_v5, %v10866_v27  ;;  %v1287_v52 = vadd.f32 %v1255_v9, %v10831_v33  ;;  %v11015_v36 = vadd.f32 %v1253_v58, %v10703_v38  ;;  %v15544_v27 = vld [vmem:[#allocation126_spill] sm:$0xff]  ;;  %v15545_v38 = vld [vmem:[#allocation25_spill] sm:$0xff]  ;;  %v15546_v9 = vld [vmem:[#allocation127_spill] sm:$0xff] }
 0x35c   : > { %2956 = vst.msk [vmem:[#allocation3 + $0x118] sm:$0x3] %vm2922_vm3, %v15443_v53  ;;  %v1259_v12 = vmul.f32 %v10637_v61, %v15541_v8  ;;  %v1290_v44 = vadd.f32 %v1258_v15, %v10855_v14  ;;  %v1264_v5 = vmul.f32 %v10637_v61, %v15544_v27  ;;  %v11031_v33 = vadd.f32 %v1256_v60, %v15545_v38  ;;  %v15547_v17 = vld [vmem:[#allocation128_spill] sm:$0xff]  ;;  %v15549_v29 = vld [vmem:[#allocation130_spill] sm:$0xff]  ;;  %v15550_v8 = vld [vmem:[#allocation131_spill] sm:$0xff] }
 0x35d   : > { %2957 = vst.msk [vmem:[#allocation3 + $0x120] sm:$0xff] %vm2919_vm2, %v15443_v53  ;;  %v1262_v58 = vmul.f32 %v10637_v61, %v15546_v9  ;;  %v11042_v15 = vadd.f32 %v1269_v24, %v10901_v19  ;;  %v1293_v25 = vadd.f32 %v1261_v20, %v10879_v16  ;;  %v1265_v60 = vmul.f32 %v10637_v61, %v15549_v29  ;;  %v15551_v38 = vld [vmem:[#allocation132_spill] sm:$0xff]  ;;  %v15553_v24 = vld [vmem:[#allocation135_spill] sm:$0xff] }
 0x35e   : > { %2958 = vst.msk [vmem:[#allocation3 + $0x128] sm:$0xff] %vm2919_vm2, %v15443_v53  ;;  %v11052_v27 = vadd.f32 %v1259_v12, %v10766_v50  ;;  %v1296_v20 = vadd.f32 %v1264_v5, %v10898_v11  ;;  %v15555_v12 = vld [vmem:[#allocation137_spill] sm:$0xff] }
 0x35f   : > { %2977 = vst.msk [vmem:[#allocation3 + $0x21] sm:$0xff] %vm2919_vm2, %v2888_v37  ;;  %v15536_v37 = vld [vmem:[#allocation119_spill] sm:$0xff] }
 0x360   : > { %2959 = vst.msk [vmem:[#allocation3 + $0x130] sm:$0x3] %vm2922_vm3, %v15443_v53  ;;  %v1266_v3 = vmul.f32 %v10637_v61, %v15536_v37  ;;  %v15543_v37 = vld [vmem:[#allocation22_spill] sm:$0xff] }
 0x361   : > { %2960 = vst.msk [vmem:[#allocation3 + $0x138] sm:$0xff] %vm2919_vm2, %v15443_v53  ;;  %v1498_v39 = vmul.f32 %v15543_v37, %v15542_v28  ;;  %v1504_v28 = vmul.f32 %v15543_v37, %v15550_v8  ;;  %v1496_v9 = vmul.f32 %v15543_v37, %v15551_v38  ;;  %v1499_v16 = vmul.f32 %v15543_v37, %v15553_v24  ;;  %v11070_v8 = vpop.permute.xlu0 %2480  ;;  %v11072_v38 = vpop.permute.xlu1 %2470 }
 0x362   : > { %2961 = vst.msk [vmem:[#allocation3 + $0x140] sm:$0xff] %vm2919_vm2, %v15443_v53  ;;  %v11021_v46 = vadd.f32 %v1266_v3, %v1040_v4  ;;  %v1501_v4 = vmul.f32 %v15543_v37, %v15547_v17  ;;  %v15548_v3 = vld [vmem:[#allocation129_spill] sm:$0xff]  ;;  %v15552_v17 = vld [vmem:[#allocation134_spill] sm:$0xff]  ;;  %v1502_v29 = vmul.f32 %v15543_v37, %v15555_v12  ;;  %v11088_v24 = vadd.f32 %v1265_v60, %v10810_v22  ;;  %v15559_v12 = vld [vmem:[#allocation139_spill] sm:$0xff] }
 0x363   : > { %2962 = vst.msk [vmem:[#allocation3 + $0x148] sm:$0x3] %vm2922_vm3, %v15443_v53  ;;  %v1267_v14 = vmul.f32 %v10637_v61, %v15548_v3  ;;  %v1507_v19 = vmul.f32 %v15543_v37, %v15552_v17  ;;  %v11063_v61 = vadd.f32 %v1498_v39, %v10924_v26  ;;  %v15554_v3 = vld [vmem:[#allocation136_spill] sm:$0xff]  ;;  %v1294_v17 = vadd.f32 %v1262_v58, %v10790_v49  ;;  %v15557_v39 = vld [vmem:[#allocation138_spill] sm:$0xff] }
 0x364   : > { %2963 = vst.msk [vmem:[#allocation3 + $0x150] sm:$0xff] %vm2919_vm2, %v15443_v53  ;;  %v1510_v50 = vmul.f32 %v15543_v37, %v15554_v3  ;;  %v11078_v26 = vadd.f32 %v1501_v4, %v10943_v45  ;;  %v1500_v5 = vmul.f32 %v15543_v37, %v15557_v39  ;;  %v11090_v3 = vadd.f32 %v1504_v28, %v1278_v41  ;;  %v15560_v58 = vld [vmem:[#allocation140_spill] sm:$0xff]  ;;  %v15561_v39 = vld [vmem:[#allocation141_spill] sm:$0xff]  ;;  %v15562_v28 = vld [vmem:[#allocation142_spill] sm:$0xff] }
 0x365   : > { %2964 = vst.msk [vmem:[#allocation3 + $0x158] sm:$0xff] %vm2919_vm2, %v15443_v53  ;;  %v11081_v11 = vadd.f32 %v1267_v14, %v10911_v51  ;;  %v1513_v49 = vmul.f32 %v15543_v37, %v15559_v12  ;;  %v1505_v45 = vmul.f32 %v15543_v37, %v15560_v58  ;;  %v1528_v51 = vadd.f32 %v1496_v9, %v10927_v54  ;;  %v15563_v58 = vld [vmem:[#allocation143_spill] sm:$0xff] }
 0x366   : > { %2965 = vst.msk [vmem:[#allocation3 + $0x160] sm:$0x3] %vm2922_vm3, %v15443_v53  ;;  %v11099_v4 = vadd.f32 %v1507_v19, %v1281_v57  ;;  %v1531_v14 = vadd.f32 %v1499_v16, %v10954_v21  ;;  %v1503_v22 = vmul.f32 %v15543_v37, %v15561_v39  ;;  %v11106_v41 = vadd.f32 %v1510_v50, %v1284_v30  ;;  %v15564_v57 = vld [vmem:[#allocation37_spill] sm:$0xff]  ;;  %v15565_v19 = vld [vmem:[#allocation32_spill] sm:$0xff] }
 0x367   : > { %2966 = vst.msk [vmem:[#allocation3 + $0x168] sm:$0xff] %vm2919_vm2, %v15443_v53  ;;  %v1534_v60 = vadd.f32 %v1502_v29, %v10978_v10  ;;  %v1516_v12 = vmul.f32 %v15543_v37, %v15562_v28  ;;  %v1508_v54 = vmul.f32 %v15543_v37, %v15563_v58  ;;  %v11116_v21 = vadd.f32 %v1500_v5, %v10891_v35  ;;  %v15566_v16 = vld [vmem:[#allocation144_spill] sm:$0xff]  ;;  %v15568_v5 = vld [vmem:[#allocation38_spill] sm:$0xff] }
 0x368   : > { %2967 = vst.msk [vmem:[#allocation3 + $0x170] sm:$0xff] %vm2919_vm2, %v15443_v53  ;;  %v1506_v9 = vmul.f32 %v15543_v37, %v15564_v57  ;;  %v1519_v30 = vmul.f32 %v15543_v37, %v15565_v19  ;;  %v1511_v10 = vmul.f32 %v15543_v37, %v15566_v16  ;;  %v11126_v50 = vadd.f32 %v1513_v49, %v1287_v52  ;;  %v15567_v39 = vld [vmem:[#allocation28_spill] sm:$0xff]  ;;  %v15569_v57 = vld [vmem:[#allocation145_spill] sm:$0xff]  ;;  %v15571_v49 = vld [vmem:[#allocation147_spill] sm:$0xff] }
 0x369   : > { %2968 = vst.msk [vmem:[#allocation3 + $0x178] sm:$0x3] %vm2922_vm3, %v15443_v53  ;;  %v1537_v29 = vadd.f32 %v1505_v45, %v10991_v32  ;;  %v1509_v35 = vmul.f32 %v15543_v37, %v15567_v39  ;;  %v1522_v28 = vmul.f32 %v15543_v37, %v15568_v5  ;;  %v11136_v58 = vadd.f32 %v1503_v22, %v10904_v18  ;;  %v15570_v16 = vld [vmem:[#allocation33_spill] sm:$0xff]  ;;  %v15572_v5 = vld [vmem:[#allocation39_spill] sm:$0xff]  ;;  %v15573_v22 = vld [vmem:[#allocation52_spill] sm:$0xff] }
 0x36a   : > { %15556 = vst [vmem:[#allocation27_spill] sm:$0xff] %v11081_v11  ;;  %v1514_v19 = vmul.f32 %v15543_v37, %v15569_v57  ;;  %v1512_v52 = vmul.f32 %v15543_v37, %v15570_v16  ;;  %v1517_v32 = vmul.f32 %v15543_v37, %v15571_v49  ;;  %v11146_v45 = vadd.f32 %v1516_v12, %v1290_v44  ;;  %v15607_v11 = vld [vmem:[#allocation155_spill] sm:$0xff] }
 0x36b   : > { %2969 = vst.msk [vmem:[#allocation3 + $0x180] sm:$0xff] %vm2919_vm2, %v15443_v53  ;;  %v1540_v39 = vadd.f32 %v1508_v54, %v11002_v42  ;;  %v1515_v18 = vmul.f32 %v15543_v37, %v15572_v5  ;;  %v1754_v7 = vmul.f32 %v10718_v0, %v15573_v22  ;;  %v1538_v57 = vadd.f32 %v1506_v9, %v10921_v43  ;;  %v15576_v54 = vld [vmem:[#allocation43_spill] sm:$0xff]  ;;  %v15577_v22 = vld [vmem:[#allocation58_spill] sm:$0xff]  ;;  %v15579_v9 = vld [vmem:[#allocation48_spill] sm:$0xff] }
 0x36c   : > { %15558 = vst [vmem:[#allocation29_spill] sm:$0xff] %v11088_v24  ;;  %v11156_v16 = vadd.f32 %v1519_v30, %v1293_v25  ;;  %v1543_v49 = vadd.f32 %v1511_v10, %v11015_v36  ;;  %v1520_v44 = vmul.f32 %v15543_v37, %v15574_v23  ;;  %v11164_v42 = vadd.f32 %v1509_v35, %v10934_v55  ;;  %v11174_v36 = vpop.permute.xlu0 %2495  ;;  %v11176_v23 = vpop.permute.xlu1 %2485  ;;  %v15593_v24 = vld [vmem:[#allocation83_spill] sm:$0xff] }
 0x36d   : > { %2970 = vst.msk [vmem:[#allocation3 + $0x188] sm:$0xff] %vm2919_vm2, %v15443_v53  ;;  %v11166_v12 = vadd.f32 %v1522_v28, %v1296_v20  ;;  %v1518_v5 = vmul.f32 %v15543_v37, %v15576_v54  ;;  %v1757_v43 = vmul.f32 %v10718_v0, %v15577_v22  ;;  %v1546_v25 = vadd.f32 %v1514_v19, %v11031_v33  ;;  %v15580_v28 = vld [vmem:[#allocation64_spill] sm:$0xff]  ;;  %v15581_v33 = vld [vmem:[#allocation54_spill] sm:$0xff] }
 0x36e   : > { %2971 = vst.msk [vmem:[#allocation3 + $0x190] sm:$0x3] %vm2922_vm3, %v15443_v53  ;;  %v11180_v55 = vadd.f32 %v1512_v52, %v10957_v48  ;;  %v1549_v20 = vadd.f32 %v1517_v32, %v11052_v27  ;;  %v1521_v30 = vmul.f32 %v15543_v37, %v15579_v9  ;;  %v11188_v10 = vadd.f32 %v1515_v18, %v10981_v56  ;;  %v15583_v19 = vld [vmem:[#allocation70_spill] sm:$0xff]  ;;  %v15584_v32 = vld [vmem:[#allocation65_spill] sm:$0xff]  ;;  %v15585_v18 = vld [vmem:[#allocation60_spill] sm:$0xff] }
 0x36f   : > { %2972 = vst.msk [vmem:[#allocation3 + $0x198] sm:$0xff] %vm2919_vm2, %v15443_v53  ;;  %v11190_v35 = vadd.f32 %v1754_v7, %v1528_v51  ;;  %v1760_v54 = vmul.f32 %v10718_v0, %v15580_v28  ;;  %v1524_v48 = vmul.f32 %v15543_v37, %v15581_v33  ;;  %v11198_v27 = vadd.f32 %v1520_v44, %v1294_v17  ;;  %v15586_v9 = vld [vmem:[#allocation76_spill] sm:$0xff]  ;;  %v15587_v44 = vld [vmem:[#allocation71_spill] sm:$0xff]  ;;  %v15588_v33 = vld [vmem:[#allocation66_spill] sm:$0xff] }
 0x370   : > { %2973 = vst.msk [vmem:[#allocation3 + $0x1a0] sm:$0xff] %vm2919_vm2, %v15443_v53  ;;  %v1763_v52 = vmul.f32 %v10718_v0, %v15583_v19  ;;  %v1527_v56 = vmul.f32 %v15543_v37, %v15584_v32  ;;  %v1766_v7 = vmul.f32 %v10718_v0, %v15585_v18  ;;  %v1550_v51 = vadd.f32 %v1518_v5, %v10994_v2  ;;  %v15589_v32 = vld [vmem:[#allocation82_spill] sm:$0xff]  ;;  %v15590_v2 = vld [vmem:[#allocation77_spill] sm:$0xff] }
 0x371   : > { %2974 = vst.msk [vmem:[#allocation3 + $0x1a8] sm:$0x3] %vm2922_vm3, %v15443_v53  ;;  %v11209_v22 = vadd.f32 %v1757_v43, %v1531_v14  ;;  %v1758_v17 = vmul.f32 %v10718_v0, %v15586_v9  ;;  %v1756_v28 = vmul.f32 %v10718_v0, %v15587_v44  ;;  %v1553_v37 = vadd.f32 %v1521_v30, %v11011_v34  ;;  %v15591_v9 = vld [vmem:[#allocation72_spill] sm:$0xff] }
 0x372   : > { %6643 = vst.msk [vmem:[#allocation5] sm:$0xff] %vm2919_vm2, %v15443_v53  ;;  %v1769_v19 = vmul.f32 %v10718_v0, %v15588_v33  ;;  %v1761_v18 = vmul.f32 %v10718_v0, %v15589_v32  ;;  %v1759_v14 = vmul.f32 %v10718_v0, %v15590_v2  ;;  %v11226_v5 = vadd.f32 %v1760_v54, %v1534_v60  ;;  %v15592_v34 = vld [vmem:[#allocation88_spill] sm:$0xff] }
 0x373   : > { %6644 = vst.msk [vmem:[#allocation5 + $0x8] sm:$0xff] %vm2919_vm2, %v15443_v53  ;;  %v1556_v43 = vadd.f32 %v1524_v48, %v11021_v46  ;;  %v1772_v44 = vmul.f32 %v10718_v0, %v15591_v9  ;;  %v1764_v30 = vmul.f32 %v10718_v0, %v15592_v34  ;;  %v11235_v33 = vadd.f32 %v1763_v52, %v1537_v29  ;;  %v15594_v48 = vld [vmem:[#allocation78_spill] sm:$0xff]  ;;  %v15595_v29 = vld [vmem:[#allocation89_spill] sm:$0xff] }
 0x374   : > { %6645 = vst.msk [vmem:[#allocation5 + $0x10] sm:$0x3] %vm2922_vm3, %v15443_v53  ;;  %v1559_v32 = vadd.f32 %v1527_v56, %v11042_v15  ;;  %v11238_v2 = vadd.f32 %v1766_v7, %v1540_v39  ;;  %v1762_v60 = vmul.f32 %v10718_v0, %v15593_v24  ;;  %v1790_v46 = vadd.f32 %v1758_v17, %v11116_v21  ;;  %v11254_v15 = vpop.permute.xlu2 %2648 }
 0x375   : > { %15575 = vst [vmem:[#allocation31_spill] sm:$0xff] %v11166_v12  ;;  %v11246_v54 = vadd.f32 %v1756_v28, %v11063_v61  ;;  %v1775_v9 = vmul.f32 %v10718_v0, %v15594_v48  ;;  %v1767_v52 = vmul.f32 %v10718_v0, %v15595_v29  ;;  %v11256_v24 = vadd.f32 %v1769_v19, %v1543_v49  ;;  %v15596_v61 = vld [vmem:[#allocation84_spill] sm:$0xff]  ;;  %v15598_v48 = vld [vmem:[#allocation90_spill] sm:$0xff]  ;;  %v15633_v12 = vld [vmem:[#allocation177_spill] sm:$0xff] }
 0x376   : > { %6646 = vst.msk [vmem:[#allocation5 + $0x18] sm:$0xff] %vm2919_vm2, %v15443_v53  ;;  %v1793_v39 = vadd.f32 %v1761_v18, %v11136_v58  ;;  %v11260_v21 = vadd.f32 %v1759_v14, %v11078_v26  ;;  %v1765_v56 = vmul.f32 %v10718_v0, %v15596_v61  ;;  %v11266_v7 = vadd.f32 %v1772_v44, %v1546_v25  ;;  %v15597_v28 = vld [vmem:[#allocation148_spill] sm:$0xff]  ;;  %v11274_v26 = vpop.permute.xlu0 %2510  ;;  %v11276_v58 = vpop.permute.xlu1 %2500  ;;  %v15600_v18 = vld [vmem:[#allocation149_spill] sm:$0xff]  ;;  %v15602_v44 = vld [vmem:[#allocation151_spill] sm:$0xff] }
 0x377   : > { %15578 = vst [vmem:[#allocation30_spill] sm:$0xff] %v11176_v23  ;;  %v1796_v17 = vadd.f32 %v1764_v30, %v1538_v57  ;;  %v1770_v34 = vmul.f32 %v10718_v0, %v15597_v28  ;;  %v1768_v49 = vmul.f32 %v10718_v0, %v15598_v48  ;;  %v11279_v19 = vadd.f32 %v1762_v60, %v11090_v3  ;;  %v15601_v57 = vld [vmem:[#allocation95_spill] sm:$0xff]  ;;  %v15604_v28 = vld [vmem:[#allocation152_spill] sm:$0xff]  ;;  %v15605_v60 = vld [vmem:[#allocation153_spill] sm:$0xff] }
 0x378   : > { %6647 = vst.msk [vmem:[#allocation5 + $0x20] sm:$0xff] %vm2919_vm2, %v15443_v53  ;;  %v1773_v25 = vmul.f32 %v10718_v0, %v15600_v18  ;;  %v1771_v14 = vmul.f32 %v10718_v0, %v15601_v57  ;;  %v1776_v30 = vmul.f32 %v10718_v0, %v15602_v44  ;;  %v11289_v29 = vadd.f32 %v1775_v9, %v1549_v20  ;;  %v15606_v57 = vld [vmem:[#allocation154_spill] sm:$0xff]  ;;  %v15608_v9 = vld [vmem:[#allocation156_spill] sm:$0xff] }
 0x379   : > { %6648 = vst.msk [vmem:[#allocation5 + $0x28] sm:$0x3] %vm2922_vm3, %v15443_v53  ;;  %v1799_v61 = vadd.f32 %v1767_v52, %v11164_v42  ;;  %v1774_v3 = vmul.f32 %v10718_v0, %v15604_v28  ;;  %v1779_v48 = vmul.f32 %v10718_v0, %v15605_v60  ;;  %v11299_v18 = vadd.f32 %v1765_v56, %v11099_v4  ;;  %v15609_v60 = vld [vmem:[#allocation158_spill] sm:$0xff]  ;;  %v15610_v56 = vld [vmem:[#allocation159_spill] sm:$0xff] }
 0x37a   : > { %15582 = vst [vmem:[#allocation34_spill] sm:$0xff] %v11198_v27  ;;  %v1777_v44 = vmul.f32 %v10718_v0, %v15606_v57  ;;  %v2016_v20 = vmul.f32 %v10723_v31, %v15607_v11  ;;  %v1782_v42 = vmul.f32 %v10718_v0, %v15608_v9  ;;  %v1802_v52 = vadd.f32 %v1770_v34, %v11180_v55  ;;  %v15611_v27 = vld [vmem:[#allocation161_spill] sm:$0xff] }
 0x37b   : > { %6649 = vst.msk [vmem:[#allocation5 + $0x30] sm:$0xff] %vm2919_vm2, %v15443_v53  ;;  %v1800_v28 = vadd.f32 %v1768_v49, %v11106_v41  ;;  %v2019_v4 = vmul.f32 %v10723_v31, %v15609_v60  ;;  %v1805_v11 = vadd.f32 %v1773_v25, %v11188_v10  ;;  %v11319_v57 = vadd.f32 %v1771_v14, %v11126_v50  ;;  %v15612_v49 = vld [vmem:[#allocation162_spill] sm:$0xff]  ;;  %v15615_v25 = vld [vmem:[#allocation164_spill] sm:$0xff] }
 0x37c   : > { %6650 = vst.msk [vmem:[#allocation5 + $0x38] sm:$0xff] %vm2919_vm2, %v15443_v53  ;;  %v1808_v9 = vadd.f32 %v1776_v30, %v1550_v51  ;;  %v2022_v55 = vmul.f32 %v10723_v31, %v15611_v27  ;;  %v11326_v41 = vadd.f32 %v1774_v3, %v11146_v45  ;;  %v1811_v34 = vadd.f32 %v1779_v48, %v1553_v37  ;;  %v15616_v37 = vld [vmem:[#allocation157_spill] sm:$0xff] }
 0x37d   : > { %6651 = vst.msk [vmem:[#allocation5 + $0x40] sm:$0x3] %vm2922_vm3, %v15443_v53  ;;  %v2014_v60 = vmul.f32 %v10723_v31, %v15612_v49  ;;  %v11335_v50 = vadd.f32 %v1777_v44, %v11156_v16  ;;  %v11337_v27 = vadd.f32 %v2016_v20, %v1790_v46  ;;  %v11339_v51 = vadd.f32 %v1782_v42, %v1556_v43  ;;  %v15619_v16 = vld [vmem:[#allocation165_spill] sm:$0xff]  ;;  %v11357_v43 = vpop.permute.xlu2 %2663  ;;  %v15621_v20 = vld [vmem:[#allocation166_spill] sm:$0xff]  ;;  %v15622_v42 = vld [vmem:[#allocation167_spill] sm:$0xff] }
 0x37e   : > { %6652 = vst.msk [vmem:[#allocation5 + $0x48] sm:$0xff] %vm2919_vm2, %v15443_v53  ;;  %v2025_v45 = vmul.f32 %v10723_v31, %v15615_v25  ;;  %v11347_v14 = vmul.f32 %v10718_v0, %v15616_v37  ;;  %v11349_v30 = vadd.f32 %v2019_v4, %v1793_v39  ;;  %v2017_v46 = vmul.f32 %v10723_v31, %v15619_v16  ;;  %v11359_v48 = vpop.permute.xlu0 %2525  ;;  %v11371_v4 = vpop.permute.xlu1 %2515  ;;  %v15626_v25 = vld [vmem:[#allocation170_spill] sm:$0xff] }
 0x37f   : > { %6653 = vst.msk [vmem:[#allocation5 + $0x50] sm:$0xff] %vm2919_vm2, %v15443_v53  ;;  %v11361_v44 = vadd.f32 %v2022_v55, %v1796_v17  ;;  %v2028_v39 = vmul.f32 %v10723_v31, %v15622_v42  ;;  %v2046_v49 = vadd.f32 %v2014_v60, %v11246_v54  ;;  %v15625_v17 = vld [vmem:[#allocation169_spill] sm:$0xff]  ;;  %v2031_v37 = vmul.f32 %v10723_v31, %v15626_v25  ;;  %v15631_v25 = vld [vmem:[#allocation175_spill] sm:$0xff] }
 0x380   : > { %6654 = vst.msk [vmem:[#allocation5 + $0x58] sm:$0x3] %vm2922_vm3, %v15443_v53  ;;  %v2018_v55 = vmul.f32 %v10723_v31, %v15625_v17  ;;  %v11381_v16 = vadd.f32 %v2025_v45, %v1799_v61  ;;  %v15629_v54 = vld [vmem:[#allocation173_spill] sm:$0xff]  ;;  %v2049_v60 = vadd.f32 %v2017_v46, %v11260_v21  ;;  %v2024_v61 = vmul.f32 %v10723_v31, %v15631_v25  ;;  %v15632_v45 = vld [vmem:[#allocation176_spill] sm:$0xff] }
 0x381   : > { %6655 = vst.msk [vmem:[#allocation5 + $0x60] sm:$0xff] %vm2919_vm2, %v15443_v53  ;;  %v2029_v21 = vmul.f32 %v10723_v31, %v15633_v12  ;;  %v15634_v25 = vld [vmem:[#allocation185_spill] sm:$0xff] }
 0x382   : > { %6656 = vst.msk [vmem:[#allocation5 + $0x68] sm:$0xff] %vm2919_vm2, %v15443_v53  ;;  %v2050_v46 = vadd.f32 %v2018_v55, %v11226_v5 }
 0x383   : > { %15599 = vst [vmem:[#allocation36_spill] sm:$0xff] %v11276_v58  ;;  %v1785_v58 = vmul.f32 %v10718_v0, %v15610_v56  ;;  %v15613_v56 = vld [vmem:[#allocation163_spill] sm:$0xff]  ;;  %v2015_v0 = vmul.f32 %v10723_v31, %v15621_v20 }
 0x384   : > { %6657 = vst.msk [vmem:[#allocation5 + $0x70] sm:$0x3] %vm2922_vm3, %v15443_v53  ;;  %v2012_v10 = vmul.f32 %v10723_v31, %v15613_v56  ;;  %v15627_v20 = vld [vmem:[#allocation171_spill] sm:$0xff] }
 0x385   : > { %15603 = vst [vmem:[#allocation35_spill] sm:$0xff] %v11289_v29  ;;  %v11351_v3 = vadd.f32 %v1785_v58, %v1559_v32  ;;  %v15623_v32 = vld [vmem:[#allocation168_spill] sm:$0xff]  ;;  %v2023_v42 = vmul.f32 %v10723_v31, %v15627_v20  ;;  %v2037_v20 = vmul.f32 %v10723_v31, %v15632_v45  ;;  %v2273_v45 = vmul.f32 %v10773_v47, %v15634_v25 }
 0x386   : > { %6658 = vst.msk [vmem:[#allocation5 + $0x78] sm:$0xff] %vm2919_vm2, %v15443_v53  ;;  %v2020_v58 = vmul.f32 %v10723_v31, %v15623_v32  ;;  %v2044_v56 = vadd.f32 %v2012_v10, %v11190_v35  ;;  %v15628_v32 = vld [vmem:[#allocation172_spill] sm:$0xff]  ;;  %v2034_v35 = vmul.f32 %v10723_v31, %v15629_v54  ;;  %v15630_v10 = vld [vmem:[#allocation174_spill] sm:$0xff]  ;;  %v11401_v54 = vadd.f32 %v2028_v39, %v1802_v52 }
 0x387   : > { %6659 = vst.msk [vmem:[#allocation5 + $0x80] sm:$0xff] %vm2919_vm2, %v15443_v53  ;;  %v2026_v17 = vmul.f32 %v10723_v31, %v15630_v10  ;;  %v11409_v10 = vadd.f32 %v2031_v37, %v1805_v11  ;;  %v15635_v29 = vld [vmem:[#allocation188_spill] sm:$0xff]  ;;  %v11428_v39 = vadd.f32 %v2024_v61, %v11238_v2  ;;  %v15639_v2 = vld [vmem:[#allocation194_spill] sm:$0xff]  ;;  %v15640_v37 = vld [vmem:[#allocation195_spill] sm:$0xff] }
 0x388   : > { %6660 = vst.msk [vmem:[#allocation5 + $0x88] sm:$0x3] %vm2922_vm3, %v15443_v53  ;;  %v11419_v52 = vadd.f32 %v2034_v35, %v1808_v9  ;;  %v11438_v9 = vpop.permute.xlu0 %2638  ;;  %v11453_v35 = vpop.permute.xlu1 %2628 }
 0x389   : > { %6661 = vst.msk [vmem:[#allocation5 + $0x90] sm:$0xff] %vm2919_vm2, %v15443_v53  ;;  %v11425_v11 = vadd.f32 %v2026_v17, %v1800_v28  ;;  %v15638_v28 = vld [vmem:[#allocation178_spill] sm:$0xff]  ;;  %v15641_v17 = vld [vmem:[#allocation179_spill] sm:$0xff] }
 0x38a   : > { %6662 = vst.msk [vmem:[#allocation5 + $0x98] sm:$0xff] %vm2919_vm2, %v15443_v53  ;;  %v11445_v55 = vmul.f32 %v10723_v31, %v15638_v28  ;;  %v11457_v61 = vmul.f32 %v10723_v31, %v15641_v17  ;;  %v15646_v17 = vld [vmem:[#allocation204_spill] sm:$0xff] }
 0x38b   : > { %15614 = vst [vmem:[#allocation40_spill] sm:$0xff] %v11335_v50  ;;  %v15649_v50 = vld [vmem:[#allocation213_spill] sm:$0xff] }
 0x38c   : > { %6663 = vst.msk [vmem:[#allocation5 + $0xa0] sm:$0x3] %vm2922_vm3, %v15443_v53 }
 0x38d   : > { %15617 = vst [vmem:[#allocation42_spill] sm:$0xff] %v11347_v14  ;;  %v2052_v14 = vadd.f32 %v2020_v58, %v11279_v19  ;;  %v2055_v19 = vadd.f32 %v2023_v42, %v11299_v18  ;;  %v15637_v58 = vld [vmem:[#allocation192_spill] sm:$0xff]  ;;  %v2274_v42 = vmul.f32 %v10773_v47, %v15640_v37 }
 0x38e   : > { %15618 = vst [vmem:[#allocation41_spill] sm:$0xff] %v11351_v3  ;;  %v2271_v18 = vmul.f32 %v10773_v47, %v15637_v58  ;;  %v15643_v58 = vld [vmem:[#allocation198_spill] sm:$0xff]  ;;  %v2290_v3 = vmul.f32 %v10773_v47, %v15649_v50 }
 0x38f   : > { %6664 = vst.msk [vmem:[#allocation5 + $0xa8] sm:$0xff] %vm2919_vm2, %v15443_v53  ;;  %v2275_v28 = vmul.f32 %v10773_v47, %v15643_v58 }
 0x390   : > { %15620 = vst [vmem:[#allocation44_spill] sm:$0xff] %v11359_v48 }
 0x391   : > { %6665 = vst.msk [vmem:[#allocation5 + $0xb0] sm:$0xff] %vm2919_vm2, %v15443_v53  ;;  %v2307_v50 = vadd.f32 %v2275_v28, %v11337_v27 }
 0x392   : > { %15624 = vst [vmem:[#allocation50_spill] sm:$0xff] %v11371_v4  ;;  %v2021_v4 = vmul.f32 %v10723_v31, %v15628_v32  ;;  %v2047_v32 = vadd.f32 %v2015_v0, %v11209_v22  ;;  %v2276_v22 = vmul.f32 %v10773_v47, %v15635_v29  ;;  %v15636_v0 = vld [vmem:[#allocation191_spill] sm:$0xff]  ;;  %v11430_v29 = vadd.f32 %v2037_v20, %v1811_v34  ;;  %v15645_v31 = vld [vmem:[#allocation201_spill] sm:$0xff] }
 0x393   : > { %6666 = vst.msk [vmem:[#allocation5 + $0xb8] sm:$0x3] %vm2922_vm3, %v15443_v53  ;;  %v2279_v5 = vmul.f32 %v10773_v47, %v15636_v0  ;;  %v2282_v34 = vmul.f32 %v10773_v47, %v15639_v2  ;;  %v15644_v2 = vld [vmem:[#allocation200_spill] sm:$0xff] }
 0x394   : > { %6667 = vst.msk [vmem:[#allocation5 + $0xc0] sm:$0xff] %vm2919_vm2, %v15443_v53  ;;  %v2053_v12 = vadd.f32 %v2021_v4, %v11235_v33  ;;  %v11436_v33 = vpop.permute.xlu2 %2678  ;;  %v11441_v4 = vadd.f32 %v2029_v21, %v11319_v57  ;;  %v11459_v57 = vadd.f32 %v2273_v45, %v2046_v49  ;;  %v11461_v20 = vadd.f32 %v2276_v22, %v2049_v60  ;;  %v15642_v21 = vld [vmem:[#allocation197_spill] sm:$0xff]  ;;  %v3040_v60 = vld [vmem:[#allocation3 + $0x1] sm:$0xff] }
 0x395   : > { %6668 = vst.msk [vmem:[#allocation5 + $0xc8] sm:$0xff] %vm2919_vm2, %v15443_v53  ;;  %v2277_v25 = vmul.f32 %v10773_v47, %v15642_v21  ;;  %v11467_v0 = vadd.f32 %v2279_v5, %v2052_v14  ;;  %v2280_v37 = vmul.f32 %v10773_v47, %v15644_v2  ;;  %v2278_v49 = vmul.f32 %v10773_v47, %v15645_v31  ;;  %v3041_v45 = vld [vmem:[#allocation3 + $0x9] sm:$0xff]  ;;  %v15647_v14 = vld [vmem:[#allocation207_spill] sm:$0xff]  ;;  %v15648_v31 = vld [vmem:[#allocation210_spill] sm:$0xff] }
 0x396   : > { %6669 = vst.msk [vmem:[#allocation5 + $0xd0] sm:$0x3] %vm2922_vm3, %v15443_v53  ;;  %v2303_v22 = vadd.f32 %v2271_v18, %v2044_v56  ;;  %v2281_v21 = vmul.f32 %v10773_v47, %v15646_v17  ;;  %v2284_v5 = vmul.f32 %v10773_v47, %v15647_v14  ;;  %v8096_v58 = vpack.i.bf16 %v3041_v45, %v3040_v60  ;;  %v15650_v56 = vld [vmem:[#allocation196_spill] sm:$0xff]  ;;  %v15651_v14 = vld [vmem:[#allocation214_spill] sm:$0xff]  ;;  %v15653_v45 = vld [vmem:[#allocation217_spill] sm:$0xff] }
 0x397   : > { %6670 = vst.msk [vmem:[#allocation5 + $0xd8] sm:$0xff] %vm2919_vm2, %v15443_v53  ;;  %v11483_v2 = vadd.f32 %v2282_v34, %v2055_v19  ;;  %v2306_v48 = vadd.f32 %v2274_v42, %v2047_v32  ;;  %v2287_v23 = vmul.f32 %v10773_v47, %v15648_v31  ;;  %v11493_v18 = vmul.f32 %v10773_v47, %v15650_v56  ;;  %v15652_v42 = vld [vmem:[#allocation227_spill] sm:$0xff]  ;;  %v15656_v56 = vld [vmem:[#allocation228_spill] sm:$0xff] }
 0x398   : > { %6671 = vst.msk [vmem:[#allocation5 + $0xe0] sm:$0xff] %vm2919_vm2, %v15443_v53  ;;  %v11495_v17 = vadd.f32 %v2277_v25, %v2050_v46  ;;  %v2529_v19 = vmul.f32 %v10799_v63, %v15651_v14  ;;  %8097 = vrot.lane.b32.xlu0 %v8096_v58, %s9288_s12  ;;  %v11503_v32 = vadd.f32 %v2280_v37, %v2053_v12  ;;  %v15654_v58 = vld [vmem:[#allocation231_spill] sm:$0xff]  ;;  %v2654_v12 = vpop.permute.xlu0 %2653 }
 0x399   : > { %6672 = vst.msk [vmem:[#allocation5 + $0xe8] sm:$0x3] %vm2922_vm3, %v15443_v53  ;;  %v2310_v34 = vadd.f32 %v2278_v49, %v11349_v30  ;;  %v2533_v60 = vmul.f32 %v10799_v63, %v15652_v42  ;;  %v2313_v46 = vadd.f32 %v2281_v21, %v11361_v44  ;;  %v2316_v25 = vadd.f32 %v2284_v5, %v11381_v16  ;;  %v15655_v49 = vld [vmem:[#allocation14_spill] sm:$0xff]  ;;  %v2644_v21 = vpop.permute.xlu1 %2643  ;;  %v15657_v42 = vld [vmem:[#allocation232_spill] sm:$0xff] }
 0x39a   : > { %6673 = vst.msk [vmem:[#allocation5 + $0xf0] sm:$0xff] %vm2919_vm2, %v15443_v53  ;;  %v2532_v31 = vmul.f32 %v10799_v63, %v15653_v45  ;;  %v2536_v27 = vmul.f32 %v10799_v63, %v15654_v58  ;;  %v2319_v28 = vadd.f32 %v2287_v23, %v11401_v54  ;;  %v11520_v37 = vadd.f32 %v2290_v3, %v11409_v10  ;;  %v15658_v10 = vld [vmem:[#allocation17_spill] sm:$0xff]  ;;  %v15659_v58 = vld [vmem:[#allocation23_spill] sm:$0xff] }
 0x39b   : > { %6674 = vst.msk [vmem:[#allocation5 + $0xf8] sm:$0xff] %vm2919_vm2, %v15443_v53  ;;  %v2539_v44 = vmul.f32 %v10799_v63, %v15655_v49  ;;  %v2791_v16 = vmul.f32 %v10823_v40, %v11254_v15  ;;  %v2561_v5 = vadd.f32 %v2529_v19, %v2303_v22  ;;  %v2531_v14 = vmul.f32 %v10799_v63, %v15656_v56 }
 0x39c   : > { %6675 = vst.msk [vmem:[#allocation5 + $0x100] sm:$0x3] %vm2922_vm3, %v15443_v53  ;;  %v2694_v30 = vpop.permute.xlu2 %2693  ;;  %v2534_v23 = vmul.f32 %v10799_v63, %v15657_v42  ;;  %v2794_v3 = vmul.f32 %v10823_v40, %v11357_v43  ;;  %v2565_v54 = vadd.f32 %v2533_v60, %v2307_v50  ;;  %v2537_v45 = vmul.f32 %v10799_v63, %v15658_v10  ;;  %v15660_v50 = vld [vmem:[#allocation218_spill] sm:$0xff] }
 0x39d   : > { %6676 = vst.msk [vmem:[#allocation5 + $0x108] sm:$0xff] %vm2919_vm2, %v15443_v53  ;;  %v2542_v15 = vmul.f32 %v10799_v63, %v15659_v58  ;;  %v2797_v22 = vmul.f32 %v10823_v40, %v11436_v33  ;;  %v2564_v19 = vadd.f32 %v2532_v31, %v2306_v48  ;;  %v2568_v49 = vadd.f32 %v2536_v27, %v2310_v34 }
 0x39e   : > { %6677 = vst.msk [vmem:[#allocation5 + $0x110] sm:$0xff] %vm2919_vm2, %v15443_v53  ;;  %v2545_v56 = vmul.f32 %v10799_v63, %v10848_v6  ;;  %v2789_v43 = vmul.f32 %v10823_v40, %v11438_v9  ;;  %v2535_v60 = vmul.f32 %v10799_v63, %v15660_v50  ;;  %v2571_v42 = vadd.f32 %v2539_v44, %v2313_v46 }
 0x39f   : > { %6678 = vst.msk [vmem:[#allocation5 + $0x118] sm:$0x3] %vm2922_vm3, %v15443_v53  ;;  %v2823_v10 = vadd.f32 %v2791_v16, %v2565_v54  ;;  %v2787_v48 = vmul.f32 %v10823_v40, %v11453_v35  ;;  %v2563_v33 = vadd.f32 %v2531_v14, %v11459_v57  ;;  %v2566_v6 = vadd.f32 %v2534_v23, %v11461_v20  ;;  %v4440_v35 = vld [vmem:[%s15078_s5 + $0x88] sm:$0xff]  ;;  %v4439_v57 = vld [vmem:[%s15078_s5 + $0x80] sm:$0xff] }
 0x3a0   : > { %6679 = vst.msk [vmem:[#allocation5 + $0x120] sm:$0xff] %vm2919_vm2, %v15443_v53  ;;  %v2826_v34 = vadd.f32 %v2794_v3, %v2568_v49  ;;  %v2800_v9 = vmul.f32 %v10823_v40, %v2694_v30  ;;  %v2569_v31 = vadd.f32 %v2537_v45, %v11467_v0  ;;  %v2574_v46 = vadd.f32 %v2542_v15, %v2316_v25  ;;  %v2669_v16 = vpop.permute.xlu0 %2668  ;;  %v15661_v15 = vld [vmem:[#allocation24_spill] sm:$0xff] }
 0x3a1   : > { %6680 = vst.msk [vmem:[#allocation5 + $0x128] sm:$0xff] %vm2919_vm2, %v15443_v53  ;;  %v2829_v27 = vadd.f32 %v2797_v22, %v2571_v42  ;;  %v2792_v44 = vmul.f32 %v10823_v40, %v2654_v12  ;;  %v2577_v20 = vadd.f32 %v2545_v56, %v2319_v28  ;;  %v2821_v0 = vadd.f32 %v2789_v43, %v2563_v33  ;;  %v2659_v3 = vpop.permute.xlu1 %2658  ;;  %v15662_v33 = vld [vmem:[#allocation221_spill] sm:$0xff] }
 0x3a2   : > { %6681 = vst.msk [vmem:[#allocation5 + $0x130] sm:$0x3] %vm2922_vm3, %v15443_v53  ;;  %v2790_v25 = vmul.f32 %v10823_v40, %v2644_v21  ;;  %8022 = vmatpush.msra.mxu1 %v4440_v35  ;;  %8023 = vmatpush.msra.mxu2 %v4440_v35  ;;  %v2859_v12 = vadd.f32 %v10873_v13, %v2823_v10 }
 0x3a3   : > { %6682 = vst.msk [vmem:[#allocation5 + $0x138] sm:$0xff] %vm2919_vm2, %v15443_v53  ;;  %v2819_v14 = vadd.f32 %v2787_v48, %v2561_v5  ;;  %8024 = vmatpush.msra.mxu3 %v4440_v35  ;;  %v2862_v28 = vadd.f32 %v10873_v13, %v2826_v34  ;;  %v2832_v21 = vadd.f32 %v2800_v9, %v2574_v46 }
 0x3a4   : > { %6683 = vst.msk [vmem:[#allocation5 + $0x140] sm:$0xff] %vm2919_vm2, %v15443_v53  ;;  %v2709_v30 = vpop.permute.xlu2 %2708  ;;  %v2795_v54 = vmul.f32 %v10823_v40, %v2669_v16  ;;  %8025 = vmatpush.msra.mxu1 %v4439_v57  ;;  %8026 = vmatpush.msra.mxu2 %v4439_v57  ;;  %v2865_v45 = vadd.f32 %v10873_v13, %v2829_v27  ;;  %v2891_v42 = vmax.f32 %v2859_v12, 0.0 }
 0x3a5   : > { %6684 = vst.msk [vmem:[#allocation5 + $0x148] sm:$0x3] %vm2922_vm3, %v15443_v53  ;;  %v2803_v23 = vmul.f32 %v10823_v40, %v2709_v30  ;;  %v2824_v5 = vadd.f32 %v2792_v44, %v2566_v6  ;;  %v2793_v58 = vmul.f32 %v10823_v40, %v2659_v3  ;;  %8027 = vmatpush.msra.mxu3 %v4439_v57 }
 0x3a6   : > { %6685 = vst.msk [vmem:[#allocation5 + $0x150] sm:$0xff] %vm2919_vm2, %v15443_v53  ;;  %v2540_v22 = vmul.f32 %v10799_v63, %v15661_v15  ;;  %v2548_v49 = vmul.f32 %v10799_v63, %v10963_v62  ;;  %v2857_v56 = vadd.f32 %v10873_v13, %v2821_v0  ;;  %v2822_v43 = vadd.f32 %v2790_v25, %v2564_v19  ;;  %v15663_v19 = vld [vmem:[#allocation216_spill] sm:$0xff] }
 0x3a7   : > { %6686 = vst.msk [vmem:[#allocation5 + $0x158] sm:$0xff] %vm2919_vm2, %v15443_v53  ;;  %v2567_v50 = vadd.f32 %v2535_v60, %v11495_v17  ;;  %v2855_v10 = vadd.f32 %v10873_v13, %v2819_v14  ;;  %v2835_v48 = vadd.f32 %v2803_v23, %v2577_v20  ;;  %v2538_v6 = vmul.f32 %v10799_v63, %v15662_v33  ;;  %v11643_v33 = vld [vmem:[%s15076_s3 + $0x5] ss:$0 sm:$0xff] }
 0x3a8   : > { %6687 = vst.msk [vmem:[#allocation5 + $0x160] sm:$0x3] %vm2922_vm3, %v15443_v53  ;;  %v2894_v62 = vmax.f32 %v2862_v28, 0.0  ;;  %v2868_v34 = vadd.f32 %v10873_v13, %v2832_v21  ;;  %v2827_v9 = vadd.f32 %v2795_v54, %v2569_v31  ;;  %v2293_v17 = vmul.f32 %v10773_v47, %v15663_v19  ;;  %v2684_v0 = vpop.permute.xlu0 %2683 }
 0x3a9   : > { %6688 = vst.msk [vmem:[#allocation5 + $0x168] sm:$0xff] %vm2919_vm2, %v15443_v53  ;;  %v2897_v60 = vmax.f32 %v2865_v45, 0.0  ;;  %v2860_v46 = vadd.f32 %v10873_v13, %v2824_v5  ;;  %v2825_v27 = vadd.f32 %v2793_v58, %v2567_v50  ;;  %v2572_v44 = vadd.f32 %v2540_v22, %v11483_v2  ;;  %v2674_v2 = vpop.permute.xlu1 %2673  ;;  %v15664_v5 = vld [vmem:[#allocation203_spill] sm:$0xff] }
 0x3aa   : > { %6689 = vst.msk [vmem:[#allocation5 + $0x170] sm:$0xff] %vm2919_vm2, %v15443_v53  ;;  %v2580_v35 = vadd.f32 %v2548_v49, %v11520_v37  ;;  %v2889_v57 = vmax.f32 %v2857_v56, 0.0  ;;  %v2858_v31 = vadd.f32 %v10873_v13, %v2822_v43  ;;  %v2887_v25 = vmax.f32 %v2855_v10, 0.0 }
 0x3ab   : > { %6690 = vst.msk [vmem:[#allocation5 + $0x178] sm:$0x3] %vm2922_vm3, %v15443_v53  ;;  %v2871_v30 = vadd.f32 %v10873_v13, %v2835_v48  ;;  %v2798_v12 = vmul.f32 %v10823_v40, %v2684_v0  ;;  %v2570_v37 = vadd.f32 %v2538_v6, %v11503_v32  ;;  %v2900_v14 = vmax.f32 %v2868_v34, 0.0  ;;  %v15666_v6 = vld [vmem:[#allocation180_spill] sm:$0xff] }
 0x3ac   : > { %6691 = vst.msk [vmem:[#allocation5 + $0x180] sm:$0xff] %vm2919_vm2, %v15443_v53  ;;  %v2724_v20 = vpop.permute.xlu2 %2723  ;;  %v2863_v23 = vadd.f32 %v10873_v13, %v2827_v9  ;;  %v2796_v3 = vmul.f32 %v10823_v40, %v2674_v2  ;;  %v2892_v28 = vmax.f32 %v2860_v46, 0.0  ;;  %v2861_v21 = vadd.f32 %v10873_v13, %v2825_v27  ;;  %v15670_v2 = vld [vmem:[#allocation206_spill] sm:$0xff] }
 0x3ad   : > { %6692 = vst.msk [vmem:[#allocation5 + $0x188] sm:$0xff] %vm2919_vm2, %v15443_v53  ;;  %v2806_v16 = vmul.f32 %v10823_v40, %v2724_v20  ;;  %v2830_v45 = vadd.f32 %v2798_v12, %v2572_v44  ;;  %v2283_v58 = vmul.f32 %v10773_v47, %v15664_v5  ;;  %v2543_v32 = vmul.f32 %v10799_v63, %v10850_v59  ;;  %v15668_v20 = vld [vmem:[#allocation220_spill] sm:$0xff]  ;;  %v15671_v5 = vld [vmem:[#allocation182_spill] sm:$0xff] }
 0x3ae   : > { %6693 = vst.msk [vmem:[#allocation5 + $0x190] sm:$0x3] %vm2922_vm3, %v15443_v53  ;;  %v2890_v15 = vmax.f32 %v2858_v31, 0.0  ;;  %v2828_v22 = vadd.f32 %v2796_v3, %v2570_v37  ;;  %v2551_v49 = vmul.f32 %v10799_v63, %v11070_v8  ;;  %v2903_v56 = vmax.f32 %v2871_v30, 0.0 }
 0x3af   : > { %6694 = vst.msk [vmem:[#allocation5 + $0x198] sm:$0xff] %vm2919_vm2, %v15443_v53  ;;  %v2838_v54 = vadd.f32 %v2806_v16, %v2580_v35  ;;  %v2866_v50 = vadd.f32 %v10873_v13, %v2830_v45  ;;  %v2317_v47 = vadd.f32 %v11493_v18, %v11425_v11  ;;  %v2895_v10 = vmax.f32 %v2863_v23, 0.0  ;;  %v15669_v16 = vld [vmem:[#allocation181_spill] sm:$0xff]  ;;  %v3043_v23 = vld [vmem:[#allocation3 + $0x21] sm:$0xff] }
 0x3b0   : > { %6695 = vst.msk [vmem:[#allocation5 + $0x1a0] sm:$0xff] %vm2919_vm2, %v15443_v53  ;;  %v2864_v48 = vadd.f32 %v10873_v13, %v2828_v22  ;;  %v2059_v8 = vadd.f32 %v11445_v55, %v11256_v24  ;;  %v2325_v11 = vadd.f32 %v2293_v17, %v11419_v52  ;;  %v11651_v18 = vadd.f32 %v11457_v61, %v11339_v51  ;;  %v2699_v19 = vpop.permute.xlu0 %2698  ;;  %v11661_v51 = vld [vmem:[%s15076_s3 + $0x6] ss:$0 sm:$0xff] }
 0x3b1   : > { %6696 = vst.msk [vmem:[#allocation5 + $0x1a8] sm:$0x3] %vm2922_vm3, %v15443_v53  ;;  %v2874_v43 = vadd.f32 %v10873_v13, %v2838_v54  ;;  %v2315_v34 = vadd.f32 %v2283_v58, %v11428_v39  ;;  %v2575_v24 = vadd.f32 %v2543_v32, %v2317_v47  ;;  %v2898_v46 = vmax.f32 %v2866_v50, 0.0  ;;  %v2689_v27 = vpop.permute.xlu1 %2688  ;;  %v15667_v39 = vld [vmem:[#allocation199_spill] sm:$0xff]  ;;  %v15672_v32 = vld [vmem:[#allocation226_spill] sm:$0xff] }
 0x3b2   : > { %2980 = vst.msk [vmem:[#allocation3 + $0x49] sm:$0xff] %vm2919_vm2, %v2891_v42  ;;  %v15665_v42 = vld [vmem:[#allocation224_spill] sm:$0xff]  ;;  %v2801_v17 = vmul.f32 %v10823_v40, %v2699_v19  ;;  %v2288_v61 = vmul.f32 %v11661_v51, %v15667_v39  ;;  %v2896_v35 = vmax.f32 %v2864_v48, 0.0  ;;  %v2296_v0 = vmul.f32 %v11661_v51, %v15668_v20 }
 0x3b3   : > { %2983 = vst.msk [vmem:[#allocation3 + $0x69] sm:$0xff] %vm2919_vm2, %v2894_v62  ;;  %v2541_v59 = vmul.f32 %v10799_v63, %v15665_v42  ;;  %v2032_v62 = vmul.f32 %v11643_v33, %v15666_v6  ;;  %v2893_v63 = vmax.f32 %v2861_v21, 0.0  ;;  %v2906_v55 = vmax.f32 %v2874_v43, 0.0 }
 0x3b4   : > { %2986 = vst.msk [vmem:[#allocation3 + $0x91] sm:$0xff] %vm2919_vm2, %v2897_v60  ;;  %v2739_v9 = vpop.permute.xlu2 %2738  ;;  %v2583_v60 = vadd.f32 %v2551_v49, %v2325_v11  ;;  %v2833_v30 = vadd.f32 %v2801_v17, %v2575_v24  ;;  %v2030_v12 = vmul.f32 %v11643_v33, %v15669_v16  ;;  %v2286_v37 = vmul.f32 %v11661_v51, %v15670_v2  ;;  %v15673_v24 = vld [vmem:[#allocation202_spill] sm:$0xff]  ;;  %v11739_v2 = vld [vmem:[%s15077_s4] ss:$0 sm:$0xff] }
 0x3b5   : > { %2978 = vst.msk [vmem:[#allocation3 + $0x31] sm:$0xff] %vm2919_vm2, %v2889_v57  ;;  %v2809_v52 = vmul.f32 %v10823_v40, %v2739_v9  ;;  %v2573_v44 = vadd.f32 %v2541_v59, %v2315_v34  ;;  %v2799_v57 = vmul.f32 %v10823_v40, %v2689_v27  ;;  %v11668_v31 = vadd.f32 %v2032_v62, %v11326_v41  ;;  %v11680_v40 = vld [vmem:[%s15076_s3 + $0x7] ss:$0 sm:$0xff] }
 0x3b6   : > { %2976 = vst.msk [vmem:[#allocation3 + $0x19] sm:$0xff] %vm2919_vm2, %v2887_v25  ;;  %v2546_v41 = vmul.f32 %v11680_v40, %v10965_v1  ;;  %v2869_v45 = vadd.f32 %v10873_v13, %v2833_v30  ;;  %v11694_v58 = vmul.f32 %v11643_v33, %v15671_v5  ;;  %v2320_v1 = vadd.f32 %v2288_v61, %v11441_v4 }
 0x3b7   : > { %2989 = vst.msk [vmem:[#allocation3 + $0xb1] sm:$0xff] %vm2919_vm2, %v2900_v14  ;;  %v2841_v25 = vadd.f32 %v2809_v52, %v2583_v60  ;;  %v2831_v3 = vadd.f32 %v2799_v57, %v2573_v44  ;;  %v2318_v59 = vadd.f32 %v2286_v37, %v2059_v8  ;;  %v15674_v52 = vld [vmem:[#allocation223_spill] sm:$0xff]  ;;  %v2062_v44 = vadd.f32 %v2030_v12, %v11266_v7 }
 0x3b8   : > { %2981 = vst.msk [vmem:[#allocation3 + $0x51] sm:$0xff] %vm2919_vm2, %v2892_v28  ;;  %v2554_v28 = vmul.f32 %v11680_v40, %v11174_v36  ;;  %v2901_v4 = vmax.f32 %v2869_v45, 0.0  ;;  %v2714_v11 = vpop.permute.xlu0 %2713  ;;  %v2299_v17 = vmul.f32 %v11661_v51, %v15674_v52  ;;  %v2549_v20 = vmul.f32 %v11680_v40, %v11072_v38  ;;  %v15677_v45 = vld [vmem:[#allocation183_spill] sm:$0xff] }
 0x3b9   : > { %2979 = vst.msk [vmem:[#allocation3 + $0x39] sm:$0xff] %vm2919_vm2, %v2890_v15  ;;  %v2877_v54 = vadd.f32 %v10873_v13, %v2841_v25  ;;  %v2544_v15 = vmul.f32 %v11680_v40, %v15672_v32  ;;  %v3046_v36 = vld [vmem:[#allocation3 + $0x49] sm:$0xff]  ;;  %v2867_v49 = vadd.f32 %v10873_v13, %v2831_v3  ;;  %v11714_v13 = vld [vmem:[%s15076_s3 + $0x8] ss:$0 sm:$0xff]  ;;  %v2704_v34 = vpop.permute.xlu1 %2703  ;;  %v2557_v16 = vmul.f32 %v11680_v40, %v11274_v26 }
 0x3ba   : > { %2992 = vst.msk [vmem:[#allocation3 + $0xd9] sm:$0xff] %vm2919_vm2, %v2903_v56  ;;  %v2328_v56 = vadd.f32 %v2296_v0, %v11430_v29  ;;  %v2804_v8 = vmul.f32 %v11714_v13, %v2714_v11  ;;  %v3049_v60 = vld [vmem:[#allocation3 + $0x69] sm:$0xff]  ;;  %v2035_v5 = vmul.f32 %v11643_v33, %v15677_v45  ;;  %vm7839_vm3 = vcmask 1047559  }
 0x3bb   : > { %2984 = vst.msk [vmem:[#allocation3 + $0x79] sm:$0xff] %vm2919_vm2, %v2895_v10  ;;  %v2909_v42 = vmax.f32 %v2877_v54, 0.0  ;;  %v2578_v10 = vadd.f32 %v2546_v41, %v2320_v1  ;;  %v2899_v6 = vmax.f32 %v2867_v49, 0.0  ;;  %v2576_v9 = vadd.f32 %v2544_v15, %v2318_v59  ;;  %v3052_v25 = vld [vmem:[#allocation3 + $0x91] sm:$0xff]  ;;  %v15678_v15 = vld [vmem:[#allocation184_spill] sm:$0xff] }
 0x3bc   : > { %2982 = vst.msk [vmem:[#allocation3 + $0x61] sm:$0xff] %vm2919_vm2, %v2893_v63  ;;  %v3044_v50 = vld [vmem:[#allocation3 + $0x31] sm:$0xff]  ;;  %v2754_v62 = vpop.permute.xlu2 %2753  ;;  %v2586_v63 = vadd.f32 %v2554_v28, %v2328_v56  ;;  %v2331_v1 = vadd.f32 %v2299_v17, %v11651_v18  ;;  %v15683_v17 = vld [vmem:[#allocation212_spill] sm:$0xff] }
 0x3bd   : > { %v3042_v14 = vld [vmem:[#allocation3 + $0x19] sm:$0xff]  ;;  %2995 = vst.msk [vmem:[#allocation3 + $0xf9] sm:$0xff] %vm2919_vm2, %v2906_v55  ;;  %v2812_v29 = vmul.f32 %v11714_v13, %v2754_v62  ;;  %v2291_v55 = vmul.f32 %v11661_v51, %v15673_v24  ;;  %v2836_v61 = vadd.f32 %v2804_v8, %v2578_v10  ;;  %v15676_v3 = vld [vmem:[#allocation229_spill] sm:$0xff] }
 0x3be   : > { %v11687_v21 = vpack.i.bf16 %v3043_v23, %v3042_v14  ;;  %2987 = vst.msk [vmem:[#allocation3 + $0x99] sm:$0xff] %vm2919_vm2, %v2898_v46  ;;  %v2802_v46 = vmul.f32 %v11714_v13, %v2704_v34  ;;  %v2547_v26 = vmul.f32 %v11680_v40, %v15676_v3  ;;  %v15679_v10 = vld [vmem:[#allocation205_spill] sm:$0xff] }
 0x3bf   : > { %2985 = vst.msk [vmem:[#allocation3 + $0x81] sm:$0xff] %vm2919_vm2, %v2896_v35  ;;  %v3047_v22 = vld [vmem:[#allocation3 + $0x51] sm:$0xff]  ;;  %v2844_v39 = vadd.f32 %v2812_v29, %v2586_v63  ;;  %v2872_v7 = vadd.f32 %v11739_v2, %v2836_v61  ;;  %v2323_v23 = vadd.f32 %v2291_v55, %v11668_v31 }
 0x3c0   : > { %8102 = vrot.lane.b32.xlu1 %v11687_v21, %s9288_s12  ;;  %v11704_v43 = vpack.i.bf16 %v3047_v22, %v3046_v36  ;;  %v3045_v47 = vld [vmem:[#allocation3 + $0x39] sm:$0xff]  ;;  %2998 = vst.msk [vmem:[#allocation3 + $0x121] sm:$0xff] %vm2919_vm2, %v2909_v42  ;;  %v15675_v35 = vld [vmem:[#allocation209_spill] sm:$0xff]  ;;  %v2834_v0 = vadd.f32 %v2802_v46, %v2576_v9  ;;  %v2033_v36 = vmul.f32 %v11643_v33, %v15678_v15  ;;  %v15682_v46 = vld [vmem:[#allocation40_spill] sm:$0xff] }
 0x3c1   : > { %v11706_v48 = vpack.i.bf16 %v3045_v47, %v3044_v50  ;;  %2990 = vst.msk [vmem:[#allocation3 + $0xc1] sm:$0xff] %vm2919_vm2, %v2901_v4  ;;  %v2289_v57 = vmul.f32 %v11661_v51, %v15675_v35  ;;  %v2880_v37 = vadd.f32 %v11739_v2, %v2844_v39  ;;  %v2904_v31 = vmax.f32 %v2872_v7, 0.0  ;;  %v2729_v47 = vpop.permute.xlu0 %2728  ;;  %v2719_v59 = vpop.permute.xlu1 %2718  ;;  %v3055_v29 = vld [vmem:[#allocation3 + $0xb1] sm:$0xff]  ;;  %v15687_v7 = vld [vmem:[#allocation35_spill] sm:$0xff] }
 0x3c2   : > { %8112 = vrot.lane.b32.xlu0 %v11704_v43, %s9288_s12  ;;  %2988 = vst.msk [vmem:[#allocation3 + $0xa9] sm:$0xff] %vm2919_vm2, %v2899_v6  ;;  %v3050_v38 = vld [vmem:[#allocation3 + $0x79] sm:$0xff]  ;;  %v2870_v28 = vadd.f32 %v11739_v2, %v2834_v0  ;;  %v2581_v49 = vadd.f32 %v2549_v20, %v2323_v23  ;;  %v2589_v42 = vadd.f32 %v2557_v16, %v2331_v1  ;;  %v15680_v8 = vld [vmem:[#allocation225_spill] sm:$0xff] }
 0x3c3   : > { %8107 = vrot.lane.b32.xlu2 %v11706_v48, %s9288_s12  ;;  %v3048_v19 = vld [vmem:[#allocation3 + $0x61] sm:$0xff]  ;;  %v2912_v32 = vmax.f32 %v2880_v37, 0.0  ;;  %v2321_v22 = vadd.f32 %v2289_v57, %v2062_v44  ;;  %v2807_v4 = vmul.f32 %v11714_v13, %v2729_v47  ;;  %v2294_v6 = vmul.f32 %v11661_v51, %v15679_v10  ;;  %2993 = vst.msk [vmem:[#allocation3 + $0xe1] sm:$0xff] %vm2919_vm2, %v2904_v31  ;;  %v15684_v44 = vld [vmem:[#allocation30_spill] sm:$0xff] }
 0x3c4   : > { %v11727_v27 = vpack.i.bf16 %v3049_v60, %v3048_v19  ;;  %v2902_v56 = vmax.f32 %v2870_v28, 0.0  ;;  %v2769_v50 = vpop.permute.xlu2 %2768  ;;  %v2805_v11 = vmul.f32 %v11714_v13, %v2719_v59  ;;  %v2302_v34 = vmul.f32 %v11661_v51, %v15680_v8  ;;  %v15681_v19 = vld [vmem:[#allocation41_spill] sm:$0xff]  ;;  %v15685_v57 = vld [vmem:[#allocation44_spill] sm:$0xff]  ;;  %v15686_v16 = vld [vmem:[#allocation94_spill] sm:$0xff]  ;;  %4799 = vst.msk [vmem:[#allocation4] sm:$0xff] %vm4225_vm4, %v15443_v53 }
 0x3c5   : > { %v3053_v30 = vld [vmem:[#allocation3 + $0x99] sm:$0xff]  ;;  %3001 = vst.msk [vmem:[#allocation3 + $0x141] sm:$0xff] %vm2919_vm2, %v2912_v32  ;;  %v2815_v18 = vmul.f32 %v11714_v13, %v2769_v50  ;;  %v2579_v62 = vadd.f32 %v2547_v26, %v2321_v22  ;;  %v2839_v55 = vadd.f32 %v2807_v4, %v2581_v49  ;;  %v2075_v60 = vadd.f32 %v11694_v58, %v15681_v19  ;;  %v11794_v58 = vld [vmem:[%s15076_s3 + $0x4] ss:$0 sm:$0xff] }
 0x3c6   : > { %v11743_v12 = vld [vmem:[#allocation3 + $0x82] sm:$0xff]  ;;  %v11745_v41 = vpack.i.bf16 %v3053_v30, %v3052_v25  ;;  %2991 = vst.msk [vmem:[#allocation3 + $0xc9] sm:$0xff] %vm2919_vm2, %v2902_v56  ;;  %v2067_v52 = vadd.f32 %v2035_v5, %v15682_v46  ;;  %v2292_v39 = vmul.f32 %v11661_v51, %v15683_v17  ;;  %v2552_v35 = vmul.f32 %v11680_v40, %v15684_v44  ;;  %v11789_v30 = vld [vmem:[#allocation3 + $0x92] sm:$0xff] }
 0x3c7   : > { %v3051_v14 = vld [vmem:[#allocation3 + $0x81] sm:$0xff]  ;;  %7958 = vmatmul.msk.f32.vlgmr.msra.gmra.mxu1 %vm2919_vm2, %v11743_v12  ;;  %v2847_v24 = vadd.f32 %v2815_v18, %v2589_v42  ;;  %v2837_v61 = vadd.f32 %v2805_v11, %v2579_v62  ;;  %v2560_v20 = vmul.f32 %v11680_v40, %v15685_v57  ;;  %v2875_v25 = vadd.f32 %v11739_v2, %v2839_v55  ;;  %v15690_v32 = vld [vmem:[#allocation42_spill] sm:$0xff]  ;;  %v9153_v17 = vld [vmem:[%s15076_s3 + $0x3] ss:$0 sm:$0xff] }
 0x3c8   : > { %v11753_v54 = vpack.i.bf16 %v3051_v14, %v3050_v38  ;;  %8117 = vrot.lane.b32.xlu1 %v11727_v27, %s9288_s12  ;;  %v1778_v37 = vmul.f32 %v11794_v58, %v15686_v16  ;;  %v2065_v38 = vadd.f32 %v2033_v36, %v15687_v7  ;;  %v15688_v14 = vld [vmem:[#allocation230_spill] sm:$0xff]  ;;  %v2326_v26 = vadd.f32 %v2294_v6, %v2067_v52  ;;  %v15689_v1 = vld [vmem:[#allocation31_spill] sm:$0xff]  ;;  %v15693_v55 = vld [vmem:[#allocation208_spill] sm:$0xff] }
 0x3c9   : > { %v3054_v63 = vld [vmem:[#allocation3 + $0xa9] sm:$0xff]  ;;  %v2883_v0 = vadd.f32 %v11739_v2, %v2847_v24  ;;  %v2550_v23 = vmul.f32 %v11680_v40, %v15688_v14  ;;  %v2873_v3 = vadd.f32 %v11739_v2, %v2837_v61  ;;  %v2334_v28 = vadd.f32 %v2302_v34, %v2075_v60  ;;  %v15691_v15 = vld [vmem:[#allocation186_spill] sm:$0xff]  ;;  %v2744_v50 = vpop.permute.xlu0 %2743  ;;  %v2734_v59 = vpop.permute.xlu1 %2733  ;;  %v15692_v62 = vld [vmem:[#allocation187_spill] sm:$0xff]  ;;  %4800 = vst.msk [vmem:[#allocation4 + $0x8] sm:$0xff] %vm4225_vm4, %v15443_v53 }
 0x3ca   : > { %8127 = vrot.lane.b32.xlu0 %v11745_v41, %s9288_s12  ;;  %v11776_v9 = vpack.i.bf16 %v3055_v29, %v3054_v63  ;;  %v2907_v5 = vmax.f32 %v2875_v25, 0.0  ;;  %v1812_v31 = vadd.f32 %v15690_v32, %v15689_v1  ;;  %v2038_v36 = vmul.f32 %v11643_v33, %v15691_v15  ;;  %v3058_v10 = vld [vmem:[#allocation3 + $0xd9] sm:$0xff]  ;;  %v3059_v6 = vld [vmem:[#allocation3 + $0xe1] sm:$0xff]  ;;  %4803 = vst.msk [vmem:[#allocation4 + $0x18] sm:$0xff] %vm4225_vm4, %v15443_v53 }
 0x3cb   : > { %8122 = vrot.lane.b32.xlu2 %v11753_v54, %s9288_s12  ;;  %v2915_v45 = vmax.f32 %v2883_v0, 0.0  ;;  %v2324_v22 = vadd.f32 %v2292_v39, %v2065_v38  ;;  %v2905_v49 = vmax.f32 %v2873_v3, 0.0  ;;  %v2584_v47 = vadd.f32 %v2552_v35, %v2326_v26  ;;  %v3056_v34 = vld [vmem:[#allocation3 + $0xc1] sm:$0xff]  ;;  %v15694_v39 = vld [vmem:[#allocation146_spill] sm:$0xff]  ;;  %4804 = vst.msk [vmem:[#allocation4 + $0x20] sm:$0xff] %vm4225_vm4, %v15443_v53 }
 0x3cc   : > { %v2784_v56 = vpop.permute.xlu2 %2783  ;;  %v2592_v42 = vadd.f32 %v2560_v20, %v2334_v28  ;;  %v2810_v4 = vmul.f32 %v11714_v13, %v2744_v50  ;;  %v2036_v11 = vmul.f32 %v11643_v33, %v15692_v62  ;;  %2996 = vst.msk [vmem:[#allocation3 + $0x109] sm:$0xff] %vm2919_vm2, %v2907_v5  ;;  %v2808_v29 = vmul.f32 %v11714_v13, %v2734_v59  ;;  %v15695_v44 = vld [vmem:[#allocation34_spill] sm:$0xff]  ;;  %v15696_v57 = vld [vmem:[#allocation215_spill] sm:$0xff]  ;;  %v15697_v16 = vld [vmem:[#allocation36_spill] sm:$0xff] }
 0x3cd   : > { %3004 = vst.msk [vmem:[#allocation3 + $0x169] sm:$0xff] %vm2919_vm2, %v2915_v45  ;;  %v2818_v18 = vmul.f32 %v11714_v13, %v2784_v56  ;;  %v2582_v63 = vadd.f32 %v2550_v23, %v2324_v22  ;;  %v11817_v8 = vpack.i.bf16 %v3059_v6, %v3058_v10  ;;  %v3057_v24 = vld [vmem:[#allocation3 + $0xc9] sm:$0xff]  ;;  %v2297_v19 = vmul.f32 %v11661_v51, %v15693_v55  ;;  %v11837_v23 = vld [vmem:[#allocation3 + $0x9a] sm:$0xff]  ;;  %v9154_v22 = vld [vmem:[%s15076_s3 + $0x2] ss:$0 sm:$0xff] }
 0x3ce   : > { %2994 = vst.msk [vmem:[#allocation3 + $0xf1] sm:$0xff] %vm2919_vm2, %v2905_v49  ;;  %v2842_v46 = vadd.f32 %v2810_v4, %v2584_v47  ;;  %v11822_v52 = vpack.i.bf16 %v3057_v24, %v3056_v34  ;;  %v1525_v61 = vmul.f32 %v9153_v17, %v15694_v39  ;;  %v1810_v35 = vadd.f32 %v1778_v37, %v15695_v44  ;;  %v15698_v37 = vld [vmem:[#allocation53_spill] sm:$0xff]  ;;  %v15699_v28 = vld [vmem:[#allocation15_spill] sm:$0xff]  ;;  %v15700_v1 = vld [vmem:[#allocation160_spill] sm:$0xff] }
 0x3cf   : > { %7959 = vmatmul.msk.f32.gmra.mxu1 %vm2919_vm2, %v11789_v30  ;;  %v2850_v60 = vadd.f32 %v2818_v18, %v2592_v42  ;;  %v2295_v20 = vmul.f32 %v11661_v51, %v15696_v57  ;;  %v2840_v0 = vadd.f32 %v2808_v29, %v2582_v63  ;;  %v2070_v25 = vadd.f32 %v2038_v36, %v1812_v31  ;;  %v15701_v49 = vld [vmem:[#allocation133_spill] sm:$0xff]  ;;  %v15702_v50 = vld [vmem:[#allocation99_spill] sm:$0xff]  ;;  %v15706_v55 = vld [vmem:[#allocation190_spill] sm:$0xff] }
 0x3d0   : > { %8132 = vrot.lane.b32.xlu1 %v11776_v9, %s9288_s12  ;;  %v2555_v7 = vmul.f32 %v11680_v40, %v15697_v16  ;;  %v2878_v14 = vadd.f32 %v11739_v2, %v2842_v46  ;;  %v1523_v3 = vmul.f32 %v9153_v17, %v15698_v37  ;;  %v2068_v26 = vadd.f32 %v2036_v11, %v1810_v35  ;;  %v15703_v59 = vld [vmem:[#allocation27_spill] sm:$0xff]  ;;  %v15704_v6 = vld [vmem:[#allocation189_spill] sm:$0xff] }
 0x3d1   : > { %v2886_v38 = vadd.f32 %v11739_v2, %v2850_v60  ;;  %v2553_v45 = vmul.f32 %v11680_v40, %v15699_v28  ;;  %v2876_v5 = vadd.f32 %v11739_v2, %v2840_v0  ;;  %v1783_v32 = vmul.f32 %v11794_v58, %v15700_v1  ;;  %v2759_v4 = vpop.permute.xlu0 %2758  ;;  %v2749_v29 = vpop.permute.xlu1 %2748  ;;  %v15705_v34 = vld [vmem:[#allocation29_spill] sm:$0xff]  ;;  %v15707_v35 = vld [vmem:[#allocation211_spill] sm:$0xff]  ;;  %4806 = vst.msk [vmem:[#allocation4 + $0x30] sm:$0xff] %vm4225_vm4, %v15443_v53 }
 0x3d2   : > { %8142 = vrot.lane.b32.xlu0 %v11817_v8, %s9288_s12  ;;  %v2329_v31 = vadd.f32 %v2297_v19, %v2070_v25  ;;  %v2910_v36 = vmax.f32 %v2878_v14, 0.0  ;;  %v1268_v56 = vmul.f32 %v9154_v22, %v15701_v49  ;;  %v1781_v47 = vmul.f32 %v11794_v58, %v15702_v50  ;;  %v15708_v25 = vld [vmem:[#allocation21_spill] sm:$0xff]  ;;  %v15710_v14 = vld [vmem:[#allocation219_spill] sm:$0xff]  ;;  %4807 = vst.msk [vmem:[#allocation4 + $0x38] sm:$0xff] %vm4225_vm4, %v15443_v53 }
 0x3d3   : > { %8137 = vrot.lane.b32.xlu2 %v11822_v52, %s9288_s12  ;;  %v2918_v15 = vmax.f32 %v2886_v38, 0.0  ;;  %v2327_v42 = vadd.f32 %v2295_v20, %v2068_v26  ;;  %v2908_v18 = vmax.f32 %v2876_v5, 0.0  ;;  %v1557_v10 = vadd.f32 %v1525_v61, %v15703_v59  ;;  %v3061_v61 = vld [vmem:[#allocation3 + $0xf9] sm:$0xff]  ;;  %v15709_v16 = vld [vmem:[#allocation45_spill] sm:$0xff]  ;;  %4809 = vst.msk [vmem:[#allocation4 + $0x48] sm:$0xff] %vm4225_vm4, %v15443_v53 }
 0x3d4   : > { %v2041_v62 = vmul.f32 %v11643_v33, %v15704_v6  ;;  %v2587_v11 = vadd.f32 %v2555_v7, %v2329_v31  ;;  %v2813_v63 = vmul.f32 %v11714_v13, %v2759_v4  ;;  %v1555_v24 = vadd.f32 %v1523_v3, %v15705_v34  ;;  %2999 = vst.msk [vmem:[#allocation3 + $0x129] sm:$0xff] %vm2919_vm2, %v2910_v36  ;;  %v15711_v26 = vld [vmem:[#allocation59_spill] sm:$0xff]  ;;  %v15712_v5 = vld [vmem:[#allocation50_spill] sm:$0xff]  ;;  %v11878_v31 = vld [vmem:[#allocation3 + $0xaa] sm:$0xff] }
 0x3d5   : > { %3007 = vst.msk [vmem:[#allocation3 + $0x189] sm:$0xff] %vm2919_vm2, %v2918_v15  ;;  %v2039_v19 = vmul.f32 %v11643_v33, %v15706_v55  ;;  %v2585_v60 = vadd.f32 %v2553_v45, %v2327_v42  ;;  %v2811_v46 = vmul.f32 %v11714_v13, %v2749_v29  ;;  %v3060_v39 = vld [vmem:[#allocation3 + $0xf1] sm:$0xff]  ;;  %v1815_v44 = vadd.f32 %v1783_v32, %v1557_v10  ;;  %v3064_v29 = vld [vmem:[#allocation3 + $0x121] sm:$0xff] }
 0x3d6   : > { %v2300_v57 = vmul.f32 %v11661_v51, %v15707_v35  ;;  %2997 = vst.msk [vmem:[#allocation3 + $0x111] sm:$0xff] %vm2919_vm2, %v2908_v18  ;;  %v2845_v20 = vadd.f32 %v2813_v63, %v2587_v11  ;;  %v11868_v0 = vpack.i.bf16 %v3061_v61, %v3060_v39  ;;  %v1042_v7 = vadd.f32 %v15709_v16, %v15708_v25  ;;  %v15713_v36 = vld [vmem:[#allocation18_spill] sm:$0xff] }
 0x3d7   : > { %7960 = vmatmul.msk.f32.gmra.mxu1 %vm2919_vm2, %v11837_v23  ;;  %v1813_v38 = vadd.f32 %v1781_v47, %v1555_v24  ;;  %v2298_v37 = vmul.f32 %v11661_v51, %v15710_v14  ;;  %v2843_v3 = vadd.f32 %v2811_v46, %v2585_v60  ;;  %v1526_v28 = vmul.f32 %v9153_v17, %v15711_v26  ;;  %v15714_v42 = vld [vmem:[#allocation150_spill] sm:$0xff]  ;;  %v15715_v24 = vld [vmem:[#allocation193_spill] sm:$0xff] }
 0x3d8   : > { %v2073_v45 = vadd.f32 %v2041_v62, %v1815_v44  ;;  %v2558_v1 = vmul.f32 %v11680_v40, %v15712_v5  ;;  %v2881_v32 = vadd.f32 %v11739_v2, %v2845_v20  ;;  %8147 = vrot.lane.b32.xlu1 %v11868_v0, %s9288_s12  ;;  %v2556_v22 = vmul.f32 %v11680_v40, %v15713_v36  ;;  %v3062_v46 = vld [vmem:[#allocation3 + $0x109] sm:$0xff]  ;;  %v11908_v16 = vld [vmem:[#allocation3 + $0xb2] sm:$0xff]  ;;  %v3067_v5 = vld [vmem:[#allocation3 + $0x141] sm:$0xff] }
 0x3d9   : > { %v2071_v15 = vadd.f32 %v2039_v19, %v1813_v38  ;;  %v2879_v49 = vadd.f32 %v11739_v2, %v2843_v3  ;;  %v1300_v17 = vadd.f32 %v1268_v56, %v1042_v7  ;;  %v1784_v18 = vmul.f32 %v11794_v58, %v15714_v42  ;;  %v2774_v10 = vpop.permute.xlu0 %2773  ;;  %v2764_v63 = vpop.permute.xlu1 %2763  ;;  %v15717_v38 = vld [vmem:[#allocation26_spill] sm:$0xff]  ;;  %v3070_v42 = vld [vmem:[#allocation3 + $0x169] sm:$0xff]  ;;  %4810 = vst.msk [vmem:[#allocation4 + $0x50] sm:$0xff] %vm4225_vm4, %v15443_v53 }
 0x3da   : > { %v2332_v50 = vadd.f32 %v2300_v57, %v2073_v45  ;;  %v2913_v47 = vmax.f32 %v2881_v32, 0.0  ;;  %v2816_v11 = vmul.f32 %v11714_v13, %v2774_v10  ;;  %v2042_v56 = vmul.f32 %v11643_v33, %v15715_v24  ;;  %v15716_v57 = vld [vmem:[#allocation222_spill] sm:$0xff]  ;;  %4812 = vst.msk [vmem:[#allocation4 + $0x60] sm:$0xff] %vm4225_vm4, %v15443_v53 }
 0x3db   : > { %v2330_v4 = vadd.f32 %v2298_v37, %v2071_v15  ;;  %v2911_v59 = vmax.f32 %v2879_v49, 0.0  ;;  %v1558_v6 = vadd.f32 %v1526_v28, %v1300_v17  ;;  %v3065_v34 = vld [vmem:[#allocation3 + $0x129] sm:$0xff]  ;;  %v2814_v58 = vmul.f32 %v11714_v13, %v2764_v63  ;;  %v3076_v63 = vld [vmem:[#allocation3 + $0x32] sm:$0xff]  ;;  %4813 = vst.msk [vmem:[#allocation4 + $0x68] sm:$0xff] %vm4225_vm4, %v15443_v53 }
 0x3dc   : > { %v2590_v62 = vadd.f32 %v2558_v1, %v2332_v50  ;;  %3002 = vst.msk [vmem:[#allocation3 + $0x151] sm:$0xff] %vm2919_vm2, %v2913_v47  ;;  %v11897_v60 = vpack.i.bf16 %v3065_v34, %v3064_v29  ;;  %v2301_v33 = vmul.f32 %v11661_v51, %v15716_v57  ;;  %v2559_v14 = vmul.f32 %v11680_v40, %v15717_v38  ;;  %v3072_v49 = vld [vmem:[#allocation3 + $0x2] sm:$0xff]  ;;  %v3073_v17 = vld [vmem:[#allocation3 + $0xa] sm:$0xff]  ;;  %v3077_v29 = vld [vmem:[#allocation3 + $0x3a] sm:$0xff] }
 0x3dd   : > { %v2588_v55 = vadd.f32 %v2556_v22, %v2330_v4  ;;  %3000 = vst.msk [vmem:[#allocation3 + $0x139] sm:$0xff] %vm2919_vm2, %v2911_v59  ;;  %v11895_v19 = vld [vmem:[#allocation3 + $0x10a] sm:$0xff]  ;;  %v1816_v35 = vadd.f32 %v1784_v18, %v1558_v6  ;;  %v11920_v15 = vld [vmem:[#allocation3 + $0x112] sm:$0xff]  ;;  %v3277_v22 = vld [vmem:[#allocation3 + $0xc2] sm:$0xff]  ;;  %v8176_v4 = vpack.i.bf16 %v3073_v17, %v3072_v49 }
 0x3de   : > { %v3063_v39 = vld [vmem:[#allocation3 + $0x111] sm:$0xff]  ;;  %v2848_v61 = vadd.f32 %v2816_v11, %v2590_v62  ;;  %7969 = vmatmul.msk.f32.vlgmr.msra.gmra.mxu2 %vm2919_vm2, %v11895_v19  ;;  %8157 = vrot.lane.b32.xlu0 %v11897_v60, %s9288_s12  ;;  %v3285_v62 = vld [vmem:[#allocation3 + $0x122] sm:$0xff]  ;;  %v3279_v57 = vld [vmem:[#allocation3 + $0xda] sm:$0xff]  ;;  %4815 = vst.msk [vmem:[#allocation4 + $0x78] sm:$0xff] %vm4225_vm4, %v15443_v53 }
 0x3df   : > { %7961 = vmatmul.msk.f32.gmra.mxu1 %vm2919_vm2, %v11878_v31  ;;  %v11901_v44 = vpack.i.bf16 %v3063_v39, %v3062_v46  ;;  %v2846_v20 = vadd.f32 %v2814_v58, %v2588_v55  ;;  %v2074_v7 = vadd.f32 %v2042_v56, %v1816_v35  ;;  %v3078_v34 = vld [vmem:[#allocation3 + $0x4a] sm:$0xff]  ;;  %v3079_v24 = vld [vmem:[#allocation3 + $0x52] sm:$0xff]  ;;  %v3074_v56 = vld [vmem:[#allocation3 + $0x1a] sm:$0xff]  ;;  %v11946_v58 = vpack.i.bf16 %v3077_v29, %v3076_v63 }
 0x3e0   : > { %v2884_v25 = vadd.f32 %v11739_v2, %v2848_v61  ;;  %v3075_v46 = vld [vmem:[#allocation3 + $0x22] sm:$0xff]  ;;  %v3286_v39 = vld [vmem:[#allocation3 + $0x12a] sm:$0xff]  ;;  %v11949_v61 = vpack.i.bf16 %v3079_v24, %v3078_v34  ;;  %v3018_v29 = vld [vmem:[#allocation3 + $0x78] sm:$0xff]  ;;  %4816 = vst.msk [vmem:[#allocation4 + $0x80] sm:$0xff] %vm4225_vm4, %v15443_v53 }
 0x3e1   : > { %8152 = vrot.lane.b32.xlu2 %v11901_v44, %s9288_s12  ;;  %v2882_v37 = vadd.f32 %v11739_v2, %v2846_v20  ;;  %v2333_v3 = vadd.f32 %v2301_v33, %v2074_v7  ;;  %v2779_v28 = vpop.permute.xlu1 %2778  ;;  %v11951_v35 = vpack.i.bf16 %v3075_v46, %v3074_v56  ;;  %v11961_v33 = vld [vmem:[#allocation3 + $0x7a] sm:$0xff]  ;;  %v3080_v20 = vld [vmem:[#allocation3 + $0x62] sm:$0xff]  ;;  %v3081_v38 = vld [vmem:[#allocation3 + $0x6a] sm:$0xff]  ;;  %4818 = vst.msk [vmem:[#allocation4 + $0x90] sm:$0xff] %vm4225_vm4, %v15443_v53 }
 0x3e2   : > { %v2916_v51 = vmax.f32 %v2884_v25, 0.0  ;;  %v2817_v32 = vmul.f32 %v11714_v13, %v2779_v28  ;;  %v3294_v25 = vld [vmem:[#allocation3 + $0x18a] sm:$0xff]  ;;  %v8201_v7 = vpack.i.bf16 %v11743_v12, %v11961_v33  ;;  %4819 = vst.msk [vmem:[#allocation4 + $0x98] sm:$0xff] %vm4225_vm4, %v15443_v53 }
 0x3e3   : > { %v2914_v26 = vmax.f32 %v2882_v37, 0.0  ;;  %v2591_v1 = vadd.f32 %v2559_v14, %v2333_v3  ;;  %v3068_v10 = vld [vmem:[#allocation3 + $0x151] sm:$0xff]  ;;  %v8206_v37 = vpack.i.bf16 %v11837_v23, %v11789_v30  ;;  %v3280_v3 = vld [vmem:[#allocation3 + $0xe2] sm:$0xff]  ;;  %v8211_v30 = vpack.i.bf16 %v11908_v16, %v11878_v31  ;;  %4821 = vst.msk [vmem:[#allocation4 + $0xa8] sm:$0xff] %vm4225_vm4, %v15443_v53 }
 0x3e4   : > { %3005 = vst.msk [vmem:[#allocation3 + $0x171] sm:$0xff] %vm2919_vm2, %v2916_v51  ;;  %v3066_v45 = vld [vmem:[#allocation3 + $0x139] sm:$0xff]  ;;  %v11968_v51 = vpack.i.bf16 %v3081_v38, %v3080_v20  ;;  %v8221_v28 = vpack.i.bf16 %v3280_v3, %v3279_v57  ;;  %v3111_v63 = vld [vmem:[#allocation3 + $0x68] sm:$0xff]  ;;  %v3114_v34 = vld [vmem:[#allocation3 + $0x90] sm:$0xff] }
 0x3e5   : > { %3003 = vst.msk [vmem:[#allocation3 + $0x159] sm:$0xff] %vm2919_vm2, %v2914_v26  ;;  %v11922_v40 = vpack.i.bf16 %v3067_v5, %v3066_v45  ;;  %v2849_v36 = vadd.f32 %v2817_v32, %v2591_v1  ;;  %v3287_v14 = vld [vmem:[#allocation3 + $0x13a] sm:$0xff]  ;;  %v3288_v26 = vld [vmem:[#allocation3 + $0x142] sm:$0xff]  ;;  %v3281_v23 = vld [vmem:[#allocation3 + $0xf2] sm:$0xff]  ;;  %v8231_v5 = vpack.i.bf16 %v11920_v15, %v11895_v19  ;;  %v8236_v32 = vpack.i.bf16 %v3286_v39, %v3285_v62 }
 0x3e6   : > { %7970 = vmatmul.msk.f32.gmra.mxu2 %vm2919_vm2, %v11920_v15  ;;  %v3282_v45 = vld [vmem:[#allocation3 + $0xfa] sm:$0xff]  ;;  %v8241_v17 = vpack.i.bf16 %v3288_v26, %v3287_v14  ;;  %v3116_v20 = vld [vmem:[#allocation3 + $0xa8] sm:$0xff]  ;;  %4822 = vst.msk [vmem:[#allocation4 + $0xb0] sm:$0xff] %vm4225_vm4, %v15443_v53 }
 0x3e7   : > { %7962 = vmatmul.msk.f32.gmra.mxu1 %vm2919_vm2, %v11908_v16  ;;  %8162 = vrot.lane.b32.xlu1 %v11922_v40, %s9288_s12  ;;  %v2885_v50 = vadd.f32 %v11739_v2, %v2849_v36  ;;  %v3278_v2 = vld [vmem:[#allocation3 + $0xca] sm:$0xff]  ;;  %v8226_v36 = vpack.i.bf16 %v3282_v45, %v3281_v23  ;;  %v11995_v19 = vld [vmem:[#allocation3 + $0x38] sm:$0xff]  ;;  %4824 = vst.msk [vmem:[#allocation4 + $0xc0] sm:$0xff] %vm4225_vm4, %v15443_v53 }
 0x3e8   : > { %v8216_v12 = vpack.i.bf16 %v3278_v2, %v3277_v22  ;;  %v11997_v15 = vld [vmem:[#allocation3 + $0x18] sm:$0xff]  ;;  %4825 = vst.msk [vmem:[#allocation4 + $0xc8] sm:$0xff] %vm4225_vm4, %v15443_v53 }
 0x3e9   : > { %v2917_v47 = vmax.f32 %v2885_v50, 0.0  ;;  %v11999_v50 = vld [vmem:[#allocation3 + $0x20] sm:$0xff]  ;;  %v3120_v38 = vld [vmem:[#allocation3 + $0xd8] sm:$0xff]  ;;  %4827 = vst.msk [vmem:[#allocation4 + $0xd8] sm:$0xff] %vm4225_vm4, %v15443_v53 }
 0x3ea   : > { %4828 = vst.msk [vmem:[#allocation4 + $0xe0] sm:$0xff] %vm4225_vm4, %v15443_v53 }
 0x3eb   : > { %v11930_v13 = vld [vmem:[#allocation3 + $0x172] sm:$0xff]  ;;  %3006 = vst.msk [vmem:[#allocation3 + $0x181] sm:$0xff] %vm2919_vm2, %v2917_v47  ;;  %v3102_v16 = vld [vmem:[#allocation3 + $0x16a] sm:$0xff] }
 0x3ec   : > { %v3071_v18 = vld [vmem:[#allocation3 + $0x171] sm:$0xff]  ;;  %7978 = vmatmul.msk.f32.vlgmr.msra.gmra.mxu3 %vm2919_vm2, %v11930_v13  ;;  %v3069_v6 = vld [vmem:[#allocation3 + $0x159] sm:$0xff]  ;;  %v8251_v49 = vpack.i.bf16 %v11930_v13, %v3102_v16  ;;  %v12005_v13 = vld [vmem:[#allocation3 + $0x48] sm:$0xff]  ;;  %4830 = vst.msk [vmem:[#allocation4 + $0xf0] sm:$0xff] %vm4225_vm4, %v15443_v53 }
 0x3ed   : > { %v11934_v59 = vpack.i.bf16 %v3071_v18, %v3070_v42  ;;  %v11937_v11 = vpack.i.bf16 %v3069_v6, %v3068_v10  ;;  %v3289_v1 = vld [vmem:[#allocation3 + $0x152] sm:$0xff]  ;;  %v3290_v31 = vld [vmem:[#allocation3 + $0x15a] sm:$0xff]  ;;  %v8256_v10 = vpack.i.bf16 %v11999_v50, %v11997_v15  ;;  %4831 = vst.msk [vmem:[#allocation4 + $0xf8] sm:$0xff] %vm4225_vm4, %v15443_v53 }
 0x3ee   : > { %7971 = vmatmul.msk.f32.gmra.mxu2 %vm2919_vm2, %v3285_v62  ;;  %v12001_v47 = vld [vmem:[#allocation3 + $0x50] sm:$0xff]  ;;  %v3019_v6 = vld [vmem:[#allocation3 + $0x80] sm:$0xff]  ;;  %v3115_v62 = vld [vmem:[#allocation3 + $0x98] sm:$0xff]  ;;  %4833 = vst.msk [vmem:[#allocation4 + $0x108] sm:$0xff] %vm4225_vm4, %v15443_v53 }
 0x3ef   : > { %7963 = vmatmul.msk.f32.gmra.mxu1 %vm2919_vm2, %v3277_v22  ;;  %8172 = vrot.lane.b32.xlu0 %v11934_v59, %s9288_s12  ;;  %v8246_v22 = vpack.i.bf16 %v3290_v31, %v3289_v1  ;;  %v12003_v42 = vld [vmem:[#allocation3 + $0x30] sm:$0xff]  ;;  %v12025_v24 = vpack.i.bf16 %v3019_v6, %v3018_v29  ;;  %v12027_v56 = vpack.i.bf16 %v3115_v62, %v3114_v34  ;;  %v3129_v6 = vld [vmem:[#allocation3 + $0x140] sm:$0xff] }
 0x3f0   : > { %8177 = vrot.lane.b32.xlu1 %v8176_v4, %s9289_s30  ;;  %8167 = vrot.lane.b32.xlu2 %v11937_v11, %s9288_s12  ;;  %v12009_v18 = vpack.i.bf16 %v11995_v19, %v12003_v42  ;;  %v12013_v4 = vpack.i.bf16 %v12001_v47, %v12005_v13  ;;  %s9290_s12 = smov 48   ;;  %v3130_v62 = vld [vmem:[#allocation3 + $0x150] sm:$0xff]  ;;  %4834 = vst.msk [vmem:[#allocation4 + $0x110] sm:$0xff] %vm4225_vm4, %v15443_v53 }
 0x3f1   : > { %4836 = vst.msk [vmem:[#allocation4 + $0x120] sm:$0xff] %vm4225_vm4, %v15443_v53 }
 0x3f2   : > { %v3293_v55 = vld [vmem:[#allocation3 + $0x182] sm:$0xff]  ;;  %4837 = vst.msk [vmem:[#allocation4 + $0x128] sm:$0xff] %vm4225_vm4, %v15443_v53 }
 0x3f3   : > { %4839 = vst.msk [vmem:[#allocation4 + $0x138] sm:$0xff] %vm4225_vm4, %v15443_v53 }
 0x3f4   : > { %7979 = vmatmul.msk.f32.gmra.mxu3 %vm2919_vm2, %v3293_v55  ;;  %4840 = vst.msk [vmem:[#allocation4 + $0x140] sm:$0xff] %vm4225_vm4, %v15443_v53 }
 0x3f5   : > { %4842 = vst.msk [vmem:[#allocation4 + $0x150] sm:$0xff] %vm4225_vm4, %v15443_v53 }
 0x3f6   : > { %7972 = vmatmul.msk.f32.gmra.mxu2 %vm2919_vm2, %v3286_v39  ;;  %v3025_v39 = vld [vmem:[#allocation3 + $0xc8] sm:$0xff]  ;;  %4843 = vst.msk [vmem:[#allocation4 + $0x158] sm:$0xff] %vm4225_vm4, %v15443_v53 }
 0x3f7   : > { %7964 = vmatmul.msk.f32.gmra.mxu1 %vm2919_vm2, %v3278_v2  ;;  %8187 = vrot.lane.b32.xlu0 %v11946_v58, %s9289_s30  ;;  %v12023_v2 = vld [vmem:[#allocation3 + $0x60] sm:$0xff]  ;;  %4845 = vst.msk [vmem:[#allocation4 + $0x168] sm:$0xff] %vm4225_vm4, %v15443_v53 }
 0x3f8   : > { %8192 = vrot.lane.b32.xlu1 %v11949_v61, %s9289_s30  ;;  %8182 = vrot.lane.b32.xlu2 %v11951_v35, %s9289_s30  ;;  %v12030_v55 = vpack.i.bf16 %v3111_v63, %v12023_v2  ;;  %v3132_v63 = vld [vmem:[#allocation3 + $0x168] sm:$0xff]  ;;  %4846 = vst.msk [vmem:[#allocation4 + $0x170] sm:$0xff] %vm4225_vm4, %v15443_v53 }
 0x3f9   : > { %4848 = vst.msk [vmem:[#allocation4 + $0x180] sm:$0xff] %vm4225_vm4, %v15443_v53 }
 0x3fa   : > { %4849 = vst.msk [vmem:[#allocation4 + $0x188] sm:$0xff] %vm4225_vm4, %v15443_v53 }
 0x3fb   : > { %4851 = vst.msk [vmem:[#allocation4 + $0x198] sm:$0xff] %vm4225_vm4, %v15443_v53 }
 0x3fc   : > { %7980 = vmatmul.msk.f32.gmra.mxu3 %vm2919_vm2, %v3294_v25  ;;  %v3117_v25 = vld [vmem:[#allocation3 + $0xb0] sm:$0xff]  ;;  %4852 = vst.msk [vmem:[#allocation4 + $0x1a0] sm:$0xff] %vm4225_vm4, %v15443_v53 }
 0x3fd   : > { %v3260_v53 = vld [vmem:[#allocation3 + $0x171] sm:$0xff] }
 0x3fe   : > { %7973 = vmatmul.msk.f32.gmra.mxu2 %vm2919_vm2, %v3287_v14 }
 0x3ff   : > { %7965 = vmatmul.msk.f32.gmra.mxu1 %vm2919_vm2, %v3279_v57  ;;  %8202 = vrot.lane.b32.xlu0 %v8201_v7, %s9289_s30  ;;  %v3121_v57 = vld [vmem:[#allocation3 + $0xe0] sm:$0xff] }
 0x400   : > { %8207 = vrot.lane.b32.xlu1 %v8206_v37, %s9289_s30  ;;  %8197 = vrot.lane.b32.xlu2 %v11968_v51, %s9289_s30  ;;  %v3024_v7 = vld [vmem:[#allocation3 + $0xc0] sm:$0xff]  ;;  %v12042_v37 = vpack.i.bf16 %v3121_v57, %v3120_v38  ;;  %v3135_v38 = vld [vmem:[#allocation3 + $0x188] sm:$0xff] }
 0x401   : > { %v12040_v14 = vpack.i.bf16 %v3025_v39, %v3024_v7  ;;  %v3134_v7 = vld [vmem:[#allocation3 + $0x180] sm:$0xff] }
 0x406   : > { %7974 = vmatmul.msk.f32.gmra.mxu2 %vm2919_vm2, %v3288_v26  ;;  %v3125_v26 = vld [vmem:[#allocation3 + $0x110] sm:$0xff] }
 0x407   : > { %7966 = vmatmul.msk.f32.gmra.mxu1 %vm2919_vm2, %v3280_v3  ;;  %8217 = vrot.lane.b32.xlu0 %v8216_v12, %s9289_s30  ;;  %v12044_v3 = vpack.i.bf16 %v3117_v25, %v3116_v20 }
 0x408   : > { %8222 = vrot.lane.b32.xlu1 %v8221_v28, %s9289_s30  ;;  %8212 = vrot.lane.b32.xlu2 %v8211_v30, %s9289_s30  ;;  %v3127_v28 = vld [vmem:[#allocation3 + $0x128] sm:$0xff]  ;;  %v3122_v30 = vld [vmem:[#allocation3 + $0xf0] sm:$0xff] }
 0x40e   : > { %7975 = vmatmul.msk.f32.gmra.mxu2 %vm2919_vm2, %v3289_v1 }
 0x40f   : > { %7967 = vmatmul.msk.f32.gmra.mxu1 %vm2919_vm2, %v3281_v23  ;;  %8232 = vrot.lane.b32.xlu0 %v8231_v5, %s9289_s30  ;;  %v3123_v23 = vld [vmem:[#allocation3 + $0xf8] sm:$0xff]  ;;  %v3126_v5 = vld [vmem:[#allocation3 + $0x120] sm:$0xff] }
 0x410   : > { %8237 = vrot.lane.b32.xlu1 %v8236_v32, %s9289_s30  ;;  %8227 = vrot.lane.b32.xlu2 %v8226_v36, %s9289_s30  ;;  %v8311_v32 = vpack.i.bf16 %v3127_v28, %v3126_v5  ;;  %v12056_v36 = vpack.i.bf16 %v3123_v23, %v3122_v30 }
 0x416   : > { %7976 = vmatmul.msk.f32.gmra.mxu2 %vm2919_vm2, %v3290_v31  ;;  %v12060_v31 = vpop.permute.xlu0 %8097 }
 0x417   : > { %7968 = vmatmul.msk.f32.gmra.mxu1 %vm2919_vm2, %v3282_v45  ;;  %8247 = vrot.lane.b32.xlu0 %v8246_v22, %s9289_s30  ;;  %v3124_v45 = vld [vmem:[#allocation3 + $0x108] sm:$0xff] }
 0x418   : > { %8252 = vrot.lane.b32.xlu1 %v8251_v49, %s9289_s30  ;;  %8242 = vrot.lane.b32.xlu2 %v8241_v17, %s9289_s30  ;;  %v12054_v1 = vpack.i.bf16 %v3125_v26, %v3124_v45  ;;  %v3131_v49 = vld [vmem:[#allocation3 + $0x158] sm:$0xff]  ;;  %v3133_v17 = vld [vmem:[#allocation3 + $0x170] sm:$0xff]  ;;  %v8331_v26 = vpack.i.bf16 %v3135_v38, %v3134_v7 }
 0x419   : > { %v8321_v29 = vpack.i.bf16 %v3131_v49, %v3130_v62  ;;  %v8326_v34 = vpack.i.bf16 %v3133_v17, %v3132_v63  ;;  %v3233_v17 = vld [vmem:[#allocation3 + $0x31] sm:$0xff]  ;;  %v3235_v63 = vld [vmem:[#allocation3 + $0x49] sm:$0xff] }
 0x41a   : > { %v3236_v62 = vld [vmem:[#allocation3 + $0x51] sm:$0xff]  ;;  %v3238_v7 = vld [vmem:[#allocation3 + $0x69] sm:$0xff] }
 0x41d   : > { %v12038_v46 = vpop.permute.xlu2 %8107 }
 0x41e   : > { %7977 = vmatmul.msk.f32.gmra.mxu2 %vm2919_vm2, %v3102_v16 }
 0x41f   : > { %8262 = vrot.lane.b32.xlu0 %v12009_v18, %s9290_s12 }
 0x420   : > { %8267 = vrot.lane.b32.xlu1 %v12013_v4, %s9290_s12  ;;  %8257 = vrot.lane.b32.xlu2 %v8256_v10, %s9290_s12  ;;  %v3128_v10 = vld [vmem:[#allocation3 + $0x138] sm:$0xff] }
 0x421   : > { %v8316_v39 = vpack.i.bf16 %v3129_v6, %v3128_v10 }
 0x425   : > { %v12052_v12 = vpop.permute.xlu2 %8122 }
 0x427   : > { %8277 = vrot.lane.b32.xlu0 %v12025_v24, %s9290_s12 }
 0x428   : > { %8282 = vrot.lane.b32.xlu1 %v12027_v56, %s9290_s12  ;;  %8272 = vrot.lane.b32.xlu2 %v12030_v55, %s9290_s12 }
 0x42d   : > { %v12075_v22 = vpop.permute.xlu2 %8137 }
 0x42f   : > { %8292 = vrot.lane.b32.xlu0 %v12040_v14, %s9290_s12 }
 0x430   : > { %8297 = vrot.lane.b32.xlu1 %v12042_v37, %s9290_s12  ;;  %8287 = vrot.lane.b32.xlu2 %v12044_v3, %s9290_s12 }
 0x432   : > { %v12073_v16 = vpop.permute.xlu1 %8102 }
 0x434   : > { %v12094_v57 = vpop.permute.xlu0 %8112 }
 0x437   : > { %8307 = vrot.lane.b32.xlu0 %v12054_v1, %s9290_s12 }
 0x438   : > { %8312 = vrot.lane.b32.xlu1 %v8311_v32, %s9290_s12  ;;  %8302 = vrot.lane.b32.xlu2 %v12056_v36, %s9290_s12 }
 0x43a   : > { %v12098_v20 = vpop.permute.xlu1 %8117 }
 0x43b   : > { %v12100_v25 = vpop.permute.xlu2 %8152 }
 0x43c   : > { %15718 = vst [vmem:[#allocation46_spill] sm:$0xff] %v12100_v25  ;;  %v12121_v28 = vpop.permute.xlu0 %8127  ;;  %v3258_v25 = vld [vmem:[#allocation3 + $0x159] sm:$0xff] }
 0x43f   : > { %8322 = vrot.lane.b32.xlu0 %v8321_v29, %s9290_s12  ;;  %v8446_v29 = vpack.i.bf16 %v3236_v62, %v3235_v63  ;;  %v3178_v63 = vld [vmem:[#allocation3 + $0x92] sm:$0xff] }
 0x440   : > { %8327 = vrot.lane.b32.xlu1 %v8326_v34, %s9290_s12  ;;  %8317 = vrot.lane.b32.xlu2 %v8316_v39, %s9290_s12 }
 0x442   : > { %v12125_v30 = vpop.permute.xlu1 %8132 }
 0x447   : > { %8337 = vrot.lane.b32.xlu0 %v11687_v21, %s9291_s11  ;;  %v12149_v21 = vpop.permute.xlu0 %8142 }
 0x448   : > { %8342 = vrot.lane.b32.xlu1 %v11706_v48, %s9291_s11  ;;  %8332 = vrot.lane.b32.xlu2 %v8331_v26, %s9290_s12  ;;  %15720 = vst [vmem:[#allocation49_spill] sm:$0xff] %v12149_v21  ;;  %s7867_s12 = sshll.u32 %s7864_s28, 4  ;;  %s7868_s12 = int_to_ptr.hbm [resolvable:$true] %s7867_s12 }
 0x44a   : > { %v12127_v23 = vpop.permute.xlu2 %8167  ;;  %v12153_v48 = vpop.permute.xlu1 %8147 }
 0x44b   : > { %15719 = vst [vmem:[#allocation56_spill] sm:$0xff] %v12127_v23  ;;  %v3247_v23 = vld [vmem:[#allocation3 + $0xd9] sm:$0xff] }
 0x44c   : > { %15721 = vst [vmem:[#allocation63_spill] sm:$0xff] %v12153_v48  ;;  %v3228_v48 = vld [vmem:[#allocation3 + $0x170] sm:$0xff] }
 0x44f   : > { %8352 = vrot.lane.b32.xlu0 %v11727_v27, %s9291_s11 }
 0x450   : > { %8357 = vrot.lane.b32.xlu1 %v11753_v54, %s9291_s11  ;;  %8347 = vrot.lane.b32.xlu2 %v11704_v43, %s9291_s11  ;;  %v12177_v43 = vpop.permute.xlu0 %8157 }
 0x451   : > { %15722 = vst [vmem:[#allocation62_spill] sm:$0xff] %v12177_v43 }
 0x452   : > { %v12155_v27 = vpop.permute.xlu2 %8182 }
 0x457   : > { %8367 = vrot.lane.b32.xlu0 %v11776_v9, %s9291_s11 }
 0x458   : > { %8372 = vrot.lane.b32.xlu1 %v11822_v52, %s9291_s11  ;;  %8362 = vrot.lane.b32.xlu2 %v11745_v41, %s9291_s11 }
 0x459   : > { %v12181_v54 = vpop.permute.xlu1 %8162 }
 0x45a   : > { %15723 = vst [vmem:[#allocation51_spill] sm:$0xff] %v12181_v54  ;;  %v12183_v45 = vpop.permute.xlu2 %8197  ;;  %v3221_v54 = vld [vmem:[#allocation3 + $0x120] sm:$0xff] }
 0x45f   : > { %8382 = vrot.lane.b32.xlu0 %v11868_v0, %s9291_s11 }
 0x460   : > { %8387 = vrot.lane.b32.xlu1 %v11901_v44, %s9291_s11  ;;  %8377 = vrot.lane.b32.xlu2 %v11817_v8, %s9291_s11  ;;  %v3166_v44 = vld [vmem:[#allocation3 + $0x181] sm:$0xff]  ;;  %v3167_v8 = vld [vmem:[#allocation3 + $0x189] sm:$0xff] }
 0x461   : > { %v12191_v9 = vpop.permute.xlu0 %8172  ;;  %v12207_v32 = vpack.i.bf16 %v3167_v8, %v3166_v44  ;;  %v3177_v44 = vld [vmem:[#allocation3 + $0x82] sm:$0xff]  ;;  %v3239_v8 = vld [vmem:[#allocation3 + $0x79] sm:$0xff] }
 0x462   : > { %15724 = vst [vmem:[#allocation69_spill] sm:$0xff] %v12191_v9  ;;  %v12193_v41 = vpop.permute.xlu1 %8177  ;;  %v12195_v52 = vpop.permute.xlu2 %8212  ;;  %v3245_v9 = vld [vmem:[#allocation3 + $0xc1] sm:$0xff] }
 0x467   : > { %8397 = vrot.lane.b32.xlu0 %v11922_v40, %s9291_s11 }
 0x468   : > { %8402 = vrot.lane.b32.xlu1 %v11937_v11, %s9291_s11  ;;  %8392 = vrot.lane.b32.xlu2 %v11897_v60, %s9291_s11  ;;  %v3234_v11 = vld [vmem:[#allocation3 + $0x39] sm:$0xff] }
 0x469   : > { %v12203_v0 = vpop.permute.xlu0 %8187  ;;  %v8431_v10 = vpack.i.bf16 %v3234_v11, %v3233_v17 }
 0x46a   : > { %v12205_v5 = vpop.permute.xlu1 %8192  ;;  %v12211_v49 = vpop.permute.xlu2 %8227 }
 0x46b   : > { %15725 = vst [vmem:[#allocation68_spill] sm:$0xff] %v12211_v49  ;;  %v3197_v49 = vld [vmem:[#allocation3 + $0x172] sm:$0xff] }
 0x46f   : > { %8412 = vrot.lane.b32.xlu0 %v12207_v32, %s9291_s11 }
 0x470   : > { %8417 = vrot.lane.b32.xlu1 %v11951_v35, %s9292_s13  ;;  %8407 = vrot.lane.b32.xlu2 %v11934_v59, %s9291_s11 }
 0x471   : > { %v12217_v60 = vpop.permute.xlu0 %8202 }
 0x472   : > { %v12219_v40 = vpop.permute.xlu1 %8207  ;;  %v12228_v59 = vpop.permute.xlu2 %8242 }
 0x473   : > { %15726 = vst [vmem:[#allocation73_spill] sm:$0xff] %v12228_v59 }
 0x477   : > { %8427 = vrot.lane.b32.xlu0 %v12009_v18, %s9293_s14 }
 0x478   : > { %8432 = vrot.lane.b32.xlu1 %v8431_v10, %s9294_s19  ;;  %8422 = vrot.lane.b32.xlu2 %v11946_v58, %s9292_s13  ;;  %v3237_v58 = vld [vmem:[#allocation3 + $0x61] sm:$0xff]  ;;  %v8476_v10 = vpack.i.bf16 %v3177_v44, %v11961_v33 }
 0x479   : > { %v12226_v35 = vpop.permute.xlu0 %8217  ;;  %v8456_v38 = vpack.i.bf16 %v3238_v7, %v3237_v58  ;;  %v3241_v58 = vld [vmem:[#allocation3 + $0x91] sm:$0xff] }
 0x47a   : > { %v12230_v6 = vpop.permute.xlu1 %8222  ;;  %v12241_v39 = vpop.permute.xlu2 %8257 }
 0x47b   : > { %15727 = vst [vmem:[#allocation75_spill] sm:$0xff] %v12230_v6  ;;  %v8100_v6 = vunpack.i.h.bf16 %v12060_v31 }
 0x47f   : > { %8442 = vrot.lane.b32.xlu0 %v12013_v4, %s9293_s14 }
 0x480   : > { %8447 = vrot.lane.b32.xlu1 %v8446_v29, %s9294_s19  ;;  %8437 = vrot.lane.b32.xlu2 %v11949_v61, %s9292_s13  ;;  %v3240_v61 = vld [vmem:[#allocation3 + $0x81] sm:$0xff] }
 0x481   : > { %v12237_v18 = vpop.permute.xlu0 %8232  ;;  %v8471_v11 = vpack.i.bf16 %v3240_v61, %v3239_v8  ;;  %v3179_v29 = vld [vmem:[#allocation3 + $0x9a] sm:$0xff]  ;;  %v3243_v61 = vld [vmem:[#allocation3 + $0xa9] sm:$0xff] }
 0x482   : > { %15728 = vst [vmem:[#allocation74_spill] sm:$0xff] %v12237_v18  ;;  %v12239_v34 = vpop.permute.xlu1 %8237  ;;  %v12252_v17 = vpop.permute.xlu2 %8272  ;;  %v3180_v8 = vld [vmem:[#allocation3 + $0xaa] sm:$0xff] }
 0x483   : > { %15729 = vst [vmem:[#allocation55_spill] sm:$0xff] %v12239_v34  ;;  %v4427_v34 = vld [vmem:[%s15078_s5 + $0x20] sm:$0xff] }
 0x484   : > { %v4423_v18 = vld [vmem:[%s15078_s5] sm:$0xff] }
 0x487   : > { %8457 = vrot.lane.b32.xlu0 %v8456_v38, %s9294_s19  ;;  %v8491_v38 = vpack.i.bf16 %v3179_v29, %v3178_v63  ;;  %v3246_v29 = vld [vmem:[#allocation3 + $0xc9] sm:$0xff] }
 0x488   : > { %8462 = vrot.lane.b32.xlu1 %v11968_v51, %s9292_s13  ;;  %8452 = vrot.lane.b32.xlu2 %v12030_v55, %s9293_s14  ;;  %v3242_v55 = vld [vmem:[#allocation3 + $0x99] sm:$0xff] }
 0x489   : > { %v12248_v4 = vpop.permute.xlu0 %8247  ;;  %v8486_v7 = vpack.i.bf16 %v3242_v55, %v3241_v58 }
 0x48a   : > { %15730 = vst [vmem:[#allocation57_spill] sm:$0xff] %v12248_v4  ;;  %v12250_v26 = vpop.permute.xlu1 %8252  ;;  %v12264_v33 = vpop.permute.xlu2 %8287  ;;  %v8516_v4 = vpack.i.bf16 %v3246_v29, %v3245_v9  ;;  %v4438_v9 = vld [vmem:[%s15078_s5 + $0x78] sm:$0xff] }
 0x48b   : > { %15731 = vst [vmem:[#allocation61_spill] sm:$0xff] %v12250_v26  ;;  %4541 = vmatpush.msra.mxu0 %v4438_v9 }
 0x48f   : > { %8472 = vrot.lane.b32.xlu0 %v8471_v11, %s9294_s19  ;;  %v3244_v11 = vld [vmem:[#allocation3 + $0xb1] sm:$0xff] }
 0x490   : > { %8477 = vrot.lane.b32.xlu1 %v8476_v10, %s9292_s13  ;;  %8467 = vrot.lane.b32.xlu2 %v12025_v24, %s9293_s14  ;;  %v3181_v10 = vld [vmem:[#allocation3 + $0xb2] sm:$0xff]  ;;  %v8501_v26 = vpack.i.bf16 %v3244_v11, %v3243_v61  ;;  %v3184_v11 = vld [vmem:[#allocation3 + $0xda] sm:$0xff] }
 0x491   : > { %v12259_v51 = vpop.permute.xlu0 %8262  ;;  %v8506_v55 = vpack.i.bf16 %v3181_v10, %v3180_v8  ;;  %v3185_v10 = vld [vmem:[#allocation3 + $0xe2] sm:$0xff] }
 0x492   : > { %v12261_v62 = vpop.permute.xlu1 %8267 }
 0x497   : > { %8487 = vrot.lane.b32.xlu0 %v8486_v7, %s9294_s19  ;;  %v3182_v7 = vld [vmem:[#allocation3 + $0xc2] sm:$0xff] }
 0x498   : > { %8492 = vrot.lane.b32.xlu1 %v8491_v38, %s9292_s13  ;;  %8482 = vrot.lane.b32.xlu2 %v12027_v56, %s9293_s14  ;;  %v12279_v56 = vpop.permute.xlu2 %8302  ;;  %v3183_v38 = vld [vmem:[#allocation3 + $0xca] sm:$0xff] }
 0x499   : > { %v12269_v24 = vpop.permute.xlu0 %8277  ;;  %15732 = vst [vmem:[#allocation67_spill] sm:$0xff] %v12279_v56  ;;  %v8521_v61 = vpack.i.bf16 %v3183_v38, %v3182_v7  ;;  %v3186_v38 = vld [vmem:[#allocation3 + $0xf2] sm:$0xff]  ;;  %v3264_v56 = vld [vmem:[#allocation3 + $0x1a1] sm:$0xff] }
 0x49a   : > { %v12271_v44 = vpop.permute.xlu1 %8282 }
 0x49f   : > { %8502 = vrot.lane.b32.xlu0 %v8501_v26, %s9294_s19  ;;  %v3248_v26 = vld [vmem:[#allocation3 + $0xe1] sm:$0xff] }
 0x4a0   : > { %8507 = vrot.lane.b32.xlu1 %v8506_v55, %s9292_s13  ;;  %8497 = vrot.lane.b32.xlu2 %v12044_v3, %s9293_s14  ;;  %v12291_v55 = vpop.permute.xlu2 %8317  ;;  %v8531_v59 = vpack.i.bf16 %v3248_v26, %v3247_v23  ;;  %v3249_v23 = vld [vmem:[#allocation3 + $0xf1] sm:$0xff]  ;;  %v3187_v26 = vld [vmem:[#allocation3 + $0xfa] sm:$0xff] }
 0x4a1   : > { %v12277_v63 = vpop.permute.xlu0 %8292  ;;  %15736 = vst [vmem:[#allocation85_spill] sm:$0xff] %v12291_v55  ;;  %v8551_v9 = vpack.i.bf16 %v3187_v26, %v3186_v38  ;;  %v3252_v38 = vld [vmem:[#allocation3 + $0x111] sm:$0xff] }
 0x4a2   : > { %v12281_v58 = vpop.permute.xlu1 %8297  ;;  %v3189_v26 = vld [vmem:[#allocation3 + $0x112] sm:$0xff] }
 0x4a3   : > { %15733 = vst [vmem:[#allocation79_spill] sm:$0xff] %v12281_v58 }
 0x4a7   : > { %8517 = vrot.lane.b32.xlu0 %v8516_v4, %s9294_s19  ;;  %v8536_v4 = vpack.i.bf16 %v3185_v10, %v3184_v11 }
 0x4a8   : > { %8522 = vrot.lane.b32.xlu1 %v8521_v61, %s9292_s13  ;;  %8512 = vrot.lane.b32.xlu2 %v12040_v14, %s9293_s14  ;;  %v4437_v14 = vld [vmem:[%s15078_s5 + $0x70] sm:$0xff]  ;;  %v12313_v10 = vpop.permute.xlu2 %8332 }
 0x4a9   : > { %v12287_v3 = vpop.permute.xlu0 %8307  ;;  %4542 = vmatpush.msra.mxu0 %v4437_v14  ;;  %v3250_v61 = vld [vmem:[#allocation3 + $0xf9] sm:$0xff]  ;;  %15739 = vst [vmem:[#allocation91_spill] sm:$0xff] %v12313_v10 }
 0x4aa   : > { %15734 = vst [vmem:[#allocation80_spill] sm:$0xff] %v12287_v3  ;;  %v12289_v8 = vpop.permute.xlu1 %8312  ;;  %v8546_v11 = vpack.i.bf16 %v3250_v61, %v3249_v23  ;;  %v4433_v14 = vld [vmem:[%s15078_s5 + $0x50] sm:$0xff]  ;;  %v3196_v3 = vld [vmem:[#allocation3 + $0x16a] sm:$0xff] }
 0x4ab   : > { %15735 = vst [vmem:[#allocation81_spill] sm:$0xff] %v12289_v8 }
 0x4af   : > { %8532 = vrot.lane.b32.xlu0 %v8531_v59, %s9294_s19  ;;  %v4436_v59 = vld [vmem:[%s15078_s5 + $0x68] sm:$0xff] }
 0x4b0   : > { %8537 = vrot.lane.b32.xlu1 %v8536_v4, %s9292_s13  ;;  %8527 = vrot.lane.b32.xlu2 %v12042_v37, %s9293_s14  ;;  %v4435_v37 = vld [vmem:[%s15078_s5 + $0x60] sm:$0xff]  ;;  %v4434_v4 = vld [vmem:[%s15078_s5 + $0x58] sm:$0xff] }
 0x4b1   : > { %v12303_v29 = vpop.permute.xlu0 %8322  ;;  %4543 = vmatpush.msra.mxu0 %v4436_v59  ;;  %v3188_v59 = vld [vmem:[#allocation3 + $0x10a] sm:$0xff] }
 0x4b2   : > { %15737 = vst [vmem:[#allocation86_spill] sm:$0xff] %v12303_v29  ;;  %v12305_v7 = vpop.permute.xlu1 %8327  ;;  %v8566_v10 = vpack.i.bf16 %v3189_v26, %v3188_v59  ;;  %v3254_v59 = vld [vmem:[#allocation3 + $0x129] sm:$0xff]  ;;  %v4429_v26 = vld [vmem:[%s15078_s5 + $0x30] sm:$0xff] }
 0x4b3   : > { %15738 = vst [vmem:[#allocation87_spill] sm:$0xff] %v12305_v7  ;;  %4544 = vmatpush.msra.mxu0 %v4435_v37  ;;  %v3253_v7 = vld [vmem:[#allocation3 + $0x121] sm:$0xff] }
 0x4b4   : > { %v8576_v29 = vpack.i.bf16 %v3254_v59, %v3253_v7 }
 0x4b5   : > { %4545 = vmatpush.msra.mxu0 %v4434_v4  ;;  %v12336_v4 = vpop.permute.xlu2 %8347 }
 0x4b7   : > { %8547 = vrot.lane.b32.xlu0 %v8546_v11, %s9294_s19  ;;  %4546 = vmatpush.msra.mxu0 %v4433_v14  ;;  %v3251_v11 = vld [vmem:[#allocation3 + $0x109] sm:$0xff] }
 0x4b8   : > { %8552 = vrot.lane.b32.xlu1 %v8551_v9, %s9292_s13  ;;  %8542 = vrot.lane.b32.xlu2 %v12056_v36, %s9293_s14  ;;  %v8561_v37 = vpack.i.bf16 %v3252_v38, %v3251_v11  ;;  %v4432_v36 = vld [vmem:[%s15078_s5 + $0x48] sm:$0xff]  ;;  %v4431_v9 = vld [vmem:[%s15078_s5 + $0x40] sm:$0xff] }
 0x4b9   : > { %v12325_v23 = vpop.permute.xlu0 %8337  ;;  %4547 = vmatpush.msra.mxu0 %v4432_v36  ;;  %v4430_v14 = vld [vmem:[%s15078_s5 + $0x38] sm:$0xff] }
 0x4ba   : > { %v12327_v61 = vpop.permute.xlu1 %8342  ;;  %v3191_v36 = vld [vmem:[#allocation3 + $0x12a] sm:$0xff]  ;;  %v8340_v21 = vunpack.i.h.bf16 %v12325_v23 }
 0x4bb   : > { %4548 = vmatpush.msra.mxu0 %v4431_v9 }
 0x4bd   : > { %4549 = vmatpush.msra.mxu0 %v4430_v14  ;;  %v4426_v14 = vld [vmem:[%s15078_s5 + $0x18] sm:$0xff]  ;;  %v12365_v59 = vpop.permute.xlu2 %8362 }
 0x4bf   : > { %8562 = vrot.lane.b32.xlu0 %v8561_v37, %s9294_s19  ;;  %v3190_v37 = vld [vmem:[#allocation3 + $0x122] sm:$0xff]  ;;  %4550 = vmatpush.msra.mxu0 %v4429_v26 }
 0x4c0   : > { %8567 = vrot.lane.b32.xlu1 %v8566_v10, %s9292_s13  ;;  %8557 = vrot.lane.b32.xlu2 %v12054_v1, %s9293_s14  ;;  %v3222_v10 = vld [vmem:[#allocation3 + $0x128] sm:$0xff]  ;;  %v4428_v1 = vld [vmem:[%s15078_s5 + $0x28] sm:$0xff]  ;;  %v8581_v9 = vpack.i.bf16 %v3191_v36, %v3190_v37  ;;  %v4425_v26 = vld [vmem:[%s15078_s5 + $0x10] sm:$0xff] }
 0x4c1   : > { %v12344_v38 = vpop.permute.xlu0 %8352  ;;  %v8571_v55 = vpack.i.bf16 %v3222_v10, %v3221_v54  ;;  %4551 = vmatpush.msra.mxu0 %v4428_v1  ;;  %v3255_v54 = vld [vmem:[#allocation3 + $0x139] sm:$0xff] }
 0x4c2   : > { %v12349_v11 = vpop.permute.xlu1 %8357  ;;  %v3192_v37 = vld [vmem:[#allocation3 + $0x13a] sm:$0xff] }
 0x4c3   : > { %4552 = vmatpush.msra.mxu0 %v4427_v34  ;;  %v3223_v36 = vld [vmem:[#allocation3 + $0x138] sm:$0xff]  ;;  %v3224_v10 = vld [vmem:[#allocation3 + $0x140] sm:$0xff] }
 0x4c4   : > { %v4424_v1 = vld [vmem:[%s15078_s5 + $0x8] sm:$0xff]  ;;  %v8586_v8 = vpack.i.bf16 %v3224_v10, %v3223_v36 }
 0x4c5   : > { %4553 = vmatpush.msra.mxu0 %v4426_v14  ;;  %v3195_v36 = vld [vmem:[#allocation3 + $0x15a] sm:$0xff] }
 0x4c6   : > { %v3226_v10 = vld [vmem:[#allocation3 + $0x158] sm:$0xff] }
 0x4c7   : > { %8577 = vrot.lane.b32.xlu0 %v8576_v29, %s9294_s19  ;;  %4554 = vmatpush.msra.mxu0 %v4425_v26 }
 0x4c8   : > { %8582 = vrot.lane.b32.xlu1 %v8581_v9, %s9292_s13  ;;  %8572 = vrot.lane.b32.xlu2 %v8571_v55, %s9293_s14  ;;  %v3256_v55 = vld [vmem:[#allocation3 + $0x141] sm:$0xff] }
 0x4c9   : > { %v12363_v7 = vpop.permute.xlu0 %8367  ;;  %v3193_v9 = vld [vmem:[#allocation3 + $0x142] sm:$0xff]  ;;  %v8591_v34 = vpack.i.bf16 %v3256_v55, %v3255_v54  ;;  %4555 = vmatpush.msra.mxu0 %v4424_v1  ;;  %v9155_v54 = vld [vmem:[%s15078_s5 + $0x88] sm:$0xff]  ;;  %v12388_v55 = vpop.permute.xlu2 %8377 }
 0x4ca   : > { %v12370_v29 = vpop.permute.xlu1 %8372  ;;  %v8596_v43 = vpack.i.bf16 %v3193_v9, %v3192_v37  ;;  %v3194_v37 = vld [vmem:[#allocation3 + $0x152] sm:$0xff]  ;;  %15742 = vst [vmem:[#allocation96_spill] sm:$0xff] %v12388_v55 }
 0x4cb   : > { %4556 = vmatpush.msra.mxu0 %v4423_v18  ;;  %v3257_v1 = vld [vmem:[#allocation3 + $0x151] sm:$0xff]  ;;  %v8611_v9 = vpack.i.bf16 %v3195_v36, %v3194_v37  ;;  %v8626_v37 = vpack.i.bf16 %v3197_v49, %v3196_v3  ;;  %v8259_v49 = vunpack.i.l.bf16 %v12241_v39  ;;  %v8339_v3 = vunpack.i.l.bf16 %v12325_v23 }
 0x4cc   : > { %v8606_v18 = vpack.i.bf16 %v3258_v25, %v3257_v1  ;;  %v3227_v25 = vld [vmem:[#allocation3 + $0x168] sm:$0xff] }
 0x4cd   : > { %4668 = vmatpush.msrb.mxu0 %v9155_v54  ;;  %v8616_v36 = vpack.i.bf16 %v3228_v48, %v3227_v25  ;;  %v3199_v48 = vld [vmem:[#allocation3 + $0x18a] sm:$0xff] }
 0x4cf   : > { %8592 = vrot.lane.b32.xlu0 %v8591_v34, %s9294_s19 }
 0x4d0   : > { %8597 = vrot.lane.b32.xlu1 %v8596_v43, %s9292_s13  ;;  %8587 = vrot.lane.b32.xlu2 %v8586_v8, %s9293_s14  ;;  %v9156_v43 = vld [vmem:[%s15078_s5 + $0x80] sm:$0xff] }
 0x4d1   : > { %v12381_v14 = vpop.permute.xlu0 %8382  ;;  %4669 = vmatpush.msrb.mxu0 %v9156_v43  ;;  %v3225_v8 = vld [vmem:[#allocation3 + $0x150] sm:$0xff]  ;;  %v12400_v1 = vpop.permute.xlu2 %8392 }
 0x4d2   : > { %15740 = vst [vmem:[#allocation92_spill] sm:$0xff] %v12381_v14  ;;  %v12386_v26 = vpop.permute.xlu1 %8387  ;;  %v8601_v34 = vpack.i.bf16 %v3226_v10, %v3225_v8  ;;  %v3259_v14 = vld [vmem:[#allocation3 + $0x169] sm:$0xff] }
 0x4d3   : > { %15741 = vst [vmem:[#allocation93_spill] sm:$0xff] %v12386_v26  ;;  %v8621_v43 = vpack.i.bf16 %v3260_v53, %v3259_v14  ;;  %v3008_v53 = vld [vmem:[#allocation3] sm:$0xff]  ;;  %v8179_v14 = vunpack.i.l.bf16 %v12193_v41 }
 0x4d4   : > { %15745 = vst [vmem:[#allocation101_spill] sm:$0xff] %v12400_v1  ;;  %v3263_v1 = vld [vmem:[#allocation3 + $0x199] sm:$0xff] }
 0x4d7   : > { %8607 = vrot.lane.b32.xlu0 %v8606_v18, %s9294_s19  ;;  %v8099_v18 = vunpack.i.l.bf16 %v12060_v31  ;;  %v8260_v31 = vunpack.i.h.bf16 %v12241_v39 }
 0x4d8   : > { %8612 = vrot.lane.b32.xlu1 %v8611_v9, %s9292_s13  ;;  %8602 = vrot.lane.b32.xlu2 %v8601_v34, %s9293_s14  ;;  %v3198_v9 = vld [vmem:[#allocation3 + $0x182] sm:$0xff] }
 0x4d9   : > { %v12396_v54 = vpop.permute.xlu0 %8397  ;;  %v3229_v34 = vld [vmem:[#allocation3 + $0x180] sm:$0xff] }
 0x4da   : > { %15743 = vst [vmem:[#allocation97_spill] sm:$0xff] %v12396_v54  ;;  %v12398_v26 = vpop.permute.xlu1 %8402  ;;  %v12415_v54 = vpop.permute.xlu2 %8407 }
 0x4db   : > { %15744 = vst [vmem:[#allocation98_spill] sm:$0xff] %v12398_v26  ;;  %v3230_v26 = vld [vmem:[#allocation3 + $0x188] sm:$0xff] }
 0x4dc   : > { %v8631_v25 = vpack.i.bf16 %v3230_v26, %v3229_v34  ;;  %15747 = vst [vmem:[#allocation102_spill] sm:$0xff] %v12415_v54  ;;  %v3232_v34 = vld [vmem:[#allocation3 + $0x1a0] sm:$0xff] }
 0x4df   : > { %8622 = vrot.lane.b32.xlu0 %v8621_v43, %s9294_s19  ;;  %v8641_v43 = vpack.i.bf16 %v3199_v48, %v3198_v9  ;;  %v3231_v9 = vld [vmem:[#allocation3 + $0x198] sm:$0xff]  ;;  %v3009_v48 = vld [vmem:[#allocation3 + $0x8] sm:$0xff] }
 0x4e0   : > { %8627 = vrot.lane.b32.xlu1 %v8626_v37, %s9292_s13  ;;  %8617 = vrot.lane.b32.xlu2 %v8616_v36, %s9293_s14  ;;  %v4193_v37 = vsel %vm2919_vm2, %v3008_v53, %v8099_v18  ;;  %v8646_v54 = vpack.i.bf16 %v3232_v34, %v3231_v9 }
 0x4e1   : > { %v12405_v10 = vpop.permute.xlu0 %8412 }
 0x4e2   : > { %15746 = vst [vmem:[#allocation100_spill] sm:$0xff] %v12405_v10  ;;  %v8418_v8 = vpop.permute.xlu1 %8417  ;;  %v4226_v10 = vsel %vm4225_vm4, %v4193_v37, %v8179_v14  ;;  %v8651_v37 = vpack.i.bf16 %v3264_v56, %v3263_v1  ;;  %v8104_v1 = vunpack.i.l.bf16 %v12073_v16  ;;  %v8423_v23 = vpop.permute.xlu2 %8422 }
 0x4e3   : > { %v8419_v36 = vunpack.i.l.bf16 %v8418_v8  ;;  %v4259_v26 = vsel %vm4258_vm5, %v4226_v10, %v8259_v49  ;;  %v8420_v55 = vunpack.i.h.bf16 %v8418_v8  ;;  %v8184_v8 = vunpack.i.l.bf16 %v12155_v27 }
 0x4e4   : > { %v4292_v14 = vsel %vm4291_vm6, %v4259_v26, %v8339_v3 }
 0x4e7   : > { %8637 = vrot.lane.b32.xlu0 %v12207_v32, %s9294_s19  ;;  %v8180_v32 = vunpack.i.h.bf16 %v12193_v41  ;;  %v4194_v41 = vsel %vm2919_vm2, %v3009_v48, %v8100_v6 }
 0x4e8   : > { %8642 = vrot.lane.b32.xlu1 %v8641_v43, %s9292_s13  ;;  %8632 = vrot.lane.b32.xlu2 %v8631_v25, %s9293_s14  ;;  %v4325_v25 = vsel %vm4324_vm7, %v4292_v14, %v8419_v36  ;;  %s9231_s13 = sshra.s32 %s7868_s12, 4  ;;  %s9232_s13 = int_to_ptr.hbm [resolvable:$true] %s9231_s13 }
 0x4e9   : > { %v8428_v18 = vpop.permute.xlu0 %8427  ;;  %v4227_v26 = vsel %vm4225_vm4, %v4194_v41, %v8180_v32  ;;  %v8344_v32 = vunpack.i.l.bf16 %v12327_v61  ;;  %p9238_p3 = scmp.lt.s32.totalorder %s9232_s13, %s15083_s10 }
 0x4ea   : > { %v8429_v53 = vunpack.i.l.bf16 %v8428_v18  ;;  %v8433_v43 = vpop.permute.xlu1 %8432  ;;  %v8430_v58 = vunpack.i.h.bf16 %v8428_v18  ;;  %v4260_v56 = vsel %vm4258_vm5, %v4227_v26, %v8260_v31  ;;  %v8264_v18 = vunpack.i.l.bf16 %v12259_v51  ;;  %v8438_v41 = vpop.permute.xlu2 %8437 }
 0x4eb   : > { %v8434_v10 = vunpack.i.l.bf16 %v8433_v43  ;;  %v4293_v39 = vsel %vm4291_vm6, %v4260_v56, %v8340_v21  ;;  %v8435_v36 = vunpack.i.h.bf16 %v8433_v43  ;;  %v8425_v56 = vunpack.i.h.bf16 %v8423_v23 }
 0x4ec   : > { %v4358_v49 = vsel %vm4357_vm8, %v4325_v25, %v8429_v53  ;;  %v4326_v6 = vsel %vm4324_vm7, %v4293_v39, %v8420_v55  ;;  %v8424_v53 = vunpack.i.l.bf16 %v8423_v23  ;;  %v8105_v25 = vunpack.i.h.bf16 %v12073_v16 }
 0x4ed   : > { %v4391_v3 = vsel %vm4390_vm9, %v4358_v49, %v8434_v10  ;;  %v4359_v9 = vsel %vm4357_vm8, %v4326_v6, %v8430_v58  ;;  %v8185_v10 = vunpack.i.h.bf16 %v12155_v27  ;;  %v8265_v49 = vunpack.i.h.bf16 %v12259_v51 }
 0x4ee   : > { %4557 = vmatmul.f32.vlgmr.msra.gmra.mxu0 %v4391_v3  ;;  %v4392_v21 = vsel %vm4390_vm9, %v4359_v9, %v8435_v36  ;;  %v8345_v3 = vunpack.i.h.bf16 %v12327_v61  ;;  %v4196_v26 = vsel %vm2919_vm2, %v11999_v50, %v8105_v25  ;;  %v8109_v61 = vunpack.i.l.bf16 %v12038_v46 }
 0x4ef   : > { %8652 = vrot.lane.b32.xlu0 %v8651_v37, %s9294_s19  ;;  %v4229_v16 = vsel %vm4225_vm4, %v4196_v26, %v8185_v10  ;;  %v8189_v50 = vunpack.i.l.bf16 %v12203_v0  ;;  %v8269_v23 = vunpack.i.l.bf16 %v12261_v62  ;;  %v8270_v10 = vunpack.i.h.bf16 %v12261_v62  ;;  %s9233_s19 = scalar_lea.hbm %s9232_s13, 16 }
 0x4f0   : > { %8647 = vrot.lane.b32.xlu2 %v8646_v54, %s9293_s14  ;;  %v4195_v54 = vsel %vm2919_vm2, %v11997_v15, %v8104_v1  ;;  %v4262_v36 = vsel %vm4258_vm5, %v4229_v16, %v8265_v49  ;;  %v8194_v16 = vunpack.i.l.bf16 %v12205_v5  ;;  %p9234_p0 = scmp.ne.s32.totalorder %s9232_s13, %s9233_s19  ;;  %p9239_p4 = scmp.lt.s32.totalorder %s9237_s26, %s9233_s19 }
 0x4f1   : > { %v8443_v34 = vpop.permute.xlu0 %8442  ;;  %v4228_v14 = vsel %vm4225_vm4, %v4195_v54, %v8184_v8  ;;  %v4295_v27 = vsel %vm4291_vm6, %v4262_v36, %v8345_v3  ;;  %v4197_v54 = vsel %vm2919_vm2, %v12003_v42, %v8109_v61  ;;  %v8440_v3 = vunpack.i.h.bf16 %v8438_v41 }
 0x4f2   : > { %v8444_v48 = vunpack.i.l.bf16 %v8443_v34  ;;  %v8448_v43 = vpop.permute.xlu1 %8447  ;;  %v4261_v55 = vsel %vm4258_vm5, %v4228_v14, %v8264_v18  ;;  %v8445_v1 = vunpack.i.h.bf16 %v8443_v34  ;;  %v4328_v51 = vsel %vm4324_vm7, %v4295_v27, %v8425_v56  ;;  %v8453_v9 = vpop.permute.xlu2 %8452  ;;  %p9235_p1 = pnand %p9234_p0, %p9393_p5  ;;  %p9240_p7 = por %p9239_p4, %p9238_p3 }
 0x4f3   : > { %v4294_v58 = vsel %vm4291_vm6, %v4261_v55, %v8344_v32  ;;  %v8449_v37 = vunpack.i.l.bf16 %v8448_v43  ;;  %v8450_v6 = vunpack.i.h.bf16 %v8448_v43  ;;  %v8349_v34 = vunpack.i.l.bf16 %v12336_v4 }
 0x4f4   : > { %v4327_v31 = vsel %vm4324_vm7, %v4294_v58, %v8424_v53  ;;  %v4361_v8 = vsel %vm4357_vm8, %v4328_v51, %v8445_v1  ;;  %v8439_v53 = vunpack.i.l.bf16 %v8438_v41  ;;  %v8454_v14 = vunpack.i.l.bf16 %v8453_v9  ;;  %p9236_p2 = pneg %p9235_p1 }
 0x4f5   : > { %v4360_v15 = vsel %vm4357_vm8, %v4327_v31, %v8444_v48  ;;  %v4394_v18 = vsel %vm4390_vm9, %v4361_v8, %v8450_v6  ;;  %v8110_v58 = vunpack.i.h.bf16 %v12038_v46  ;;  %v8455_v46 = vunpack.i.h.bf16 %v8453_v9 }
 0x4f6   : > { %4560 = vmatmul.f32.gmra.mxu0 %v4392_v21  ;;  %v4393_v39 = vsel %vm4390_vm9, %v4360_v15, %v8449_v37  ;;  %v4230_v21 = vsel %vm4225_vm4, %v4197_v54, %v8189_v50  ;;  %v8190_v37 = vunpack.i.h.bf16 %v12203_v0  ;;  %v8350_v15 = vunpack.i.h.bf16 %v12336_v4  ;;  %p9241_p8 = pnand %p9240_p7, %p9236_p2 }
 0x4f7   : > { %v4263_v48 = vsel %vm4258_vm5, %v4230_v21, %v8269_v23  ;;  %v4198_v49 = vsel %vm2919_vm2, %v11995_v19, %v8110_v58  ;;  %v8114_v56 = vunpack.i.l.bf16 %v12094_v57  ;;  %v8274_v4 = vunpack.i.l.bf16 %v12252_v17 }
 0x4f8   : > { %v4296_v55 = vsel %vm4291_vm6, %v4263_v48, %v8349_v34  ;;  %v4231_v26 = vsel %vm4225_vm4, %v4198_v49, %v8190_v37  ;;  %v8354_v19 = vunpack.i.l.bf16 %v12344_v38  ;;  %v8195_v54 = vunpack.i.h.bf16 %v12205_v5 }
 0x4f9   : > { %v8458_v32 = vpop.permute.xlu0 %8457  ;;  %v4329_v25 = vsel %vm4324_vm7, %v4296_v55, %v8439_v53  ;;  %v4264_v0 = vsel %vm4258_vm5, %v4231_v26, %v8270_v10  ;;  %v4199_v27 = vsel %vm2919_vm2, %v12005_v13, %v8114_v56  ;;  %v8275_v53 = vunpack.i.h.bf16 %v12252_v17 }
 0x4fa   : > { %v8459_v43 = vunpack.i.l.bf16 %v8458_v32  ;;  %v4362_v31 = vsel %vm4357_vm8, %v4329_v25, %v8454_v14  ;;  %v8463_v62 = vpop.permute.xlu1 %8462  ;;  %v4297_v1 = vsel %vm4291_vm6, %v4264_v0, %v8350_v15  ;;  %v4232_v8 = vsel %vm4225_vm4, %v4199_v27, %v8194_v16  ;;  %v8468_v23 = vpop.permute.xlu2 %8467 }
 0x4fb   : > { %v4330_v36 = vsel %vm4324_vm7, %v4297_v1, %v8440_v3  ;;  %v8464_v6 = vunpack.i.l.bf16 %v8463_v62  ;;  %v4265_v50 = vsel %vm4258_vm5, %v4232_v8, %v8274_v4  ;;  %v8469_v13 = vunpack.i.l.bf16 %v8468_v23 }
 0x4fc   : > { %v4395_v42 = vsel %vm4390_vm9, %v4362_v31, %v8459_v43  ;;  %v4363_v41 = vsel %vm4357_vm8, %v4330_v36, %v8455_v46  ;;  %v4298_v9 = vsel %vm4291_vm6, %v4265_v50, %v8354_v19  ;;  %v8355_v21 = vunpack.i.h.bf16 %v12344_v38 }
 0x4fd   : > { %v8465_v43 = vunpack.i.h.bf16 %v8463_v62  ;;  %v8119_v25 = vunpack.i.l.bf16 %v12098_v20  ;;  %v8199_v37 = vunpack.i.l.bf16 %v12183_v45  ;;  %v8470_v31 = vunpack.i.h.bf16 %v8468_v23 }
 0x4fe   : > { %4563 = vmatmul.f32.gmra.mxu0 %v4393_v39  ;;  %v8460_v39 = vunpack.i.h.bf16 %v8458_v32  ;;  %v4331_v32 = vsel %vm4324_vm7, %v4298_v9, %v8464_v6  ;;  %v8120_v62 = vunpack.i.h.bf16 %v12098_v20  ;;  %v8200_v36 = vunpack.i.h.bf16 %v12183_v45  ;;  %v9157_v6 = vld [vmem:[#allocation3 + $0x68] sm:$0xff] }
 0x4ff   : > { %v4364_v14 = vsel %vm4357_vm8, %v4331_v32, %v8469_v13  ;;  %v4201_v49 = vsel %vm2919_vm2, %v12023_v2, %v8119_v25  ;;  %v8280_v19 = vunpack.i.h.bf16 %v12269_v24  ;;  %v8124_v23 = vunpack.i.l.bf16 %v12052_v12 }
 0x500   : > { %v4396_v51 = vsel %vm4390_vm9, %v4363_v41, %v8460_v39  ;;  %v4234_v46 = vsel %vm4225_vm4, %v4201_v49, %v8199_v37  ;;  %v8360_v41 = vunpack.i.h.bf16 %v12349_v11  ;;  %v8204_v9 = vunpack.i.l.bf16 %v12217_v60 }
 0x501   : > { %v8473_v61 = vpop.permute.xlu0 %8472  ;;  %v8284_v32 = vunpack.i.l.bf16 %v12271_v44  ;;  %v8125_v25 = vunpack.i.h.bf16 %v12052_v12  ;;  %v8205_v37 = vunpack.i.h.bf16 %v12217_v60 }
 0x502   : > { %v8474_v34 = vunpack.i.l.bf16 %v8473_v61  ;;  %v8475_v17 = vunpack.i.h.bf16 %v8473_v61  ;;  %v8478_v10 = vpop.permute.xlu1 %8477  ;;  %v8483_v39 = vpop.permute.xlu2 %8482 }
 0x503   : > { %v8479_v3 = vunpack.i.l.bf16 %v8478_v10  ;;  %v8484_v2 = vunpack.i.l.bf16 %v8483_v39  ;;  %v8480_v8 = vunpack.i.h.bf16 %v8478_v10  ;;  %v8285_v10 = vunpack.i.h.bf16 %v12271_v44 }
 0x504   : > { %v4397_v55 = vsel %vm4390_vm9, %v4364_v14, %v8474_v34 }
 0x506   : > { %4566 = vmatmul.f32.gmra.mxu0 %v4394_v18  ;;  %v8115_v18 = vunpack.i.h.bf16 %v12094_v57 }
 0x508   : > { %v4200_v48 = vsel %vm2919_vm2, %v12001_v47, %v8115_v18  ;;  %v8279_v47 = vunpack.i.l.bf16 %v12269_v24  ;;  %v8485_v18 = vunpack.i.h.bf16 %v8483_v39 }
 0x509   : > { %v4233_v57 = vsel %vm4225_vm4, %v4200_v48, %v8195_v54  ;;  %v8488_v56 = vpop.permute.xlu0 %8487  ;;  %v8364_v54 = vunpack.i.l.bf16 %v12365_v59 }
 0x50a   : > { %v4266_v58 = vsel %vm4258_vm5, %v4233_v57, %v8275_v53  ;;  %v4267_v0 = vsel %vm4258_vm5, %v4234_v46, %v8279_v47  ;;  %v8489_v1 = vunpack.i.l.bf16 %v8488_v56  ;;  %v8490_v24 = vunpack.i.h.bf16 %v8488_v56  ;;  %v8493_v34 = vpop.permute.xlu1 %8492  ;;  %v9158_v53 = vld [vmem:[#allocation3 + $0x78] sm:$0xff] }
 0x50b   : > { %v4299_v5 = vsel %vm4291_vm6, %v4266_v58, %v8355_v21  ;;  %v4203_v21 = vsel %vm2919_vm2, %v9158_v53, %v8124_v23  ;;  %v8494_v14 = vunpack.i.l.bf16 %v8493_v34  ;;  %v8498_v58 = vpop.permute.xlu2 %8497  ;;  %v8365_v47 = vunpack.i.h.bf16 %v12365_v59 }
 0x50c   : > { %v4332_v38 = vsel %vm4324_vm7, %v4299_v5, %v8465_v43  ;;  %v4236_v43 = vsel %vm4225_vm4, %v4203_v21, %v8204_v9  ;;  %v8129_v56 = vunpack.i.l.bf16 %v12121_v28  ;;  %v8500_v39 = vunpack.i.h.bf16 %v8498_v58 }
 0x50d   : > { %v4365_v15 = vsel %vm4357_vm8, %v4332_v38, %v8470_v31  ;;  %v4269_v57 = vsel %vm4258_vm5, %v4236_v43, %v8284_v32  ;;  %v8499_v31 = vunpack.i.l.bf16 %v8498_v58  ;;  %v8210_v23 = vunpack.i.h.bf16 %v12219_v40 }
 0x50e   : > { %4569 = vmatmul.f32.gmra.mxu0 %v4395_v42  ;;  %v8359_v42 = vunpack.i.l.bf16 %v12349_v11  ;;  %v4398_v26 = vsel %vm4390_vm9, %v4365_v15, %v8475_v17  ;;  %v4302_v5 = vsel %vm4291_vm6, %v4269_v57, %v8364_v54  ;;  %v9159_v15 = vld [vmem:[#allocation3 + $0x80] sm:$0xff]  ;;  %v8370_v9 = vunpack.i.h.bf16 %v12363_v7 }
 0x50f   : > { %v4335_v38 = vsel %vm4324_vm7, %v4302_v5, %v8494_v14  ;;  %v4204_v49 = vsel %vm2919_vm2, %v9159_v15, %v8125_v25  ;;  %v8134_v21 = vunpack.i.l.bf16 %v12125_v30  ;;  %v8214_v14 = vunpack.i.l.bf16 %v12195_v52  ;;  %v9162_v5 = vld [vmem:[#allocation3 + $0xa8] sm:$0xff] }
 0x510   : > { %v4300_v16 = vsel %vm4291_vm6, %v4267_v0, %v8359_v42  ;;  %v4368_v42 = vsel %vm4357_vm8, %v4335_v38, %v8499_v31  ;;  %v4237_v12 = vsel %vm4225_vm4, %v4204_v49, %v8205_v37  ;;  %v8209_v0 = vunpack.i.l.bf16 %v12219_v40 }
 0x511   : > { %v4333_v4 = vsel %vm4324_vm7, %v4300_v16, %v8479_v3  ;;  %v8495_v3 = vunpack.i.h.bf16 %v8493_v34  ;;  %v4270_v46 = vsel %vm4258_vm5, %v4237_v12, %v8285_v10  ;;  %v9161_v34 = vld [vmem:[#allocation3 + $0x98] sm:$0xff]  ;;  %v8374_v57 = vunpack.i.l.bf16 %v12370_v29 }
 0x512   : > { %v4366_v27 = vsel %vm4357_vm8, %v4333_v4, %v8484_v2  ;;  %v4303_v60 = vsel %vm4291_vm6, %v4270_v46, %v8365_v47  ;;  %v8508_v16 = vpop.permute.xlu1 %8507  ;;  %v4207_v25 = vsel %vm2919_vm2, %v9162_v5, %v8134_v21  ;;  %v8135_v15 = vunpack.i.h.bf16 %v12125_v30  ;;  %v9165_v21 = vld [vmem:[#allocation3 + $0xc8] sm:$0xff]  ;;  %v15751_v5 = vld [vmem:[#allocation75_spill] sm:$0xff] }
 0x513   : > { %v4399_v61 = vsel %vm4390_vm9, %v4366_v27, %v8489_v1  ;;  %v4336_v59 = vsel %vm4324_vm7, %v4303_v60, %v8495_v3  ;;  %v8369_v1 = vunpack.i.l.bf16 %v12363_v7  ;;  %v8510_v54 = vunpack.i.h.bf16 %v8508_v16 }
 0x514   : > { %v4369_v4 = vsel %vm4357_vm8, %v4336_v59, %v8500_v39  ;;  %v4240_v37 = vsel %vm4225_vm4, %v4207_v25, %v8214_v14  ;;  %v8295_v46 = vunpack.i.h.bf16 %v12277_v63  ;;  %v8375_v60 = vunpack.i.h.bf16 %v12370_v29 }
 0x515   : > { %v8224_v25 = vunpack.i.l.bf16 %v15751_v5 }
 0x516   : > { %4572 = vmatmul.f32.gmra.mxu0 %v4396_v51  ;;  %v4202_v51 = vsel %vm2919_vm2, %v9157_v6, %v8120_v62  ;;  %v8289_v62 = vunpack.i.l.bf16 %v12264_v33 }
 0x517   : > { %v4235_v20 = vsel %vm4225_vm4, %v4202_v51, %v8200_v36  ;;  %v9160_v36 = vld [vmem:[#allocation3 + $0x90] sm:$0xff] }
 0x518   : > { %v4268_v50 = vsel %vm4258_vm5, %v4235_v20, %v8280_v19  ;;  %v4205_v2 = vsel %vm2919_vm2, %v9160_v36, %v8129_v56  ;;  %v8509_v19 = vunpack.i.l.bf16 %v8508_v16  ;;  %v8130_v20 = vunpack.i.h.bf16 %v12121_v28 }
 0x519   : > { %v4301_v45 = vsel %vm4291_vm6, %v4268_v50, %v8360_v41  ;;  %v4238_v27 = vsel %vm4225_vm4, %v4205_v2, %v8209_v0  ;;  %v15748_v2 = vld [vmem:[#allocation79_spill] sm:$0xff] }
 0x51a   : > { %v4334_v11 = vsel %vm4324_vm7, %v4301_v45, %v8480_v8  ;;  %v4271_v51 = vsel %vm4258_vm5, %v4238_v27, %v8289_v62  ;;  %v8513_v8 = vpop.permute.xlu2 %8512  ;;  %v4206_v32 = vsel %vm2919_vm2, %v9161_v34, %v8130_v20  ;;  %v8523_v43 = vpop.permute.xlu1 %8522  ;;  %v8139_v62 = vunpack.i.l.bf16 %v12075_v22 }
 0x51b   : > { %v4367_v13 = vsel %vm4357_vm8, %v4334_v11, %v8485_v18  ;;  %v8290_v11 = vunpack.i.h.bf16 %v12264_v33  ;;  %v4239_v28 = vsel %vm4225_vm4, %v4206_v32, %v8210_v23  ;;  %v8525_v0 = vunpack.i.h.bf16 %v8523_v43 }
 0x51c   : > { %v4400_v48 = vsel %vm4390_vm9, %v4367_v13, %v8490_v24  ;;  %v8514_v24 = vunpack.i.l.bf16 %v8513_v8  ;;  %v8220_v32 = vunpack.i.h.bf16 %v12226_v35 }
 0x51d   : > { %v4272_v53 = vsel %vm4258_vm5, %v4239_v28, %v8290_v11 }
 0x51e   : > { %4575 = vmatmul.f32.gmra.mxu0 %v4397_v55  ;;  %v8503_v55 = vpop.permute.xlu0 %8502  ;;  %v4305_v40 = vsel %vm4291_vm6, %v4272_v53, %v8370_v9  ;;  %v8140_v9 = vunpack.i.h.bf16 %v12075_v22 }
 0x51f   : > { %v8504_v17 = vunpack.i.l.bf16 %v8503_v55  ;;  %v8505_v44 = vunpack.i.h.bf16 %v8503_v55  ;;  %v4338_v7 = vsel %vm4324_vm7, %v4305_v40, %v8510_v54  ;;  %v8294_v55 = vunpack.i.l.bf16 %v12277_v63 }
 0x521   : > { %v4402_v41 = vsel %vm4390_vm9, %v4369_v4, %v8505_v44  ;;  %v4273_v10 = vsel %vm4258_vm5, %v4240_v37, %v8294_v55  ;;  %v9163_v44 = vld [vmem:[#allocation3 + $0xb0] sm:$0xff]  ;;  %v15752_v37 = vld [vmem:[#allocation67_spill] sm:$0xff] }
 0x522   : > { %v8528_v47 = vpop.permute.xlu2 %8527  ;;  %v4208_v59 = vsel %vm2919_vm2, %v9163_v44, %v8135_v15  ;;  %v8538_v36 = vpop.permute.xlu1 %8537 }
 0x523   : > { %v8529_v12 = vunpack.i.l.bf16 %v8528_v47  ;;  %v8530_v4 = vunpack.i.h.bf16 %v8528_v47  ;;  %v15753_v47 = vld [vmem:[#allocation92_spill] sm:$0xff] }
 0x526   : > { %4578 = vmatmul.f32.gmra.mxu0 %v4398_v26  ;;  %v4401_v26 = vsel %vm4390_vm9, %v4368_v42, %v8504_v17  ;;  %v8518_v6 = vpop.permute.xlu0 %8517  ;;  %v8524_v17 = vunpack.i.l.bf16 %v8523_v43  ;;  %v4306_v42 = vsel %vm4291_vm6, %v4273_v10, %v8374_v57  ;;  %v15750_v43 = vld [vmem:[#allocation49_spill] sm:$0xff] }
 0x527   : > { %v8519_v50 = vunpack.i.l.bf16 %v8518_v6  ;;  %v8520_v33 = vunpack.i.h.bf16 %v8518_v6  ;;  %v8144_v55 = vunpack.i.l.bf16 %v15750_v43 }
 0x528   : > { %v4339_v3 = vsel %vm4324_vm7, %v4306_v42, %v8524_v17  ;;  %v8384_v42 = vunpack.i.l.bf16 %v15753_v47 }
 0x529   : > { %v4372_v56 = vsel %vm4357_vm8, %v4339_v3, %v8529_v12 }
 0x52e   : > { %4581 = vmatmul.f32.gmra.mxu0 %v4399_v61  ;;  %v4304_v61 = vsel %vm4291_vm6, %v4271_v51, %v8369_v1  ;;  %v8533_v31 = vpop.permute.xlu0 %8532  ;;  %v8219_v1 = vunpack.i.l.bf16 %v12226_v35  ;;  %v9164_v51 = vld [vmem:[#allocation3 + $0xc0] sm:$0xff] }
 0x52f   : > { %v4337_v45 = vsel %vm4324_vm7, %v4304_v61, %v8509_v19  ;;  %v8534_v49 = vunpack.i.l.bf16 %v8533_v31  ;;  %v8535_v63 = vunpack.i.h.bf16 %v8533_v31  ;;  %v8299_v19 = vunpack.i.l.bf16 %v15748_v2 }
 0x530   : > { %v4370_v18 = vsel %vm4357_vm8, %v4337_v45, %v8514_v24  ;;  %v8539_v61 = vunpack.i.l.bf16 %v8538_v36  ;;  %v8543_v24 = vpop.permute.xlu2 %8542  ;;  %v8304_v31 = vunpack.i.l.bf16 %v15752_v37 }
 0x531   : > { %v4403_v13 = vsel %vm4390_vm9, %v4370_v18, %v8519_v50  ;;  %v4405_v39 = vsel %vm4390_vm9, %v4372_v56, %v8534_v49  ;;  %v8544_v54 = vunpack.i.l.bf16 %v8543_v24  ;;  %v8545_v17 = vunpack.i.h.bf16 %v8543_v24  ;;  %v9166_v49 = vld [vmem:[#allocation3 + $0xd8] sm:$0xff] }
 0x532   : > { %v4211_v3 = vsel %vm2919_vm2, %v9166_v49, %v8144_v55 }
 0x536   : > { %4584 = vmatmul.f32.gmra.mxu0 %v4400_v48  ;;  %v8515_v48 = vunpack.i.h.bf16 %v8513_v8  ;;  %v4209_v8 = vsel %vm2919_vm2, %v9164_v51, %v8139_v62  ;;  %v8548_v45 = vpop.permute.xlu0 %8547  ;;  %v8305_v62 = vunpack.i.h.bf16 %v15752_v37  ;;  %v15754_v51 = vld [vmem:[#allocation63_spill] sm:$0xff] }
 0x537   : > { %v4242_v50 = vsel %vm4225_vm4, %v4209_v8, %v8219_v1  ;;  %v8549_v18 = vunpack.i.l.bf16 %v8548_v45  ;;  %v8550_v57 = vunpack.i.h.bf16 %v8548_v45  ;;  %v8149_v8 = vunpack.i.l.bf16 %v15754_v51 }
 0x538   : > { %v4371_v58 = vsel %vm4357_vm8, %v4338_v7, %v8515_v48  ;;  %v4275_v23 = vsel %vm4258_vm5, %v4242_v50, %v8299_v19  ;;  %v8540_v7 = vunpack.i.h.bf16 %v8538_v36  ;;  %v8558_v44 = vpop.permute.xlu2 %8557  ;;  %v15755_v50 = vld [vmem:[#allocation68_spill] sm:$0xff] }
 0x539   : > { %v4404_v38 = vsel %vm4390_vm9, %v4371_v58, %v8520_v33  ;;  %v4210_v33 = vsel %vm2919_vm2, %v9165_v21, %v8140_v9  ;;  %v8229_v45 = vunpack.i.l.bf16 %v15755_v50 }
 0x53a   : > { %v4243_v14 = vsel %vm4225_vm4, %v4210_v33, %v8220_v32 }
 0x53e   : > { %4587 = vmatmul.f32.gmra.mxu0 %v4401_v26  ;;  %v8215_v26 = vunpack.i.h.bf16 %v12195_v52 }
 0x540   : > { %v4241_v30 = vsel %vm4225_vm4, %v4208_v59, %v8215_v26 }
 0x541   : > { %v4274_v16 = vsel %vm4258_vm5, %v4241_v30, %v8295_v46  ;;  %v4244_v46 = vsel %vm4225_vm4, %v4211_v3, %v8224_v25 }
 0x542   : > { %v4307_v52 = vsel %vm4291_vm6, %v4274_v16, %v8375_v60  ;;  %v8563_v60 = vpop.permute.xlu0 %8562  ;;  %v4277_v56 = vsel %vm4258_vm5, %v4244_v46, %v8304_v31  ;;  %v8225_v16 = vunpack.i.h.bf16 %v15751_v5  ;;  %v9169_v31 = vld [vmem:[#allocation3 + $0xf8] sm:$0xff] }
 0x543   : > { %v4340_v29 = vsel %vm4324_vm7, %v4307_v52, %v8525_v0  ;;  %v4310_v59 = vsel %vm4291_vm6, %v4277_v56, %v8384_v42  ;;  %v8145_v0 = vunpack.i.h.bf16 %v15750_v43  ;;  %v8559_v52 = vunpack.i.l.bf16 %v8558_v44 }
 0x544   : > { %v4373_v6 = vsel %vm4357_vm8, %v4340_v29, %v8530_v4  ;;  %v8385_v29 = vunpack.i.h.bf16 %v15753_v47  ;;  %v9167_v4 = vld [vmem:[#allocation3 + $0xe0] sm:$0xff] }
 0x545   : > { %v4406_v20 = vsel %vm4390_vm9, %v4373_v6, %v8535_v63  ;;  %v4212_v36 = vsel %vm2919_vm2, %v9167_v4, %v8145_v0 }
 0x546   : > { %4590 = vmatmul.f32.gmra.mxu0 %v4402_v41  ;;  %v15749_v41 = vld [vmem:[#allocation96_spill] sm:$0xff] }
 0x547   : > { %v8379_v27 = vunpack.i.l.bf16 %v15749_v41  ;;  %v8380_v53 = vunpack.i.h.bf16 %v15749_v41  ;;  %v4245_v41 = vsel %vm4225_vm4, %v4212_v36, %v8225_v16  ;;  %v15761_v16 = vld [vmem:[#allocation81_spill] sm:$0xff]  ;;  %v9170_v36 = vld [vmem:[#allocation3 + $0x108] sm:$0xff] }
 0x549   : > { %v4308_v11 = vsel %vm4291_vm6, %v4275_v23, %v8379_v27  ;;  %v4278_v27 = vsel %vm4258_vm5, %v4245_v41, %v8305_v62  ;;  %v8560_v23 = vunpack.i.h.bf16 %v8558_v44 }
 0x54a   : > { %v4341_v34 = vsel %vm4324_vm7, %v4308_v11, %v8539_v61  ;;  %v4311_v6 = vsel %vm4291_vm6, %v4278_v27, %v8385_v29  ;;  %v8565_v61 = vunpack.i.h.bf16 %v8563_v60  ;;  %v15756_v11 = vld [vmem:[#allocation80_spill] sm:$0xff]  ;;  %v15762_v29 = vld [vmem:[#allocation101_spill] sm:$0xff] }
 0x54b   : > { %v4374_v40 = vsel %vm4357_vm8, %v4341_v34, %v8544_v54  ;;  %v8309_v9 = vunpack.i.l.bf16 %v15756_v11  ;;  %v15757_v34 = vld [vmem:[#allocation93_spill] sm:$0xff]  ;;  %v8310_v25 = vunpack.i.h.bf16 %v15756_v11 }
 0x54c   : > { %v4407_v22 = vsel %vm4390_vm9, %v4374_v40, %v8549_v18  ;;  %v8389_v32 = vunpack.i.l.bf16 %v15757_v34 }
 0x54e   : > { %4593 = vmatmul.f32.gmra.mxu0 %v4403_v13  ;;  %v8300_v13 = vunpack.i.h.bf16 %v15748_v2 }
 0x550   : > { %v4276_v35 = vsel %vm4258_vm5, %v4243_v14, %v8300_v13  ;;  %v9168_v13 = vld [vmem:[#allocation3 + $0xf0] sm:$0xff]  ;;  %v8573_v14 = vpop.permute.xlu2 %8572 }
 0x551   : > { %v4309_v48 = vsel %vm4291_vm6, %v4276_v35, %v8380_v53  ;;  %v4213_v53 = vsel %vm2919_vm2, %v9168_v13, %v8149_v8  ;;  %v8574_v5 = vunpack.i.l.bf16 %v8573_v14  ;;  %v9171_v13 = vld [vmem:[#allocation3 + $0x110] sm:$0xff] }
 0x552   : > { %v4342_v58 = vsel %vm4324_vm7, %v4309_v48, %v8540_v7  ;;  %v4246_v33 = vsel %vm4225_vm4, %v4213_v53, %v8229_v45  ;;  %v8578_v7 = vpop.permute.xlu0 %8577  ;;  %v8150_v48 = vunpack.i.h.bf16 %v15754_v51 }
 0x553   : > { %v4375_v15 = vsel %vm4357_vm8, %v4342_v58, %v8545_v17  ;;  %v8579_v43 = vunpack.i.l.bf16 %v8578_v7  ;;  %v8230_v58 = vunpack.i.h.bf16 %v15755_v50  ;;  %v8580_v56 = vunpack.i.h.bf16 %v8578_v7 }
 0x554   : > { %v4408_v12 = vsel %vm4390_vm9, %v4375_v15, %v8550_v57  ;;  %v15758_v57 = vmov 0.0   ;;  %v4214_v47 = vsel %vm2919_vm2, %v9169_v31, %v8150_v48 }
 0x555   : > { %4814 = vst.msk [vmem:[#allocation4 + $0x70] sm:$0x3] %vm4801_vm10, %v15758_v57  ;;  %v4247_v49 = vsel %vm4225_vm4, %v4214_v47, %v8230_v58  ;;  %v15766_v47 = vld [vmem:[#allocation97_spill] sm:$0xff] }
 0x556   : > { %4596 = vmatmul.f32.gmra.mxu0 %v4404_v38  ;;  %v8553_v38 = vpop.permute.xlu1 %8552  ;;  %4802 = vst.msk [vmem:[#allocation4 + $0x10] sm:$0x3] %vm4801_vm10, %v15758_v57  ;;  %v4280_v3 = vsel %vm4258_vm5, %v4247_v49, %v8310_v25  ;;  %v12741_v25 = vld [vmem:[%s15079_s6] ss:$0 sm:$0xff] }
 0x557   : > { %v8554_v26 = vunpack.i.l.bf16 %v8553_v38  ;;  %v8555_v2 = vunpack.i.h.bf16 %v8553_v38  ;;  %4805 = vst.msk [vmem:[#allocation4 + $0x28] sm:$0x3] %vm4801_vm10, %v15758_v57  ;;  %v8390_v38 = vunpack.i.h.bf16 %v15757_v34 }
 0x558   : > { %4808 = vst.msk [vmem:[#allocation4 + $0x40] sm:$0x3] %vm4801_vm10, %v15758_v57  ;;  %v8588_v8 = vpop.permute.xlu2 %8587 }
 0x559   : > { %v4343_v30 = vsel %vm4324_vm7, %v4310_v59, %v8554_v26  ;;  %4811 = vst.msk [vmem:[#allocation4 + $0x58] sm:$0x3] %vm4801_vm10, %v15758_v57  ;;  %v4313_v26 = vsel %vm4291_vm6, %v4280_v3, %v8390_v38  ;;  %v15760_v59 = vld [vmem:[#allocation74_spill] sm:$0xff]  ;;  %v8590_v58 = vunpack.i.h.bf16 %v8588_v8  ;;  %v15765_v38 = vld [vmem:[#allocation85_spill] sm:$0xff] }
 0x55a   : > { %v4376_v1 = vsel %vm4357_vm8, %v4343_v30, %v8559_v52  ;;  %4817 = vst.msk [vmem:[#allocation4 + $0x88] sm:$0x3] %vm4801_vm10, %v15758_v57  ;;  %v8234_v0 = vunpack.i.l.bf16 %v15760_v59  ;;  %v8314_v52 = vunpack.i.l.bf16 %v15761_v16 }
 0x55b   : > { %4820 = vst.msk [vmem:[#allocation4 + $0xa0] sm:$0x3] %vm4801_vm10, %v15758_v57 }
 0x55c   : > { %4823 = vst.msk [vmem:[#allocation4 + $0xb8] sm:$0x3] %vm4801_vm10, %v15758_v57 }
 0x55d   : > { %4826 = vst.msk [vmem:[#allocation4 + $0xd0] sm:$0x3] %vm4801_vm10, %v15758_v57 }
 0x55e   : > { %4599 = vmatmul.f32.gmra.mxu0 %v4405_v39  ;;  %v8564_v39 = vunpack.i.l.bf16 %v8563_v60  ;;  %v8568_v24 = vpop.permute.xlu1 %8567  ;;  %v12688_v60 = vpop.f32.mrf.mxu1  ;;  %4829 = vst.msk [vmem:[#allocation4 + $0xe8] sm:$0x3] %vm4801_vm10, %v15758_v57 }
 0x55f   : > { %v8569_v40 = vunpack.i.l.bf16 %v8568_v24  ;;  %v8570_v42 = vunpack.i.h.bf16 %v8568_v24  ;;  %4832 = vst.msk [vmem:[#allocation4 + $0x100] sm:$0x3] %vm4801_vm10, %v15758_v57  ;;  %v8589_v24 = vunpack.i.l.bf16 %v8588_v8 }
 0x560   : > { %v4409_v19 = vsel %vm4390_vm9, %v4376_v1, %v8564_v39  ;;  %v8575_v39 = vunpack.i.h.bf16 %v8573_v14  ;;  %v8394_v1 = vunpack.i.l.bf16 %v15762_v29  ;;  %4835 = vst.msk [vmem:[#allocation4 + $0x118] sm:$0x3] %vm4801_vm10, %v15758_v57  ;;  %v15763_v14 = vld [vmem:[#allocation62_spill] sm:$0xff] }
 0x561   : > { %v4346_v44 = vsel %vm4324_vm7, %v4313_v26, %v8570_v42  ;;  %4838 = vst.msk [vmem:[#allocation4 + $0x130] sm:$0x3] %vm4801_vm10, %v15758_v57  ;;  %v8399_v42 = vunpack.i.l.bf16 %v15766_v47  ;;  %v9172_v26 = vld [vmem:[#allocation3 + $0x120] sm:$0xff] }
 0x562   : > { %v4379_v4 = vsel %vm4357_vm8, %v4346_v44, %v8575_v39  ;;  %4841 = vst.msk [vmem:[#allocation4 + $0x148] sm:$0x3] %vm4801_vm10, %v15758_v57 }
 0x563   : > { %v4412_v41 = vsel %vm4390_vm9, %v4379_v4, %v8580_v56  ;;  %4844 = vst.msk [vmem:[#allocation4 + $0x160] sm:$0x3] %vm4801_vm10, %v15758_v57 }
 0x564   : > { %4847 = vst.msk [vmem:[#allocation4 + $0x178] sm:$0x3] %vm4801_vm10, %v15758_v57 }
 0x565   : > { %4850 = vst.msk [vmem:[#allocation4 + $0x190] sm:$0x3] %vm4801_vm10, %v15758_v57 }
 0x566   : > { %4602 = vmatmul.f32.gmra.mxu0 %v4406_v20  ;;  %v4344_v20 = vsel %vm4324_vm7, %v4311_v6, %v8555_v2  ;;  %v8583_v30 = vpop.permute.xlu1 %8582  ;;  %v8593_v6 = vpop.permute.xlu0 %8592  ;;  %4853 = vst.msk [vmem:[#allocation4 + $0x1a8] sm:$0x3] %vm4801_vm10, %v15758_v57 }
 0x567   : > { %v4377_v54 = vsel %vm4357_vm8, %v4344_v20, %v8560_v23  ;;  %v8594_v50 = vunpack.i.l.bf16 %v8593_v6  ;;  %v8235_v23 = vunpack.i.h.bf16 %v15760_v59  ;;  %v4695_v11 = vpop.f32.mrf.mxu1  ;;  %v8595_v48 = vunpack.i.h.bf16 %v8593_v6 }
 0x568   : > { %v4410_v21 = vsel %vm4390_vm9, %v4377_v54, %v8565_v61 }
 0x56b   : > { %v12610_v28 = vpop.f32.mrf.mxu0 }
 0x56e   : > { %4605 = vmatmul.f32.gmra.mxu0 %v4407_v22  ;;  %v4279_v22 = vsel %vm4258_vm5, %v4246_v33, %v8309_v9  ;;  %v8315_v9 = vunpack.i.h.bf16 %v15761_v16  ;;  %v8608_v59 = vpop.permute.xlu0 %8607 }
 0x56f   : > { %v4312_v35 = vsel %vm4291_vm6, %v4279_v22, %v8389_v32  ;;  %v8395_v32 = vunpack.i.h.bf16 %v15762_v29  ;;  %v4698_v3 = vpop.f32.mrf.mxu1  ;;  %v8160_v29 = vunpack.i.h.bf16 %v15763_v14 }
 0x570   : > { %v4345_v55 = vsel %vm4324_vm7, %v4312_v35, %v8569_v40  ;;  %v8585_v40 = vunpack.i.h.bf16 %v8583_v30  ;;  %v8159_v35 = vunpack.i.l.bf16 %v15763_v14  ;;  %v15769_v14 = vld [vmem:[#allocation86_spill] sm:$0xff] }
 0x571   : > { %v4378_v37 = vsel %vm4357_vm8, %v4345_v55, %v8574_v5  ;;  %v15764_v55 = vld [vmem:[#allocation55_spill] sm:$0xff]  ;;  %v8598_v5 = vpop.permute.xlu1 %8597 }
 0x572   : > { %v4411_v15 = vsel %vm4390_vm9, %v4378_v37, %v8579_v43  ;;  %v8239_v57 = vunpack.i.l.bf16 %v15764_v55  ;;  %v8319_v37 = vunpack.i.l.bf16 %v15765_v38 }
 0x573   : > { %v12623_v10 = vpop.f32.mrf.mxu0 }
 0x576   : > { %4608 = vmatmul.f32.gmra.mxu0 %v4408_v12  ;;  %v15759_v12 = vld [vmem:[#allocation46_spill] sm:$0xff] }
 0x577   : > { %v8154_v46 = vunpack.i.l.bf16 %v15759_v12  ;;  %v8155_v20 = vunpack.i.h.bf16 %v15759_v12  ;;  %v4217_v12 = vsel %vm2919_vm2, %v9172_v26, %v8159_v35 }
 0x578   : > { %v4250_v44 = vsel %vm4225_vm4, %v4217_v12, %v8239_v57 }
 0x579   : > { %v4215_v2 = vsel %vm2919_vm2, %v9170_v36, %v8154_v46  ;;  %v4216_v53 = vsel %vm2919_vm2, %v9171_v13, %v8155_v20  ;;  %v8599_v46 = vunpack.i.l.bf16 %v8598_v5  ;;  %v4283_v39 = vsel %vm4258_vm5, %v4250_v44, %v8319_v37 }
 0x57a   : > { %v4248_v27 = vsel %vm4225_vm4, %v4215_v2, %v8234_v0  ;;  %v4249_v33 = vsel %vm4225_vm4, %v4216_v53, %v8235_v23  ;;  %v4316_v16 = vsel %vm4291_vm6, %v4283_v39, %v8399_v42  ;;  %v8240_v36 = vunpack.i.h.bf16 %v15764_v55  ;;  %v4701_v23 = vpop.f32.mrf.mxu1 }
 0x57b   : > { %v12636_v63 = vpop.f32.mrf.mxu0  ;;  %v4281_v51 = vsel %vm4258_vm5, %v4248_v27, %v8314_v52  ;;  %v4282_v7 = vsel %vm4258_vm5, %v4249_v33, %v8315_v9  ;;  %v4349_v4 = vsel %vm4324_vm7, %v4316_v16, %v8599_v46  ;;  %v8610_v53 = vunpack.i.h.bf16 %v8608_v59 }
 0x57c   : > { %v4314_v61 = vsel %vm4291_vm6, %v4281_v51, %v8394_v1  ;;  %v4315_v22 = vsel %vm4291_vm6, %v4282_v7, %v8395_v32  ;;  %v8609_v1 = vunpack.i.l.bf16 %v8608_v59  ;;  %v9173_v51 = vld [vmem:[#allocation3 + $0x128] sm:$0xff] }
 0x57d   : > { %v4348_v43 = vsel %vm4324_vm7, %v4315_v22, %v8585_v40  ;;  %v4218_v8 = vsel %vm2919_vm2, %v9173_v51, %v8160_v29  ;;  %v8613_v22 = vpop.permute.xlu1 %8612 }
 0x57e   : > { %4611 = vmatmul.f32.gmra.mxu0 %v4409_v19  ;;  %v8584_v19 = vunpack.i.l.bf16 %v8583_v30  ;;  %v4381_v49 = vsel %vm4357_vm8, %v4348_v43, %v8590_v58  ;;  %v8603_v30 = vpop.permute.xlu2 %8602  ;;  %v9174_v58 = vld [vmem:[#allocation3 + $0x138] sm:$0xff] }
 0x57f   : > { %v4414_v56 = vsel %vm4390_vm9, %v4381_v49, %v8595_v48  ;;  %v8604_v2 = vunpack.i.l.bf16 %v8603_v30  ;;  %v8605_v7 = vunpack.i.h.bf16 %v8603_v30  ;;  %v15770_v48 = vld [vmem:[#allocation98_spill] sm:$0xff] }
 0x580   : > { %v4347_v45 = vsel %vm4324_vm7, %v4314_v61, %v8584_v19  ;;  %v8320_v19 = vunpack.i.h.bf16 %v15765_v38  ;;  %v8600_v61 = vunpack.i.h.bf16 %v8598_v5  ;;  %v8404_v43 = vunpack.i.l.bf16 %v15770_v48  ;;  %v3295_v30 = vld [vmem:[#allocation3 + $0x19a] sm:$0xff] }
 0x581   : > { %v4380_v54 = vsel %vm4357_vm8, %v4347_v45, %v8589_v24  ;;  %v4382_v6 = vsel %vm4357_vm8, %v4349_v4, %v8604_v2  ;;  %v8614_v38 = vunpack.i.l.bf16 %v8613_v22  ;;  %7981 = vmatmul.msk.f32.gmra.mxu3 %vm2919_vm2, %v3295_v30  ;;  %v9175_v4 = vld [vmem:[#allocation3 + $0x140] sm:$0xff]  ;;  %v8615_v2 = vunpack.i.h.bf16 %v8613_v22 }
 0x582   : > { %v4415_v20 = vsel %vm4390_vm9, %v4382_v6, %v8609_v1 }
 0x583   : > { %v12649_v18 = vpop.f32.mrf.mxu0 }
 0x586   : > { %4614 = vmatmul.f32.gmra.mxu0 %v4410_v21  ;;  %v4413_v21 = vsel %vm4390_vm9, %v4380_v54, %v8594_v50  ;;  %v4251_v50 = vsel %vm4225_vm4, %v4218_v8, %v8240_v36  ;;  %v15767_v54 = vld [vmem:[#allocation51_spill] sm:$0xff]  ;;  %v8618_v49 = vpop.permute.xlu2 %8617  ;;  %v15771_v8 = vld [vmem:[#allocation56_spill] sm:$0xff] }
 0x587   : > { %v4284_v24 = vsel %vm4258_vm5, %v4251_v50, %v8320_v19  ;;  %v8164_v13 = vunpack.i.l.bf16 %v15767_v54  ;;  %v8165_v46 = vunpack.i.h.bf16 %v15767_v54  ;;  %v8619_v39 = vunpack.i.l.bf16 %v8618_v49  ;;  %v3296_v54 = vld [vmem:[#allocation3 + $0x1a2] sm:$0xff] }
 0x589   : > { %v4219_v5 = vsel %vm2919_vm2, %v9174_v58, %v8164_v13  ;;  %v4220_v36 = vsel %vm2919_vm2, %v9175_v4, %v8165_v46  ;;  %7982 = vmatmul.msk.f32.gmra.mxu3 %vm2919_vm2, %v3296_v54 }
 0x58b   : > { %v12666_v17 = vpop.f32.mrf.mxu0 }
 0x58e   : > { %4617 = vmatmul.f32.gmra.mxu0 %v4411_v15 }
 0x593   : > { %v12697_v62 = vpop.f32.mrf.mxu0 }
 0x596   : > { %4620 = vmatmul.f32.gmra.mxu0 %v4412_v41  ;;  %v8400_v41 = vunpack.i.h.bf16 %v15766_v47  ;;  %v8623_v47 = vpop.permute.xlu0 %8622 }
 0x597   : > { %v8624_v44 = vunpack.i.l.bf16 %v8623_v47 }
 0x598   : > { %v4317_v9 = vsel %vm4291_vm6, %v4284_v24, %v8400_v41 }
 0x599   : > { %v4350_v40 = vsel %vm4324_vm7, %v4317_v9, %v8600_v61  ;;  %v8169_v61 = vunpack.i.l.bf16 %v15771_v8  ;;  %v8620_v9 = vunpack.i.h.bf16 %v8618_v49 }
 0x59a   : > { %v4383_v57 = vsel %vm4357_vm8, %v4350_v40, %v8605_v7 }
 0x59b   : > { %v12726_v34 = vpop.f32.mrf.mxu0  ;;  %v4416_v37 = vsel %vm4390_vm9, %v4383_v57, %v8610_v53 }
 0x59e   : > { %4623 = vmatmul.f32.gmra.mxu0 %v4413_v21  ;;  %v15768_v21 = vld [vmem:[#allocation73_spill] sm:$0xff] }
 0x59f   : > { %v8244_v33 = vunpack.i.l.bf16 %v15768_v21 }
 0x5a3   : > { %v4579_v31 = vpop.f32.mrf.mxu0 }
 0x5a4   : > { %v4580_v15 = vadd.f32 %v12741_v25, %v4579_v31  ;;  %v4252_v31 = vsel %vm4225_vm4, %v4219_v5, %v8244_v33  ;;  %v8633_v5 = vpop.permute.xlu2 %8632 }
 0x5a5   : > { %v8634_v49 = vunpack.i.l.bf16 %v8633_v5 }
 0x5a6   : > { %v4693_v0 = vadd.f32 %v12688_v60, %v4580_v15  ;;  %4626 = vmatmul.f32.gmra.mxu0 %v4414_v56  ;;  %v4704_v56 = vpop.f32.mrf.mxu1 }
 0x5a8   : > { %v4774_v52 = vmax.f32 %v4693_v0, 0.0  ;;  %v8245_v0 = vunpack.i.h.bf16 %v15768_v21  ;;  %v15774_v21 = vld [vmem:[#allocation102_spill] sm:$0xff] }
 0x5a9   : > { %v8409_v33 = vunpack.i.l.bf16 %v15774_v21  ;;  %v8410_v46 = vunpack.i.h.bf16 %v15774_v21 }
 0x5aa   : > { %4862 = vst.msk [vmem:[#allocation4 + $0x69] sm:$0xff] %vm4225_vm4, %v4774_v52  ;;  %v8405_v52 = vunpack.i.h.bf16 %v15770_v48 }
 0x5ab   : > { %v4582_v60 = vpop.f32.mrf.mxu0 }
 0x5ac   : > { %v4583_v27 = vadd.f32 %v12741_v25, %v4582_v60  ;;  %v4253_v60 = vsel %vm4225_vm4, %v4220_v36, %v8245_v0  ;;  %v15775_v36 = vld [vmem:[#allocation69_spill] sm:$0xff] }
 0x5ae   : > { %v4696_v45 = vadd.f32 %v4695_v11, %v4583_v27  ;;  %4629 = vmatmul.f32.gmra.mxu0 %v4415_v20  ;;  %v8324_v11 = vunpack.i.l.bf16 %v15769_v14  ;;  %v8625_v20 = vunpack.i.h.bf16 %v8623_v47  ;;  %v4707_v13 = vpop.f32.mrf.mxu1 }
 0x5b0   : > { %v4775_v32 = vmax.f32 %v4696_v45, 0.0  ;;  %v4285_v15 = vsel %vm4258_vm5, %v4252_v31, %v8324_v11  ;;  %v15772_v45 = vld [vmem:[#allocation57_spill] sm:$0xff]  ;;  %v8170_v31 = vunpack.i.h.bf16 %v15771_v8  ;;  %v15777_v8 = vld [vmem:[#allocation91_spill] sm:$0xff] }
 0x5b1   : > { %v4318_v26 = vsel %vm4291_vm6, %v4285_v15, %v8404_v43  ;;  %v8249_v24 = vunpack.i.l.bf16 %v15772_v45  ;;  %v8250_v15 = vunpack.i.h.bf16 %v15772_v45 }
 0x5b2   : > { %4863 = vst.msk [vmem:[#allocation4 + $0x79] sm:$0xff] %vm4225_vm4, %v4775_v32  ;;  %v4351_v59 = vsel %vm4324_vm7, %v4318_v26, %v8614_v38  ;;  %v8628_v32 = vpop.permute.xlu1 %8627 }
 0x5b3   : > { %v4585_v35 = vpop.f32.mrf.mxu0  ;;  %v4384_v1 = vsel %vm4357_vm8, %v4351_v59, %v8619_v39  ;;  %v9177_v59 = vld [vmem:[#allocation3 + $0x158] sm:$0xff]  ;;  %v8630_v30 = vunpack.i.h.bf16 %v8628_v32 }
 0x5b4   : > { %v4586_v55 = vadd.f32 %v12741_v25, %v4585_v35  ;;  %v4417_v19 = vsel %vm4390_vm9, %v4384_v1, %v8624_v44  ;;  %v8629_v35 = vunpack.i.l.bf16 %v8628_v32  ;;  %v4222_v0 = vsel %vm2919_vm2, %v9177_v59, %v8170_v31  ;;  %v9178_v32 = vld [vmem:[#allocation3 + $0x168] sm:$0xff] }
 0x5b6   : > { %v4699_v42 = vadd.f32 %v4698_v3, %v4586_v55  ;;  %4632 = vmatmul.f32.gmra.mxu0 %v4416_v37  ;;  %v8325_v3 = vunpack.i.h.bf16 %v15769_v14  ;;  %v9176_v14 = vld [vmem:[#allocation3 + $0x150] sm:$0xff]  ;;  %v8638_v55 = vpop.permute.xlu0 %8637  ;;  %v4710_v39 = vpop.f32.mrf.mxu1 }
 0x5b7   : > { %v4221_v11 = vsel %vm2919_vm2, %v9176_v14, %v8169_v61  ;;  %v8639_v47 = vunpack.i.l.bf16 %v8638_v55  ;;  %v8334_v61 = vunpack.i.l.bf16 %v15777_v8 }
 0x5b8   : > { %v4776_v12 = vmax.f32 %v4699_v42, 0.0  ;;  %v4286_v27 = vsel %vm4258_vm5, %v4253_v60, %v8325_v3  ;;  %v4254_v43 = vsel %vm4225_vm4, %v4221_v11, %v8249_v24 }
 0x5b9   : > { %v4319_v6 = vsel %vm4291_vm6, %v4286_v27, %v8405_v52 }
 0x5ba   : > { %4864 = vst.msk [vmem:[#allocation4 + $0x81] sm:$0xff] %vm4225_vm4, %v4776_v12  ;;  %v4352_v50 = vsel %vm4324_vm7, %v4319_v6, %v8615_v2  ;;  %v8174_v2 = vunpack.i.l.bf16 %v15775_v36  ;;  %v8635_v6 = vunpack.i.h.bf16 %v8633_v5 }
 0x5bb   : > { %v4588_v16 = vpop.f32.mrf.mxu0  ;;  %v4385_v22 = vsel %vm4357_vm8, %v4352_v50, %v8620_v9  ;;  %v15778_v50 = vld [vmem:[#allocation100_spill] sm:$0xff] }
 0x5bc   : > { %v4589_v29 = vadd.f32 %v12741_v25, %v4588_v16  ;;  %v4418_v48 = vsel %vm4390_vm9, %v4385_v22, %v8625_v20  ;;  %v4255_v16 = vsel %vm4225_vm4, %v4222_v0, %v8250_v15  ;;  %v8414_v45 = vunpack.i.l.bf16 %v15778_v50 }
 0x5bd   : > { %v4223_v54 = vsel %vm2919_vm2, %v9178_v32, %v8174_v2 }
 0x5be   : > { %v4702_v41 = vadd.f32 %v4701_v23, %v4589_v29  ;;  %4635 = vmatmul.f32.gmra.mxu0 %v4417_v19  ;;  %v15773_v23 = vld [vmem:[#allocation87_spill] sm:$0xff]  ;;  %v8640_v19 = vunpack.i.h.bf16 %v8638_v55  ;;  %v8653_v21 = vpop.permute.xlu0 %8652 }
 0x5bf   : > { %v8329_v53 = vunpack.i.l.bf16 %v15773_v23  ;;  %v8330_v26 = vunpack.i.h.bf16 %v15773_v23  ;;  %v8648_v23 = vpop.permute.xlu2 %8647 }
 0x5c0   : > { %v4777_v51 = vmax.f32 %v4702_v41, 0.0  ;;  %v15776_v41 = vld [vmem:[#allocation61_spill] sm:$0xff]  ;;  %v8649_v11 = vunpack.i.l.bf16 %v8648_v23 }
 0x5c1   : > { %v4287_v58 = vsel %vm4258_vm5, %v4254_v43, %v8329_v53  ;;  %v4288_v29 = vsel %vm4258_vm5, %v4255_v16, %v8330_v26  ;;  %v8254_v27 = vunpack.i.l.bf16 %v15776_v41  ;;  %v8654_v43 = vunpack.i.l.bf16 %v8653_v21 }
 0x5c2   : > { %4865 = vst.msk [vmem:[#allocation4 + $0x91] sm:$0xff] %vm4225_vm4, %v4777_v51  ;;  %v4320_v38 = vsel %vm4291_vm6, %v4287_v58, %v8409_v33  ;;  %v4321_v1 = vsel %vm4291_vm6, %v4288_v29, %v8410_v46  ;;  %v8643_v51 = vpop.permute.xlu1 %8642  ;;  %v8335_v58 = vunpack.i.h.bf16 %v15777_v8 }
 0x5c3   : > { %v4591_v40 = vpop.f32.mrf.mxu0  ;;  %v4353_v42 = vsel %vm4324_vm7, %v4320_v38, %v8629_v35  ;;  %v4354_v60 = vsel %vm4324_vm7, %v4321_v1, %v8630_v30  ;;  %v8415_v38 = vunpack.i.h.bf16 %v15778_v50  ;;  %v8645_v15 = vunpack.i.h.bf16 %v8643_v51 }
 0x5c4   : > { %v4592_v7 = vadd.f32 %v12741_v25, %v4591_v40  ;;  %v4386_v44 = vsel %vm4357_vm8, %v4353_v42, %v8634_v49  ;;  %v4387_v9 = vsel %vm4357_vm8, %v4354_v60, %v8635_v6  ;;  %v4256_v40 = vsel %vm4225_vm4, %v4223_v54, %v8254_v27  ;;  %v4725_v60 = vpop.f32.mrf.mxu2  ;;  %v3267_v54 = vld [vmem:[#allocation3 + $0x4a] sm:$0xff] }
 0x5c5   : > { %v4419_v3 = vsel %vm4390_vm9, %v4386_v44, %v8639_v47  ;;  %v4420_v53 = vsel %vm4390_vm9, %v4387_v9, %v8640_v19  ;;  %v4289_v22 = vsel %vm4258_vm5, %v4256_v40, %v8334_v61  ;;  %v9179_v47 = vld [vmem:[#allocation3 + $0x170] sm:$0xff]  ;;  %v8650_v44 = vunpack.i.h.bf16 %v8648_v23 }
 0x5c6   : > { %v4705_v57 = vadd.f32 %v4704_v56, %v4592_v7  ;;  %4638 = vmatmul.f32.gmra.mxu0 %v4418_v48  ;;  %v4713_v7 = vpop.f32.mrf.mxu1  ;;  %v4322_v14 = vsel %vm4291_vm6, %v4289_v22, %v8414_v45  ;;  %v8175_v48 = vunpack.i.h.bf16 %v15775_v36 }
 0x5c8   : > { %v4778_v37 = vmax.f32 %v4705_v57, 0.0  ;;  %v8255_v57 = vunpack.i.h.bf16 %v15776_v41  ;;  %v4224_v42 = vsel %vm2919_vm2, %v9179_v47, %v8175_v48  ;;  %v3265_v41 = vld [vmem:[#allocation3 + $0x32] sm:$0xff]  ;;  %v3269_v48 = vld [vmem:[#allocation3 + $0x62] sm:$0xff] }
 0x5ca   : > { %4866 = vst.msk [vmem:[#allocation4 + $0x99] sm:$0xff] %vm4225_vm4, %v4778_v37  ;;  %v4257_v26 = vsel %vm4225_vm4, %v4224_v42, %v8255_v57 }
 0x5cb   : > { %v4594_v12 = vpop.f32.mrf.mxu0  ;;  %v4290_v46 = vsel %vm4258_vm5, %v4257_v26, %v8335_v58 }
 0x5cc   : > { %v4595_v56 = vadd.f32 %v12741_v25, %v4594_v12  ;;  %v4728_v45 = vpop.f32.mrf.mxu2 }
 0x5ce   : > { %v4708_v52 = vadd.f32 %v4707_v13, %v4595_v56  ;;  %4641 = vmatmul.f32.gmra.mxu0 %v4419_v3  ;;  %v8644_v13 = vunpack.i.l.bf16 %v8643_v51  ;;  %v4323_v56 = vsel %vm4291_vm6, %v4290_v46, %v8415_v38  ;;  %v4716_v0 = vpop.f32.mrf.mxu1  ;;  %v3270_v38 = vld [vmem:[#allocation3 + $0x6a] sm:$0xff] }
 0x5cf   : > { %v4356_v30 = vsel %vm4324_vm7, %v4323_v56, %v8645_v15  ;;  %v3271_v15 = vld [vmem:[#allocation3 + $0x7a] sm:$0xff] }
 0x5d0   : > { %v4779_v4 = vmax.f32 %v4708_v52, 0.0  ;;  %v4355_v55 = vsel %vm4324_vm7, %v4322_v14, %v8644_v13  ;;  %v4389_v52 = vsel %vm4357_vm8, %v4356_v30, %v8650_v44 }
 0x5d1   : > { %v4388_v31 = vsel %vm4357_vm8, %v4355_v55, %v8649_v11 }
 0x5d2   : > { %4867 = vst.msk [vmem:[#allocation4 + $0xa9] sm:$0xff] %vm4225_vm4, %v4779_v4  ;;  %v4421_v49 = vsel %vm4390_vm9, %v4388_v31, %v8654_v43 }
 0x5d3   : > { %v4597_v20 = vpop.f32.mrf.mxu0 }
 0x5d4   : > { %v4598_v24 = vadd.f32 %v12741_v25, %v4597_v20  ;;  %v3266_v20 = vld [vmem:[#allocation3 + $0x3a] sm:$0xff] }
 0x5d6   : > { %v4711_v33 = vadd.f32 %v4710_v39, %v4598_v24  ;;  %4644 = vmatmul.f32.gmra.mxu0 %v4420_v53  ;;  %v8655_v39 = vunpack.i.h.bf16 %v8653_v21  ;;  %v4719_v36 = vpop.f32.mrf.mxu1  ;;  %v4731_v53 = vpop.f32.mrf.mxu2 }
 0x5d8   : > { %v4780_v35 = vmax.f32 %v4711_v33, 0.0  ;;  %v4422_v29 = vsel %vm4390_vm9, %v4389_v52, %v8655_v39  ;;  %v3268_v33 = vld [vmem:[#allocation3 + $0x52] sm:$0xff] }
 0x5da   : > { %4868 = vst.msk [vmem:[#allocation4 + $0xb1] sm:$0xff] %vm4225_vm4, %v4780_v35 }
 0x5db   : > { %v4600_v5 = vpop.f32.mrf.mxu0 }
 0x5dc   : > { %v4601_v37 = vadd.f32 %v12741_v25, %v4600_v5 }
 0x5de   : > { %v4714_v12 = vadd.f32 %v4713_v7, %v4601_v37  ;;  %4647 = vmatmul.f32.gmra.mxu0 %v4421_v49  ;;  %v4722_v61 = vpop.f32.mrf.mxu1  ;;  %v4734_v14 = vpop.f32.mrf.mxu2 }
 0x5e0   : > { %v4781_v59 = vmax.f32 %v4714_v12, 0.0 }
 0x5e2   : > { %4869 = vst.msk [vmem:[#allocation4 + $0xc1] sm:$0xff] %vm4225_vm4, %v4781_v59 }
 0x5e3   : > { %v4603_v3 = vpop.f32.mrf.mxu0 }
 0x5e4   : > { %v4604_v16 = vadd.f32 %v12741_v25, %v4603_v3 }
 0x5e6   : > { %v4717_v1 = vadd.f32 %v4716_v0, %v4604_v16  ;;  %4650 = vmatmul.f32.gmra.mxu0 %v4422_v29  ;;  %v4737_v5 = vpop.f32.mrf.mxu2 }
 0x5e8   : > { %v4782_v4 = vmax.f32 %v4717_v1, 0.0 }
 0x5ea   : > { %4870 = vst.msk [vmem:[#allocation4 + $0xc9] sm:$0xff] %vm4225_vm4, %v4782_v4 }
 0x5eb   : > { %v4606_v2 = vpop.f32.mrf.mxu0 }
 0x5ec   : > { %v4607_v19 = vadd.f32 %v12741_v25, %v4606_v2 }
 0x5ee   : > { %v4720_v27 = vadd.f32 %v4719_v36, %v4607_v19  ;;  %7951 = vmatmul.msk.f32.vlgmr.msrb.gmra.mxu0 %vm2919_vm2, %v3265_v41  ;;  %v4740_v26 = vpop.f32.mrf.mxu2 }
 0x5f0   : > { %v4783_v6 = vmax.f32 %v4720_v27, 0.0 }
 0x5f2   : > { %4871 = vst.msk [vmem:[#allocation4 + $0xd9] sm:$0xff] %vm4225_vm4, %v4783_v6 }
 0x5f3   : > { %v4609_v51 = vpop.f32.mrf.mxu0 }
 0x5f4   : > { %v4610_v8 = vadd.f32 %v12741_v25, %v4609_v51 }
 0x5f6   : > { %v4723_v50 = vadd.f32 %v4722_v61, %v4610_v8  ;;  %7952 = vmatmul.msk.f32.gmra.mxu0 %vm2919_vm2, %v3266_v20  ;;  %v4743_v0 = vpop.f32.mrf.mxu2 }
 0x5f8   : > { %v4784_v24 = vmax.f32 %v4723_v50, 0.0 }
 0x5fa   : > { %4872 = vst.msk [vmem:[#allocation4 + $0xe1] sm:$0xff] %vm4225_vm4, %v4784_v24 }
 0x5fb   : > { %v4612_v9 = vpop.f32.mrf.mxu0 }
 0x5fc   : > { %v4613_v32 = vadd.f32 %v12741_v25, %v4612_v9 }
 0x5fe   : > { %v4726_v13 = vadd.f32 %v4725_v60, %v4613_v32  ;;  %7953 = vmatmul.msk.f32.gmra.mxu0 %vm2919_vm2, %v3267_v54  ;;  %v4746_v52 = vpop.f32.mrf.mxu2  ;;  %v4752_v60 = vpop.f32.mrf.mxu3 }
 0x600   : > { %v4785_v23 = vmax.f32 %v4726_v13, 0.0 }
 0x602   : > { %4873 = vst.msk [vmem:[#allocation4 + $0xf1] sm:$0xff] %vm4225_vm4, %v4785_v23 }
 0x603   : > { %v4615_v40 = vpop.f32.mrf.mxu0 }
 0x604   : > { %v4616_v21 = vadd.f32 %v12741_v25, %v4615_v40 }
 0x606   : > { %v4729_v7 = vadd.f32 %v4728_v45, %v4616_v21  ;;  %7954 = vmatmul.msk.f32.gmra.mxu0 %vm2919_vm2, %v3268_v33  ;;  %v4749_v41 = vpop.f32.mrf.mxu2  ;;  %v4755_v20 = vpop.f32.mrf.mxu3 }
 0x608   : > { %v4786_v22 = vmax.f32 %v4729_v7, 0.0 }
 0x60a   : > { %4874 = vst.msk [vmem:[#allocation4 + $0xf9] sm:$0xff] %vm4225_vm4, %v4786_v22 }
 0x60b   : > { %v4618_v11 = vpop.f32.mrf.mxu0 }
 0x60c   : > { %v4619_v35 = vadd.f32 %v12741_v25, %v4618_v11 }
 0x60e   : > { %v4732_v43 = vadd.f32 %v4731_v53, %v4619_v35  ;;  %7955 = vmatmul.msk.f32.gmra.mxu0 %vm2919_vm2, %v3269_v48  ;;  %v4758_v54 = vpop.f32.mrf.mxu3 }
 0x610   : > { %v4787_v55 = vmax.f32 %v4732_v43, 0.0 }
 0x612   : > { %4875 = vst.msk [vmem:[#allocation4 + $0x109] sm:$0xff] %vm4225_vm4, %v4787_v55 }
 0x613   : > { %v4621_v57 = vpop.f32.mrf.mxu0 }
 0x614   : > { %v4622_v58 = vadd.f32 %v12741_v25, %v4621_v57  ;;  %v12893_v57 = vld [vmem:[%s15080_s7 + $0x118] sm:$0xff] }
 0x615   : > { %6510 = vmatpush.msrb.mxu1 %v12893_v57 }
 0x616   : > { %v4735_v37 = vadd.f32 %v4734_v14, %v4622_v58  ;;  %7956 = vmatmul.msk.f32.gmra.mxu0 %vm2919_vm2, %v3270_v38  ;;  %v4761_v21 = vpop.f32.mrf.mxu3  ;;  %v4559_v58 = vadd.f32 %v12741_v25, %v12610_v28  ;;  %v4562_v28 = vadd.f32 %v12741_v25, %v12623_v10  ;;  %v4565_v10 = vadd.f32 %v12741_v25, %v12636_v63 }
 0x617   : > { %v4571_v63 = vadd.f32 %v12741_v25, %v12666_v17 }
 0x618   : > { %v4788_v31 = vmax.f32 %v4735_v37, 0.0 }
 0x61a   : > { %4876 = vst.msk [vmem:[#allocation4 + $0x111] sm:$0xff] %vm4225_vm4, %v4788_v31  ;;  %v12903_v31 = vld [vmem:[%s15080_s7 + $0x110] sm:$0xff] }
 0x61b   : > { %v4624_v47 = vpop.f32.mrf.mxu0  ;;  %6511 = vmatpush.msrb.mxu1 %v12903_v31 }
 0x61c   : > { %v4625_v42 = vadd.f32 %v12741_v25, %v4624_v47  ;;  %v12908_v47 = vld [vmem:[%s15080_s7 + $0x108] sm:$0xff] }
 0x61d   : > { %6512 = vmatpush.msrb.mxu1 %v12908_v47 }
 0x61e   : > { %v4738_v49 = vadd.f32 %v4737_v5, %v4625_v42  ;;  %7957 = vmatmul.msk.f32.gmra.mxu0 %vm2919_vm2, %v3271_v15  ;;  %v4764_v35 = vpop.f32.mrf.mxu3  ;;  %v12916_v42 = vld [vmem:[%s15080_s7 + $0x100] sm:$0xff] }
 0x61f   : > { %6513 = vmatpush.msrb.mxu1 %v12916_v42 }
 0x620   : > { %v4789_v12 = vmax.f32 %v4738_v49, 0.0 }
 0x622   : > { %4877 = vst.msk [vmem:[#allocation4 + $0x121] sm:$0xff] %vm4225_vm4, %v4789_v12  ;;  %v4919_v12 = vld [vmem:[#allocation4 + $0x1] sm:$0xff] }
 0x623   : > { %v4627_v46 = vpop.f32.mrf.mxu0 }
 0x624   : > { %v4628_v56 = vadd.f32 %v12741_v25, %v4627_v46  ;;  %v4920_v46 = vld [vmem:[#allocation4 + $0x9] sm:$0xff] }
 0x626   : > { %v4741_v44 = vadd.f32 %v4740_v26, %v4628_v56  ;;  %v8656_v56 = vpack.i.bf16 %v4920_v46, %v4919_v12  ;;  %v13016_v46 = vld [vmem:[#allocation4 + $0xf9] sm:$0xff] }
 0x628   : > { %v4790_v59 = vmax.f32 %v4741_v44, 0.0  ;;  %8657 = vrot.lane.b32.xlu1 %v8656_v56, %s9289_s30 }
 0x62a   : > { %4878 = vst.msk [vmem:[#allocation4 + $0x129] sm:$0xff] %vm4225_vm4, %v4790_v59 }
 0x62b   : > { %v4630_v39 = vpop.f32.mrf.mxu0 }
 0x62c   : > { %v4631_v30 = vadd.f32 %v12741_v25, %v4630_v39 }
 0x62e   : > { %v4744_v3 = vadd.f32 %v4743_v0, %v4631_v30 }
 0x630   : > { %v4791_v16 = vmax.f32 %v4744_v3, 0.0 }
 0x631   : > { %v13018_v56 = vld [vmem:[#allocation4 + $0x129] sm:$0xff] }
 0x632   : > { %4879 = vst.msk [vmem:[#allocation4 + $0x139] sm:$0xff] %vm4225_vm4, %v4791_v16  ;;  %v4568_v16 = vadd.f32 %v12741_v25, %v12649_v18 }
 0x633   : > { %v4633_v29 = vpop.f32.mrf.mxu0 }
 0x634   : > { %v4634_v1 = vadd.f32 %v12741_v25, %v4633_v29 }
 0x636   : > { %v4747_v4 = vadd.f32 %v4746_v52, %v4634_v1 }
 0x638   : > { %v4792_v36 = vmax.f32 %v4747_v4, 0.0 }
 0x63a   : > { %4880 = vst.msk [vmem:[#allocation4 + $0x141] sm:$0xff] %vm4225_vm4, %v4792_v36 }
 0x63b   : > { %v4636_v2 = vpop.f32.mrf.mxu0 }
 0x63c   : > { %v4637_v19 = vadd.f32 %v12741_v25, %v4636_v2 }
 0x63e   : > { %v4750_v27 = vadd.f32 %v4749_v41, %v4637_v19 }
 0x640   : > { %v4793_v6 = vmax.f32 %v4750_v27, 0.0  ;;  %v4574_v27 = vadd.f32 %v12741_v25, %v12697_v62 }
 0x642   : > { %4881 = vst.msk [vmem:[#allocation4 + $0x151] sm:$0xff] %vm4225_vm4, %v4793_v6 }
 0x643   : > { %v4639_v51 = vpop.f32.mrf.mxu0 }
 0x644   : > { %v4640_v8 = vadd.f32 %v12741_v25, %v4639_v51  ;;  %v12942_v51 = vld [vmem:[#allocation4 + $0x81] sm:$0xff] }
 0x646   : > { %v4753_v61 = vadd.f32 %v4752_v60, %v4640_v8 }
 0x648   : > { %v4794_v50 = vmax.f32 %v4753_v61, 0.0 }
 0x64a   : > { %4882 = vst.msk [vmem:[#allocation4 + $0x159] sm:$0xff] %vm4225_vm4, %v4794_v50  ;;  %v4577_v50 = vadd.f32 %v12741_v25, %v12726_v34 }
 0x64b   : > { %v4642_v45 = vpop.f32.mrf.mxu0 }
 0x64c   : > { %v4643_v24 = vadd.f32 %v12741_v25, %v4642_v45 }
 0x64e   : > { %v4756_v9 = vadd.f32 %v4755_v20, %v4643_v24  ;;  %v12946_v20 = vld [vmem:[#allocation4 + $0x79] sm:$0xff] }
 0x64f   : > { %v8681_v62 = vpack.i.bf16 %v12942_v51, %v12946_v20 }
 0x650   : > { %v4795_v32 = vmax.f32 %v4756_v9, 0.0  ;;  %v12956_v9 = vld [vmem:[#allocation4 + $0xc9] sm:$0xff] }
 0x652   : > { %4883 = vst.msk [vmem:[#allocation4 + $0x169] sm:$0xff] %vm4225_vm4, %v4795_v32 }
 0x653   : > { %v4645_v13 = vpop.f32.mrf.mxu0 }
 0x654   : > { %v4646_v23 = vadd.f32 %v12741_v25, %v4645_v13 }
 0x656   : > { %v4759_v53 = vadd.f32 %v4758_v54, %v4646_v23  ;;  %v12958_v54 = vld [vmem:[#allocation4 + $0xc1] sm:$0xff] }
 0x658   : > { %v4796_v40 = vmax.f32 %v4759_v53, 0.0 }
 0x65a   : > { %4884 = vst.msk [vmem:[#allocation4 + $0x171] sm:$0xff] %vm4225_vm4, %v4796_v40  ;;  %v12975_v40 = vld [vmem:[#allocation4 + $0x99] sm:$0xff] }
 0x65b   : > { %v4648_v33 = vpop.f32.mrf.mxu0 }
 0x65c   : > { %v4649_v7 = vadd.f32 %v12741_v25, %v4648_v33  ;;  %v12979_v33 = vld [vmem:[#allocation4 + $0x111] sm:$0xff] }
 0x65e   : > { %v4762_v22 = vadd.f32 %v4761_v21, %v4649_v7  ;;  %v12977_v21 = vld [vmem:[#allocation4 + $0x69] sm:$0xff] }
 0x660   : > { %v4797_v14 = vmax.f32 %v4762_v22, 0.0 }
 0x662   : > { %4885 = vst.msk [vmem:[#allocation4 + $0x181] sm:$0xff] %vm4225_vm4, %v4797_v14  ;;  %v12985_v14 = vld [vmem:[#allocation4 + $0x91] sm:$0xff] }
 0x663   : > { %v4651_v11 = vpop.f32.mrf.mxu0 }
 0x664   : > { %v4652_v48 = vadd.f32 %v12741_v25, %v4651_v11  ;;  %v8696_v25 = vpack.i.bf16 %v12956_v9, %v12958_v54 }
 0x666   : > { %v4765_v43 = vadd.f32 %v4764_v35, %v4652_v48  ;;  %v8686_v35 = vpack.i.bf16 %v12975_v40, %v12985_v14  ;;  %v12993_v48 = vld [vmem:[#allocation4 + $0x109] sm:$0xff] }
 0x668   : > { %v4798_v55 = vmax.f32 %v4765_v43, 0.0  ;;  %v8711_v43 = vpack.i.bf16 %v12979_v33, %v12993_v48 }
 0x66a   : > { %4886 = vst.msk [vmem:[#allocation4 + $0x189] sm:$0xff] %vm4225_vm4, %v4798_v55  ;;  %v13000_v55 = vld [vmem:[#allocation4 + $0xb1] sm:$0xff] }
 0x66b   : > { %v4671_v5 = vpop.f32.mrf.mxu0 }
 0x66c   : > { %v4672_v38 = vadd.f32 %v4671_v5, %v4559_v58  ;;  %v13002_v58 = vld [vmem:[#allocation4 + $0xe1] sm:$0xff]  ;;  %v4948_v5 = vld [vmem:[#allocation4 + $0x159] sm:$0xff] }
 0x66e   : > { %v4767_v37 = vmax.f32 %v4672_v38, 0.0 }
 0x670   : > { %4855 = vst.msk [vmem:[#allocation4 + $0x19] sm:$0xff] %vm4225_vm4, %v4767_v37  ;;  %v13004_v37 = vld [vmem:[#allocation4 + $0xa9] sm:$0xff] }
 0x673   : > { %v4674_v15 = vpop.f32.mrf.mxu0 }
 0x674   : > { %v4675_v49 = vadd.f32 %v4674_v15, %v4562_v28  ;;  %v13006_v28 = vld [vmem:[#allocation4 + $0xd9] sm:$0xff]  ;;  %v8691_v15 = vpack.i.bf16 %v13000_v55, %v13004_v37 }
 0x676   : > { %v4768_v26 = vmax.f32 %v4675_v49, 0.0  ;;  %v8701_v49 = vpack.i.bf16 %v13002_v58, %v13006_v28 }
 0x677   : > { %v4921_v39 = vld [vmem:[#allocation4 + $0x19] sm:$0xff] }
 0x678   : > { %4856 = vst.msk [vmem:[#allocation4 + $0x21] sm:$0xff] %vm4225_vm4, %v4768_v26  ;;  %v4947_v26 = vld [vmem:[#allocation4 + $0x151] sm:$0xff] }
 0x679   : > { %v8726_v12 = vpack.i.bf16 %v4948_v5, %v4947_v26  ;;  %v4969_v5 = vld [vmem:[#allocation4 + $0xda] sm:$0xff] }
 0x67b   : > { %v4677_v44 = vpop.f32.mrf.mxu0 }
 0x67c   : > { %v4678_v59 = vadd.f32 %v4677_v44, %v4565_v10 }
 0x67e   : > { %v4769_v0 = vmax.f32 %v4678_v59, 0.0  ;;  %v5149_v59 = vld [vmem:[#allocation4 + $0x6a] sm:$0xff] }
 0x67f   : > { %v4922_v30 = vld [vmem:[#allocation4 + $0x21] sm:$0xff] }
 0x680   : > { %4857 = vst.msk [vmem:[#allocation4 + $0x31] sm:$0xff] %vm4225_vm4, %v4769_v0  ;;  %v8661_v3 = vpack.i.bf16 %v4922_v30, %v4921_v39  ;;  %v4953_v10 = vld [vmem:[#allocation4 + $0x1a] sm:$0xff]  ;;  %v4954_v44 = vld [vmem:[#allocation4 + $0x22] sm:$0xff]  ;;  %v13020_v0 = vld [vmem:[#allocation4 + $0xf1] sm:$0xff] }
 0x681   : > { %v13022_v39 = vld [vmem:[#allocation4 + $0x121] sm:$0xff]  ;;  %v8706_v30 = vpack.i.bf16 %v13016_v46, %v13020_v0 }
 0x682   : > { %8662 = vrot.lane.b32.xlu2 %v8661_v3, %s9289_s30  ;;  %v8716_v3 = vpack.i.bf16 %v13018_v56, %v13022_v39 }
 0x683   : > { %v4680_v52 = vpop.f32.mrf.mxu0 }
 0x684   : > { %v4681_v29 = vadd.f32 %v4680_v52, %v4568_v16  ;;  %v8741_v16 = vpack.i.bf16 %v4954_v44, %v4953_v10  ;;  %v13032_v52 = vld [vmem:[#allocation4 + $0x141] sm:$0xff]  ;;  %v13099_v10 = vld [vmem:[#allocation4 + $0x18] sm:$0xff] }
 0x686   : > { %v4770_v1 = vmax.f32 %v4681_v29, 0.0  ;;  %v13034_v29 = vld [vmem:[#allocation4 + $0x171] sm:$0xff] }
 0x687   : > { %v4923_v60 = vld [vmem:[#allocation4 + $0x31] sm:$0xff] }
 0x688   : > { %4858 = vst.msk [vmem:[#allocation4 + $0x39] sm:$0xff] %vm4225_vm4, %v4770_v1  ;;  %v5150_v1 = vld [vmem:[#allocation4 + $0x7a] sm:$0xff] }
 0x68b   : > { %v4683_v4 = vpop.f32.mrf.mxu0 }
 0x68c   : > { %v4684_v36 = vadd.f32 %v4683_v4, %v4571_v63  ;;  %v13036_v63 = vld [vmem:[#allocation4 + $0x139] sm:$0xff]  ;;  %v13038_v4 = vld [vmem:[#allocation4 + $0x169] sm:$0xff] }
 0x68e   : > { %v4771_v2 = vmax.f32 %v4684_v36, 0.0  ;;  %v8721_v36 = vpack.i.bf16 %v13032_v52, %v13036_v63 }
 0x68f   : > { %v12931_v19 = vld [vmem:[#allocation4 + $0x32] sm:$0xff]  ;;  %v12944_v61 = vld [vmem:[#allocation4 + $0x3a] sm:$0xff] }
 0x690   : > { %v4924_v41 = vld [vmem:[#allocation4 + $0x39] sm:$0xff]  ;;  %4859 = vst.msk [vmem:[#allocation4 + $0x49] sm:$0xff] %vm4225_vm4, %v4771_v2  ;;  %7983 = vmatmul.msk.f32.vlgmr.msrb.gmra.mxu1 %vm4225_vm4, %v12931_v19  ;;  %v8731_v2 = vpack.i.bf16 %v13034_v29, %v13038_v4 }
 0x691   : > { %v12936_v18 = vpack.i.bf16 %v4924_v41, %v4923_v60  ;;  %v4951_v41 = vld [vmem:[#allocation4 + $0x2] sm:$0xff] }
 0x693   : > { %8667 = vrot.lane.b32.xlu0 %v12936_v18, %s9289_s30  ;;  %v4686_v17 = vpop.f32.mrf.mxu0 }
 0x694   : > { %v4687_v6 = vadd.f32 %v4686_v17, %v4574_v27  ;;  %v4952_v27 = vld [vmem:[#allocation4 + $0xa] sm:$0xff] }
 0x695   : > { %v8736_v17 = vpack.i.bf16 %v4952_v27, %v4951_v41 }
 0x696   : > { %v4772_v8 = vmax.f32 %v4687_v6, 0.0  ;;  %v4965_v6 = vld [vmem:[#allocation4 + $0xaa] sm:$0xff] }
 0x697   : > { %v12962_v23 = vld [vmem:[#allocation4 + $0x49] sm:$0xff] }
 0x698   : > { %4860 = vst.msk [vmem:[#allocation4 + $0x51] sm:$0xff] %vm4225_vm4, %v4772_v8  ;;  %7984 = vmatmul.msk.f32.gmra.mxu1 %vm4225_vm4, %v12944_v61  ;;  %v4966_v8 = vld [vmem:[#allocation4 + $0xb2] sm:$0xff]  ;;  %v8816_v44 = vpack.i.bf16 %v12962_v23, %v13099_v10 }
 0x69b   : > { %8682 = vrot.lane.b32.xlu0 %v8681_v62, %s9289_s30  ;;  %v4689_v45 = vpop.f32.mrf.mxu0  ;;  %v5151_v62 = vld [vmem:[#allocation4 + $0x82] sm:$0xff] }
 0x69c   : > { %v4690_v24 = vadd.f32 %v4689_v45, %v4577_v50  ;;  %v8746_v50 = vpack.i.bf16 %v12944_v61, %v12931_v19  ;;  %v13054_v45 = vpack.i.bf16 %v4966_v8, %v4965_v6  ;;  %v13067_v19 = vpack.i.bf16 %v5151_v62, %v5150_v1 }
 0x69e   : > { %v4773_v32 = vmax.f32 %v4690_v24, 0.0  ;;  %v13060_v24 = vld [vmem:[#allocation4 + $0xf2] sm:$0xff] }
 0x69f   : > { %v12960_v13 = vld [vmem:[#allocation4 + $0x4a] sm:$0xff]  ;;  %v12981_v7 = vld [vmem:[#allocation4 + $0x52] sm:$0xff] }
 0x6a0   : > { %v12964_v53 = vld [vmem:[#allocation4 + $0x51] sm:$0xff]  ;;  %4861 = vst.msk [vmem:[#allocation4 + $0x61] sm:$0xff] %vm4225_vm4, %v4773_v32  ;;  %7985 = vmatmul.msk.f32.gmra.mxu1 %vm4225_vm4, %v12960_v13  ;;  %v13062_v32 = vld [vmem:[#allocation4 + $0xfa] sm:$0xff] }
 0x6a1   : > { %v8671_v34 = vpack.i.bf16 %v12964_v53, %v12962_v23  ;;  %v13071_v61 = vpack.i.bf16 %v13062_v32, %v13060_v24  ;;  %v5082_v23 = vld [vmem:[#allocation4 + $0x48] sm:$0xff] }
 0x6a3   : > { %8672 = vrot.lane.b32.xlu1 %v8671_v34, %s9289_s30  ;;  %8697 = vrot.lane.b32.xlu0 %v8696_v25, %s9289_s30  ;;  %v5152_v34 = vld [vmem:[#allocation4 + $0x92] sm:$0xff]  ;;  %v8751_v25 = vpack.i.bf16 %v12981_v7, %v12960_v13 }
 0x6a7   : > { %v12983_v22 = vld [vmem:[#allocation4 + $0x61] sm:$0xff] }
 0x6a8   : > { %7986 = vmatmul.msk.f32.gmra.mxu1 %vm4225_vm4, %v12981_v7  ;;  %v8676_v11 = vpack.i.bf16 %v12977_v21, %v12983_v22  ;;  %v5148_v38 = vld [vmem:[#allocation4 + $0x62] sm:$0xff] }
 0x6a9   : > { %v13045_v60 = vpack.i.bf16 %v5149_v59, %v5148_v38 }
 0x6aa   : > { %8677 = vrot.lane.b32.xlu2 %v8676_v11, %s9289_s30  ;;  %v5153_v11 = vld [vmem:[#allocation4 + $0x9a] sm:$0xff] }
 0x6ab   : > { %8687 = vrot.lane.b32.xlu1 %v8686_v35, %s9289_s30  ;;  %8712 = vrot.lane.b32.xlu0 %v8711_v43, %s9289_s30  ;;  %v4967_v35 = vld [vmem:[#allocation4 + $0xc2] sm:$0xff]  ;;  %v4968_v43 = vld [vmem:[#allocation4 + $0xca] sm:$0xff]  ;;  %v13079_v13 = vpack.i.bf16 %v5153_v11, %v5152_v34 }
 0x6ac   : > { %v13081_v7 = vpack.i.bf16 %v4968_v43, %v4967_v35 }
 0x6b0   : > { %7987 = vmatmul.msk.f32.gmra.mxu1 %vm4225_vm4, %v5148_v38  ;;  %v4970_v38 = vld [vmem:[#allocation4 + $0xe2] sm:$0xff] }
 0x6b1   : > { %v13093_v26 = vpack.i.bf16 %v4970_v38, %v4969_v5 }
 0x6b2   : > { %8692 = vrot.lane.b32.xlu2 %v8691_v15, %s9289_s30  ;;  %v13088_v15 = vld [vmem:[#allocation4 + $0x10a] sm:$0xff] }
 0x6b3   : > { %8702 = vrot.lane.b32.xlu1 %v8701_v49, %s9289_s30  ;;  %8727 = vrot.lane.b32.xlu0 %v8726_v12, %s9289_s30  ;;  %v13090_v49 = vld [vmem:[#allocation4 + $0x112] sm:$0xff] }
 0x6b4   : > { %v13097_v12 = vpack.i.bf16 %v13090_v49, %v13088_v15 }
 0x6b8   : > { %7988 = vmatmul.msk.f32.gmra.mxu1 %vm4225_vm4, %v5149_v59  ;;  %v5080_v59 = vld [vmem:[#allocation4 + $0x30] sm:$0xff] }
 0x6ba   : > { %8707 = vrot.lane.b32.xlu2 %v8706_v30, %s9289_s30  ;;  %v5084_v30 = vld [vmem:[#allocation4 + $0x60] sm:$0xff] }
 0x6bb   : > { %8717 = vrot.lane.b32.xlu1 %v8716_v3, %s9289_s30  ;;  %8742 = vrot.lane.b32.xlu0 %v8741_v16, %s9291_s11  ;;  %v13108_v3 = vld [vmem:[#allocation4 + $0x122] sm:$0xff] }
 0x6c0   : > { %7989 = vmatmul.msk.f32.gmra.mxu1 %vm4225_vm4, %v5150_v1  ;;  %v5083_v1 = vld [vmem:[#allocation4 + $0x50] sm:$0xff] }
 0x6c2   : > { %8722 = vrot.lane.b32.xlu2 %v8721_v36, %s9289_s30  ;;  %v8831_v36 = vpack.i.bf16 %v5084_v30, %v5083_v1 }
 0x6c3   : > { %8732 = vrot.lane.b32.xlu1 %v8731_v2, %s9289_s30  ;;  %8757 = vrot.lane.b32.xlu0 %v13045_v60, %s9291_s11  ;;  %v5081_v2 = vld [vmem:[#allocation4 + $0x38] sm:$0xff] }
 0x6c4   : > { %v8811_v41 = vpack.i.bf16 %v5082_v23, %v5081_v2  ;;  %v8846_v27 = vpack.i.bf16 %v12977_v21, %v5081_v2 }
 0x6c8   : > { %7990 = vmatmul.msk.f32.gmra.mxu1 %vm4225_vm4, %v5151_v62  ;;  %v8836_v62 = vpack.i.bf16 %v12983_v22, %v5080_v59 }
 0x6ca   : > { %8737 = vrot.lane.b32.xlu2 %v8736_v17, %s9291_s11 }
 0x6cb   : > { %8747 = vrot.lane.b32.xlu1 %v8746_v50, %s9291_s11  ;;  %8772 = vrot.lane.b32.xlu0 %v13054_v45, %s9291_s11 }
 0x6d0   : > { %7991 = vmatmul.msk.f32.gmra.mxu1 %vm4225_vm4, %v5152_v34  ;;  %v5086_v34 = vld [vmem:[#allocation4 + $0x78] sm:$0xff] }
 0x6d2   : > { %8752 = vrot.lane.b32.xlu2 %v8751_v25, %s9291_s11 }
 0x6d3   : > { %8762 = vrot.lane.b32.xlu1 %v13067_v19, %s9291_s11  ;;  %8787 = vrot.lane.b32.xlu0 %v13071_v61, %s9291_s11 }
 0x6d8   : > { %7992 = vmatmul.msk.f32.gmra.mxu1 %vm4225_vm4, %v5153_v11 }
 0x6da   : > { %8767 = vrot.lane.b32.xlu2 %v13079_v13, %s9291_s11 }
 0x6db   : > { %8777 = vrot.lane.b32.xlu1 %v13081_v7, %s9291_s11  ;;  %8802 = vrot.lane.b32.xlu0 %v8741_v16, %s9289_s30  ;;  %v8796_v16 = vpack.i.bf16 %v5080_v59, %v13108_v3 }
 0x6dc   : > { %v13120_v17 = vpop.permute.xlu2 %8662 }
 0x6e0   : > { %7993 = vmatmul.msk.f32.gmra.mxu1 %vm4225_vm4, %v4965_v6  ;;  %v8665_v6 = vunpack.i.h.bf16 %v13120_v17 }
 0x6e2   : > { %8782 = vrot.lane.b32.xlu2 %v13093_v26, %s9291_s11 }
 0x6e3   : > { %8792 = vrot.lane.b32.xlu1 %v13097_v12, %s9291_s11  ;;  %8817 = vrot.lane.b32.xlu0 %v8816_v44, %s9293_s14  ;;  %v6150_v44 = vld [vmem:[%s15080_s7 + $0x70] sm:$0xff] }
 0x6e8   : > { %7994 = vmatmul.msk.f32.gmra.mxu1 %vm4225_vm4, %v4966_v8 }
 0x6ea   : > { %8797 = vrot.lane.b32.xlu2 %v8796_v16, %s9291_s11  ;;  %v6149_v16 = vld [vmem:[%s15080_s7 + $0x68] sm:$0xff] }
 0x6eb   : > { %8807 = vrot.lane.b32.xlu1 %v12936_v18, %s9293_s14  ;;  %8832 = vrot.lane.b32.xlu0 %v8831_v36, %s9291_s11  ;;  %v4984_v18 = vld [vmem:[#allocation4 + $0x20] sm:$0xff] }
 0x6ec   : > { %v8826_v8 = vpack.i.bf16 %v12964_v53, %v4984_v18  ;;  %v13130_v21 = vsel %vm4225_vm4, %v4984_v18, %v8665_v6  ;;  %v6151_v53 = vld [vmem:[%s15080_s7 + $0x78] sm:$0xff]  ;;  %v8896_v18 = vpack.i.bf16 %v13004_v37, %v5086_v34 }
 0x6ed   : > { %6272 = vmatpush.msrb.mxu2 %v6151_v53  ;;  %v6147_v6 = vld [vmem:[%s15080_s7 + $0x58] sm:$0xff] }
 0x6ef   : > { %6273 = vmatpush.msrb.mxu2 %v6150_v44 }
 0x6f0   : > { %7995 = vmatmul.msk.f32.gmra.mxu1 %vm4225_vm4, %v4967_v35  ;;  %v8876_v35 = vpack.i.bf16 %v12985_v14, %v5084_v30  ;;  %v8856_v14 = vpack.i.bf16 %v12946_v20, %v5082_v23  ;;  %v13157_v30 = vpop.permute.xlu1 %8657  ;;  %v6148_v23 = vld [vmem:[%s15080_s7 + $0x60] sm:$0xff] }
 0x6f1   : > { %6274 = vmatpush.msrb.mxu2 %v6149_v16 }
 0x6f2   : > { %8812 = vrot.lane.b32.xlu2 %v8811_v41, %s9291_s11 }
 0x6f3   : > { %8822 = vrot.lane.b32.xlu1 %v8746_v50, %s9289_s30  ;;  %8847 = vrot.lane.b32.xlu0 %v8846_v27, %s9293_s14  ;;  %v5085_v50 = vld [vmem:[#allocation4 + $0x68] sm:$0xff] }
 0x6f4   : > { %v8851_v11 = vpack.i.bf16 %v5086_v34, %v5085_v50  ;;  %6275 = vmatpush.msrb.mxu2 %v6148_v23  ;;  %v6145_v34 = vld [vmem:[%s15080_s7 + $0x48] sm:$0xff] }
 0x6f6   : > { %6276 = vmatpush.msrb.mxu2 %v6147_v6  ;;  %v6160_v6 = vld [vmem:[%s15080_s7 + $0xc0] sm:$0xff] }
 0x6f8   : > { %7996 = vmatmul.msk.f32.gmra.mxu1 %vm4225_vm4, %v4968_v43  ;;  %v5090_v43 = vld [vmem:[#allocation4 + $0xa8] sm:$0xff] }
 0x6fa   : > { %8827 = vrot.lane.b32.xlu2 %v8826_v8, %s9293_s14  ;;  %v6146_v8 = vld [vmem:[%s15080_s7 + $0x50] sm:$0xff] }
 0x6fb   : > { %8837 = vrot.lane.b32.xlu1 %v8836_v62, %s9293_s14  ;;  %8862 = vrot.lane.b32.xlu0 %v13045_v60, %s9289_s30  ;;  %v6166_v62 = vld [vmem:[%s15080_s7 + $0xf0] sm:$0xff] }
 0x6fc   : > { %6277 = vmatpush.msrb.mxu2 %v6146_v8  ;;  %v6140_v8 = vld [vmem:[%s15080_s7 + $0x20] sm:$0xff] }
 0x6fe   : > { %6278 = vmatpush.msrb.mxu2 %v6145_v34 }
 0x700   : > { %7997 = vmatmul.msk.f32.gmra.mxu1 %vm4225_vm4, %v4969_v5  ;;  %v13149_v5 = vld [vmem:[#allocation4 + $0x98] sm:$0xff] }
 0x701   : > { %v8891_v59 = vpack.i.bf16 %v5090_v43, %v13149_v5  ;;  %v8926_v23 = vpack.i.bf16 %v12956_v9, %v13149_v5  ;;  %v6142_v9 = vld [vmem:[%s15080_s7 + $0x30] sm:$0xff] }
 0x702   : > { %8842 = vrot.lane.b32.xlu2 %v8751_v25, %s9289_s30  ;;  %v8866_v25 = vpack.i.bf16 %v12942_v51, %v5083_v1  ;;  %v5087_v1 = vld [vmem:[#allocation4 + $0x80] sm:$0xff] }
 0x703   : > { %8852 = vrot.lane.b32.xlu1 %v8851_v11, %s9291_s11  ;;  %8877 = vrot.lane.b32.xlu0 %v8876_v35, %s9293_s14  ;;  %v8906_v2 = vpack.i.bf16 %v13000_v55, %v5087_v1  ;;  %v6167_v55 = vld [vmem:[%s15080_s7 + $0xf8] sm:$0xff]  ;;  %v6164_v11 = vld [vmem:[%s15080_s7 + $0xe0] sm:$0xff]  ;;  %v13223_v35 = vld [vmem:[#allocation4 + $0xb0] sm:$0xff] }
 0x704   : > { %v13142_v22 = vpop.permute.xlu2 %8677  ;;  %6385 = vmatpush.msrb.mxu3 %v6167_v55 }
 0x705   : > { %v13144_v60 = vpop.permute.xlu0 %8667 }
 0x706   : > { %6386 = vmatpush.msrb.mxu3 %v6166_v62  ;;  %v6158_v62 = vld [vmem:[%s15080_s7 + $0xb0] sm:$0xff] }
 0x708   : > { %7998 = vmatmul.msk.f32.gmra.mxu1 %vm4225_vm4, %v4970_v38  ;;  %v13164_v38 = vld [vmem:[#allocation4 + $0x90] sm:$0xff] }
 0x709   : > { %v8871_v36 = vpack.i.bf16 %v13164_v38, %v5087_v1  ;;  %v6143_v1 = vld [vmem:[%s15080_s7 + $0x38] sm:$0xff] }
 0x70a   : > { %8857 = vrot.lane.b32.xlu2 %v8856_v14, %s9293_s14  ;;  %v6163_v14 = vld [vmem:[%s15080_s7 + $0xd8] sm:$0xff] }
 0x70b   : > { %8867 = vrot.lane.b32.xlu1 %v8866_v25, %s9293_s14  ;;  %8892 = vrot.lane.b32.xlu0 %v8891_v59, %s9291_s11  ;;  %v8936_v25 = vpack.i.bf16 %v13006_v28, %v5090_v43  ;;  %v13246_v28 = vld [vmem:[#allocation4 + $0xf0] sm:$0xff]  ;;  %v6161_v43 = vld [vmem:[%s15080_s7 + $0xc8] sm:$0xff] }
 0x70c   : > { %v13160_v20 = vpop.permute.xlu2 %8692 }
 0x70d   : > { %v13162_v51 = vpop.permute.xlu0 %8682 }
 0x710   : > { %7999 = vmatmul.msk.f32.gmra.mxu1 %vm4225_vm4, %v13060_v24 }
 0x712   : > { %8872 = vrot.lane.b32.xlu2 %v8871_v36, %s9291_s11  ;;  %v8916_v36 = vpack.i.bf16 %v12958_v54, %v13164_v38  ;;  %v6159_v54 = vld [vmem:[%s15080_s7 + $0xb8] sm:$0xff] }
 0x713   : > { %8882 = vrot.lane.b32.xlu1 %v13067_v19, %s9289_s30  ;;  %8907 = vrot.lane.b32.xlu0 %v8906_v2, %s9293_s14  ;;  %v8886_v19 = vpack.i.bf16 %v12975_v40, %v5085_v50  ;;  %v13212_v50 = vld [vmem:[#allocation4 + $0xc0] sm:$0xff] }
 0x714   : > { %v13180_v41 = vpop.permute.xlu2 %8707  ;;  %v8911_v53 = vpack.i.bf16 %v13212_v50, %v13223_v35  ;;  %v13263_v2 = vld [vmem:[#allocation4 + $0xe0] sm:$0xff] }
 0x715   : > { %v13182_v27 = vpop.permute.xlu1 %8672  ;;  %v13184_v24 = vpop.permute.xlu0 %8697  ;;  %v8951_v55 = vpack.i.bf16 %v13246_v28, %v13263_v2 }
 0x718   : > { %8000 = vmatmul.msk.f32.gmra.mxu1 %vm4225_vm4, %v13062_v32 }
 0x71a   : > { %8887 = vrot.lane.b32.xlu2 %v8886_v19, %s9293_s14  ;;  %v13285_v19 = vld [vmem:[#allocation4 + $0xd8] sm:$0xff] }
 0x71b   : > { %8897 = vrot.lane.b32.xlu1 %v8896_v18, %s9293_s14  ;;  %8922 = vrot.lane.b32.xlu0 %v13054_v45, %s9289_s30  ;;  %v6165_v45 = vld [vmem:[%s15080_s7 + $0xe8] sm:$0xff] }
 0x71c   : > { %v13206_v32 = vpop.permute.xlu2 %8722  ;;  %6387 = vmatpush.msrb.mxu3 %v6165_v45  ;;  %v6141_v18 = vld [vmem:[%s15080_s7 + $0x28] sm:$0xff] }
 0x71d   : > { %15779 = vst [vmem:[#allocation103_spill] sm:$0xff] %v13206_v32  ;;  %v13208_v40 = vpop.permute.xlu1 %8687  ;;  %v13210_v37 = vpop.permute.xlu0 %8712  ;;  %v5093_v45 = vld [vmem:[#allocation4 + $0xc8] sm:$0xff] }
 0x71e   : > { %6388 = vmatpush.msrb.mxu3 %v6164_v11  ;;  %v8931_v34 = vpack.i.bf16 %v13285_v19, %v5093_v45  ;;  %v6139_v11 = vld [vmem:[%s15080_s7 + $0x18] sm:$0xff] }
 0x720   : > { %8001 = vmatmul.msk.f32.gmra.mxu1 %vm4225_vm4, %v13088_v15  ;;  %6389 = vmatpush.msrb.mxu3 %v6163_v14  ;;  %v6144_v15 = vld [vmem:[%s15080_s7 + $0x40] sm:$0xff]  ;;  %v8966_v14 = vpack.i.bf16 %v13016_v46, %v5093_v45  ;;  %v8996_v45 = vpack.i.bf16 %v13022_v39, %v13246_v28  ;;  %v13387_v28 = vld [vmem:[#allocation4 + $0x138] sm:$0xff] }
 0x721   : > { %6279 = vmatpush.msrb.mxu2 %v6144_v15  ;;  %v6156_v15 = vld [vmem:[%s15080_s7 + $0xa0] sm:$0xff] }
 0x722   : > { %8902 = vrot.lane.b32.xlu2 %v13079_v13, %s9289_s30  ;;  %v6162_v13 = vld [vmem:[%s15080_s7 + $0xd0] sm:$0xff] }
 0x723   : > { %8912 = vrot.lane.b32.xlu1 %v8911_v53, %s9291_s11  ;;  %8937 = vrot.lane.b32.xlu0 %v8936_v25, %s9293_s14  ;;  %v6157_v53 = vld [vmem:[%s15080_s7 + $0xa8] sm:$0xff]  ;;  %v6138_v25 = vld [vmem:[%s15080_s7 + $0x10] sm:$0xff] }
 0x724   : > { %v13240_v44 = vpop.permute.xlu2 %8737  ;;  %6390 = vmatpush.msrb.mxu3 %v6162_v13  ;;  %6280 = vmatpush.msrb.mxu2 %v6143_v1  ;;  %v6155_v1 = vld [vmem:[%s15080_s7 + $0x98] sm:$0xff] }
 0x725   : > { %v13242_v59 = vpop.permute.xlu1 %8702  ;;  %v13244_v16 = vpop.permute.xlu0 %8727 }
 0x726   : > { %15780 = vst [vmem:[#allocation104_spill] sm:$0xff] %v13244_v16  ;;  %6391 = vmatpush.msrb.mxu3 %v6161_v43  ;;  %6281 = vmatpush.msrb.mxu2 %v6142_v9  ;;  %v6154_v9 = vld [vmem:[%s15080_s7 + $0x90] sm:$0xff] }
 0x728   : > { %8002 = vmatmul.msk.f32.gmra.mxu1 %vm4225_vm4, %v13090_v49  ;;  %6392 = vmatpush.msrb.mxu3 %v6160_v6  ;;  %v8946_v6 = vpack.i.bf16 %v13002_v58, %v13223_v35  ;;  %v6153_v58 = vld [vmem:[%s15080_s7 + $0x88] sm:$0xff] }
 0x729   : > { %6282 = vmatpush.msrb.mxu2 %v6141_v18  ;;  %v6152_v18 = vld [vmem:[%s15080_s7 + $0x80] sm:$0xff] }
 0x72a   : > { %8917 = vrot.lane.b32.xlu2 %v8916_v36, %s9293_s14  ;;  %6393 = vmatpush.msrb.mxu3 %v6159_v54  ;;  %v6136_v36 = vld [vmem:[%s15080_s7] sm:$0xff]  ;;  %v13355_v54 = vld [vmem:[#allocation4 + $0x108] sm:$0xff] }
 0x72b   : > { %8927 = vrot.lane.b32.xlu1 %v8926_v23, %s9293_s14  ;;  %8952 = vrot.lane.b32.xlu0 %v8951_v55, %s9291_s11  ;;  %v13331_v23 = vld [vmem:[#allocation4 + $0x12a] sm:$0xff]  ;;  %v8956_v55 = vpack.i.bf16 %v13020_v0, %v13212_v50 }
 0x72c   : > { %v13279_v49 = vpop.permute.xlu2 %8752  ;;  %6394 = vmatpush.msrb.mxu3 %v6158_v62  ;;  %6283 = vmatpush.msrb.mxu2 %v6140_v8  ;;  %v13360_v8 = vld [vmem:[#allocation4 + $0x13a] sm:$0xff] }
 0x72d   : > { %v13281_v5 = vpop.permute.xlu1 %8717  ;;  %v13283_v38 = vpop.permute.xlu0 %8742  ;;  %v8754_v39 = vunpack.i.l.bf16 %v13279_v49 }
 0x72e   : > { %6395 = vmatpush.msrb.mxu3 %v6157_v53  ;;  %6284 = vmatpush.msrb.mxu2 %v6139_v11  ;;  %v8674_v11 = vunpack.i.l.bf16 %v13182_v27 }
 0x730   : > { %8003 = vmatmul.msk.f32.gmra.mxu1 %vm4225_vm4, %v13108_v3  ;;  %6396 = vmatpush.msrb.mxu3 %v6156_v15  ;;  %v13392_v15 = vld [vmem:[#allocation4 + $0x142] sm:$0xff] }
 0x731   : > { %6285 = vmatpush.msrb.mxu2 %v6138_v25  ;;  %v13389_v25 = vpop.f32.mrf.mxu1 }
 0x732   : > { %8932 = vrot.lane.b32.xlu2 %v8931_v34, %s9291_s11  ;;  %6397 = vmatpush.msrb.mxu3 %v6155_v1  ;;  %15782 = vst [vmem:[#allocation105_spill] sm:$0xff] %v13389_v25  ;;  %v4893_v1 = vld [vmem:[#allocation4 + $0x48] sm:$0xff]  ;;  %v8739_v25 = vunpack.i.l.bf16 %v13240_v44 }
 0x733   : > { %8942 = vrot.lane.b32.xlu1 %v13081_v7, %s9289_s30  ;;  %8967 = vrot.lane.b32.xlu0 %v8966_v14, %s9293_s14  ;;  %v6137_v7 = vld [vmem:[%s15080_s7 + $0x8] sm:$0xff] }
 0x734   : > { %v13316_v13 = vpop.permute.xlu2 %8767  ;;  %6286 = vmatpush.msrb.mxu2 %v6137_v7  ;;  %6398 = vmatpush.msrb.mxu3 %v6154_v9  ;;  %v13401_v7 = vld [vmem:[#allocation4 + $0x128] sm:$0xff]  ;;  %v8679_v9 = vunpack.i.l.bf16 %v13142_v22 }
 0x735   : > { %v13318_v46 = vpop.permute.xlu1 %8732  ;;  %v13320_v43 = vpop.permute.xlu0 %8757 }
 0x736   : > { %15781 = vst [vmem:[#allocation13_spill] sm:$0xff] %v13318_v46  ;;  %6287 = vmatpush.msrb.mxu2 %v6136_v36  ;;  %6399 = vmatpush.msrb.mxu3 %v6153_v58  ;;  %v9011_v36 = vpack.i.bf16 %v13387_v28, %v13401_v7  ;;  %v8690_v58 = vunpack.i.h.bf16 %v13208_v40 }
 0x738   : > { %8004 = vmatmul.msk.f32.gmra.mxu1 %vm4225_vm4, %v13331_v23  ;;  %6400 = vmatpush.msrb.mxu3 %v6152_v18 }
 0x73a   : > { %8947 = vrot.lane.b32.xlu2 %v8946_v6, %s9293_s14  ;;  %8028 = vmatpush.msra.mxu3 %v12893_v57  ;;  %v8675_v57 = vunpack.i.h.bf16 %v13182_v27  ;;  %v8986_v27 = vpack.i.bf16 %v12979_v33, %v13263_v2  ;;  %v4894_v6 = vld [vmem:[#allocation4 + $0x50] sm:$0xff] }
 0x73b   : > { %8957 = vrot.lane.b32.xlu1 %v8956_v55, %s9293_s14  ;;  %8982 = vrot.lane.b32.xlu0 %v13071_v61, %s9289_s30  ;;  %v13362_v61 = vld [vmem:[#allocation4 + $0xf8] sm:$0xff]  ;;  %v8680_v55 = vunpack.i.h.bf16 %v13142_v22  ;;  %v5099_v22 = vld [vmem:[#allocation4 + $0x110] sm:$0xff] }
 0x73c   : > { %v13349_v35 = vpop.permute.xlu2 %8782  ;;  %v8971_v62 = vpack.i.bf16 %v13355_v54, %v13362_v61  ;;  %8029 = vmatpush.msra.mxu3 %v12903_v31  ;;  %v8755_v31 = vunpack.i.h.bf16 %v13279_v49  ;;  %v5950_v49 = vsel %vm4225_vm4, %v4893_v1, %v8674_v11  ;;  %v5951_v33 = vsel %vm4225_vm4, %v4894_v6, %v8675_v57  ;;  %v13443_v6 = vpop.f32.mrf.mxu1 }
 0x73d   : > { %v13351_v0 = vpop.permute.xlu1 %8747  ;;  %v13353_v50 = vpop.permute.xlu0 %8772  ;;  %v8760_v11 = vunpack.i.h.bf16 %v13320_v43  ;;  %v8759_v57 = vunpack.i.l.bf16 %v13320_v43  ;;  %v9026_v1 = vpack.i.bf16 %v13032_v52, %v5099_v22  ;;  %v4900_v43 = vld [vmem:[#allocation4 + $0x98] sm:$0xff]  ;;  %15784 = vst [vmem:[#allocation106_spill] sm:$0xff] %v13443_v6  ;;  %v4887_v52 = vld [vmem:[#allocation4] sm:$0xff] }
 0x73e   : > { %8030 = vmatpush.msra.mxu3 %v12908_v47  ;;  %v8976_v47 = vpack.i.bf16 %v12993_v48, %v13285_v19  ;;  %v13413_v48 = vsel %vm4291_vm6, %v5950_v49, %v8754_v39  ;;  %v13418_v2 = vsel %vm4291_vm6, %v5951_v33, %v8755_v31  ;;  %v8770_v39 = vunpack.i.h.bf16 %v13316_v13  ;;  %v13436_v31 = vld [vmem:[#allocation4 + $0x152] sm:$0xff]  ;;  %v4896_v49 = vld [vmem:[#allocation4 + $0x68] sm:$0xff] }
 0x73f   : > { %15783 = vst [vmem:[#allocation16_spill] sm:$0xff] %v13418_v2  ;;  %v5953_v46 = vsel %vm4225_vm4, %v4896_v49, %v8680_v55  ;;  %v5957_v32 = vsel %vm4225_vm4, %v4900_v43, %v8690_v58  ;;  %v9016_v58 = vpack.i.bf16 %v13036_v63, %v13355_v54  ;;  %v8694_v54 = vunpack.i.l.bf16 %v13160_v20  ;;  %v4892_v63 = vld [vmem:[#allocation4 + $0x38] sm:$0xff] }
 0x740   : > { %8005 = vmatmul.msk.f32.gmra.mxu1 %vm4225_vm4, %v13360_v8  ;;  %8031 = vmatpush.msra.mxu3 %v12916_v42  ;;  %v13459_v6 = vsel %vm4291_vm6, %v5953_v46, %v8760_v11  ;;  %v8670_v46 = vunpack.i.h.bf16 %v13144_v60  ;;  %v8704_v11 = vunpack.i.l.bf16 %v13242_v59  ;;  %v8785_v49 = vunpack.i.h.bf16 %v13349_v35 }
 0x741   : > { %15786 = vst [vmem:[#allocation19_spill] sm:$0xff] %v13459_v6  ;;  %v8775_v43 = vunpack.i.h.bf16 %v13353_v50  ;;  %v4888_v6 = vld [vmem:[#allocation4 + $0x8] sm:$0xff]  ;;  %v8684_v2 = vunpack.i.l.bf16 %v13162_v51 }
 0x742   : > { %8962 = vrot.lane.b32.xlu2 %v13093_v26, %s9289_s30  ;;  %v8745_v26 = vunpack.i.h.bf16 %v13283_v38 }
 0x743   : > { %8972 = vrot.lane.b32.xlu1 %v8971_v62, %s9291_s11  ;;  %8997 = vrot.lane.b32.xlu0 %v8996_v45, %s9293_s14  ;;  %v13428_v62 = vld [vmem:[#allocation4 + $0x120] sm:$0xff]  ;;  %v8769_v45 = vunpack.i.l.bf16 %v13316_v13  ;;  %v13445_v13 = vld [vmem:[#allocation4 + $0x150] sm:$0xff] }
 0x744   : > { %v13379_v53 = vpop.permute.xlu2 %8797  ;;  %v13410_v42 = vsel %vm4291_vm6, %v13130_v21, %v8745_v26  ;;  %v8689_v21 = vunpack.i.l.bf16 %v13208_v40  ;;  %v8659_v40 = vunpack.i.l.bf16 %v13157_v30 }
 0x745   : > { %v13376_v34 = vpop.permute.xlu1 %8762  ;;  %v13381_v14 = vpop.permute.xlu0 %8787 }
 0x748   : > { %8006 = vmatmul.msk.f32.gmra.mxu1 %vm4225_vm4, %v13392_v15 }
 0x74a   : > { %8977 = vrot.lane.b32.xlu2 %v8976_v47, %s9293_s14  ;;  %v4899_v47 = vld [vmem:[#allocation4 + $0x90] sm:$0xff] }
 0x74b   : > { %8987 = vrot.lane.b32.xlu1 %v8986_v27, %s9293_s14  ;;  %9012 = vrot.lane.b32.xlu0 %v9011_v36, %s9291_s11  ;;  %v8991_v27 = vpack.i.bf16 %v13428_v62, %v5099_v22  ;;  %v4895_v36 = vld [vmem:[#allocation4 + $0x60] sm:$0xff]  ;;  %v5956_v16 = vsel %vm4225_vm4, %v4899_v47, %v8689_v21  ;;  %v8750_v47 = vunpack.i.h.bf16 %v13351_v0 }
 0x74c   : > { %v13434_v26 = vpop.permute.xlu2 %8812  ;;  %v5952_v33 = vsel %vm4225_vm4, %v4895_v36, %v8679_v9  ;;  %v13462_v55 = vsel %vm4291_vm6, %v5956_v16, %v8769_v45  ;;  %v9006_v9 = vpack.i.bf16 %v13018_v56, %v13362_v61  ;;  %v13471_v21 = vld [vmem:[#allocation4 + $0x140] sm:$0xff]  ;;  %v8695_v16 = vunpack.i.h.bf16 %v13160_v20 }
 0x74d   : > { %v13420_v19 = vpop.permute.xlu1 %8777  ;;  %v13426_v18 = vpop.permute.xlu0 %8802  ;;  %v13456_v22 = vsel %vm4291_vm6, %v5952_v33, %v8759_v57  ;;  %15787 = vst [vmem:[#allocation108_spill] sm:$0xff] %v13462_v55  ;;  %v13474_v57 = vsel %vm4291_vm6, %v5957_v32, %v8770_v39  ;;  %v9041_v56 = vpack.i.bf16 %v13392_v15, %v13360_v8  ;;  %v8705_v61 = vunpack.i.h.bf16 %v13242_v59  ;;  %v13498_v33 = vld [vmem:[#allocation4 + $0x15a] sm:$0xff] }
 0x74e   : > { %15785 = vst [vmem:[#allocation107_spill] sm:$0xff] %v13456_v22  ;;  %v5944_v39 = vsel %vm4225_vm4, %v4887_v52, %v8659_v40  ;;  %v8784_v20 = vunpack.i.l.bf16 %v13349_v35  ;;  %v8804_v59 = vunpack.i.l.bf16 %v13426_v18  ;;  %v8660_v40 = vunpack.i.h.bf16 %v13157_v30  ;;  %v4902_v35 = vld [vmem:[#allocation4 + $0xb0] sm:$0xff] }
 0x74f   : > { %15788 = vst [vmem:[#allocation109_spill] sm:$0xff] %v13474_v57  ;;  %v5976_v36 = vsel %vm4291_vm6, %v5944_v39, %v8739_v25  ;;  %v8685_v52 = vunpack.i.h.bf16 %v13162_v51  ;;  %v5949_v25 = vsel %vm4225_vm4, %v4892_v63, %v8670_v46  ;;  %v4901_v39 = vld [vmem:[#allocation4 + $0xa8] sm:$0xff]  ;;  %v4905_v57 = vld [vmem:[#allocation4 + $0xd8] sm:$0xff]  ;;  %v5959_v22 = vsel %vm4225_vm4, %v4902_v35, %v8695_v16 }
 0x750   : > { %8007 = vmatmul.msk.f32.gmra.mxu1 %vm4225_vm4, %v13436_v31  ;;  %v5958_v30 = vsel %vm4225_vm4, %v4901_v39, %v8694_v54  ;;  %v5015_v46 = vld [vmem:[#allocation4 + $0x19] sm:$0xff]  ;;  %v13522_v54 = vpop.f32.mrf.mxu1  ;;  %v13527_v51 = vsel %vm4291_vm6, %v5959_v22, %v8775_v43  ;;  %v8710_v16 = vunpack.i.h.bf16 %v13180_v41  ;;  %v8719_v22 = vunpack.i.l.bf16 %v13281_v5 }
 0x751   : > { %v8799_v35 = vunpack.i.l.bf16 %v13379_v53 }
 0x752   : > { %8992 = vrot.lane.b32.xlu2 %v8991_v27, %s9291_s11  ;;  %v8774_v27 = vunpack.i.l.bf16 %v13353_v50  ;;  %v8740_v50 = vunpack.i.h.bf16 %v13240_v44  ;;  %v13516_v44 = vsel %vm4291_vm6, %v5949_v25, %v8750_v47  ;;  %v8789_v25 = vunpack.i.l.bf16 %v13381_v14 }
 0x753   : > { %9002 = vrot.lane.b32.xlu1 %v13097_v12, %s9289_s30  ;;  %9027 = vrot.lane.b32.xlu0 %v9026_v1, %s9293_s14 }
 0x754   : > { %v13507_v55 = vpop.permute.xlu2 %8827 }
 0x755   : > { %v13478_v45 = vpop.permute.xlu1 %8792  ;;  %v13487_v32 = vpop.permute.xlu0 %8817 }
 0x756   : > { %v8819_v1 = vunpack.i.l.bf16 %v13487_v32 }
 0x758   : > { %v6008_v12 = vsel %vm4357_vm8, %v5976_v36, %v8819_v1  ;;  %8008 = vmatmul.msk.f32.gmra.mxu1 %vm4225_vm4, %v13498_v33  ;;  %v5962_v1 = vsel %vm4225_vm4, %v4905_v57, %v8704_v11  ;;  %v4906_v36 = vld [vmem:[#allocation4 + $0xe0] sm:$0xff]  ;;  %v6040_v57 = vsel %vm4225_vm4, %v5015_v46, %v8804_v59  ;;  %v8800_v11 = vunpack.i.h.bf16 %v13379_v53  ;;  %v4908_v46 = vld [vmem:[#allocation4 + $0xf8] sm:$0xff] }
 0x759   : > { %6288 = vmatmul.f32.vlgmr.msrb.gmra.mxu2 %v6008_v12  ;;  %v13519_v12 = vsel %vm4291_vm6, %v5958_v30, %v8774_v27  ;;  %v5963_v63 = vsel %vm4225_vm4, %v4906_v36, %v8705_v61  ;;  %v8829_v61 = vunpack.i.l.bf16 %v13507_v55  ;;  %v8709_v27 = vunpack.i.l.bf16 %v13180_v41 }
 0x75a   : > { %9007 = vrot.lane.b32.xlu2 %v9006_v9, %s9293_s14  ;;  %v13530_v9 = vsel %vm4291_vm6, %v5962_v1, %v8784_v20  ;;  %v8765_v59 = vunpack.i.h.bf16 %v13376_v34  ;;  %v6072_v39 = vsel %vm4291_vm6, %v6040_v57, %v8800_v11  ;;  %v8790_v30 = vunpack.i.h.bf16 %v13381_v14  ;;  %v4897_v1 = vld [vmem:[#allocation4 + $0x78] sm:$0xff]  ;;  %v4907_v14 = vld [vmem:[#allocation4 + $0xf0] sm:$0xff] }
 0x75b   : > { %9017 = vrot.lane.b32.xlu1 %v9016_v58, %s9293_s14  ;;  %9042 = vrot.lane.b32.xlu0 %v9041_v56, %s9289_s30  ;;  %v13533_v58 = vsel %vm4291_vm6, %v5963_v63, %v8785_v49  ;;  %v5945_v56 = vsel %vm4225_vm4, %v4888_v6, %v8660_v40  ;;  %v8764_v49 = vunpack.i.l.bf16 %v13376_v34  ;;  %v8805_v6 = vunpack.i.h.bf16 %v13426_v18  ;;  %v13550_v40 = vld [vmem:[#allocation4 + $0x16a] sm:$0xff]  ;;  %v4911_v18 = vld [vmem:[#allocation4 + $0x120] sm:$0xff] }
 0x75c   : > { %v5977_v20 = vsel %vm4291_vm6, %v5945_v56, %v8740_v50  ;;  %v4898_v50 = vld [vmem:[#allocation4 + $0x80] sm:$0xff]  ;;  %v9056_v34 = vpack.i.bf16 %v13038_v4, %v13387_v28  ;;  %v5954_v53 = vsel %vm4225_vm4, %v4897_v1, %v8684_v2  ;;  %v5964_v57 = vsel %vm4225_vm4, %v4907_v14, %v8709_v27  ;;  %v5136_v1 = vld [vmem:[#allocation4 + $0x151] sm:$0xff] }
 0x75d   : > { %v8808_v47 = vpop.permute.xlu1 %8807  ;;  %v6009_v36 = vsel %vm4357_vm8, %v5977_v20, %v8829_v61  ;;  %v5955_v63 = vsel %vm4225_vm4, %v4898_v50, %v8685_v52  ;;  %v5965_v11 = vsel %vm4225_vm4, %v4908_v46, %v8710_v16  ;;  %v5968_v61 = vsel %vm4225_vm4, %v4911_v18, %v8719_v22  ;;  %v5016_v2 = vld [vmem:[#allocation4 + $0x21] sm:$0xff]  ;;  %v5017_v46 = vld [vmem:[#allocation4 + $0x31] sm:$0xff] }
 0x75e   : > { %v8809_v43 = vunpack.i.l.bf16 %v8808_v47  ;;  %v8814_v56 = vunpack.i.l.bf16 %v13434_v26  ;;  %v15789_v4 = vpack.i.bf16 %v13331_v23, %v13108_v3  ;;  %v15790_v28 = vpack.i.bf16 %v13445_v13, %v13471_v21  ;;  %v4904_v18 = vld [vmem:[#allocation4 + $0xc8] sm:$0xff] }
 0x75f   : > { %v13572_v52 = vsel %vm4291_vm6, %v5954_v53, %v8764_v49  ;;  %v13575_v16 = vsel %vm4291_vm6, %v5955_v63, %v8765_v59  ;;  %v13578_v27 = vsel %vm4291_vm6, %v5964_v57, %v8789_v25  ;;  %v8810_v22 = vunpack.i.h.bf16 %v8808_v47  ;;  %v5137_v47 = vld [vmem:[#allocation4 + $0x159] sm:$0xff] }
 0x760   : > { %v6104_v41 = vsel %vm4357_vm8, %v6072_v39, %v8809_v43  ;;  %8009 = vmatmul.msk.f32.gmra.mxu1 %vm4225_vm4, %v13550_v40  ;;  %v6041_v3 = vsel %vm4225_vm4, %v5016_v2, %v8805_v6  ;;  %v13583_v43 = vsel %vm4291_vm6, %v5965_v11, %v8790_v30  ;;  %v13586_v20 = vsel %vm4291_vm6, %v5968_v61, %v8799_v35 }
 0x761   : > { %6401 = vmatmul.f32.vlgmr.msrb.gmra.mxu3 %v6104_v41  ;;  %6291 = vmatmul.f32.gmra.mxu2 %v6009_v36  ;;  %v8700_v49 = vunpack.i.h.bf16 %v13184_v24  ;;  %v8699_v59 = vunpack.i.l.bf16 %v13184_v24  ;;  %v13590_v41 = vpop.f32.mrf.mxu1  ;;  %v8780_v50 = vunpack.i.h.bf16 %v13420_v19  ;;  %v8779_v6 = vunpack.i.l.bf16 %v13420_v19  ;;  %v13594_v36 = vpop.permute.xlu0 %8832  ;;  %v4903_v19 = vld [vmem:[#allocation4 + $0xc0] sm:$0xff] }
 0x762   : > { %9022 = vrot.lane.b32.xlu2 %v15789_v4, %s9289_s30  ;;  %v6073_v30 = vsel %vm4291_vm6, %v6041_v3, %v8814_v56  ;;  %v8664_v53 = vunpack.i.l.bf16 %v13120_v17  ;;  %v9036_v24 = vpack.i.bf16 %v5136_v1, %v13428_v62  ;;  %v9046_v14 = vpack.i.bf16 %v5137_v47, %v13401_v7  ;;  %v13630_v3 = vld [vmem:[#allocation4 + $0x168] sm:$0xff] }
 0x763   : > { %9032 = vrot.lane.b32.xlu1 %v15790_v28, %s9291_s11  ;;  %9057 = vrot.lane.b32.xlu0 %v9056_v34, %s9293_s14  ;;  %v6105_v35 = vsel %vm4357_vm8, %v6073_v30, %v8810_v22  ;;  %v13598_v34 = vld [vmem:[#allocation4 + $0x172] sm:$0xff]  ;;  %v9071_v63 = vpack.i.bf16 %v13034_v29, %v13471_v21  ;;  %v5960_v11 = vsel %vm4225_vm4, %v4903_v19, %v8699_v59  ;;  %v8744_v61 = vunpack.i.l.bf16 %v13283_v38 }
 0x764   : > { %v5961_v17 = vsel %vm4225_vm4, %v4904_v18, %v8700_v49  ;;  %v8815_v56 = vunpack.i.h.bf16 %v13434_v26  ;;  %v13615_v7 = vsel %vm4291_vm6, %v5960_v11, %v8779_v6  ;;  %v8715_v29 = vunpack.i.h.bf16 %v13210_v37  ;;  %v13645_v6 = vld [vmem:[#allocation4 + $0x182] sm:$0xff] }
 0x765   : > { %v8823_v39 = vpop.permute.xlu1 %8822  ;;  %v13618_v62 = vsel %vm4291_vm6, %v5961_v17, %v8780_v50  ;;  %v5946_v38 = vsel %vm4225_vm4, %v13099_v10, %v8664_v53  ;;  %v8714_v4 = vunpack.i.l.bf16 %v13210_v37  ;;  %v8820_v28 = vunpack.i.h.bf16 %v13487_v32  ;;  %v13641_v32 = vld [vmem:[#allocation4 + $0x158] sm:$0xff]  ;;  %v4910_v53 = vld [vmem:[#allocation4 + $0x110] sm:$0xff] }
 0x766   : > { %v8824_v25 = vunpack.i.l.bf16 %v8823_v39  ;;  %v8825_v2 = vunpack.i.h.bf16 %v8823_v39  ;;  %v8795_v49 = vunpack.i.h.bf16 %v13478_v45  ;;  %v8794_v59 = vunpack.i.l.bf16 %v13478_v45  ;;  %v4909_v39 = vld [vmem:[#allocation4 + $0x108] sm:$0xff] }
 0x767   : > { %v5978_v1 = vsel %vm4291_vm6, %v5946_v38, %v8744_v61  ;;  %v9051_v45 = vpack.i.bf16 %v13630_v3, %v13641_v32  ;;  %v9061_v30 = vpack.i.bf16 %v13498_v33, %v13436_v31  ;;  %v5967_v19 = vsel %vm4225_vm4, %v4910_v53, %v8715_v29  ;;  %v13673_v29 = vld [vmem:[#allocation4 + $0x180] sm:$0xff] }
 0x768   : > { %8010 = vmatmul.msk.f32.gmra.mxu1 %vm4225_vm4, %v13598_v34  ;;  %v6042_v57 = vsel %vm4225_vm4, %v5017_v46, %v8824_v25  ;;  %v13634_v25 = vpop.permute.xlu2 %8842  ;;  %v5966_v46 = vsel %vm4225_vm4, %v4909_v39, %v8714_v4  ;;  %v8834_v18 = vunpack.i.l.bf16 %v13594_v36  ;;  %v8830_v61 = vunpack.i.h.bf16 %v13507_v55 }
 0x769   : > { %6404 = vmatmul.f32.gmra.mxu3 %v6105_v35  ;;  %v6074_v26 = vsel %vm4291_vm6, %v6042_v57, %v8815_v56  ;;  %v13637_v10 = vpop.f32.mrf.mxu1  ;;  %v13643_v50 = vpop.permute.xlu0 %8847  ;;  %v5018_v35 = vld [vmem:[#allocation4 + $0x39] sm:$0xff]  ;;  %v13665_v57 = vsel %vm4291_vm6, %v5967_v19, %v8795_v49  ;;  %v13671_v56 = vld [vmem:[#allocation4 + $0x170] sm:$0xff]  ;;  %v8844_v4 = vunpack.i.l.bf16 %v13634_v25  ;;  %v8835_v39 = vunpack.i.h.bf16 %v13594_v36 }
 0x76a   : > { %9037 = vrot.lane.b32.xlu2 %v9036_v24, %s9293_s14  ;;  %v6106_v37 = vsel %vm4357_vm8, %v6074_v26, %v8820_v28  ;;  %v9086_v24 = vpack.i.bf16 %v13598_v34, %v13550_v40  ;;  %v8849_v11 = vunpack.i.l.bf16 %v13643_v50  ;;  %v5110_v26 = vld [vmem:[#allocation4 + $0x198] sm:$0xff]  ;;  %v13683_v49 = vld [vmem:[#allocation4 + $0x18a] sm:$0xff]  ;;  %v9066_v55 = vpack.i.bf16 %v13671_v56, %v13331_v23 }
 0x76b   : > { %9047 = vrot.lane.b32.xlu1 %v9046_v14, %s9293_s14  ;;  %9072 = vrot.lane.b32.xlu0 %v9071_v63, %s9293_s14  ;;  %v6043_v14 = vsel %vm4225_vm4, %v5018_v35, %v8825_v2  ;;  %v13662_v63 = vsel %vm4291_vm6, %v5966_v46, %v8794_v59  ;;  %v9076_v59 = vpack.i.bf16 %v13673_v29, %v13360_v8  ;;  %v5019_v23 = vld [vmem:[#allocation4 + $0x49] sm:$0xff]  ;;  %v5140_v35 = vld [vmem:[#allocation4 + $0x181] sm:$0xff]  ;;  %v8845_v46 = vunpack.i.h.bf16 %v13634_v25  ;;  %v5020_v25 = vld [vmem:[#allocation4 + $0x51] sm:$0xff] }
 0x76c   : > { %v6075_v17 = vsel %vm4291_vm6, %v6043_v14, %v8834_v18  ;;  %v6011_v28 = vsel %vm4357_vm8, %v13410_v42, %v8849_v11  ;;  %v9101_v42 = vpack.i.bf16 %v5110_v26, %v13436_v31  ;;  %v5111_v14 = vld [vmem:[#allocation4 + $0x1a0] sm:$0xff] }
 0x76d   : > { %v13622_v21 = vpop.permute.xlu1 %8837  ;;  %v6107_v2 = vsel %vm4357_vm8, %v6075_v17, %v8830_v61  ;;  %v9081_v17 = vpack.i.bf16 %v5140_v35, %v13445_v13  ;;  %v9116_v26 = vpack.i.bf16 %v5111_v14, %v13498_v33  ;;  %v5141_v13 = vld [vmem:[#allocation4 + $0x189] sm:$0xff] }
 0x76e   : > { %v8839_v22 = vunpack.i.l.bf16 %v13622_v21 }
 0x770   : > { %v6010_v47 = vsel %vm4357_vm8, %v5978_v1, %v8839_v22  ;;  %8011 = vmatmul.msk.f32.gmra.mxu1 %vm4225_vm4, %v13645_v6  ;;  %v13681_v22 = vpop.permute.xlu2 %8857  ;;  %v8669_v1 = vunpack.i.l.bf16 %v13144_v60  ;;  %v8840_v60 = vunpack.i.h.bf16 %v13622_v21 }
 0x771   : > { %6294 = vmatmul.f32.gmra.mxu2 %v6010_v47  ;;  %6407 = vmatmul.f32.gmra.mxu3 %v6106_v37  ;;  %v13690_v47 = vpop.f32.mrf.mxu1  ;;  %v8749_v37 = vunpack.i.l.bf16 %v13351_v0  ;;  %v8859_v8 = vunpack.i.l.bf16 %v13681_v22  ;;  %v13704_v0 = vld [vmem:[#allocation4 + $0x188] sm:$0xff]  ;;  %v8863_v36 = vpop.permute.xlu0 %8862 }
 0x772   : > { %9052 = vrot.lane.b32.xlu2 %v9051_v45, %s9291_s11  ;;  %v6044_v45 = vsel %vm4225_vm4, %v5019_v23, %v8844_v4  ;;  %v9091_v61 = vpack.i.bf16 %v13704_v0, %v13392_v15  ;;  %v8864_v15 = vunpack.i.l.bf16 %v8863_v36  ;;  %v9096_v23 = vpack.i.bf16 %v5141_v13, %v13641_v32  ;;  %v15792_v13 = vld [vmem:[#allocation107_spill] sm:$0xff] }
 0x773   : > { %9062 = vrot.lane.b32.xlu1 %v9061_v30, %s9289_s30  ;;  %9087 = vrot.lane.b32.xlu0 %v9086_v24, %s9289_s30  ;;  %v4891_v30 = vld [vmem:[#allocation4 + $0x30] sm:$0xff]  ;;  %v6076_v24 = vsel %vm4291_vm6, %v6044_v45, %v8835_v39  ;;  %v8860_v45 = vunpack.i.h.bf16 %v13681_v22  ;;  %v8865_v32 = vunpack.i.h.bf16 %v8863_v36 }
 0x774   : > { %v5948_v31 = vsel %vm4225_vm4, %v4891_v30, %v8669_v1  ;;  %v6108_v19 = vsel %vm4357_vm8, %v6076_v24, %v8840_v60  ;;  %v5143_v30 = vld [vmem:[#allocation4 + $0x1a1] sm:$0xff]  ;;  %v5022_v22 = vld [vmem:[#allocation4 + $0x69] sm:$0xff] }
 0x775   : > { %v13675_v38 = vpop.permute.xlu1 %8852  ;;  %v5980_v53 = vsel %vm4291_vm6, %v5948_v31, %v8749_v37  ;;  %v9121_v24 = vpack.i.bf16 %v5143_v30, %v13671_v56  ;;  %v5025_v30 = vld [vmem:[#allocation4 + $0x91] sm:$0xff] }
 0x776   : > { %v6012_v21 = vsel %vm4357_vm8, %v5980_v53, %v8859_v8  ;;  %v8854_v18 = vunpack.i.l.bf16 %v13675_v38  ;;  %v8855_v37 = vunpack.i.h.bf16 %v13675_v38 }
 0x778   : > { %8012 = vmatmul.msk.f32.gmra.mxu1 %vm4225_vm4, %v13683_v49  ;;  %v8873_v1 = vpop.permute.xlu2 %8872 }
 0x779   : > { %6297 = vmatmul.f32.gmra.mxu2 %v6011_v28  ;;  %6410 = vmatmul.f32.gmra.mxu3 %v6107_v2  ;;  %v6045_v28 = vsel %vm4225_vm4, %v5020_v25, %v8845_v46  ;;  %v8878_v39 = vpop.permute.xlu0 %8877  ;;  %v8874_v14 = vunpack.i.l.bf16 %v8873_v1  ;;  %v8875_v25 = vunpack.i.h.bf16 %v8873_v1  ;;  %v5024_v1 = vld [vmem:[#allocation4 + $0x81] sm:$0xff] }
 0x77a   : > { %9067 = vrot.lane.b32.xlu2 %v9066_v55, %s9291_s11  ;;  %v6077_v2 = vsel %vm4291_vm6, %v6045_v28, %v8854_v18  ;;  %v8850_v55 = vunpack.i.h.bf16 %v13643_v50  ;;  %v5021_v50 = vld [vmem:[#allocation4 + $0x61] sm:$0xff]  ;;  %v8879_v60 = vunpack.i.l.bf16 %v8878_v39  ;;  %v8880_v28 = vunpack.i.h.bf16 %v8878_v39 }
 0x77b   : > { %9077 = vrot.lane.b32.xlu1 %v9076_v59, %s9291_s11  ;;  %9102 = vrot.lane.b32.xlu0 %v9101_v42, %s9291_s11  ;;  %v5142_v59 = vld [vmem:[#allocation4 + $0x199] sm:$0xff] }
 0x77c   : > { %v6109_v42 = vsel %vm4357_vm8, %v6077_v2, %v8850_v55  ;;  %v9106_v8 = vpack.i.bf16 %v5142_v59, %v13630_v3  ;;  %v6014_v3 = vsel %vm4357_vm8, %v13413_v48, %v8879_v60  ;;  %v6047_v48 = vsel %vm4225_vm4, %v5022_v22, %v8865_v32 }
 0x77d   : > { %v8868_v11 = vpop.permute.xlu1 %8867  ;;  %v6079_v18 = vsel %vm4291_vm6, %v6047_v48, %v8874_v14 }
 0x77e   : > { %v8869_v4 = vunpack.i.l.bf16 %v8868_v11  ;;  %v8870_v46 = vunpack.i.h.bf16 %v8868_v11 }
 0x780   : > { %v6013_v33 = vsel %vm4357_vm8, %v13516_v44, %v8869_v4  ;;  %v6046_v44 = vsel %vm4225_vm4, %v5021_v50, %v8864_v15  ;;  %v8888_v53 = vpop.permute.xlu2 %8887  ;;  %v15793_v50 = vld [vmem:[#allocation19_spill] sm:$0xff] }
 0x781   : > { %6300 = vmatmul.f32.gmra.mxu2 %v6012_v21  ;;  %6413 = vmatmul.f32.gmra.mxu3 %v6108_v19  ;;  %v6078_v38 = vsel %vm4291_vm6, %v6046_v44, %v8855_v37  ;;  %v8889_v36 = vunpack.i.l.bf16 %v8888_v53  ;;  %v8893_v19 = vpop.permute.xlu0 %8892  ;;  %v8890_v39 = vunpack.i.h.bf16 %v8888_v53 }
 0x782   : > { %9082 = vrot.lane.b32.xlu2 %v9081_v17, %s9293_s14  ;;  %v6110_v35 = vsel %vm4357_vm8, %v6078_v38, %v8860_v45  ;;  %v15791_v17 = vld [vmem:[#allocation16_spill] sm:$0xff]  ;;  %v8895_v45 = vunpack.i.h.bf16 %v8893_v19 }
 0x783   : > { %9092 = vrot.lane.b32.xlu1 %v9091_v61, %s9291_s11  ;;  %9117 = vrot.lane.b32.xlu0 %v9116_v26, %s9291_s11  ;;  %v6015_v61 = vsel %vm4357_vm8, %v15791_v17, %v8889_v36  ;;  %v5026_v36 = vld [vmem:[#allocation4 + $0x99] sm:$0xff] }
 0x785   : > { %v8883_v31 = vpop.permute.xlu1 %8882 }
 0x786   : > { %v8884_v21 = vunpack.i.l.bf16 %v8883_v31  ;;  %v8885_v2 = vunpack.i.h.bf16 %v8883_v31 }
 0x788   : > { %v8903_v55 = vpop.permute.xlu2 %8902 }
 0x789   : > { %6303 = vmatmul.f32.gmra.mxu2 %v6013_v33  ;;  %6416 = vmatmul.f32.gmra.mxu3 %v6109_v42  ;;  %v8908_v33 = vpop.permute.xlu0 %8907  ;;  %v8894_v42 = vunpack.i.l.bf16 %v8893_v19  ;;  %v8905_v53 = vunpack.i.h.bf16 %v8903_v55 }
 0x78a   : > { %9097 = vrot.lane.b32.xlu2 %v9096_v23, %s9293_s14  ;;  %v8910_v19 = vunpack.i.h.bf16 %v8908_v33 }
 0x78b   : > { %9107 = vrot.lane.b32.xlu1 %v9106_v8, %s9293_s14  ;;  %5524 = vrot.lane.b32.xlu0 %v13673_v29, %s9293_s14  ;;  %v9111_v29 = vpack.i.bf16 %v13683_v49, %v13645_v6  ;;  %v6111_v6 = vsel %vm4357_vm8, %v6079_v18, %v8870_v46  ;;  %v5023_v49 = vld [vmem:[#allocation4 + $0x79] sm:$0xff]  ;;  %v8904_v8 = vunpack.i.l.bf16 %v8903_v55  ;;  %v6051_v48 = vsel %vm4225_vm4, %v5026_v36, %v8905_v53 }
 0x78c   : > { %v6048_v26 = vsel %vm4225_vm4, %v5023_v49, %v8884_v21  ;;  %v5027_v49 = vld [vmem:[#allocation4 + $0xa9] sm:$0xff]  ;;  %v15794_v55 = vld [vmem:[#allocation108_spill] sm:$0xff] }
 0x78d   : > { %v8898_v56 = vpop.permute.xlu1 %8897  ;;  %v6080_v4 = vsel %vm4291_vm6, %v6048_v26, %v8875_v25 }
 0x78e   : > { %v8899_v11 = vunpack.i.l.bf16 %v8898_v56  ;;  %v6112_v15 = vsel %vm4357_vm8, %v6080_v4, %v8880_v28  ;;  %v8900_v32 = vunpack.i.h.bf16 %v8898_v56 }
 0x790   : > { %v6016_v59 = vsel %vm4357_vm8, %v15792_v13, %v8899_v11  ;;  %v8918_v38 = vpop.permute.xlu2 %8917 }
 0x791   : > { %6306 = vmatmul.f32.gmra.mxu2 %v6014_v3  ;;  %6419 = vmatmul.f32.gmra.mxu3 %v6110_v35  ;;  %v8919_v31 = vunpack.i.l.bf16 %v8918_v38  ;;  %v8923_v3 = vpop.permute.xlu0 %8922  ;;  %v8920_v4 = vunpack.i.h.bf16 %v8918_v38 }
 0x792   : > { %9112 = vrot.lane.b32.xlu2 %v9111_v29, %s9289_s30  ;;  %v8924_v17 = vunpack.i.l.bf16 %v8923_v3  ;;  %s7709_s30 = sld [smem:[#allocation6]] }
 0x793   : > { %9122 = vrot.lane.b32.xlu1 %v9121_v24, %s9293_s14  ;;  %v6018_v29 = vsel %vm4357_vm8, %v13572_v52, %v8919_v31 }
 0x794   : > { %v6052_v25 = vsel %vm4225_vm4, %v5027_v49, %v8924_v17 }
 0x795   : > { %v8913_v23 = vpop.permute.xlu1 %8912 }
 0x796   : > { %v8914_v14 = vunpack.i.l.bf16 %v8913_v23 }
 0x798   : > { %v6083_v21 = vsel %vm4291_vm6, %v6051_v48, %v8914_v14  ;;  %v8933_v18 = vpop.permute.xlu2 %8932 }
 0x799   : > { %6309 = vmatmul.f32.gmra.mxu2 %v6015_v61  ;;  %6422 = vmatmul.f32.gmra.mxu3 %v6111_v6  ;;  %v6115_v52 = vsel %vm4357_vm8, %v6083_v21, %v8910_v19  ;;  %v8915_v6 = vunpack.i.h.bf16 %v8913_v23  ;;  %v8938_v56 = vpop.permute.xlu0 %8937  ;;  %v15795_v23 = vld [vmem:[#allocation109_spill] sm:$0xff] }
 0x79a   : > { %5396 = vrot.lane.b32.xlu2 %v13550_v40, %s9291_s11  ;;  %v6049_v40 = vsel %vm4225_vm4, %v5024_v1, %v8885_v2  ;;  %v8939_v26 = vunpack.i.l.bf16 %v8938_v56  ;;  %v8925_v2 = vunpack.i.h.bf16 %v8923_v3 }
 0x79b   : > { %5398 = vrot.lane.b32.xlu1 %v13598_v34, %s9291_s11  ;;  %v8909_v34 = vunpack.i.l.bf16 %v8908_v33  ;;  %v6081_v37 = vsel %vm4291_vm6, %v6049_v40, %v8894_v42  ;;  %v6084_v11 = vsel %vm4291_vm6, %v6052_v25, %v8915_v6  ;;  %v5028_v33 = vld [vmem:[#allocation4 + $0xb1] sm:$0xff]  ;;  %s365_s11 = sand.u32 1, %s9275_s16  }
 0x79c   : > { %v6113_v44 = vsel %vm4357_vm8, %v6081_v37, %v8890_v39  ;;  %v6020_v13 = vsel %vm4357_vm8, %v15794_v55, %v8939_v26  ;;  %v6053_v42 = vsel %vm4225_vm4, %v5028_v33, %v8925_v2  ;;  %s7853_s21 = scalar_lea.sflag [#allocation8], %s365_s11 }
 0x79d   : > { %v6017_v60 = vsel %vm4357_vm8, %v15793_v50, %v8909_v34  ;;  %v8928_v22 = vpop.permute.xlu1 %8927 }
 0x79e   : > { %v8929_v46 = vunpack.i.l.bf16 %v8928_v22  ;;  %v8930_v40 = vunpack.i.h.bf16 %v8928_v22 }
 0x7a0   : > { %v6019_v61 = vsel %vm4357_vm8, %v13575_v16, %v8929_v46  ;;  %v6116_v16 = vsel %vm4357_vm8, %v6084_v11, %v8920_v4  ;;  %v13798_v11 = vld [vmem:[%s15081_s8] ss:$0 sm:$0xff] }
 0x7a1   : > { %6312 = vmatmul.f32.gmra.mxu2 %v6016_v59  ;;  %6425 = vmatmul.f32.gmra.mxu3 %v6112_v15  ;;  %v8948_v59 = vpop.permute.xlu2 %8947  ;;  %v8934_v15 = vunpack.i.l.bf16 %v8933_v18  ;;  %v8953_v37 = vpop.permute.xlu0 %8952 }
 0x7a2   : > { %5526 = vrot.lane.b32.xlu2 %v13704_v0, %s9293_s14  ;;  %v6050_v0 = vsel %vm4225_vm4, %v5025_v30, %v8904_v8  ;;  %v8949_v1 = vunpack.i.l.bf16 %v8948_v59  ;;  %v8954_v22 = vunpack.i.l.bf16 %v8953_v37  ;;  %v8950_v48 = vunpack.i.h.bf16 %v8948_v59  ;;  %v5032_v59 = vld [vmem:[#allocation4 + $0xe1] sm:$0xff]  ;;  %s7948_s14 = sshll.u32 %s365_s11, 4 }
 0x7a3   : > { %v6082_v35 = vsel %vm4291_vm6, %v6050_v0, %v8895_v45  ;;  %v6085_v39 = vsel %vm4291_vm6, %v6053_v42, %v8934_v15  ;;  %v8935_v45 = vunpack.i.h.bf16 %v8933_v18  ;;  %s14980_s22 = scalar_lea.vmem [#allocation10], %s7948_s14 }
 0x7a4   : > { %v6114_v24 = vsel %vm4357_vm8, %v6082_v35, %v8900_v32  ;;  %v6021_v8 = vsel %vm4357_vm8, %v15795_v23, %v8949_v1  ;;  %v6117_v50 = vsel %vm4357_vm8, %v6085_v39, %v8930_v40  ;;  %v8940_v32 = vunpack.i.h.bf16 %v8938_v56  ;;  %s7865_s29 = sshll.u32 %s14980_s22, 4  ;;  %s7866_s29 = int_to_ptr.vmem [resolvable:$true] %s7865_s29 }
 0x7a5   : > { %v8943_v28 = vpop.permute.xlu1 %8942 }
 0x7a6   : > { %v8944_v34 = vunpack.i.l.bf16 %v8943_v28  ;;  %v8945_v0 = vunpack.i.h.bf16 %v8943_v28 }
 0x7a9   : > { %6315 = vmatmul.f32.gmra.mxu2 %v6017_v60  ;;  %6428 = vmatmul.f32.gmra.mxu3 %v6113_v44  ;;  %v5029_v44 = vld [vmem:[#allocation4 + $0xc1] sm:$0xff]  ;;  %v8963_v3 = vpop.permute.xlu2 %8962 }
 0x7aa   : > { %v6054_v38 = vsel %vm4225_vm4, %v5029_v44, %v8944_v34  ;;  %v8964_v19 = vunpack.i.l.bf16 %v8963_v3  ;;  %v8965_v4 = vunpack.i.h.bf16 %v8963_v3  ;;  %v13816_v44 = vpop.f32.mrf.mxu1 }
 0x7ab   : > { %v6086_v31 = vsel %vm4291_vm6, %v6054_v38, %v8935_v45 }
 0x7ac   : > { %v6118_v53 = vsel %vm4357_vm8, %v6086_v31, %v8940_v32  ;;  %v6057_v1 = vsel %vm4225_vm4, %v5032_v59, %v8965_v4  ;;  %v6828_v4 = vld [vmem:[#allocation5 + $0x1] sm:$0xff] }
 0x7ad   : > { %v8958_v60 = vpop.permute.xlu1 %8957 }
 0x7ae   : > { %v8959_v30 = vunpack.i.l.bf16 %v8958_v60  ;;  %v8960_v56 = vunpack.i.h.bf16 %v8958_v60 }
 0x7b0   : > { %v6022_v35 = vsel %vm4357_vm8, %v13519_v12, %v8959_v30 }
 0x7b1   : > { %6318 = vmatmul.f32.gmra.mxu2 %v6018_v29  ;;  %6431 = vmatmul.f32.gmra.mxu3 %v6114_v24  ;;  %v8968_v29 = vpop.permute.xlu0 %8967  ;;  %v5030_v24 = vld [vmem:[#allocation4 + $0xc9] sm:$0xff]  ;;  %v8978_v17 = vpop.permute.xlu2 %8977 }
 0x7b2   : > { %v6055_v14 = vsel %vm4225_vm4, %v5030_v24, %v8945_v0  ;;  %v8969_v36 = vunpack.i.l.bf16 %v8968_v29  ;;  %v8979_v6 = vunpack.i.l.bf16 %v8978_v17  ;;  %v8970_v34 = vunpack.i.h.bf16 %v8968_v29  ;;  %v5033_v0 = vld [vmem:[#allocation4 + $0xf1] sm:$0xff] }
 0x7b3   : > { %v6087_v46 = vsel %vm4291_vm6, %v6055_v14, %v8954_v22  ;;  %v8980_v24 = vunpack.i.h.bf16 %v8978_v17  ;;  %v15797_v14 = vld [vmem:[#allocation106_spill] sm:$0xff]  ;;  %v5034_v17 = vld [vmem:[#allocation4 + $0xf9] sm:$0xff] }
 0x7b4   : > { %v6023_v18 = vsel %vm4357_vm8, %v13527_v51, %v8969_v36  ;;  %v6119_v12 = vsel %vm4357_vm8, %v6087_v46, %v8950_v48  ;;  %v6024_v28 = vsel %vm4357_vm8, %v13615_v7, %v8979_v6 }
 0x7b5   : > { %v8973_v21 = vpop.permute.xlu1 %8972 }
 0x7b6   : > { %v8974_v55 = vunpack.i.l.bf16 %v8973_v21  ;;  %v8975_v38 = vunpack.i.h.bf16 %v8973_v21 }
 0x7b8   : > { %v6089_v42 = vsel %vm4291_vm6, %v6057_v1, %v8974_v55  ;;  %v13854_v55 = vld [vmem:[%s15082_s9 + $0x1] ss:$0 sm:$0xff] }
 0x7b9   : > { %6321 = vmatmul.f32.gmra.mxu2 %v6019_v61  ;;  %6434 = vmatmul.f32.gmra.mxu3 %v6115_v52  ;;  %v8955_v61 = vunpack.i.h.bf16 %v8953_v37  ;;  %v5031_v52 = vld [vmem:[#allocation4 + $0xd9] sm:$0xff]  ;;  %v8983_v25 = vpop.permute.xlu0 %8982  ;;  %v13810_v7 = vpop.permute.xlu2 %8992  ;;  %v6121_v60 = vsel %vm4357_vm8, %v6089_v42, %v8970_v34  ;;  %v6862_v42 = vmul.f32 %v13854_v55, %v6828_v4 }
 0x7ba   : > { %v6056_v49 = vsel %vm4225_vm4, %v5031_v52, %v8964_v19  ;;  %v15796_v37 = vld [vmem:[#allocation105_spill] sm:$0xff]  ;;  %v8984_v23 = vunpack.i.l.bf16 %v8983_v25  ;;  %v8985_v36 = vunpack.i.h.bf16 %v8983_v25  ;;  %v6730_v25 = vld [vmem:[#allocation5] sm:$0xff] }
 0x7bb   : > { %v6088_v51 = vsel %vm4291_vm6, %v6056_v49, %v8955_v61 }
 0x7bc   : > { %v6120_v2 = vsel %vm4357_vm8, %v6088_v51, %v8960_v56  ;;  %v6059_v56 = vsel %vm4225_vm4, %v5034_v17, %v8985_v36  ;;  %v13846_v51 = vld [vmem:[%s15082_s9] ss:$0 sm:$0xff] }
 0x7c1   : > { %6324 = vmatmul.f32.gmra.mxu2 %v6020_v13  ;;  %6437 = vmatmul.f32.gmra.mxu3 %v6116_v16  ;;  %v13804_v13 = vpop.permute.xlu1 %8987  ;;  %v13818_v45 = vpop.permute.xlu0 %8997 }
 0x7c2   : > { %v8989_v15 = vunpack.i.l.bf16 %v13804_v13  ;;  %v8999_v3 = vunpack.i.l.bf16 %v13818_v45  ;;  %v13831_v21 = vpop.permute.xlu2 %9007  ;;  %v8990_v52 = vunpack.i.h.bf16 %v13804_v13  ;;  %v6926_v13 = vld [vmem:[#allocation5 + $0x2] sm:$0xff] }
 0x7c3   : > { %v9009_v61 = vunpack.i.l.bf16 %v13831_v21 }
 0x7c4   : > { %v6026_v46 = vsel %vm4357_vm8, %v13530_v9, %v8999_v3 }
 0x7c9   : > { %6327 = vmatmul.f32.gmra.mxu2 %v6021_v8  ;;  %6440 = vmatmul.f32.gmra.mxu3 %v6117_v50  ;;  %v6025_v50 = vsel %vm4357_vm8, %v13618_v62, %v8989_v15  ;;  %v13820_v31 = vpop.permute.xlu1 %9002 }
 0x7d1   : > { %6330 = vmatmul.f32.gmra.mxu2 %v6022_v35  ;;  %6443 = vmatmul.f32.gmra.mxu3 %v6118_v53  ;;  %v6058_v35 = vsel %vm4225_vm4, %v5033_v0, %v8984_v23  ;;  %v13840_v49 = vpop.permute.xlu1 %9017  ;;  %v13872_v23 = vld [vmem:[%s15082_s9 + $0x3] ss:$0 sm:$0xff] }
 0x7d2   : > { %v6090_v29 = vsel %vm4291_vm6, %v6058_v35, %v8975_v38 }
 0x7d3   : > { %v6122_v48 = vsel %vm4357_vm8, %v6090_v29, %v8980_v24  ;;  %v6731_v24 = vld [vmem:[#allocation5 + $0x8] sm:$0xff] }
 0x7d4   : > { %v6765_v36 = vmul.f32 %v13846_v51, %v6731_v24 }
 0x7d9   : > { %6333 = vmatmul.f32.gmra.mxu2 %v6023_v18  ;;  %6446 = vmatmul.f32.gmra.mxu3 %v6119_v12  ;;  %v13833_v18 = vpop.f32.mrf.mxu1  ;;  %v8994_v12 = vunpack.i.l.bf16 %v13810_v7 }
 0x7db   : > { %v6091_v15 = vsel %vm4291_vm6, %v6059_v56, %v8994_v12  ;;  %v13895_v12 = vpop.permute.xlu1 %9032 }
 0x7dc   : > { %v6289_v26 = vpop.f32.mrf.mxu2  ;;  %v6123_v1 = vsel %vm4357_vm8, %v6091_v15, %v8990_v52  ;;  %v13918_v15 = vld [vmem:[%s15082_s9 + $0x6] ss:$0 sm:$0xff] }
 0x7dd   : > { %v6290_v16 = vadd.f32 %v13798_v11, %v6289_v26 }
 0x7e1   : > { %6336 = vmatmul.f32.gmra.mxu2 %v6024_v28  ;;  %6449 = vmatmul.f32.gmra.mxu3 %v6120_v2  ;;  %v13848_v28 = vpop.permute.xlu0 %9012  ;;  %v9004_v2 = vunpack.i.l.bf16 %v13820_v31  ;;  %v13880_v3 = vpop.f32.mrf.mxu1 }
 0x7e4   : > { %v6402_v33 = vpop.f32.mrf.mxu3  ;;  %v6292_v8 = vpop.f32.mrf.mxu2 }
 0x7e5   : > { %v6403_v40 = vadd.f32 %v6402_v33, %v6290_v16  ;;  %v6293_v32 = vadd.f32 %v13798_v11, %v6292_v8  ;;  %v13859_v16 = vld [vmem:[%s15082_s9 + $0x2] ss:$0 sm:$0xff]  ;;  %v6027_v33 = vsel %vm4357_vm8, %v13533_v58, %v9009_v61  ;;  %v13900_v61 = vld [vmem:[%s15082_s9 + $0x4] ss:$0 sm:$0xff] }
 0x7e7   : > { %v6516_v39 = vadd.f32 %v15796_v37, %v6403_v40  ;;  %v6764_v40 = vmul.f32 %v13846_v51, %v6730_v25  ;;  %v5035_v37 = vld [vmem:[#allocation4 + $0x109] sm:$0xff] }
 0x7e8   : > { %v6060_v58 = vsel %vm4225_vm4, %v5035_v37, %v9004_v2 }
 0x7e9   : > { %v6611_v30 = vmax.f32 %v6516_v39, 0.0  ;;  %6339 = vmatmul.f32.gmra.mxu2 %v6025_v50  ;;  %6452 = vmatmul.f32.gmra.mxu3 %v6121_v60  ;;  %v6960_v39 = vmul.f32 %v13859_v16, %v6926_v13  ;;  %v6894_v8 = vadd.f32 %v6862_v42, %v6764_v40  ;;  %v8995_v60 = vunpack.i.h.bf16 %v13810_v7  ;;  %v13907_v52 = vpop.permute.xlu0 %9027  ;;  %v5036_v13 = vld [vmem:[#allocation4 + $0x111] sm:$0xff] }
 0x7eb   : > { %6698 = vst.msk [vmem:[#allocation5 + $0x19] sm:$0xff] %vm2919_vm2, %v6611_v30  ;;  %v9019_v30 = vunpack.i.l.bf16 %v13840_v49  ;;  %v6992_v29 = vadd.f32 %v6960_v39, %v6894_v8 }
 0x7ec   : > { %v6405_v62 = vpop.f32.mrf.mxu3 }
 0x7ed   : > { %v6406_v53 = vadd.f32 %v6405_v62, %v6293_v32  ;;  %v13882_v62 = vpop.permute.xlu2 %9022 }
 0x7ef   : > { %v6519_v22 = vadd.f32 %v15797_v14, %v6406_v53  ;;  %v6092_v53 = vsel %vm4291_vm6, %v6060_v58, %v8995_v60  ;;  %v6927_v14 = vld [vmem:[#allocation5 + $0xa] sm:$0xff] }
 0x7f0   : > { %v15799_v60 = vld [vmem:[#allocation104_spill] sm:$0xff] }
 0x7f1   : > { %v6612_v19 = vmax.f32 %v6519_v22, 0.0  ;;  %6342 = vmatmul.f32.gmra.mxu2 %v6026_v46  ;;  %6455 = vmatmul.f32.gmra.mxu3 %v6122_v48  ;;  %v9005_v22 = vunpack.i.h.bf16 %v13820_v31  ;;  %v6961_v48 = vmul.f32 %v13859_v16, %v6927_v14  ;;  %v13905_v31 = vld [vmem:[%s15082_s9 + $0x5] ss:$0 sm:$0xff] }
 0x7f2   : > { %v13875_v50 = vld [vmem:[#allocation5 + $0x18] sm:$0xff]  ;;  %v15800_v14 = vld [vmem:[#allocation13_spill] sm:$0xff] }
 0x7f3   : > { %6699 = vst.msk [vmem:[#allocation5 + $0x21] sm:$0xff] %vm2919_vm2, %v6612_v19  ;;  %v7058_v7 = vmul.f32 %v13872_v23, %v13875_v50  ;;  %v7122_v56 = vld [vmem:[#allocation5 + $0x19] sm:$0xff]  ;;  %v6061_v40 = vsel %vm4225_vm4, %v5036_v13, %v9005_v22 }
 0x7f4   : > { %v6295_v6 = vpop.f32.mrf.mxu2  ;;  %v6408_v9 = vpop.f32.mrf.mxu3 }
 0x7f5   : > { %v6296_v26 = vadd.f32 %v13798_v11, %v6295_v6  ;;  %v6028_v6 = vsel %vm4357_vm8, %v13578_v27, %v9019_v30  ;;  %v15798_v27 = vld [vmem:[#allocation103_spill] sm:$0xff] }
 0x7f6   : > { %v8724_v8 = vunpack.i.l.bf16 %v15798_v27 }
 0x7f7   : > { %v6409_v59 = vadd.f32 %v6408_v9, %v6296_v26 }
 0x7f9   : > { %v6522_v34 = vadd.f32 %v13522_v54, %v6409_v59  ;;  %6345 = vmatmul.f32.gmra.mxu2 %v6027_v33  ;;  %6458 = vmatmul.f32.gmra.mxu3 %v6123_v1  ;;  %v9000_v54 = vunpack.i.h.bf16 %v13818_v45  ;;  %v6829_v45 = vld [vmem:[#allocation5 + $0x9] sm:$0xff]  ;;  %v7090_v59 = vadd.f32 %v7058_v7, %v6992_v29  ;;  %v9014_v1 = vunpack.i.l.bf16 %v13848_v28 }
 0x7fa   : > { %v6863_v46 = vmul.f32 %v13854_v55, %v6829_v45  ;;  %v13893_v19 = vld [vmem:[#allocation5 + $0x20] sm:$0xff]  ;;  %v8720_v45 = vunpack.i.h.bf16 %v13281_v5 }
 0x7fb   : > { %v6613_v38 = vmax.f32 %v6522_v34, 0.0  ;;  %v6124_v9 = vsel %vm4357_vm8, %v6092_v53, %v9000_v54  ;;  %v7220_v26 = vld [vmem:[#allocation5 + $0x1a] sm:$0xff]  ;;  %v7059_v4 = vmul.f32 %v13872_v23, %v13893_v19  ;;  %v9029_v34 = vunpack.i.l.bf16 %v13907_v52 }
 0x7fc   : > { %v6298_v32 = vpop.f32.mrf.mxu2  ;;  %v6411_v0 = vpop.f32.mrf.mxu3  ;;  %v6895_v25 = vadd.f32 %v6863_v46, %v6765_v36  ;;  %v7254_v39 = vmul.f32 %v13905_v31, %v7220_v26  ;;  %v13926_v58 = vld [vmem:[#allocation5 + $0x21] sm:$0xff]  ;;  %v6093_v29 = vsel %vm4291_vm6, %v6061_v40, %v9014_v1  ;;  %v9010_v36 = vunpack.i.h.bf16 %v13831_v21 }
 0x7fd   : > { %6700 = vst.msk [vmem:[#allocation5 + $0x31] sm:$0xff] %vm2919_vm2, %v6613_v38  ;;  %v6299_v35 = vadd.f32 %v13798_v11, %v6298_v32  ;;  %v7157_v46 = vmul.f32 %v13900_v61, %v13926_v58  ;;  %v13955_v21 = vld [vmem:[#allocation5 + $0x22] sm:$0xff]  ;;  %v6766_v40 = vmul.f32 %v13846_v51, %v13875_v50  ;;  %v9015_v50 = vunpack.i.h.bf16 %v13848_v28 }
 0x7fe   : > { %v6993_v42 = vadd.f32 %v6961_v48, %v6895_v25  ;;  %v13943_v48 = vpop.f32.mrf.mxu1  ;;  %v6029_v25 = vsel %vm4357_vm8, %v13583_v43, %v9029_v34  ;;  %v6125_v13 = vsel %vm4357_vm8, %v6093_v29, %v9010_v36  ;;  %v9025_v34 = vunpack.i.h.bf16 %v13882_v62  ;;  %v13979_v29 = vpop.permute.xlu0 %9042 }
 0x7ff   : > { %v6412_v17 = vadd.f32 %v6411_v0, %v6299_v35  ;;  %v9034_v28 = vunpack.i.l.bf16 %v13895_v12 }
 0x800   : > { %v7091_v35 = vadd.f32 %v7059_v4, %v6993_v42  ;;  %v6864_v42 = vmul.f32 %v13854_v55, %v7122_v56 }
 0x801   : > { %v6525_v2 = vadd.f32 %v13590_v41, %v6412_v17  ;;  %6348 = vmatmul.f32.gmra.mxu2 %v6028_v6  ;;  %6461 = vmatmul.f32.gmra.mxu3 %v6124_v9  ;;  %v7156_v41 = vmul.f32 %v13900_v61, %v7122_v56  ;;  %v9024_v17 = vunpack.i.l.bf16 %v13882_v62  ;;  %v13946_v6 = vpop.permute.xlu2 %9037 }
 0x802   : > { %v7189_v1 = vadd.f32 %v7157_v46, %v7091_v35  ;;  %v9039_v56 = vunpack.i.l.bf16 %v13946_v6  ;;  %v7255_v35 = vmul.f32 %v13905_v31, %v13955_v21 }
 0x803   : > { %v6614_v37 = vmax.f32 %v6525_v2, 0.0  ;;  %v7188_v7 = vadd.f32 %v7156_v41, %v7090_v59  ;;  %v13953_v2 = vld [vmem:[%s15082_s9 + $0x7] ss:$0 sm:$0xff] }
 0x804   : > { %v6301_v30 = vpop.f32.mrf.mxu2  ;;  %v6414_v32 = vpop.f32.mrf.mxu3  ;;  %v13931_v0 = vld [vmem:[#allocation5 + $0x30] sm:$0xff] }
 0x805   : > { %6701 = vst.msk [vmem:[#allocation5 + $0x39] sm:$0xff] %vm2919_vm2, %v6614_v37  ;;  %v6302_v53 = vadd.f32 %v13798_v11, %v6301_v30  ;;  %v7353_v24 = vmul.f32 %v13918_v15, %v13931_v0  ;;  %v7286_v4 = vadd.f32 %v7254_v39, %v7188_v7  ;;  %v13958_v59 = vld [vmem:[#allocation5 + $0x31] sm:$0xff]  ;;  %v13965_v37 = vpop.permute.xlu1 %9047  ;;  %v6768_v5 = vmul.f32 %v13846_v51, %v13931_v0 }
 0x806   : > { %v13971_v30 = vld [vmem:[%s15082_s9 + $0x8] ss:$0 sm:$0xff]  ;;  %v7451_v36 = vmul.f32 %v13953_v2, %v13958_v59 }
 0x807   : > { %v6415_v9 = vadd.f32 %v6414_v32, %v6302_v53  ;;  %v7385_v39 = vadd.f32 %v7353_v24, %v7286_v4  ;;  %v5037_v32 = vld [vmem:[#allocation4 + $0x121] sm:$0xff]  ;;  %v6962_v53 = vmul.f32 %v13859_v16, %v7220_v26  ;;  %v7287_v4 = vadd.f32 %v7255_v35, %v7189_v1 }
 0x808   : > { %v6062_v24 = vsel %vm4225_vm4, %v5037_v32, %v9024_v17  ;;  %v6030_v1 = vsel %vm4357_vm8, %v13662_v63, %v9039_v56  ;;  %v7158_v63 = vmul.f32 %v13900_v61, %v13958_v59  ;;  %v14013_v56 = vpop.f32.mrf.mxu1 }
 0x809   : > { %v6528_v41 = vadd.f32 %v13637_v10, %v6415_v9  ;;  %6351 = vmatmul.f32.gmra.mxu2 %v6029_v25  ;;  %6464 = vmatmul.f32.gmra.mxu3 %v6125_v13  ;;  %v9020_v10 = vunpack.i.h.bf16 %v13840_v49  ;;  %v6896_v49 = vadd.f32 %v6864_v42, %v6766_v40  ;;  %v7483_v32 = vadd.f32 %v7451_v36, %v7385_v39 }
 0x80a   : > { %v6094_v35 = vsel %vm4291_vm6, %v6062_v24, %v9015_v50  ;;  %v6865_v50 = vmul.f32 %v13854_v55, %v13926_v58  ;;  %v5038_v24 = vld [vmem:[#allocation4 + $0x129] sm:$0xff] }
 0x80b   : > { %v6615_v7 = vmax.f32 %v6528_v41, 0.0  ;;  %v7060_v41 = vmul.f32 %v13872_v23, %v13931_v0  ;;  %v6994_v42 = vadd.f32 %v6962_v53, %v6896_v49  ;;  %v6126_v54 = vsel %vm4357_vm8, %v6094_v35, %v9020_v10  ;;  %v14015_v53 = vpop.permute.xlu2 %9052 }
 0x80c   : > { %v6304_v46 = vpop.f32.mrf.mxu2  ;;  %v6417_v9 = vpop.f32.mrf.mxu3  ;;  %v13985_v25 = vld [vmem:[#allocation5 + $0x32] sm:$0xff]  ;;  %v14002_v40 = vld [vmem:[#allocation5 + $0x3a] sm:$0xff] }
 0x80d   : > { %v13987_v13 = vld [vmem:[#allocation5 + $0x38] sm:$0xff]  ;;  %6702 = vst.msk [vmem:[#allocation5 + $0x49] sm:$0xff] %vm2919_vm2, %v6615_v7  ;;  %v6305_v17 = vadd.f32 %v13798_v11, %v6304_v46  ;;  %v7549_v22 = vmul.f32 %v13971_v30, %v13985_v25  ;;  %v6767_v7 = vmul.f32 %v13846_v51, %v13893_v19  ;;  %v7092_v33 = vadd.f32 %v7060_v41, %v6994_v42 }
 0x80e   : > { %v13989_v26 = vld [vmem:[#allocation5 + $0x39] sm:$0xff]  ;;  %v7354_v43 = vmul.f32 %v13918_v15, %v13987_v13  ;;  %v7550_v10 = vmul.f32 %v13971_v30, %v14002_v40 }
 0x80f   : > { %v6418_v38 = vadd.f32 %v6417_v9, %v6305_v17  ;;  %v7581_v46 = vadd.f32 %v7549_v22, %v7483_v32  ;;  %v7452_v36 = vmul.f32 %v13953_v2, %v13989_v26  ;;  %v7256_v9 = vmul.f32 %v13905_v31, %v13985_v25 }
 0x810   : > { %v7386_v39 = vadd.f32 %v7354_v43, %v7287_v4  ;;  %v6897_v58 = vadd.f32 %v6865_v50, %v6767_v7  ;;  %v6963_v4 = vmul.f32 %v13859_v16, %v13955_v21  ;;  %v6063_v17 = vsel %vm4225_vm4, %v5038_v24, %v9025_v34  ;;  %v4912_v50 = vld [vmem:[#allocation4 + $0x128] sm:$0xff] }
 0x811   : > { %v6531_v19 = vadd.f32 %v13690_v47, %v6418_v38  ;;  %6354 = vmatmul.f32.gmra.mxu2 %v6030_v1  ;;  %6467 = vmatmul.f32.gmra.mxu3 %v6126_v54  ;;  %v7613_v22 = vsel %vm2919_vm2, %v7581_v46, 0.0  ;;  %v7061_v47 = vmul.f32 %v13872_v23, %v13987_v13  ;;  %v4913_v38 = vld [vmem:[#allocation4 + $0x138] sm:$0xff]  ;;  %v14027_v54 = vpop.permute.xlu1 %9062  ;;  %v9049_v1 = vunpack.i.l.bf16 %v13965_v37 }
 0x812   : > { %v7484_v43 = vadd.f32 %v7452_v36, %v7386_v39  ;;  %7614 = vadd.xlane.f32.xlu0 %v7613_v22  ;;  %v14035_v32 = vsel %vm4225_vm4, %v4913_v38, %v8724_v8  ;;  %v6095_v42 = vsel %vm4291_vm6, %v6063_v17, %v9034_v28  ;;  %v7190_v7 = vadd.f32 %v7158_v63, %v7092_v33  ;;  %v14048_v22 = vpop.permute.xlu0 %9057  ;;  %v5039_v17 = vld [vmem:[#allocation4 + $0x139] sm:$0xff] }
 0x813   : > { %v6616_v49 = vmax.f32 %v6531_v19, 0.0  ;;  %v6995_v39 = vadd.f32 %v6963_v4, %v6897_v58  ;;  %v9030_v36 = vunpack.i.h.bf16 %v13907_v52  ;;  %v9044_v19 = vunpack.i.l.bf16 %v13979_v29 }
 0x814   : > { %v7582_v41 = vadd.f32 %v7550_v10, %v7484_v43  ;;  %v6307_v21 = vpop.f32.mrf.mxu2  ;;  %v6420_v35 = vpop.f32.mrf.mxu3  ;;  %v14039_v46 = vld [vmem:[#allocation5 + $0x48] sm:$0xff]  ;;  %v7288_v33 = vadd.f32 %v7256_v9, %v7190_v7  ;;  %v14053_v52 = vsel %vm4225_vm4, %v4912_v50, %v8720_v45  ;;  %v9035_v63 = vunpack.i.h.bf16 %v13895_v12 }
 0x815   : > { %6703 = vst.msk [vmem:[#allocation5 + $0x51] sm:$0xff] %vm2919_vm2, %v6616_v49  ;;  %v6308_v62 = vadd.f32 %v13798_v11, %v6307_v21  ;;  %v7355_v8 = vmul.f32 %v13918_v15, %v14039_v46  ;;  %v7093_v28 = vadd.f32 %v7061_v47, %v6995_v39  ;;  %v6127_v10 = vsel %vm4357_vm8, %v6095_v42, %v9030_v36  ;;  %v14057_v24 = vld [vmem:[#allocation5 + $0x49] sm:$0xff] }
 0x816   : > { %v7616_v34 = vsel %vm2919_vm2, %v7582_v41, 0.0  ;;  %v7159_v58 = vmul.f32 %v13900_v61, %v13989_v26  ;;  %v6031_v4 = vsel %vm4357_vm8, %v13665_v57, %v9049_v1  ;;  %v6866_v45 = vmul.f32 %v13854_v55, %v13958_v59  ;;  %v14076_v1 = vpop.f32.mrf.mxu1 }
 0x817   : > { %7617 = vadd.xlane.f32.xlu1 %v7616_v34  ;;  %v6421_v43 = vadd.f32 %v6420_v35, %v6308_v62  ;;  %v7387_v9 = vadd.f32 %v7355_v8, %v7288_v33  ;;  %v9040_v12 = vunpack.i.h.bf16 %v13946_v6  ;;  %v9055_v47 = vunpack.i.h.bf16 %v14015_v53  ;;  %v14078_v6 = vpop.permute.xlu2 %9067 }
 0x818   : > { %v7191_v49 = vadd.f32 %v7159_v58, %v7093_v28  ;;  %v9054_v41 = vunpack.i.l.bf16 %v14015_v53  ;;  %v9045_v57 = vunpack.i.h.bf16 %v13979_v29  ;;  %v7453_v0 = vmul.f32 %v13953_v2, %v14057_v24 }
 0x819   : > { %v6534_v38 = vadd.f32 %v13816_v44, %v6421_v43  ;;  %6357 = vmatmul.f32.gmra.mxu2 %v6031_v4  ;;  %6470 = vmatmul.f32.gmra.mxu3 %v6127_v10  ;;  %v6964_v59 = vmul.f32 %v13859_v16, %v13985_v25  ;;  %v9059_v44 = vunpack.i.l.bf16 %v14048_v22  ;;  %v6064_v35 = vsel %vm4225_vm4, %v5039_v17, %v9044_v19  ;;  %v14100_v10 = vpop.permute.xlu1 %9077 }
 0x81a   : > { %v7257_v42 = vmul.f32 %v13905_v31, %v14002_v40  ;;  %v6096_v39 = vsel %vm4291_vm6, %v6064_v35, %v9035_v63  ;;  %v7485_v36 = vadd.f32 %v7453_v0, %v7387_v9  ;;  %v6898_v8 = vadd.f32 %v6866_v45, %v6768_v5  ;;  %v14108_v0 = vpop.permute.xlu0 %9072 }
 0x81b   : > { %v6617_v21 = vmax.f32 %v6534_v38, 0.0  ;;  %v7062_v50 = vmul.f32 %v13872_v23, %v14039_v46  ;;  %v9069_v43 = vunpack.i.l.bf16 %v14078_v6  ;;  %v6769_v9 = vmul.f32 %v13846_v51, %v13987_v13  ;;  %v5040_v38 = vld [vmem:[#allocation4 + $0x141] sm:$0xff] }
 0x81c   : > { %v6310_v29 = vpop.f32.mrf.mxu2  ;;  %v6423_v7 = vpop.f32.mrf.mxu3  ;;  %v14085_v62 = vld [vmem:[#allocation5 + $0x4a] sm:$0xff]  ;;  %v7289_v28 = vadd.f32 %v7257_v42, %v7191_v49  ;;  %v6996_v4 = vadd.f32 %v6964_v59, %v6898_v8  ;;  %v6867_v49 = vmul.f32 %v13854_v55, %v13989_v26  ;;  %v6128_v35 = vsel %vm4357_vm8, %v6096_v39, %v9040_v12  ;;  %v14114_v59 = vld [vmem:[#allocation5 + $0x52] sm:$0xff] }
 0x81d   : > { %v14087_v25 = vld [vmem:[#allocation5 + $0x50] sm:$0xff]  ;;  %6704 = vst.msk [vmem:[#allocation5 + $0x61] sm:$0xff] %vm2919_vm2, %v6617_v21  ;;  %v6311_v19 = vadd.f32 %v13798_v11, %v6310_v29  ;;  %v7551_v33 = vmul.f32 %v13971_v30, %v14085_v62  ;;  %v6032_v21 = vsel %vm4357_vm8, %v13586_v20, %v9059_v44  ;;  %v6065_v42 = vsel %vm4225_vm4, %v5040_v38, %v9045_v57 }
 0x81e   : > { %v14089_v34 = vld [vmem:[#allocation5 + $0x51] sm:$0xff]  ;;  %v7356_v63 = vmul.f32 %v13918_v15, %v14087_v25  ;;  %v7094_v29 = vadd.f32 %v7062_v50, %v6996_v4  ;;  %v6899_v26 = vadd.f32 %v6867_v49, %v6769_v9  ;;  %v7160_v8 = vmul.f32 %v13900_v61, %v14057_v24  ;;  %v14134_v9 = vpop.f32.mrf.mxu1 }
 0x81f   : > { %v7454_v58 = vmul.f32 %v13953_v2, %v14089_v34  ;;  %v6424_v5 = vadd.f32 %v6423_v7, %v6311_v19  ;;  %v7583_v45 = vadd.f32 %v7551_v33, %v7485_v36  ;;  %v7258_v20 = vmul.f32 %v13905_v31, %v14085_v62 }
 0x820   : > { %v7388_v17 = vadd.f32 %v7356_v63, %v7289_v28  ;;  %v6965_v12 = vmul.f32 %v13859_v16, %v14002_v40  ;;  %v7063_v57 = vmul.f32 %v13872_v23, %v14087_v25  ;;  %v9074_v44 = vunpack.i.l.bf16 %v14108_v0 }
 0x821   : > { %v6537_v13 = vadd.f32 %v13833_v18, %v6424_v5  ;;  %6360 = vmatmul.f32.gmra.mxu2 %v6032_v21  ;;  %6473 = vmatmul.f32.gmra.mxu3 %v6128_v35  ;;  %v7619_v7 = vsel %vm2919_vm2, %v7583_v45, 0.0  ;;  %v9050_v18 = vunpack.i.h.bf16 %v13965_v37  ;;  %v7552_v50 = vmul.f32 %v13971_v30, %v14114_v59 }
 0x822   : > { %v7486_v36 = vadd.f32 %v7454_v58, %v7388_v17  ;;  %7620 = vadd.xlane.f32.xlu2 %v7619_v7  ;;  %v9070_v19 = vunpack.i.h.bf16 %v14078_v6  ;;  %v9064_v33 = vunpack.i.l.bf16 %v14027_v54  ;;  %v7192_v58 = vadd.f32 %v7160_v8, %v7094_v29  ;;  %v14146_v29 = vpop.permute.xlu2 %9082  ;;  %v5041_v8 = vld [vmem:[#allocation4 + $0x151] sm:$0xff] }
 0x823   : > { %v6618_v39 = vmax.f32 %v6537_v13, 0.0  ;;  %v6997_v40 = vadd.f32 %v6965_v12, %v6899_v26  ;;  %v6097_v5 = vsel %vm4291_vm6, %v6065_v42, %v9054_v41  ;;  %v9079_v17 = vunpack.i.l.bf16 %v14100_v10 }
 0x824   : > { %v6313_v28 = vpop.f32.mrf.mxu2  ;;  %v6426_v63 = vpop.f32.mrf.mxu3  ;;  %v14132_v4 = vld [vmem:[#allocation5 + $0x60] sm:$0xff]  ;;  %v7584_v45 = vadd.f32 %v7552_v50, %v7486_v36  ;;  %v6001_v49 = vsel %vm4291_vm6, %v14053_v52, %v9069_v43  ;;  %v7290_v21 = vadd.f32 %v7258_v20, %v7192_v58  ;;  %v6129_v26 = vsel %vm4357_vm8, %v6097_v5, %v9050_v18 }
 0x825   : > { %6705 = vst.msk [vmem:[#allocation5 + $0x69] sm:$0xff] %vm2919_vm2, %v6618_v39  ;;  %v6314_v37 = vadd.f32 %v13798_v11, %v6313_v28  ;;  %v7357_v38 = vmul.f32 %v13918_v15, %v14132_v4  ;;  %v7095_v35 = vadd.f32 %v7063_v57, %v6997_v40  ;;  %v6033_v7 = vsel %vm4357_vm8, %v6001_v49, %v9074_v44  ;;  %v14150_v41 = vld [vmem:[#allocation5 + $0x61] sm:$0xff]  ;;  %v14154_v36 = vpop.permute.xlu1 %9092  ;;  %v14170_v28 = vpop.permute.xlu0 %9087 }
 0x826   : > { %v7161_v42 = vmul.f32 %v13900_v61, %v14089_v34  ;;  %v6066_v12 = vsel %vm4225_vm4, %v5041_v8, %v9064_v33  ;;  %v6770_v43 = vmul.f32 %v13846_v51, %v14039_v46  ;;  %v6868_v20 = vmul.f32 %v13854_v55, %v14057_v24 }
 0x827   : > { %v6427_v13 = vadd.f32 %v6426_v63, %v6314_v37  ;;  %v7389_v52 = vadd.f32 %v7357_v38, %v7290_v21  ;;  %v9060_v57 = vunpack.i.h.bf16 %v14048_v22  ;;  %v7622_v44 = vsel %vm2919_vm2, %v7584_v45, 0.0 }
 0x828   : > { %v7193_v39 = vadd.f32 %v7161_v42, %v7095_v35  ;;  %v9084_v50 = vunpack.i.l.bf16 %v14146_v29  ;;  %v9065_v33 = vunpack.i.h.bf16 %v14027_v54  ;;  %v7455_v46 = vmul.f32 %v13953_v2, %v14150_v41 }
 0x829   : > { %v6540_v18 = vadd.f32 %v13880_v3, %v6427_v13  ;;  %6363 = vmatmul.f32.gmra.mxu2 %v6033_v7  ;;  %6476 = vmatmul.f32.gmra.mxu3 %v6129_v26  ;;  %v6966_v24 = vmul.f32 %v13859_v16, %v14085_v62  ;;  %v9094_v3 = vunpack.i.l.bf16 %v14154_v36  ;;  %v6098_v63 = vsel %vm4291_vm6, %v6066_v12, %v9055_v47  ;;  %v5042_v13 = vld [vmem:[#allocation4 + $0x159] sm:$0xff]  ;;  %v14201_v12 = vpop.f32.mrf.mxu1 }
 0x82a   : > { %7623 = vadd.xlane.f32.xlu2 %v7622_v44  ;;  %v7259_v58 = vmul.f32 %v13905_v31, %v14114_v59  ;;  %v6002_v37 = vsel %vm4291_vm6, %v14035_v32, %v9079_v17  ;;  %v7487_v5 = vadd.f32 %v7455_v46, %v7389_v52  ;;  %v6900_v49 = vadd.f32 %v6868_v20, %v6770_v43 }
 0x82b   : > { %v6619_v22 = vmax.f32 %v6540_v18, 0.0  ;;  %v7064_v53 = vmul.f32 %v13872_v23, %v14132_v4  ;;  %v6067_v26 = vsel %vm4225_vm4, %v5042_v13, %v9065_v33  ;;  %v6771_v42 = vmul.f32 %v13846_v51, %v14087_v25 }
 0x82c   : > { %v6316_v54 = vpop.f32.mrf.mxu2  ;;  %v6429_v40 = vpop.f32.mrf.mxu3  ;;  %v14180_v45 = vld [vmem:[#allocation5 + $0x62] sm:$0xff]  ;;  %v7291_v35 = vadd.f32 %v7259_v58, %v7193_v39  ;;  %v14194_v17 = vld [vmem:[#allocation5 + $0x6a] sm:$0xff]  ;;  %v6998_v8 = vadd.f32 %v6966_v24, %v6900_v49  ;;  %v6869_v18 = vmul.f32 %v13854_v55, %v14089_v34  ;;  %v6034_v44 = vsel %vm4357_vm8, %v6002_v37, %v9084_v50 }
 0x82d   : > { %v14182_v62 = vld [vmem:[#allocation5 + $0x68] sm:$0xff]  ;;  %6706 = vst.msk [vmem:[#allocation5 + $0x79] sm:$0xff] %vm2919_vm2, %v6619_v22  ;;  %v6317_v47 = vadd.f32 %v13798_v11, %v6316_v54  ;;  %v7553_v21 = vmul.f32 %v13971_v30, %v14180_v45  ;;  %v6130_v39 = vsel %vm4357_vm8, %v6098_v63, %v9060_v57  ;;  %v7554_v46 = vmul.f32 %v13971_v30, %v14194_v17  ;;  %v4914_v54 = vld [vmem:[#allocation4 + $0x140] sm:$0xff]  ;;  %v14219_v63 = vpop.permute.xlu2 %9097 }
 0x82e   : > { %v14184_v38 = vld [vmem:[#allocation5 + $0x69] sm:$0xff]  ;;  %v7358_v32 = vmul.f32 %v13918_v15, %v14182_v62  ;;  %v7096_v33 = vadd.f32 %v7064_v53, %v6998_v8  ;;  %v6901_v58 = vadd.f32 %v6869_v18, %v6771_v42  ;;  %v7162_v34 = vmul.f32 %v13900_v61, %v14150_v41 }
 0x82f   : > { %v7456_v7 = vmul.f32 %v13953_v2, %v14184_v38  ;;  %v6430_v52 = vadd.f32 %v6429_v40, %v6317_v47  ;;  %v7585_v43 = vadd.f32 %v7553_v21, %v7487_v5  ;;  %v4915_v40 = vld [vmem:[#allocation4 + $0x150] sm:$0xff]  ;;  %v7260_v57 = vmul.f32 %v13905_v31, %v14180_v45 }
 0x830   : > { %v7390_v20 = vadd.f32 %v7358_v32, %v7291_v35  ;;  %v6967_v50 = vmul.f32 %v13859_v16, %v14114_v59  ;;  %v15801_v49 = vunpack.i.h.bf16 %v15798_v27  ;;  %v15802_v47 = vunpack.i.l.bf16 %v15799_v60 }
 0x831   : > { %v6543_v24 = vadd.f32 %v13943_v48, %v6430_v52  ;;  %6366 = vmatmul.f32.gmra.mxu2 %v6034_v44  ;;  %6479 = vmatmul.f32.gmra.mxu3 %v6130_v39  ;;  %v7625_v25 = vsel %vm2919_vm2, %v7585_v43, 0.0  ;;  %v7065_v48 = vmul.f32 %v13872_v23, %v14182_v62  ;;  %v9075_v35 = vunpack.i.h.bf16 %v14108_v0  ;;  %v14244_v39 = vpop.permute.xlu1 %9107 }
 0x832   : > { %v7488_v22 = vadd.f32 %v7456_v7, %v7390_v20  ;;  %7626 = vadd.xlane.f32.xlu0 %v7625_v25  ;;  %v5971_v53 = vsel %vm4225_vm4, %v4914_v54, %v15801_v49  ;;  %v5972_v21 = vsel %vm4225_vm4, %v4915_v40, %v15802_v47  ;;  %v6099_v59 = vsel %vm4291_vm6, %v6067_v26, %v9070_v19  ;;  %v14241_v19 = vpop.permute.xlu0 %9102 }
 0x833   : > { %v6620_v37 = vmax.f32 %v6543_v24, 0.0  ;;  %v7194_v7 = vadd.f32 %v7162_v34, %v7096_v33  ;;  %v6999_v42 = vadd.f32 %v6967_v50, %v6901_v58  ;;  %v6003_v43 = vsel %vm4291_vm6, %v5971_v53, %v9094_v3 }
 0x834   : > { %v7586_v5 = vadd.f32 %v7554_v46, %v7488_v22  ;;  %v6319_v32 = vpop.f32.mrf.mxu2  ;;  %v6432_v13 = vpop.f32.mrf.mxu3  ;;  %v14231_v8 = vld [vmem:[#allocation5 + $0x78] sm:$0xff]  ;;  %v9099_v20 = vunpack.i.l.bf16 %v14219_v63  ;;  %v9089_v6 = vunpack.i.l.bf16 %v14170_v28  ;;  %v9080_v44 = vunpack.i.h.bf16 %v14100_v10 }
 0x835   : > { %6707 = vst.msk [vmem:[#allocation5 + $0x81] sm:$0xff] %vm2919_vm2, %v6620_v37  ;;  %v6320_v27 = vadd.f32 %v13798_v11, %v6319_v32  ;;  %v7359_v0 = vmul.f32 %v13918_v15, %v14231_v8  ;;  %v7292_v26 = vadd.f32 %v7260_v57, %v7194_v7  ;;  %v7097_v18 = vadd.f32 %v7065_v48, %v6999_v42  ;;  %v14247_v3 = vld [vmem:[#allocation5 + $0x79] sm:$0xff]  ;;  %v14256_v10 = vpop.f32.mrf.mxu1  ;;  %v14280_v42 = vpop.permute.xlu2 %9112 }
 0x836   : > { %v7628_v52 = vsel %vm2919_vm2, %v7586_v5, 0.0  ;;  %v6131_v33 = vsel %vm4357_vm8, %v6099_v59, %v9075_v35  ;;  %v7163_v24 = vmul.f32 %v13900_v61, %v14184_v38  ;;  %v6035_v25 = vsel %vm4357_vm8, %v6003_v43, %v9099_v20  ;;  %v5043_v5 = vld [vmem:[#allocation4 + $0x169] sm:$0xff] }
 0x837   : > { %7629 = vadd.xlane.f32.xlu1 %v7628_v52  ;;  %v6433_v46 = vadd.f32 %v6432_v13, %v6320_v27  ;;  %v7391_v22 = vadd.f32 %v7359_v0, %v7292_v26  ;;  %v6772_v58 = vmul.f32 %v13846_v51, %v14132_v4  ;;  %v6870_v54 = vmul.f32 %v13854_v55, %v14150_v41 }
 0x838   : > { %v9085_v40 = vunpack.i.h.bf16 %v14146_v29  ;;  %v9090_v34 = vunpack.i.h.bf16 %v14170_v28  ;;  %v7195_v50 = vadd.f32 %v7163_v24, %v7097_v18  ;;  %v9104_v48 = vunpack.i.l.bf16 %v14241_v19 }
 0x839   : > { %v6546_v57 = vadd.f32 %v14013_v56, %v6433_v46  ;;  %6369 = vmatmul.f32.gmra.mxu2 %v6035_v25  ;;  %6482 = vmatmul.f32.gmra.mxu3 %v6131_v33  ;;  %v9095_v37 = vunpack.i.h.bf16 %v14154_v36  ;;  %v7457_v4 = vmul.f32 %v13953_v2, %v14247_v3  ;;  %v6968_v41 = vmul.f32 %v13859_v16, %v14180_v45 }
 0x83a   : > { %v9109_v29 = vunpack.i.l.bf16 %v14244_v39  ;;  %v6068_v28 = vsel %vm4225_vm4, %v5043_v5, %v9089_v6  ;;  %v7261_v56 = vmul.f32 %v13905_v31, %v14194_v17  ;;  %v6902_v45 = vadd.f32 %v6870_v54, %v6772_v58 }
 0x83b   : > { %v6621_v49 = vmax.f32 %v6546_v57, 0.0  ;;  %v6100_v35 = vsel %vm4291_vm6, %v6068_v28, %v9080_v44  ;;  %v7489_v36 = vadd.f32 %v7457_v4, %v7391_v22  ;;  %v7066_v7 = vmul.f32 %v13872_v23, %v14231_v8  ;;  %v14297_v22 = vpop.permute.xlu0 %9117  ;;  %v5044_v4 = vld [vmem:[#allocation4 + $0x171] sm:$0xff] }
 0x83c   : > { %v6322_v53 = vpop.f32.mrf.mxu2  ;;  %v6435_v47 = vpop.f32.mrf.mxu3  ;;  %v14272_v32 = vld [vmem:[#allocation5 + $0x7a] sm:$0xff]  ;;  %v7293_v43 = vadd.f32 %v7261_v56, %v7195_v50  ;;  %v14288_v20 = vld [vmem:[#allocation5 + $0x82] sm:$0xff]  ;;  %v6004_v6 = vsel %vm4291_vm6, %v5972_v21, %v9104_v48  ;;  %v7000_v18 = vadd.f32 %v6968_v41, %v6902_v45  ;;  %v6773_v44 = vmul.f32 %v13846_v51, %v14182_v62 }
 0x83d   : > { %v14274_v13 = vld [vmem:[#allocation5 + $0x80] sm:$0xff]  ;;  %6708 = vst.msk [vmem:[#allocation5 + $0x91] sm:$0xff] %vm2919_vm2, %v6621_v49  ;;  %v6323_v27 = vadd.f32 %v13798_v11, %v6322_v53  ;;  %v7555_v52 = vmul.f32 %v13971_v30, %v14272_v32  ;;  %v6871_v25 = vmul.f32 %v13854_v55, %v14184_v38  ;;  %v6036_v58 = vsel %vm4357_vm8, %v6004_v6, %v9109_v29  ;;  %v14303_v50 = vpop.permute.xlu1 %9122  ;;  %v14315_v49 = vpop.f32.mrf.mxu1 }
 0x83e   : > { %v14276_v59 = vld [vmem:[#allocation5 + $0x81] sm:$0xff]  ;;  %v7360_v0 = vmul.f32 %v13918_v15, %v14274_v13  ;;  %v6132_v54 = vsel %vm4357_vm8, %v6100_v35, %v9085_v40  ;;  %v7556_v21 = vmul.f32 %v13971_v30, %v14288_v20  ;;  %v7098_v57 = vadd.f32 %v7066_v7, %v7000_v18 }
 0x83f   : > { %v7458_v26 = vmul.f32 %v13953_v2, %v14276_v59  ;;  %v6436_v46 = vadd.f32 %v6435_v47, %v6323_v27  ;;  %v7587_v33 = vadd.f32 %v7555_v52, %v7489_v36  ;;  %v6903_v38 = vadd.f32 %v6871_v25, %v6773_v44 }
 0x840   : > { %v7392_v24 = vadd.f32 %v7360_v0, %v7293_v43  ;;  %v7164_v41 = vmul.f32 %v13900_v61, %v14247_v3  ;;  %v7262_v40 = vmul.f32 %v13905_v31, %v14272_v32  ;;  %v6969_v29 = vmul.f32 %v13859_v16, %v14194_v17 }
 0x841   : > { %v6549_v62 = vadd.f32 %v14076_v1, %v6436_v46  ;;  %6372 = vmatmul.f32.gmra.mxu2 %v6036_v58  ;;  %6485 = vmatmul.f32.gmra.mxu3 %v6132_v54  ;;  %v7631_v48 = vsel %vm2919_vm2, %v7587_v33, 0.0  ;;  %v7067_v1 = vmul.f32 %v13872_v23, %v14274_v13  ;;  %v9119_v28 = vunpack.i.l.bf16 %v14297_v22 }
 0x842   : > { %v7490_v5 = vadd.f32 %v7458_v26, %v7392_v24  ;;  %7632 = vadd.xlane.f32.xlu2 %v7631_v48  ;;  %v6069_v47 = vsel %vm4225_vm4, %v5044_v4, %v9090_v34  ;;  %v9124_v35 = vunpack.i.l.bf16 %v14303_v50  ;;  %v7196_v27 = vadd.f32 %v7164_v41, %v7098_v57  ;;  %v4916_v26 = vld [vmem:[#allocation4 + $0x158] sm:$0xff] }
 0x843   : > { %v6622_v56 = vmax.f32 %v6549_v62, 0.0  ;;  %v6101_v7 = vsel %vm4291_vm6, %v6069_v47, %v9095_v37  ;;  %v7001_v17 = vadd.f32 %v6969_v29, %v6903_v38  ;;  %v9100_v43 = vunpack.i.h.bf16 %v14219_v63  ;;  %v5397_v63 = vpop.permute.xlu2 %5396 }
 0x844   : > { %v7588_v53 = vadd.f32 %v7556_v21, %v7490_v5  ;;  %v6325_v36 = vpop.f32.mrf.mxu2  ;;  %v6438_v45 = vpop.f32.mrf.mxu3  ;;  %v14321_v52 = vld [vmem:[#allocation5 + $0x90] sm:$0xff]  ;;  %v9114_v18 = vunpack.i.l.bf16 %v14280_v42  ;;  %v15803_v37 = vunpack.i.h.bf16 %v15799_v60  ;;  %v7294_v46 = vadd.f32 %v7262_v40, %v7196_v27  ;;  %v9180_v5 = vld [vmem:[#allocation4 + $0x168] sm:$0xff] }
 0x845   : > { %6709 = vst.msk [vmem:[#allocation5 + $0x99] sm:$0xff] %vm2919_vm2, %v6622_v56  ;;  %v6326_v0 = vadd.f32 %v13798_v11, %v6325_v36  ;;  %v7361_v34 = vmul.f32 %v13918_v15, %v14321_v52  ;;  %v7099_v33 = vadd.f32 %v7067_v1, %v7001_v17  ;;  %v6133_v11 = vsel %vm4357_vm8, %v6101_v7, %v9100_v43  ;;  %v14335_v58 = vld [vmem:[#allocation5 + $0x91] sm:$0xff]  ;;  %v14368_v43 = vpop.f32.mrf.mxu1 }
 0x846   : > { %v7634_v6 = vsel %vm2919_vm2, %v7588_v53, 0.0  ;;  %v5973_v44 = vsel %vm4225_vm4, %v4916_v26, %v15803_v37  ;;  %v7165_v54 = vmul.f32 %v13900_v61, %v14276_v59  ;;  %v6774_v60 = vmul.f32 %v13846_v51, %v14231_v8  ;;  %v5045_v8 = vld [vmem:[#allocation4 + $0x181] sm:$0xff] }
 0x847   : > { %7635 = vadd.xlane.f32.xlu0 %v7634_v6  ;;  %v6439_v24 = vadd.f32 %v6438_v45, %v6326_v0  ;;  %v6005_v25 = vsel %vm4291_vm6, %v5973_v44, %v9119_v28  ;;  %v7393_v57 = vadd.f32 %v7361_v34, %v7294_v46  ;;  %v6872_v62 = vmul.f32 %v13854_v55, %v14247_v3  ;;  %v5525_v0 = vpop.permute.xlu0 %5524 }
 0x848   : > { %v6037_v21 = vsel %vm4357_vm8, %v6005_v25, %v9124_v35  ;;  %v9115_v48 = vunpack.i.h.bf16 %v14280_v42  ;;  %v15804_v38 = vunpack.i.l.bf16 %v15800_v14  ;;  %v7197_v40 = vadd.f32 %v7165_v54, %v7099_v33 }
 0x849   : > { %v6552_v41 = vadd.f32 %v14134_v9, %v6439_v24  ;;  %6375 = vmatmul.f32.gmra.mxu2 %v6037_v21  ;;  %6488 = vmatmul.f32.gmra.mxu3 %v6133_v11  ;;  %v9105_v29 = vunpack.i.h.bf16 %v14241_v19  ;;  %v7459_v3 = vmul.f32 %v13953_v2, %v14335_v58  ;;  %v6970_v28 = vmul.f32 %v13859_v16, %v14272_v32 }
 0x84a   : > { %v5974_v4 = vsel %vm4225_vm4, %v9180_v5, %v15804_v38  ;;  %v9120_v56 = vunpack.i.h.bf16 %v14297_v22  ;;  %v6070_v47 = vsel %vm4225_vm4, %v5045_v8, %v9114_v18  ;;  %v7263_v9 = vmul.f32 %v13905_v31, %v14288_v20  ;;  %v5399_v5 = vpop.permute.xlu1 %5398  ;;  %v14438_v22 = vld [vmem:[%s15082_s9] ss:$0 sm:$0xff] }
 0x84b   : > { %v6006_v1 = vsel %vm4291_vm6, %v5974_v4, %v5397_v63  ;;  %v6623_v53 = vmax.f32 %v6552_v41, 0.0  ;;  %v9110_v35 = vunpack.i.h.bf16 %v14244_v39  ;;  %v7491_v45 = vadd.f32 %v7459_v3, %v7393_v57  ;;  %v14374_v39 = vld [vmem:[%s15081_s8] ss:$0 sm:$0xff]  ;;  %v14403_v41 = vld [vmem:[%s15082_s9 + $0x2] ss:$0 sm:$0xff] }
 0x84c   : > { %v6328_v19 = vpop.f32.mrf.mxu2  ;;  %v6441_v36 = vpop.f32.mrf.mxu3  ;;  %v14360_v7 = vld [vmem:[#allocation5 + $0x92] sm:$0xff]  ;;  %v6904_v16 = vadd.f32 %v6872_v62, %v6774_v60  ;;  %v7068_v32 = vmul.f32 %v13872_v23, %v14321_v52  ;;  %v7295_v34 = vadd.f32 %v7263_v9, %v7197_v40  ;;  %v14381_v37 = vld [vmem:[#allocation5 + $0x9a] sm:$0xff]  ;;  %v6102_v44 = vsel %vm4291_vm6, %v6070_v47, %v9105_v29 }
 0x84d   : > { %v14362_v27 = vld [vmem:[#allocation5 + $0x98] sm:$0xff]  ;;  %6710 = vst.msk [vmem:[#allocation5 + $0xa9] sm:$0xff] %vm2919_vm2, %v6623_v53  ;;  %v6329_v6 = vadd.f32 %v14374_v39, %v6328_v19  ;;  %v7557_v26 = vmul.f32 %v13971_v30, %v14360_v7  ;;  %v6775_v63 = vmul.f32 %v13846_v51, %v14274_v13  ;;  %v6873_v54 = vmul.f32 %v13854_v55, %v14276_v59 }
 0x84e   : > { %v14364_v17 = vld [vmem:[#allocation5 + $0x99] sm:$0xff]  ;;  %v7362_v18 = vmul.f32 %v13918_v15, %v14362_v27  ;;  %v7002_v33 = vadd.f32 %v6970_v28, %v6904_v16  ;;  %v6038_v21 = vsel %vm4357_vm8, %v6006_v1, %v5525_v0  ;;  %v6134_v57 = vsel %vm4357_vm8, %v6102_v44, %v9110_v35 }
 0x84f   : > { %v7460_v46 = vmul.f32 %v13953_v2, %v14364_v17  ;;  %v6442_v24 = vadd.f32 %v6441_v36, %v6329_v6  ;;  %v7589_v25 = vadd.f32 %v7557_v26, %v7491_v45  ;;  %v7558_v60 = vmul.f32 %v13971_v30, %v14381_v37  ;;  %v9183_v1 = vld [vmem:[#allocation4 + $0x170] sm:$0xff]  ;;  %v14427_v26 = vpop.f32.mrf.mxu1 }
 0x850   : > { %v7394_v11 = vadd.f32 %v7362_v18, %v7295_v34  ;;  %v7100_v62 = vadd.f32 %v7068_v32, %v7002_v33  ;;  %v6905_v4 = vadd.f32 %v6873_v54, %v6775_v63  ;;  %v7166_v55 = vmul.f32 %v13900_v61, %v14335_v58  ;;  %v5046_v19 = vld [vmem:[#allocation4 + $0x189] sm:$0xff]  ;;  %v5527_v34 = vpop.permute.xlu2 %5526  ;;  %v14445_v63 = vld [vmem:[%s15082_s9 + $0x1] ss:$0 sm:$0xff] }
 0x851   : > { %v6555_v38 = vadd.f32 %v14201_v12, %v6442_v24  ;;  %6378 = vmatmul.f32.gmra.mxu2 %v6038_v21  ;;  %6491 = vmatmul.f32.gmra.mxu3 %v6134_v57  ;;  %v7637_v51 = vsel %vm2919_vm2, %v7589_v25, 0.0  ;;  %v7264_v59 = vmul.f32 %v13905_v31, %v14360_v7  ;;  %v6971_v12 = vmul.f32 %v14403_v41, %v14288_v20 }
 0x852   : > { %v7492_v13 = vadd.f32 %v7460_v46, %v7394_v11  ;;  %7638 = vadd.xlane.f32.xlu1 %v7637_v51  ;;  %v7069_v40 = vmul.f32 %v13872_v23, %v14362_v27  ;;  %v9125_v29 = vunpack.i.h.bf16 %v14303_v50  ;;  %v15805_v8 = vunpack.i.h.bf16 %v15800_v14  ;;  %v14459_v51 = vld [vmem:[%s15082_s9 + $0x3] ss:$0 sm:$0xff] }
 0x853   : > { %v6624_v28 = vmax.f32 %v6555_v38, 0.0  ;;  %v7198_v36 = vadd.f32 %v7166_v55, %v7100_v62  ;;  %v7003_v20 = vadd.f32 %v6971_v12, %v6905_v4  ;;  %v6071_v14 = vsel %vm4225_vm4, %v5046_v19, %v9115_v48  ;;  %v5174_v12 = vld [vmem:[#allocation4 + $0x19a] sm:$0xff] }
 0x854   : > { %v5975_v3 = vsel %vm4225_vm4, %v9183_v1, %v15805_v8  ;;  %v7590_v53 = vadd.f32 %v7558_v60, %v7492_v13  ;;  %v6331_v9 = vpop.f32.mrf.mxu2  ;;  %v6444_v35 = vpop.f32.mrf.mxu3  ;;  %v14414_v45 = vld [vmem:[#allocation5 + $0xa8] sm:$0xff]  ;;  %v6103_v32 = vsel %vm4291_vm6, %v6071_v14, %v9120_v56  ;;  %v7167_v42 = vmul.f32 %v13900_v61, %v14364_v17 }
 0x855   : > { %v6007_v47 = vsel %vm4291_vm6, %v5975_v3, %v5399_v5  ;;  %6711 = vst.msk [vmem:[#allocation5 + $0xb1] sm:$0xff] %vm2919_vm2, %v6624_v28  ;;  %v6332_v23 = vadd.f32 %v14374_v39, %v6331_v9  ;;  %v7363_v16 = vmul.f32 %v13918_v15, %v14414_v45  ;;  %v7296_v0 = vadd.f32 %v7264_v59, %v7198_v36  ;;  %v14430_v46 = vld [vmem:[#allocation5 + $0xa9] sm:$0xff] }
 0x856   : > { %v7640_v50 = vsel %vm2919_vm2, %v7590_v53, 0.0  ;;  %v7101_v6 = vadd.f32 %v7069_v40, %v7003_v20  ;;  %v6135_v44 = vsel %vm4357_vm8, %v6103_v32, %v9125_v29  ;;  %v6039_v48 = vsel %vm4357_vm8, %v6007_v47, %v5527_v34 }
 0x857   : > { %7641 = vadd.xlane.f32.xlu2 %v7640_v50  ;;  %v6445_v18 = vadd.f32 %v6444_v35, %v6332_v23  ;;  %v7395_v33 = vadd.f32 %v7363_v16, %v7296_v0  ;;  %v6776_v56 = vmul.f32 %v14438_v22, %v14321_v52  ;;  %v6874_v24 = vmul.f32 %v14445_v63, %v14335_v58  ;;  %v14473_v35 = vpop.f32.mrf.mxu1 }
 0x858   : > { %v7199_v25 = vadd.f32 %v7167_v42, %v7101_v6  ;;  %v7461_v11 = vmul.f32 %v13953_v2, %v14430_v46  ;;  %v6972_v54 = vmul.f32 %v14403_v41, %v14360_v7  ;;  %v7265_v21 = vmul.f32 %v13905_v31, %v14381_v37 }
 0x859   : > { %v6558_v61 = vadd.f32 %v14256_v10, %v6445_v18  ;;  %6381 = vmatmul.f32.gmra.mxu2 %v6039_v48  ;;  %6494 = vmatmul.f32.gmra.mxu3 %v6135_v44  ;;  %v6906_v10 = vadd.f32 %v6874_v24, %v6776_v56  ;;  %v7070_v13 = vmul.f32 %v14459_v51, %v14414_v45  ;;  %v5175_v48 = vld [vmem:[#allocation4 + $0x1a2] sm:$0xff] }
 0x85a   : > { %v7493_v62 = vadd.f32 %v7461_v11, %v7395_v33  ;;  %v7297_v4 = vadd.f32 %v7265_v21, %v7199_v25  ;;  %v6777_v1 = vmul.f32 %v14438_v22, %v14362_v27  ;;  %v6875_v53 = vmul.f32 %v14445_v63, %v14364_v17  ;;  %v14481_v27 = vld [vmem:[%s15082_s9 + $0x4] ss:$0 sm:$0xff]  ;;  %v14488_v17 = vld [vmem:[%s15082_s9 + $0x5] ss:$0 sm:$0xff] }
 0x85b   : > { %v6625_v52 = vmax.f32 %v6558_v61, 0.0  ;;  %v7004_v29 = vadd.f32 %v6972_v54, %v6906_v10  ;;  %v6973_v20 = vmul.f32 %v14403_v41, %v14381_v37  ;;  %v14502_v37 = vld [vmem:[%s15082_s9 + $0x6] ss:$0 sm:$0xff]  ;;  %v6778_v54 = vmul.f32 %v14438_v22, %v14414_v45 }
 0x85c   : > { %v6334_v57 = vpop.f32.mrf.mxu2  ;;  %v6447_v60 = vpop.f32.mrf.mxu3  ;;  %v7525_v5 = vld [vmem:[#allocation5 + $0xaa] sm:$0xff]  ;;  %v7526_v59 = vld [vmem:[#allocation5 + $0xb2] sm:$0xff]  ;;  %v6907_v36 = vadd.f32 %v6875_v53, %v6777_v1 }
 0x85d   : > { %v7330_v58 = vld [vmem:[#allocation5 + $0xb0] sm:$0xff]  ;;  %6712 = vst.msk [vmem:[#allocation5 + $0xc1] sm:$0xff] %vm2919_vm2, %v6625_v52  ;;  %v6335_v7 = vadd.f32 %v14374_v39, %v6334_v57  ;;  %v7559_v31 = vmul.f32 %v13971_v30, %v7525_v5  ;;  %v7560_v47 = vmul.f32 %v13971_v30, %v7526_v59  ;;  %v7102_v9 = vadd.f32 %v7070_v13, %v7004_v29 }
 0x85e   : > { %v7428_v38 = vld [vmem:[#allocation5 + $0xb1] sm:$0xff]  ;;  %v7364_v55 = vmul.f32 %v13918_v15, %v7330_v58  ;;  %v7168_v30 = vmul.f32 %v14481_v27, %v14430_v46  ;;  %v7071_v23 = vmul.f32 %v14459_v51, %v7330_v58  ;;  %v7005_v34 = vadd.f32 %v6973_v20, %v6907_v36 }
 0x85f   : > { %v7462_v40 = vmul.f32 %v13953_v2, %v7428_v38  ;;  %v6448_v8 = vadd.f32 %v6447_v60, %v6335_v7  ;;  %v7591_v3 = vadd.f32 %v7559_v31, %v7493_v62  ;;  %v7169_v25 = vmul.f32 %v14481_v27, %v7428_v38  ;;  %v14516_v60 = vld [vmem:[%s15082_s9 + $0x7] ss:$0 sm:$0xff]  ;;  %v14520_v38 = vpop.f32.mrf.mxu1 }
 0x860   : > { %v7396_v28 = vadd.f32 %v7364_v55, %v7297_v4  ;;  %v7200_v0 = vadd.f32 %v7168_v30, %v7102_v9  ;;  %v7103_v56 = vadd.f32 %v7071_v23, %v7005_v34  ;;  %v6876_v52 = vmul.f32 %v14445_v63, %v14430_v46 }
 0x861   : > { %v6561_v15 = vadd.f32 %v14315_v49, %v6448_v8  ;;  %8013 = vmatmul.msk.f32.vlgmr.msra.gmra.mxu3 %vm4225_vm4, %v5174_v12  ;;  %v7643_v2 = vsel %vm2919_vm2, %v7591_v3, 0.0  ;;  %v7266_v49 = vmul.f32 %v14488_v17, %v7525_v5  ;;  %v6974_v58 = vmul.f32 %v14403_v41, %v7525_v5  ;;  %v14530_v5 = vld [vmem:[%s15082_s9 + $0x8] ss:$0 sm:$0xff] }
 0x862   : > { %v7494_v19 = vadd.f32 %v7462_v40, %v7396_v28  ;;  %7644 = vadd.xlane.f32.xlu0 %v7643_v2  ;;  %v7201_v57 = vadd.f32 %v7169_v25, %v7103_v56  ;;  %v7267_v10 = vmul.f32 %v14488_v17, %v7526_v59  ;;  %v6908_v55 = vadd.f32 %v6876_v52, %v6778_v54 }
 0x863   : > { %v6626_v50 = vmax.f32 %v6561_v15, 0.0  ;;  %v7298_v33 = vadd.f32 %v7266_v49, %v7200_v0 }
 0x864   : > { %v7592_v14 = vadd.f32 %v7560_v47, %v7494_v19  ;;  %v6337_v16 = vpop.f32.mrf.mxu2  ;;  %v6450_v32 = vpop.f32.mrf.mxu3  ;;  %v14494_v6 = vld [vmem:[#allocation5 + $0xc0] sm:$0xff]  ;;  %v7299_v29 = vadd.f32 %v7267_v10, %v7201_v57  ;;  %v7006_v3 = vadd.f32 %v6974_v58, %v6908_v55 }
 0x865   : > { %6713 = vst.msk [vmem:[#allocation5 + $0xc9] sm:$0xff] %vm2919_vm2, %v6626_v50  ;;  %v6338_v18 = vadd.f32 %v14374_v39, %v6337_v16  ;;  %v7365_v42 = vmul.f32 %v14502_v37, %v14494_v6  ;;  %v7429_v61 = vld [vmem:[#allocation5 + $0xc1] sm:$0xff]  ;;  %v7072_v12 = vmul.f32 %v14459_v51, %v14494_v6  ;;  %v6780_v56 = vmul.f32 %v14438_v22, %v14494_v6 }
 0x866   : > { %v7646_v44 = vsel %vm2919_vm2, %v7592_v14, 0.0  ;;  %v7463_v62 = vmul.f32 %v14516_v60, %v7429_v61  ;;  %v7170_v23 = vmul.f32 %v14481_v27, %v7429_v61 }
 0x867   : > { %7647 = vadd.xlane.f32.xlu1 %v7646_v44  ;;  %v6451_v24 = vadd.f32 %v6450_v32, %v6338_v18  ;;  %v7397_v11 = vadd.f32 %v7365_v42, %v7298_v33  ;;  %v7104_v15 = vadd.f32 %v7072_v12, %v7006_v3  ;;  %v14540_v0 = vpop.f32.mrf.mxu1 }
 0x869   : > { %v6564_v21 = vadd.f32 %v14368_v43, %v6451_v24  ;;  %8014 = vmatmul.msk.f32.gmra.mxu3 %vm4225_vm4, %v5175_v48  ;;  %v7495_v43 = vadd.f32 %v7463_v62, %v7397_v11  ;;  %v7202_v18 = vadd.f32 %v7170_v23, %v7104_v15  ;;  %v6878_v24 = vmul.f32 %v14445_v63, %v7429_v61 }
 0x86b   : > { %v6627_v45 = vmax.f32 %v6564_v21, 0.0 }
 0x86c   : > { %v6340_v46 = vpop.f32.mrf.mxu2  ;;  %v6453_v13 = vpop.f32.mrf.mxu3  ;;  %v7527_v7 = vld [vmem:[#allocation5 + $0xc2] sm:$0xff]  ;;  %v7528_v8 = vld [vmem:[#allocation5 + $0xca] sm:$0xff] }
 0x86d   : > { %v7332_v31 = vld [vmem:[#allocation5 + $0xc8] sm:$0xff]  ;;  %6714 = vst.msk [vmem:[#allocation5 + $0xd9] sm:$0xff] %vm2919_vm2, %v6627_v45  ;;  %v6341_v40 = vadd.f32 %v14374_v39, %v6340_v46  ;;  %v7561_v59 = vmul.f32 %v14530_v5, %v7527_v7  ;;  %v7562_v30 = vmul.f32 %v14530_v5, %v7528_v8  ;;  %v7268_v50 = vmul.f32 %v14488_v17, %v7527_v7 }
 0x86e   : > { %v7430_v4 = vld [vmem:[#allocation5 + $0xc9] sm:$0xff]  ;;  %v7366_v1 = vmul.f32 %v14502_v37, %v7332_v31  ;;  %v6976_v21 = vmul.f32 %v14403_v41, %v7527_v7  ;;  %v6910_v45 = vadd.f32 %v6878_v24, %v6780_v56 }
 0x86f   : > { %v6454_v28 = vadd.f32 %v6453_v13, %v6341_v40  ;;  %v7593_v53 = vadd.f32 %v7561_v59, %v7495_v43  ;;  %v7464_v9 = vmul.f32 %v14516_v60, %v7430_v4  ;;  %v7300_v48 = vadd.f32 %v7268_v50, %v7202_v18  ;;  %v14560_v7 = vpop.f32.mrf.mxu1 }
 0x870   : > { %v7398_v47 = vadd.f32 %v7366_v1, %v7299_v29  ;;  %v6879_v43 = vmul.f32 %v14445_v63, %v7430_v4  ;;  %v7008_v40 = vadd.f32 %v6976_v21, %v6910_v45  ;;  %v6977_v29 = vmul.f32 %v14403_v41, %v7528_v8 }
 0x871   : > { %v6567_v2 = vadd.f32 %v14427_v26, %v6454_v28  ;;  %v7649_v19 = vsel %vm2919_vm2, %v7593_v53, 0.0 }
 0x872   : > { %v7496_v36 = vadd.f32 %v7464_v9, %v7398_v47  ;;  %7650 = vadd.xlane.f32.xlu2 %v7649_v19 }
 0x873   : > { %v6628_v49 = vmax.f32 %v6567_v2, 0.0 }
 0x874   : > { %v7594_v20 = vadd.f32 %v7562_v30, %v7496_v36  ;;  %v6343_v14 = vpop.f32.mrf.mxu2  ;;  %v6456_v16 = vpop.f32.mrf.mxu3  ;;  %v7333_v32 = vld [vmem:[#allocation5 + $0xd8] sm:$0xff] }
 0x875   : > { %6715 = vst.msk [vmem:[#allocation5 + $0xe1] sm:$0xff] %vm2919_vm2, %v6628_v49  ;;  %v6344_v26 = vadd.f32 %v14374_v39, %v6343_v14  ;;  %v7367_v44 = vmul.f32 %v14502_v37, %v7333_v32  ;;  %v7431_v33 = vld [vmem:[#allocation5 + $0xd9] sm:$0xff]  ;;  %v7074_v10 = vmul.f32 %v14459_v51, %v7333_v32 }
 0x876   : > { %v7652_v34 = vsel %vm2919_vm2, %v7594_v20, 0.0  ;;  %v7465_v52 = vmul.f32 %v14516_v60, %v7431_v33  ;;  %v7172_v4 = vmul.f32 %v14481_v27, %v7431_v33 }
 0x877   : > { %7653 = vadd.xlane.f32.xlu0 %v7652_v34  ;;  %v6457_v42 = vadd.f32 %v6456_v16, %v6344_v26  ;;  %v7399_v11 = vadd.f32 %v7367_v44, %v7300_v48  ;;  %v6745_v16 = vld [vmem:[#allocation5 + $0xb0] sm:$0xff]  ;;  %v6782_v44 = vmul.f32 %v14438_v22, %v7333_v32  ;;  %v14585_v48 = vpop.f32.mrf.mxu1 }
 0x878   : > { %v6843_v26 = vld [vmem:[#allocation5 + $0xb1] sm:$0xff] }
 0x879   : > { %v6570_v25 = vadd.f32 %v14473_v35, %v6457_v42  ;;  %v7497_v46 = vadd.f32 %v7465_v52, %v7399_v11  ;;  %v6781_v35 = vmul.f32 %v14438_v22, %v7332_v31  ;;  %v7106_v31 = vadd.f32 %v7074_v10, %v7008_v40 }
 0x87a   : > { %v6880_v42 = vmul.f32 %v14445_v63, %v7431_v33  ;;  %v6877_v52 = vmul.f32 %v14445_v63, %v6843_v26 }
 0x87b   : > { %v6629_v54 = vmax.f32 %v6570_v25, 0.0  ;;  %v6911_v59 = vadd.f32 %v6879_v43, %v6781_v35  ;;  %v7204_v30 = vadd.f32 %v7172_v4, %v7106_v31 }
 0x87c   : > { %v6346_v57 = vpop.f32.mrf.mxu2  ;;  %v6459_v62 = vpop.f32.mrf.mxu3  ;;  %v7529_v58 = vld [vmem:[#allocation5 + $0xda] sm:$0xff]  ;;  %v14579_v14 = vld [vmem:[#allocation5 + $0xe2] sm:$0xff] }
 0x87d   : > { %6716 = vst.msk [vmem:[#allocation5 + $0xf1] sm:$0xff] %vm2919_vm2, %v6629_v54  ;;  %v6347_v6 = vadd.f32 %v14374_v39, %v6346_v57  ;;  %v7563_v61 = vmul.f32 %v14530_v5, %v7529_v58  ;;  %v14557_v13 = vld [vmem:[#allocation5 + $0xe0] sm:$0xff]  ;;  %v7009_v53 = vadd.f32 %v6977_v29, %v6911_v59  ;;  %v7270_v9 = vmul.f32 %v14488_v17, %v7529_v58  ;;  %v6941_v57 = vld [vmem:[#allocation5 + $0xb2] sm:$0xff] }
 0x87e   : > { %v7075_v1 = vmul.f32 %v14459_v51, %v14557_v13  ;;  %v14569_v15 = vld [vmem:[#allocation5 + $0xe1] sm:$0xff]  ;;  %v7271_v25 = vmul.f32 %v14488_v17, %v14579_v14  ;;  %v6978_v11 = vmul.f32 %v14403_v41, %v7529_v58  ;;  %v6779_v54 = vmul.f32 %v14438_v22, %v6745_v16 }
 0x87f   : > { %v6460_v55 = vadd.f32 %v6459_v62, %v6347_v6  ;;  %v7595_v12 = vadd.f32 %v7563_v61, %v7497_v46  ;;  %v7173_v20 = vmul.f32 %v14481_v27, %v14569_v15  ;;  %v7302_v50 = vadd.f32 %v7270_v9, %v7204_v30  ;;  %v6584_v26 = vpop.f32.mrf.mxu1 }
 0x880   : > { %v7107_v36 = vadd.f32 %v7075_v1, %v7009_v53  ;;  %v6912_v46 = vadd.f32 %v6880_v42, %v6782_v44  ;;  %v6909_v1 = vadd.f32 %v6877_v52, %v6779_v54 }
 0x881   : > { %v6573_v3 = vadd.f32 %v14520_v38, %v6460_v55  ;;  %v7655_v28 = vsel %vm2919_vm2, %v7595_v12, 0.0  ;;  %v7039_v12 = vld [vmem:[#allocation5 + $0xc8] sm:$0xff] }
 0x882   : > { %7656 = vadd.xlane.f32.xlu1 %v7655_v28  ;;  %v7205_v18 = vadd.f32 %v7173_v20, %v7107_v36  ;;  %v7010_v29 = vadd.f32 %v6978_v11, %v6912_v46 }
 0x883   : > { %v6630_v47 = vmax.f32 %v6573_v3, 0.0  ;;  %v6975_v3 = vmul.f32 %v14403_v41, %v6941_v57 }
 0x884   : > { %v6349_v2 = vpop.f32.mrf.mxu2  ;;  %v6462_v19 = vpop.f32.mrf.mxu3  ;;  %v14571_v8 = vld [vmem:[#allocation5 + $0xf0] sm:$0xff] }
 0x885   : > { %6717 = vst.msk [vmem:[#allocation5 + $0xf9] sm:$0xff] %vm2919_vm2, %v6630_v47  ;;  %v6350_v38 = vadd.f32 %v14374_v39, %v6349_v2  ;;  %v7369_v49 = vmul.f32 %v14502_v37, %v14571_v8  ;;  %v14581_v34 = vld [vmem:[#allocation5 + $0xf1] sm:$0xff]  ;;  %v7076_v58 = vmul.f32 %v14459_v51, %v14571_v8  ;;  %v6783_v47 = vmul.f32 %v14438_v22, %v14557_v13 }
 0x886   : > { %v7467_v32 = vmul.f32 %v14516_v60, %v14581_v34  ;;  %v7174_v9 = vmul.f32 %v14481_v27, %v14581_v34  ;;  %v6881_v2 = vmul.f32 %v14445_v63, %v14569_v15  ;;  %v7007_v11 = vadd.f32 %v6975_v3, %v6909_v1 }
 0x887   : > { %v6463_v23 = vadd.f32 %v6462_v19, %v6350_v38  ;;  %v7401_v24 = vadd.f32 %v7369_v49, %v7302_v50  ;;  %v7108_v4 = vadd.f32 %v7076_v58, %v7010_v29  ;;  %v7073_v19 = vmul.f32 %v14459_v51, %v7039_v12  ;;  %v7235_v12 = vld [vmem:[#allocation5 + $0xca] sm:$0xff] }
 0x888   : > { %v6979_v50 = vmul.f32 %v14403_v41, %v14579_v14 }
 0x889   : > { %v6576_v56 = vadd.f32 %v14540_v0, %v6463_v23  ;;  %v7303_v0 = vadd.f32 %v7271_v25, %v7205_v18  ;;  %v7499_v35 = vadd.f32 %v7467_v32, %v7401_v24  ;;  %v6913_v23 = vadd.f32 %v6881_v2, %v6783_v47  ;;  %v7137_v32 = vld [vmem:[#allocation5 + $0xc9] sm:$0xff] }
 0x88b   : > { %v6631_v21 = vmax.f32 %v6576_v56, 0.0  ;;  %v7206_v56 = vadd.f32 %v7174_v9, %v7108_v4  ;;  %v7011_v25 = vadd.f32 %v6979_v50, %v6913_v23 }
 0x88c   : > { %v6352_v33 = vpop.f32.mrf.mxu2  ;;  %v6465_v62 = vpop.f32.mrf.mxu3  ;;  %v14595_v45 = vld [vmem:[#allocation5 + $0xf2] sm:$0xff]  ;;  %v14611_v59 = vld [vmem:[#allocation5 + $0xfa] sm:$0xff] }
 0x88d   : > { %v14597_v10 = vld [vmem:[#allocation5 + $0xf8] sm:$0xff]  ;;  %6718 = vst.msk [vmem:[#allocation5 + $0x109] sm:$0xff] %vm2919_vm2, %v6631_v21  ;;  %v6353_v61 = vadd.f32 %v14374_v39, %v6352_v33  ;;  %v7565_v43 = vmul.f32 %v14530_v5, %v14595_v45  ;;  %v7566_v49 = vmul.f32 %v14530_v5, %v14611_v59  ;;  %v7272_v20 = vmul.f32 %v14488_v17, %v14595_v45 }
 0x88e   : > { %v14599_v6 = vld [vmem:[#allocation5 + $0xf9] sm:$0xff]  ;;  %v7370_v55 = vmul.f32 %v14502_v37, %v14597_v10  ;;  %v7077_v16 = vmul.f32 %v14459_v51, %v14597_v10  ;;  %v6980_v3 = vmul.f32 %v14403_v41, %v14595_v45  ;;  %v7368_v45 = vmul.f32 %v14502_v37, %v14557_v13 }
 0x88f   : > { %v7468_v40 = vmul.f32 %v14516_v60, %v14599_v6  ;;  %v6466_v28 = vadd.f32 %v6465_v62, %v6353_v61  ;;  %v7597_v31 = vadd.f32 %v7565_v43, %v7499_v35  ;;  %v7304_v57 = vadd.f32 %v7272_v20, %v7206_v56 }
 0x890   : > { %v7402_v53 = vadd.f32 %v7370_v55, %v7303_v0  ;;  %v7109_v33 = vadd.f32 %v7077_v16, %v7011_v25  ;;  %v7105_v62 = vadd.f32 %v7073_v19, %v7007_v11  ;;  %v7175_v58 = vmul.f32 %v14481_v27, %v14599_v6 }
 0x891   : > { %v6579_v36 = vadd.f32 %v14560_v7, %v6466_v28  ;;  %v7661_v38 = vsel %vm2919_vm2, %v7597_v31, 0.0  ;;  %v6784_v35 = vmul.f32 %v14438_v22, %v14571_v8  ;;  %v6882_v43 = vmul.f32 %v14445_v63, %v14581_v34 }
 0x892   : > { %v7500_v30 = vadd.f32 %v7468_v40, %v7402_v53  ;;  %7662 = vadd.xlane.f32.xlu2 %v7661_v38  ;;  %v7171_v55 = vmul.f32 %v14481_v27, %v7137_v32  ;;  %v7207_v29 = vadd.f32 %v7175_v58, %v7109_v33  ;;  %v7273_v8 = vmul.f32 %v14488_v17, %v14611_v59  ;;  %v6587_v38 = vpop.f32.mrf.mxu1 }
 0x893   : > { %v6632_v18 = vmax.f32 %v6579_v36, 0.0  ;;  %v7269_v53 = vmul.f32 %v14488_v17, %v7235_v12  ;;  %v6914_v19 = vadd.f32 %v6882_v43, %v6784_v35  ;;  %v6785_v25 = vmul.f32 %v14438_v22, %v14597_v10 }
 0x894   : > { %v7598_v7 = vadd.f32 %v7566_v49, %v7500_v30  ;;  %v6355_v44 = vpop.f32.mrf.mxu2  ;;  %v6468_v42 = vpop.f32.mrf.mxu3  ;;  %v14631_v24 = vld [vmem:[#allocation5 + $0x108] sm:$0xff]  ;;  %v7203_v28 = vadd.f32 %v7171_v55, %v7105_v62  ;;  %v7305_v20 = vadd.f32 %v7273_v8, %v7207_v29  ;;  %v6981_v10 = vmul.f32 %v14403_v41, %v14611_v59 }
 0x895   : > { %6719 = vst.msk [vmem:[#allocation5 + $0x111] sm:$0xff] %vm2919_vm2, %v6632_v18  ;;  %v6356_v54 = vadd.f32 %v14374_v39, %v6355_v44  ;;  %v7371_v21 = vmul.f32 %v14502_v37, %v14631_v24  ;;  %v14638_v46 = vld [vmem:[#allocation5 + $0x109] sm:$0xff]  ;;  %v7078_v36 = vmul.f32 %v14459_v51, %v14631_v24  ;;  %v7012_v18 = vadd.f32 %v6980_v3, %v6914_v19 }
 0x896   : > { %v7664_v52 = vsel %vm2919_vm2, %v7598_v7, 0.0  ;;  %v7469_v1 = vmul.f32 %v14516_v60, %v14638_v46  ;;  %v7176_v13 = vmul.f32 %v14481_v27, %v14638_v46  ;;  %v7301_v7 = vadd.f32 %v7269_v53, %v7203_v28 }
 0x897   : > { %7665 = vadd.xlane.f32.xlu0 %v7664_v52  ;;  %v6469_v0 = vadd.f32 %v6468_v42, %v6356_v54  ;;  %v7403_v61 = vadd.f32 %v7371_v21, %v7304_v57  ;;  %v7110_v11 = vadd.f32 %v7078_v36, %v7012_v18  ;;  %v6883_v54 = vmul.f32 %v14445_v63, %v14599_v6 }
 0x898   : > { %v7400_v52 = vadd.f32 %v7368_v45, %v7301_v7  ;;  %v7466_v21 = vmul.f32 %v14516_v60, %v14569_v15  ;;  %v6786_v19 = vmul.f32 %v14438_v22, %v14631_v24  ;;  %v6884_v36 = vmul.f32 %v14445_v63, %v14638_v46 }
 0x899   : > { %v6582_v40 = vadd.f32 %v14585_v48, %v6469_v0  ;;  %v7501_v4 = vadd.f32 %v7469_v1, %v7403_v61  ;;  %v6915_v58 = vadd.f32 %v6883_v54, %v6785_v25  ;;  %v7208_v43 = vadd.f32 %v7176_v13, %v7110_v11 }
 0x89a   : > { %v6916_v46 = vadd.f32 %v6884_v36, %v6786_v19 }
 0x89b   : > { %v6633_v31 = vmax.f32 %v6582_v40, 0.0  ;;  %v7013_v12 = vadd.f32 %v6981_v10, %v6915_v58  ;;  %v7498_v40 = vadd.f32 %v7466_v21, %v7400_v52 }
 0x89c   : > { %v6358_v34 = vpop.f32.mrf.mxu2  ;;  %v6471_v47 = vpop.f32.mrf.mxu3  ;;  %v7533_v9 = vld [vmem:[#allocation5 + $0x10a] sm:$0xff]  ;;  %v14670_v16 = vld [vmem:[#allocation5 + $0x112] sm:$0xff] }
 0x89d   : > { %v14655_v2 = vld [vmem:[#allocation5 + $0x110] sm:$0xff]  ;;  %6720 = vst.msk [vmem:[#allocation5 + $0x121] sm:$0xff] %vm2919_vm2, %v6633_v31  ;;  %v6359_v30 = vadd.f32 %v14374_v39, %v6358_v34  ;;  %v7567_v49 = vmul.f32 %v14530_v5, %v7533_v9  ;;  %v7568_v62 = vmul.f32 %v14530_v5, %v14670_v16  ;;  %v7274_v0 = vmul.f32 %v14488_v17, %v7533_v9  ;;  %v6590_v31 = vpop.f32.mrf.mxu1 }
 0x89e   : > { %v14657_v48 = vld [vmem:[#allocation5 + $0x111] sm:$0xff]  ;;  %v7372_v23 = vmul.f32 %v14502_v37, %v14655_v2  ;;  %v7079_v6 = vmul.f32 %v14459_v51, %v14655_v2  ;;  %v6787_v58 = vmul.f32 %v14438_v22, %v14655_v2 }
 0x89f   : > { %v7470_v50 = vmul.f32 %v14516_v60, %v14657_v48  ;;  %v6472_v44 = vadd.f32 %v6471_v47, %v6359_v30  ;;  %v7599_v42 = vadd.f32 %v7567_v49, %v7501_v4  ;;  %v7306_v3 = vadd.f32 %v7274_v0, %v7208_v43 }
 0x8a0   : > { %v7404_v56 = vadd.f32 %v7372_v23, %v7305_v20  ;;  %v7111_v28 = vadd.f32 %v7079_v6, %v7013_v12  ;;  %v7177_v34 = vmul.f32 %v14481_v27, %v14657_v48  ;;  %v7564_v47 = vmul.f32 %v14530_v5, %v14579_v14 }
 0x8a1   : > { %v6585_v32 = vadd.f32 %v6584_v26, %v6472_v44  ;;  %v7667_v57 = vsel %vm2919_vm2, %v7599_v42, 0.0  ;;  %v6982_v23 = vmul.f32 %v14403_v41, %v7533_v9  ;;  %v7275_v14 = vmul.f32 %v14488_v17, %v14670_v16 }
 0x8a2   : > { %v7502_v33 = vadd.f32 %v7470_v50, %v7404_v56  ;;  %7668 = vadd.xlane.f32.xlu1 %v7667_v57  ;;  %v7209_v30 = vadd.f32 %v7177_v34, %v7111_v28  ;;  %v14705_v49 = vadd.f32 %v7564_v47, %v7498_v40  ;;  %v6885_v10 = vmul.f32 %v14445_v63, %v14657_v48 }
 0x8a3   : > { %v6634_v61 = vmax.f32 %v6585_v32, 0.0  ;;  %v7014_v52 = vadd.f32 %v6982_v23, %v6916_v46  ;;  %v6983_v40 = vmul.f32 %v14403_v41, %v14670_v16 }
 0x8a4   : > { %v7600_v35 = vadd.f32 %v7568_v62, %v7502_v33  ;;  %v6361_v15 = vpop.f32.mrf.mxu2  ;;  %v6474_v26 = vpop.f32.mrf.mxu3  ;;  %v14688_v55 = vld [vmem:[#allocation5 + $0x120] sm:$0xff]  ;;  %v7307_v25 = vadd.f32 %v7275_v14, %v7209_v30  ;;  %v6917_v12 = vadd.f32 %v6885_v10, %v6787_v58 }
 0x8a5   : > { %6721 = vst.msk [vmem:[#allocation5 + $0x129] sm:$0xff] %vm2919_vm2, %v6634_v61  ;;  %v6362_v29 = vadd.f32 %v14374_v39, %v6361_v15  ;;  %v7373_v59 = vmul.f32 %v14502_v37, %v14688_v55  ;;  %v14695_v53 = vld [vmem:[#allocation5 + $0x121] sm:$0xff]  ;;  %v6593_v6 = vpop.f32.mrf.mxu1 }
 0x8a6   : > { %v7670_v1 = vsel %vm2919_vm2, %v7600_v35, 0.0  ;;  %v7471_v20 = vmul.f32 %v14516_v60, %v14695_v53  ;;  %v7178_v0 = vmul.f32 %v14481_v27, %v14695_v53  ;;  %v6886_v23 = vmul.f32 %v14445_v63, %v14695_v53 }
 0x8a7   : > { %7671 = vadd.xlane.f32.xlu2 %v7670_v1  ;;  %v6475_v8 = vadd.f32 %v6474_v26, %v6362_v29  ;;  %v7405_v4 = vadd.f32 %v7373_v59, %v7306_v3 }
 0x8a9   : > { %v6588_v45 = vadd.f32 %v6587_v38, %v6475_v8  ;;  %v7503_v7 = vadd.f32 %v7471_v20, %v7405_v4  ;;  %v7080_v38 = vmul.f32 %v14459_v51, %v14688_v55  ;;  %v6788_v20 = vmul.f32 %v14438_v22, %v14688_v55 }
 0x8ab   : > { %v6635_v50 = vmax.f32 %v6588_v45, 0.0  ;;  %v7112_v62 = vadd.f32 %v7080_v38, %v7014_v52 }
 0x8ac   : > { %v6364_v18 = vpop.f32.mrf.mxu2  ;;  %v6477_v13 = vpop.f32.mrf.mxu3  ;;  %v7535_v24 = vld [vmem:[#allocation5 + $0x122] sm:$0xff]  ;;  %v14718_v54 = vld [vmem:[#allocation5 + $0x12a] sm:$0xff] }
 0x8ad   : > { %v7340_v44 = vld [vmem:[#allocation5 + $0x128] sm:$0xff]  ;;  %6722 = vst.msk [vmem:[#allocation5 + $0x139] sm:$0xff] %vm2919_vm2, %v6635_v50  ;;  %v6365_v56 = vadd.f32 %v14374_v39, %v6364_v18  ;;  %v7569_v9 = vmul.f32 %v14530_v5, %v7535_v24  ;;  %v7570_v26 = vmul.f32 %v14530_v5, %v14718_v54  ;;  %v7276_v43 = vmul.f32 %v14488_v17, %v7535_v24  ;;  %v6596_v38 = vpop.f32.mrf.mxu1 }
 0x8ae   : > { %v7438_v42 = vld [vmem:[#allocation5 + $0x129] sm:$0xff]  ;;  %v7374_v11 = vmul.f32 %v14502_v37, %v7340_v44  ;;  %v7081_v2 = vmul.f32 %v14459_v51, %v7340_v44  ;;  %v7210_v3 = vadd.f32 %v7178_v0, %v7112_v62 }
 0x8af   : > { %v6478_v21 = vadd.f32 %v6477_v13, %v6365_v56  ;;  %v7601_v32 = vadd.f32 %v7569_v9, %v7503_v7  ;;  %v7472_v33 = vmul.f32 %v14516_v60, %v7438_v42  ;;  %v7179_v45 = vmul.f32 %v14481_v27, %v7438_v42 }
 0x8b0   : > { %v7406_v57 = vadd.f32 %v7374_v11, %v7307_v25  ;;  %v7308_v16 = vadd.f32 %v7276_v43, %v7210_v3  ;;  %v6984_v13 = vmul.f32 %v14403_v41, %v7535_v24  ;;  %v6789_v7 = vmul.f32 %v14438_v22, %v7340_v44 }
 0x8b1   : > { %v6591_v61 = vadd.f32 %v6590_v31, %v6478_v21  ;;  %v7673_v35 = vsel %vm2919_vm2, %v7601_v32, 0.0  ;;  %v7015_v31 = vadd.f32 %v6983_v40, %v6917_v12  ;;  %v6887_v46 = vmul.f32 %v14445_v63, %v7438_v42 }
 0x8b2   : > { %v7504_v15 = vadd.f32 %v7472_v33, %v7406_v57  ;;  %7674 = vadd.xlane.f32.xlu0 %v7673_v35  ;;  %v7277_v9 = vmul.f32 %v14488_v17, %v14718_v54  ;;  %v6918_v32 = vadd.f32 %v6886_v23, %v6788_v20 }
 0x8b3   : > { %v6636_v29 = vmax.f32 %v6591_v61, 0.0  ;;  %v7113_v4 = vadd.f32 %v7081_v2, %v7015_v31  ;;  %v6919_v58 = vadd.f32 %v6887_v46, %v6789_v7 }
 0x8b4   : > { %v7602_v1 = vadd.f32 %v7570_v26, %v7504_v15  ;;  %v6367_v48 = vpop.f32.mrf.mxu2  ;;  %v6480_v59 = vpop.f32.mrf.mxu3  ;;  %v14734_v28 = vld [vmem:[#allocation5 + $0x138] sm:$0xff]  ;;  %v7016_v0 = vadd.f32 %v6984_v13, %v6918_v32  ;;  %v6985_v26 = vmul.f32 %v14403_v41, %v14718_v54 }
 0x8b5   : > { %6723 = vst.msk [vmem:[#allocation5 + $0x141] sm:$0xff] %vm2919_vm2, %v6636_v29  ;;  %v6368_v8 = vadd.f32 %v14374_v39, %v6367_v48  ;;  %v7375_v47 = vmul.f32 %v14502_v37, %v14734_v28  ;;  %v14741_v36 = vld [vmem:[#allocation5 + $0x139] sm:$0xff]  ;;  %v7211_v14 = vadd.f32 %v7179_v45, %v7113_v4  ;;  %v7082_v57 = vmul.f32 %v14459_v51, %v14734_v28 }
 0x8b6   : > { %v7676_v34 = vsel %vm2919_vm2, %v7602_v1, 0.0  ;;  %v7473_v18 = vmul.f32 %v14516_v60, %v14741_v36  ;;  %v7017_v1 = vadd.f32 %v6985_v26, %v6919_v58  ;;  %v7180_v3 = vmul.f32 %v14481_v27, %v14741_v36 }
 0x8b7   : > { %7677 = vadd.xlane.f32.xlu1 %v7676_v34  ;;  %v6481_v19 = vadd.f32 %v6480_v59, %v6368_v8  ;;  %v7407_v30 = vadd.f32 %v7375_v47, %v7308_v16  ;;  %v7309_v42 = vadd.f32 %v7277_v9, %v7211_v14  ;;  %v7114_v15 = vadd.f32 %v7082_v57, %v7016_v0 }
 0x8b8   : > { %v6790_v13 = vmul.f32 %v14438_v22, %v14734_v28  ;;  %v6888_v7 = vmul.f32 %v14445_v63, %v14741_v36 }
 0x8b9   : > { %v6594_v50 = vadd.f32 %v6593_v6, %v6481_v19  ;;  %v7505_v11 = vadd.f32 %v7473_v18, %v7407_v30  ;;  %v7212_v19 = vadd.f32 %v7180_v3, %v7114_v15  ;;  %v6599_v30 = vpop.f32.mrf.mxu1 }
 0x8bb   : > { %v6637_v56 = vmax.f32 %v6594_v50, 0.0 }
 0x8bc   : > { %v6370_v55 = vpop.f32.mrf.mxu2  ;;  %v6483_v25 = vpop.f32.mrf.mxu3  ;;  %v7537_v53 = vld [vmem:[#allocation5 + $0x13a] sm:$0xff]  ;;  %v14761_v62 = vld [vmem:[#allocation5 + $0x142] sm:$0xff] }
 0x8bd   : > { %v7342_v52 = vld [vmem:[#allocation5 + $0x140] sm:$0xff]  ;;  %6724 = vst.msk [vmem:[#allocation5 + $0x151] sm:$0xff] %vm2919_vm2, %v6637_v56  ;;  %v6371_v24 = vadd.f32 %v14374_v39, %v6370_v55  ;;  %v7571_v44 = vmul.f32 %v14530_v5, %v7537_v53  ;;  %v7572_v29 = vmul.f32 %v14530_v5, %v14761_v62  ;;  %v7278_v31 = vmul.f32 %v14488_v17, %v7537_v53 }
 0x8be   : > { %v7440_v21 = vld [vmem:[#allocation5 + $0x141] sm:$0xff]  ;;  %v7376_v33 = vmul.f32 %v14502_v37, %v7342_v52  ;;  %v7083_v43 = vmul.f32 %v14459_v51, %v7342_v52  ;;  %v7279_v56 = vmul.f32 %v14488_v17, %v14761_v62  ;;  %v6986_v9 = vmul.f32 %v14403_v41, %v7537_v53 }
 0x8bf   : > { %v6484_v10 = vadd.f32 %v6483_v25, %v6371_v24  ;;  %v7603_v6 = vadd.f32 %v7571_v44, %v7505_v11  ;;  %v7474_v35 = vmul.f32 %v14516_v60, %v7440_v21  ;;  %v7181_v20 = vmul.f32 %v14481_v27, %v7440_v21 }
 0x8c0   : > { %v7408_v61 = vadd.f32 %v7376_v33, %v7309_v42  ;;  %v7115_v47 = vadd.f32 %v7083_v43, %v7017_v1  ;;  %v7310_v50 = vadd.f32 %v7278_v31, %v7212_v19  ;;  %v6791_v55 = vmul.f32 %v14438_v22, %v7342_v52 }
 0x8c1   : > { %v6597_v12 = vadd.f32 %v6596_v38, %v6484_v10  ;;  %v7679_v40 = vsel %vm2919_vm2, %v7603_v6, 0.0  ;;  %v6889_v25 = vmul.f32 %v14445_v63, %v7440_v21  ;;  %v6920_v33 = vadd.f32 %v6888_v7, %v6790_v13 }
 0x8c2   : > { %v7506_v2 = vadd.f32 %v7474_v35, %v7408_v61  ;;  %7680 = vadd.xlane.f32.xlu2 %v7679_v40  ;;  %v7213_v18 = vadd.f32 %v7181_v20, %v7115_v47 }
 0x8c3   : > { %v6638_v48 = vmax.f32 %v6597_v12, 0.0  ;;  %v7018_v6 = vadd.f32 %v6986_v9, %v6920_v33  ;;  %v6921_v61 = vadd.f32 %v6889_v25, %v6791_v55  ;;  %v6602_v12 = vpop.f32.mrf.mxu1 }
 0x8c4   : > { %v7604_v59 = vadd.f32 %v7572_v29, %v7506_v2  ;;  %v6373_v8 = vpop.f32.mrf.mxu2  ;;  %v6486_v54 = vpop.f32.mrf.mxu3  ;;  %v14773_v34 = vld [vmem:[#allocation5 + $0x150] sm:$0xff]  ;;  %v7311_v36 = vadd.f32 %v7279_v56, %v7213_v18  ;;  %v6987_v2 = vmul.f32 %v14403_v41, %v14761_v62 }
 0x8c5   : > { %6725 = vst.msk [vmem:[#allocation5 + $0x159] sm:$0xff] %vm2919_vm2, %v6638_v48  ;;  %v6374_v16 = vadd.f32 %v14374_v39, %v6373_v8  ;;  %v7377_v45 = vmul.f32 %v14502_v37, %v14773_v34  ;;  %v14781_v14 = vld [vmem:[#allocation5 + $0x151] sm:$0xff]  ;;  %v7084_v53 = vmul.f32 %v14459_v51, %v14773_v34 }
 0x8c6   : > { %v7682_v4 = vsel %vm2919_vm2, %v7604_v59, 0.0  ;;  %v7475_v32 = vmul.f32 %v14516_v60, %v14781_v14  ;;  %v7182_v3 = vmul.f32 %v14481_v27, %v14781_v14  ;;  %v7019_v47 = vadd.f32 %v6987_v2, %v6921_v61  ;;  %v9193_v2 = vld [vmem:[%s15082_s9 + $0x2] ss:$0 sm:$0xff] }
 0x8c7   : > { %7683 = vadd.xlane.f32.xlu0 %v7682_v4  ;;  %v6487_v23 = vadd.f32 %v6486_v54, %v6374_v16  ;;  %v7409_v38 = vadd.f32 %v7377_v45, %v7310_v50  ;;  %v7116_v40 = vadd.f32 %v7084_v53, %v7018_v6 }
 0x8c9   : > { %v6600_v46 = vadd.f32 %v6599_v30, %v6487_v23  ;;  %v7507_v21 = vadd.f32 %v7475_v32, %v7409_v38  ;;  %v7214_v62 = vadd.f32 %v7182_v3, %v7116_v40 }
 0x8cb   : > { %v6639_v11 = vmax.f32 %v6600_v46, 0.0 }
 0x8cc   : > { %v6376_v57 = vpop.f32.mrf.mxu2  ;;  %v6489_v28 = vpop.f32.mrf.mxu3  ;;  %v14794_v24 = vld [vmem:[#allocation5 + $0x152] sm:$0xff]  ;;  %v14808_v10 = vld [vmem:[#allocation5 + $0x15a] sm:$0xff] }
 0x8cd   : > { %v14796_v44 = vld [vmem:[#allocation5 + $0x158] sm:$0xff]  ;;  %6726 = vst.msk [vmem:[#allocation5 + $0x169] sm:$0xff] %vm2919_vm2, %v6639_v11  ;;  %v6377_v52 = vadd.f32 %v14374_v39, %v6376_v57  ;;  %v7573_v0 = vmul.f32 %v14530_v5, %v14794_v24  ;;  %v7574_v39 = vmul.f32 %v14530_v5, %v14808_v10  ;;  %v7280_v54 = vmul.f32 %v14488_v17, %v14794_v24 }
 0x8ce   : > { %v14798_v42 = vld [vmem:[#allocation5 + $0x159] sm:$0xff]  ;;  %v7378_v58 = vmul.f32 %v14502_v37, %v14796_v44  ;;  %v7085_v59 = vmul.f32 %v14459_v51, %v14796_v44  ;;  %v7281_v46 = vmul.f32 %v14488_v17, %v14808_v10 }
 0x8cf   : > { %v6490_v35 = vadd.f32 %v6489_v28, %v6377_v52  ;;  %v7605_v15 = vadd.f32 %v7573_v0, %v7507_v21  ;;  %v7476_v43 = vmul.f32 %v14516_v60, %v14798_v42  ;;  %v7312_v30 = vadd.f32 %v7280_v54, %v7214_v62 }
 0x8d0   : > { %v7410_v26 = vadd.f32 %v7378_v58, %v7311_v36  ;;  %v7117_v45 = vadd.f32 %v7085_v59, %v7019_v47  ;;  %v7183_v20 = vmul.f32 %v14481_v27, %v14798_v42  ;;  %v9192_v36 = vld [vmem:[%s15081_s8] ss:$0 sm:$0xff] }
 0x8d1   : > { %v6603_v29 = vadd.f32 %v6602_v12, %v6490_v35  ;;  %v7685_v1 = vsel %vm2919_vm2, %v7605_v15, 0.0  ;;  %v6890_v12 = vmul.f32 %v14445_v63, %v14781_v14 }
 0x8d2   : > { %v7508_v48 = vadd.f32 %v7476_v43, %v7410_v26  ;;  %7686 = vadd.xlane.f32.xlu1 %v7685_v1  ;;  %v7215_v18 = vadd.f32 %v7183_v20, %v7117_v45  ;;  %v6792_v43 = vmul.f32 %v14438_v22, %v14773_v34  ;;  %v9194_v1 = vld [vmem:[%s15082_s9] ss:$0 sm:$0xff]  ;;  %v9195_v22 = vld [vmem:[%s15082_s9 + $0x1] ss:$0 sm:$0xff] }
 0x8d3   : > { %v6640_v31 = vmax.f32 %v6603_v29, 0.0  ;;  %v6988_v29 = vmul.f32 %v9193_v2, %v14794_v24  ;;  %v6891_v63 = vmul.f32 %v9195_v22, %v14798_v42  ;;  %v7658_v42 = vsel %vm2919_vm2, %v14705_v49, 0.0  ;;  %v9196_v49 = vld [vmem:[%s15082_s9 + $0x3] ss:$0 sm:$0xff] }
 0x8d4   : > { %v7606_v8 = vadd.f32 %v7574_v39, %v7508_v48  ;;  %v6492_v16 = vpop.f32.mrf.mxu3  ;;  %v7345_v4 = vld [vmem:[#allocation5 + $0x168] sm:$0xff]  ;;  %v6379_v13 = vpop.f32.mrf.mxu2  ;;  %v7313_v32 = vadd.f32 %v7281_v46, %v7215_v18  ;;  %v6793_v48 = vmul.f32 %v9194_v1, %v14796_v44  ;;  %v6922_v59 = vadd.f32 %v6890_v12, %v6792_v43 }
 0x8d5   : > { %6727 = vst.msk [vmem:[#allocation5 + $0x171] sm:$0xff] %vm2919_vm2, %v6640_v31  ;;  %v7379_v19 = vmul.f32 %v14502_v37, %v7345_v4  ;;  %v7443_v23 = vld [vmem:[#allocation5 + $0x169] sm:$0xff]  ;;  %v6380_v33 = vadd.f32 %v9192_v36, %v6379_v13  ;;  %v7086_v3 = vmul.f32 %v14459_v51, %v7345_v4  ;;  %v6989_v44 = vmul.f32 %v9193_v2, %v14808_v10 }
 0x8d6   : > { %v7688_v41 = vsel %vm2919_vm2, %v7606_v8, 0.0  ;;  %v7477_v7 = vmul.f32 %v14516_v60, %v7443_v23  ;;  %v7020_v24 = vadd.f32 %v6988_v29, %v6922_v59  ;;  %v6923_v31 = vadd.f32 %v6891_v63, %v6793_v48  ;;  %v7545_v48 = vld [vmem:[#allocation5 + $0x19a] sm:$0xff] }
 0x8d7   : > { %7689 = vadd.xlane.f32.xlu2 %v7688_v41  ;;  %v7411_v50 = vadd.f32 %v7379_v19, %v7312_v30  ;;  %v6493_v61 = vadd.f32 %v6492_v16, %v6380_v33  ;;  %v6794_v62 = vmul.f32 %v9194_v1, %v7345_v4  ;;  %v6892_v19 = vmul.f32 %v9195_v22, %v7443_v23  ;;  %v7349_v33 = vld [vmem:[#allocation5 + $0x198] sm:$0xff] }
 0x8d8   : > { %v7118_v47 = vadd.f32 %v7086_v3, %v7020_v24  ;;  %v7184_v45 = vmul.f32 %v14481_v27, %v7443_v23  ;;  %v7021_v20 = vadd.f32 %v6989_v44, %v6923_v31  ;;  %v7579_v24 = vmul.f32 %v14530_v5, %v7545_v48 }
 0x8d9   : > { %v7509_v25 = vadd.f32 %v7477_v7, %v7411_v50  ;;  %v6924_v46 = vadd.f32 %v6892_v19, %v6794_v62 }
 0x8da   : > { %v7216_v13 = vadd.f32 %v7184_v45, %v7118_v47 }
 0x8dc   : > { %v6495_v38 = vpop.f32.mrf.mxu3  ;;  %v7541_v56 = vld [vmem:[#allocation5 + $0x16a] sm:$0xff]  ;;  %v14838_v28 = vld [vmem:[#allocation5 + $0x172] sm:$0xff]  ;;  %v6382_v15 = vpop.f32.mrf.mxu2 }
 0x8dd   : > { %v14831_v9 = vld [vmem:[#allocation5 + $0x170] sm:$0xff]  ;;  %v7575_v11 = vmul.f32 %v14530_v5, %v7541_v56  ;;  %v7576_v6 = vmul.f32 %v14530_v5, %v14838_v28  ;;  %v6383_v34 = vadd.f32 %v9192_v36, %v6382_v15  ;;  %v7282_v30 = vmul.f32 %v14488_v17, %v7541_v56 }
 0x8de   : > { %v14833_v55 = vld [vmem:[#allocation5 + $0x171] sm:$0xff]  ;;  %v7380_v57 = vmul.f32 %v14502_v37, %v14831_v9  ;;  %v7087_v16 = vmul.f32 %v14459_v51, %v14831_v9  ;;  %v6990_v18 = vmul.f32 %v9193_v2, %v7541_v56  ;;  %v6795_v23 = vmul.f32 %v9194_v1, %v14831_v9 }
 0x8df   : > { %v7607_v53 = vadd.f32 %v7575_v11, %v7509_v25  ;;  %v7478_v21 = vmul.f32 %v14516_v60, %v14833_v55  ;;  %v6496_v8 = vadd.f32 %v6495_v38, %v6383_v34  ;;  %v7314_v38 = vadd.f32 %v7282_v30, %v7216_v13 }
 0x8e0   : > { %v7412_v52 = vadd.f32 %v7380_v57, %v7313_v32  ;;  %v7119_v10 = vadd.f32 %v7087_v16, %v7021_v20  ;;  %v7185_v17 = vmul.f32 %v14481_v27, %v14833_v55  ;;  %v6893_v56 = vmul.f32 %v9195_v22, %v14833_v55  ;;  %v9198_v27 = vld [vmem:[%s15082_s9 + $0x4] ss:$0 sm:$0xff]  ;;  %v7447_v55 = vld [vmem:[#allocation5 + $0x199] sm:$0xff] }
 0x8e1   : > { %v7691_v0 = vsel %vm2919_vm2, %v7607_v53, 0.0  ;;  %v7022_v11 = vadd.f32 %v6990_v18, %v6924_v46  ;;  %v6991_v43 = vmul.f32 %v9193_v2, %v14838_v28  ;;  %v7481_v63 = vmul.f32 %v14516_v60, %v7447_v55  ;;  %v7350_v2 = vld [vmem:[#allocation5 + $0x1a0] sm:$0xff] }
 0x8e2   : > { %v7510_v58 = vadd.f32 %v7478_v21, %v7412_v52  ;;  %7692 = vadd.xlane.f32.xlu0 %v7691_v0  ;;  %v7217_v57 = vadd.f32 %v7185_v17, %v7119_v10  ;;  %v9197_v52 = vld [vmem:[%s15082_s9 + $0x5] ss:$0 sm:$0xff]  ;;  %v6925_v0 = vadd.f32 %v6893_v56, %v6795_v23  ;;  %v9201_v10 = vld [vmem:[%s15082_s9 + $0x8] ss:$0 sm:$0xff]  ;;  %v7618_v17 = vpop.xlane.xlu1 %7617  ;;  %v7621_v56 = vpop.xlane.xlu2 %7620 }
 0x8e3   : > { %v7283_v21 = vmul.f32 %v9197_v52, %v14838_v28 }
 0x8e4   : > { %v7608_v35 = vadd.f32 %v7576_v6, %v7510_v58  ;;  %v6605_v26 = vpop.f32.mrf.mxu3  ;;  %v7023_v34 = vadd.f32 %v6991_v43, %v6925_v0 }
 0x8e5   : > { %v6606_v39 = vadd.f32 %v6605_v26, %v6493_v61  ;;  %v7315_v61 = vadd.f32 %v7283_v21, %v7217_v57  ;;  %v7383_v26 = vmul.f32 %v14502_v37, %v7349_v33 }
 0x8e6   : > { %v7694_v40 = vsel %vm2919_vm2, %v7608_v35, 0.0 }
 0x8e7   : > { %7695 = vadd.xlane.f32.xlu1 %v7694_v40  ;;  %v6641_v14 = vmax.f32 %v6606_v39, 0.0  ;;  %v9199_v39 = vld [vmem:[%s15082_s9 + $0x6] ss:$0 sm:$0xff] }
 0x8e8   : > { %v7384_v19 = vmul.f32 %v9199_v39, %v7350_v2 }
 0x8e9   : > { %6728 = vst.msk [vmem:[#allocation5 + $0x181] sm:$0xff] %vm2919_vm2, %v6641_v14 }
 0x8ea   : > { %v7630_v23 = vpop.xlane.xlu1 %7629 }
 0x8ec   : > { %v6608_v54 = vpop.f32.mrf.mxu3 }
 0x8ed   : > { %v6609_v41 = vadd.f32 %v6608_v54, %v6496_v8 }
 0x8ef   : > { %7659 = vadd.xlane.f32.xlu1 %v7658_v42  ;;  %v6642_v50 = vmax.f32 %v6609_v41, 0.0  ;;  %v7448_v41 = vld [vmem:[#allocation5 + $0x1a1] sm:$0xff] }
 0x8f0   : > { %v7347_v7 = vld [vmem:[#allocation5 + $0x180] sm:$0xff] }
 0x8f1   : > { %6729 = vst.msk [vmem:[#allocation5 + $0x189] sm:$0xff] %vm2919_vm2, %v6642_v50  ;;  %v7381_v51 = vmul.f32 %v14502_v37, %v7347_v7  ;;  %v7088_v4 = vmul.f32 %v9196_v49, %v7347_v7  ;;  %v7445_v25 = vld [vmem:[#allocation5 + $0x181] sm:$0xff]  ;;  %v9200_v50 = vld [vmem:[%s15082_s9 + $0x7] ss:$0 sm:$0xff] }
 0x8f2   : > { %v7479_v53 = vmul.f32 %v14516_v60, %v7445_v25  ;;  %v7186_v9 = vmul.f32 %v9198_v27, %v7445_v25  ;;  %v7482_v18 = vmul.f32 %v9200_v50, %v7448_v41  ;;  %v7639_v25 = vpop.xlane.xlu1 %7638 }
 0x8f3   : > { %v7413_v32 = vadd.f32 %v7381_v51, %v7314_v38  ;;  %v7120_v36 = vadd.f32 %v7088_v4, %v7022_v11  ;;  %v7615_v11 = vpop.xlane.xlu0 %7614 }
 0x8f5   : > { %v7511_v58 = vadd.f32 %v7479_v53, %v7413_v32  ;;  %v7218_v29 = vadd.f32 %v7186_v9, %v7120_v36  ;;  %v7624_v32 = vpop.xlane.xlu2 %7623 }
 0x8f8   : > { %v7543_v6 = vld [vmem:[#allocation5 + $0x182] sm:$0xff]  ;;  %v7544_v22 = vld [vmem:[#allocation5 + $0x18a] sm:$0xff] }
 0x8f9   : > { %v7348_v35 = vld [vmem:[#allocation5 + $0x188] sm:$0xff]  ;;  %v7577_v12 = vmul.f32 %v14530_v5, %v7543_v6  ;;  %v7284_v1 = vmul.f32 %v9197_v52, %v7543_v6  ;;  %v7578_v44 = vmul.f32 %v14530_v5, %v7544_v22  ;;  %v7285_v62 = vmul.f32 %v9197_v52, %v7544_v22 }
 0x8fa   : > { %v7446_v15 = vld [vmem:[#allocation5 + $0x189] sm:$0xff]  ;;  %v7382_v40 = vmul.f32 %v9199_v39, %v7348_v35  ;;  %v7089_v14 = vmul.f32 %v9196_v49, %v7348_v35  ;;  %v7648_v57 = vpop.xlane.xlu1 %7647  ;;  %v7775_v6 = vlaneseq }
 0x8fb   : > { %v7609_v59 = vadd.f32 %v7577_v12, %v7511_v58  ;;  %v7480_v37 = vmul.f32 %v14516_v60, %v7446_v15  ;;  %v7316_v28 = vadd.f32 %v7284_v1, %v7218_v29  ;;  %v7187_v8 = vmul.f32 %v9198_v27, %v7446_v15  ;;  %v7546_v60 = vld [vmem:[#allocation5 + $0x1a2] sm:$0xff]  ;;  %v7627_v36 = vpop.xlane.xlu0 %7626 }
 0x8fc   : > { %v7414_v3 = vadd.f32 %v7382_v40, %v7315_v61  ;;  %v7121_v31 = vadd.f32 %v7089_v14, %v7023_v34  ;;  %v7580_v51 = vmul.f32 %v9201_v10, %v7546_v60  ;;  %v14919_v15 = vand.u32 127, %v7775_v6 }
 0x8fd   : > { %v7697_v54 = vsel %vm2919_vm2, %v7609_v59, 0.0  ;;  %v7415_v16 = vadd.f32 %v7383_v26, %v7316_v28  ;;  %v7633_v33 = vpop.xlane.xlu2 %7632  ;;  %v14921_v26 = vstv %s7709_s30 }
 0x8fe   : > { %v7512_v47 = vadd.f32 %v7480_v37, %v7414_v3  ;;  %7698 = vadd.xlane.f32.xlu2 %v7697_v54  ;;  %v7219_v42 = vadd.f32 %v7187_v8, %v7121_v31  ;;  %v14926_v12 = vadd.s32 4294967288, %v14919_v15  ;;  %v7712_v39 = vadd.f32 %v14921_v26, %v7618_v17 }
 0x8ff   : > { %v7513_v30 = vadd.f32 %v7481_v63, %v7415_v16  ;;  %v7714_v40 = vadd.f32 %v14921_v26, %v7624_v32  ;;  %v7716_v29 = vadd.f32 %v14921_v26, %v7630_v23  ;;  %v7711_v1 = vadd.f32 %v14921_v26, %v7615_v11 }
 0x900   : > { %v7610_v45 = vadd.f32 %v7578_v44, %v7512_v47  ;;  %v7317_v20 = vadd.f32 %v7285_v62, %v7219_v42  ;;  %v7713_v48 = vadd.f32 %v14921_v26, %v7621_v56  ;;  %v7715_v63 = vadd.f32 %v14921_v26, %v7627_v36 }
 0x901   : > { %v7611_v7 = vadd.f32 %v7579_v24, %v7513_v30  ;;  %v7779_v3 = vperm.slane %v7712_v39, %v14926_v12  ;;  %v7783_v37 = vperm.slane %v7714_v40, %v14926_v12  ;;  %v7717_v28 = vadd.f32 %v14921_v26, %v7633_v33 }
 0x902   : > { %v7700_v13 = vsel %vm2919_vm2, %v7610_v45, 0.0  ;;  %v7416_v5 = vadd.f32 %v7384_v19, %v7317_v20  ;;  %v7657_v53 = vpop.xlane.xlu1 %7656  ;;  %v7722_v2 = vadd.f32 %v14921_v26, %v7648_v57  ;;  %v7786_v24 = vperm.slane %v7716_v29, %v14926_v12 }
 0x903   : > { %7701 = vadd.xlane.f32.xlu0 %v7700_v13  ;;  %v7703_v49 = vsel %vm2919_vm2, %v7611_v7, 0.0  ;;  %v7636_v52 = vpop.xlane.xlu0 %7635  ;;  %v7719_v31 = vadd.f32 %v14921_v26, %v7639_v25  ;;  %v7777_v54 = vperm.slane %v7711_v1, %v14919_v15  ;;  %v7782_v47 = vperm.slane %v7713_v48, %v14919_v15 }
 0x904   : > { %v7514_v46 = vadd.f32 %v7482_v18, %v7416_v5  ;;  %v7718_v22 = vadd.f32 %v14921_v26, %v7636_v52  ;;  %v7785_v41 = vperm.slane %v7715_v63, %v14919_v15  ;;  %v7788_v60 = vperm.slane %v7717_v28, %v14919_v15 }
 0x905   : > { %v7642_v21 = vpop.xlane.xlu2 %7641  ;;  %v7781_v45 = vsel %vm7780_vm11, %v7779_v3, %v7777_v54  ;;  %v7784_v30 = vsel %vm7780_vm11, %v7783_v37, %v7782_v47  ;;  %v7795_v20 = vperm.slane %v7722_v2, %v14926_v12  ;;  %v7791_v18 = vperm.slane %v7719_v31, %v14919_v15 }
 0x906   : > { %7704 = vadd.xlane.f32.xlu2 %v7703_v49  ;;  %v7612_v4 = vadd.f32 %v7580_v51, %v7514_v46  ;;  %v7720_v34 = vadd.f32 %v14921_v26, %v7642_v21  ;;  %v7789_v44 = vperm.slane %v7718_v22, %v14926_v12  ;;  %v7787_v50 = vsel %vm7780_vm11, %v7786_v24, %v7785_v41 }
 0x907   : > { %v7725_v10 = vadd.f32 %v14921_v26, %v7657_v53  ;;  %v7828_v51 = vsel %vm7827_vm12, %v7784_v30, %v7781_v45 }
 0x908   : > { %v7706_v38 = vsel %vm2919_vm2, %v7612_v4, 0.0  ;;  %v7792_v42 = vperm.slane %v7720_v34, %v14926_v12  ;;  %v7790_v7 = vsel %vm7780_vm11, %v7789_v44, %v7788_v60  ;;  %v7830_v17 = vsel %vm7829_vm13, %v7787_v50, %v7828_v51 }
 0x909   : > { %v7832_v25 = vsel %vm7831_vm14, %v7790_v7, %v7830_v17  ;;  %v7800_v57 = vperm.slane %v7725_v10, %v14919_v15 }
 0x90a   : > { %v7793_v46 = vsel %vm7780_vm11, %v7792_v42, %v7791_v18 }
 0x90b   : > { %7707 = vadd.xlane.f32.xlu0 %v7706_v38  ;;  %v7645_v27 = vpop.xlane.xlu0 %7644  ;;  %v7834_v32 = vsel %vm7833_vm15, %v7793_v46, %v7832_v25 }
 0x90c   : > { %v7721_v16 = vadd.f32 %v14921_v26, %v7645_v27 }
 0x90d   : > { %v7651_v9 = vpop.xlane.xlu2 %7650 }
 0x90e   : > { %v7723_v62 = vadd.f32 %v14921_v26, %v7651_v9  ;;  %v7794_v5 = vperm.slane %v7721_v16, %v14919_v15 }
 0x910   : > { %v7797_v49 = vperm.slane %v7723_v62, %v14919_v15  ;;  %v7796_v23 = vsel %vm7780_vm11, %v7795_v20, %v7794_v5 }
 0x911   : > { %v7836_v33 = vsel %vm7835_vm0, %v7796_v23, %v7834_v32 }
 0x913   : > { %v7654_v58 = vpop.xlane.xlu0 %7653 }
 0x914   : > { %v7724_v8 = vadd.f32 %v14921_v26, %v7654_v58 }
 0x915   : > { %v14911_v0 = vpop.xlane.xlu1 %7668  ;;  %v14915_v61 = vpop.xlane.xlu2 %7662 }
 0x916   : > { %v7798_v13 = vperm.slane %v7724_v8, %v14926_v12  ;;  %v7729_v1 = vadd.f32 %v14921_v26, %v14911_v0 }
 0x918   : > { %v7799_v11 = vsel %vm7780_vm11, %v7798_v13, %v7797_v49  ;;  %v7806_v24 = vperm.slane %v7729_v1, %v14919_v15 }
 0x919   : > { %v7838_v52 = vsel %vm7837_vm1, %v7799_v11, %v7836_v33 }
 0x91b   : > { %v14923_v43 = vpop.xlane.xlu0 %7665 }
 0x91c   : > { %v7728_v29 = vadd.f32 %v14921_v26, %v14923_v43 }
 0x91d   : > { %v7672_v14 = vpop.xlane.xlu2 %7671 }
 0x91e   : > { %v7730_v39 = vadd.f32 %v14921_v26, %v7672_v14  ;;  %v7727_v14 = vadd.f32 %v14921_v26, %v14915_v61  ;;  %v7804_v2 = vperm.slane %v7728_v29, %v14926_v12 }
 0x920   : > { %v7807_v3 = vperm.slane %v7730_v39, %v14926_v12 }
 0x922   : > { %v7808_v44 = vsel %vm7780_vm11, %v7807_v3, %v7806_v24 }
 0x925   : > { %v7675_v19 = vpop.xlane.xlu0 %7674 }
 0x926   : > { %v7731_v22 = vadd.f32 %v14921_v26, %v7675_v19 }
 0x928   : > { %v7809_v8 = vperm.slane %v7731_v22, %v14919_v15 }
 0x92a   : > { %v14913_v55 = vpop.xlane.xlu1 %7677 }
 0x92b   : > { %v7732_v40 = vadd.f32 %v14921_v26, %v14913_v55 }
 0x92d   : > { %v7810_v0 = vperm.slane %v7732_v40, %v14926_v12 }
 0x92f   : > { %v7811_v42 = vsel %vm7780_vm11, %v7810_v0, %v7809_v8 }
 0x935   : > { %v7681_v4 = vpop.xlane.xlu2 %7680 }
 0x936   : > { %v7733_v55 = vadd.f32 %v14921_v26, %v7681_v4 }
 0x938   : > { %v7812_v16 = vperm.slane %v7733_v55, %v14919_v15 }
 0x93a   : > { %v7684_v53 = vpop.xlane.xlu0 %7683 }
 0x93b   : > { %v7734_v48 = vadd.f32 %v14921_v26, %v7684_v53 }
 0x93d   : > { %v7813_v61 = vperm.slane %v7734_v48, %v14926_v12 }
 0x93f   : > { %v7814_v30 = vsel %vm7780_vm11, %v7813_v61, %v7812_v16 }
 0x945   : > { %v14917_v35 = vpop.xlane.xlu1 %7686 }
 0x946   : > { %v7735_v37 = vadd.f32 %v14921_v26, %v14917_v35  ;;  %v7803_v35 = vperm.slane %v7727_v14, %v14919_v15 }
 0x948   : > { %v7815_v62 = vperm.slane %v7735_v37, %v14919_v15  ;;  %v7805_v45 = vsel %vm7780_vm11, %v7804_v2, %v7803_v35 }
 0x949   : > { %v7841_v50 = vsel %vm7827_vm12, %v7808_v44, %v7805_v45 }
 0x94a   : > { %v7690_v9 = vpop.xlane.xlu2 %7689  ;;  %v7842_v5 = vsel %vm7829_vm13, %v7811_v42, %v7841_v50 }
 0x94b   : > { %v7736_v63 = vadd.f32 %v14921_v26, %v7690_v9  ;;  %v7843_v46 = vsel %vm7831_vm14, %v7814_v30, %v7842_v5 }
 0x955   : > { %v7693_v58 = vpop.xlane.xlu0 %7692 }
 0x956   : > { %v7737_v31 = vadd.f32 %v14921_v26, %v7693_v58 }
 0x958   : > { %v7818_v60 = vperm.slane %v7737_v31, %v14919_v15 }
 0x95a   : > { %v14936_v59 = vpop.xlane.xlu1 %7695 }
 0x95b   : > { %v7738_v43 = vadd.f32 %v14921_v26, %v14936_v59  ;;  %v7816_v59 = vperm.slane %v7736_v63, %v14926_v12 }
 0x95d   : > { %v7819_v41 = vperm.slane %v7738_v43, %v14926_v12  ;;  %v7817_v18 = vsel %vm7780_vm11, %v7816_v59, %v7815_v62 }
 0x95e   : > { %v7844_v4 = vsel %vm7833_vm15, %v7817_v18, %v7843_v46 }
 0x95f   : > { %v7820_v10 = vsel %vm7780_vm11, %v7819_v41, %v7818_v60 }
 0x960   : > { %v7845_v23 = vsel %vm7835_vm0, %v7820_v10, %v7844_v4 }
 0x962   : > { %v7660_v38 = vpop.xlane.xlu1 %7659 }
 0x963   : > { %v7726_v56 = vadd.f32 %v14921_v26, %v7660_v38 }
 0x965   : > { %v7801_v36 = vperm.slane %v7726_v56, %v14926_v12 }
 0x967   : > { %v7802_v21 = vsel %vm7780_vm11, %v7801_v36, %v7800_v57 }
 0x968   : > { %v7840_v27 = vsel %vm7839_vm3, %v7802_v21, %v7838_v52 }
 0x969   : > { %7850 = vst.msk [vmem:[%s14980_s22] sm:$0xff] %vm2919_vm2, %v7840_v27 }
 0x971   : > { %v7699_v6 = vpop.xlane.xlu2 %7698 }
 0x972   : > { %v7739_v54 = vadd.f32 %v14921_v26, %v7699_v6 }
 0x974   : > { %v7821_v13 = vperm.slane %v7739_v54, %v14919_v15 }
 0x976   : > { %v7702_v34 = vpop.xlane.xlu0 %7701 }
 0x977   : > { %v7740_v28 = vadd.f32 %v14921_v26, %v7702_v34 }
 0x979   : > { %v7705_v47 = vpop.xlane.xlu2 %7704  ;;  %v7822_v19 = vperm.slane %v7740_v28, %v14926_v12 }
 0x97a   : > { %v7741_v20 = vadd.f32 %v14921_v26, %v7705_v47 }
 0x97b   : > { %v7823_v49 = vsel %vm7780_vm11, %v7822_v19, %v7821_v13 }
 0x97c   : > { %v7824_v38 = vperm.slane %v7741_v20, %v14919_v15  ;;  %v7846_v56 = vsel %vm7837_vm1, %v7823_v49, %v7845_v23 }
 0x97e   : > { %v7708_v7 = vpop.xlane.xlu0 %7707 }
 0x97f   : > { %v7742_v51 = vadd.f32 %v14921_v26, %v7708_v7 }
 0x981   : > { %v7825_v17 = vperm.slane %v7742_v51, %v14926_v12 }
 0x983   : > { %v7826_v26 = vsel %vm7780_vm11, %v7825_v17, %v7824_v38 }
 0x984   : > { %v7847_v25 = vsel %vm7839_vm3, %v7826_v26, %v7846_v56 }
 0x985   : > { %7851 = vst.msk [vmem:[%s14980_s22 + $0x8] sm:$0xff] %vm2919_vm2, %v7847_v25 }
 0x986   : > { %9244 = shalt.err (!%p9241_p8)
}
 0x987   : > { %s9295_s11 = smov 128   ;;  %s9296_s22 = smov 8  }
 0x988   : > { %8036 = dma.vmem_to_hbm [thread:$0]  (%p9393_p5), %s7866_s29, 256, %s7868_s12, %s7853_s21, %s9295_s11, %s9295_s11, %s9296_s22  }
 0x989 PF: > { %p8048_p9 = scmp.ge.s32.totalorder %s9283_s18, 2  ;;  %s7882_s28 = sand.u32 1, %s9271_s15  }
 0x98a   : > { %s7883_s30 = scalar_lea.sflag [#allocation8], %s7882_s28 }
 0x98b   : > { %p8043_p10 = pnand %p8048_p9, %p9397_p6 }
 0x98d   : > { %p8044_p11 = pneg %p8043_p10 }
 0x98f   : > { %9266 = dma.done.wait (%p8044_p11), %s7883_s30, 256  }
 0x990   : > { %9268 = vsyncadd (%p8044_p11), %s7883_s30, 4294967040  ;;  %p22_p12 = scmp.ge.s32.totalorder %s9380_s20, 4   ;;  %s15806_s15 = smov %s9275_s16 }
 0x991   : > { %s15807_s16 = smov %s9279_s17  ;;  %s15808_s17 = smov %s9391_s23 }
 0x992   : > { %s15809_s18 = smov %s9380_s20  ;;  %24 = sbr.rel (!%p22_p12) target bundleno = 6 (0x6), region = 108 }
 0x997   :  { %7889 = vsyncpa [#allocation8], 1 }
 0x998   :  { %7891 = vsyncpa [#allocation8 + $0x1], 1 }
 0x999   :  { %7892 = vsyncpa [#allocation9], 1 }
 0x99a   :  { %7894 = vsyncpa [#allocation9 + $0x1], 1 }

</bundles_post_ra>
